<compile_context>
chip_gen: v7x
topology: tpu7x:2x2x1
jax: 0.10.0
libtpu: 0.0.40
codegen_flags: <defaults>
</compile_context>

<pallas_src>
import numpy as np
import jax
import jax.numpy as jnp
from jax.experimental import pallas as pl
from jax.experimental.pallas import tpu as pltpu


_CONST_KEYS = ("wc1", "bc1", "r1e", "r1o",
               "wc2", "bc2", "r2e", "r2o",
               "wf1", "bf1", "wf2", "bf2", "wf3", "bf3")


# ----------------------------------------------------------------------------
# The fused kernel: one batch tile (B images) per grid step
# ----------------------------------------------------------------------------
def _net_kernel(x_ref,
                wc1_ref, bc1_ref, r1e_ref, r1o_ref,
                wc2_ref, bc2_ref, r2e_ref, r2o_ref,
                wf1_ref, bf1_ref, wf2_ref, bf2_ref, wf3_ref, bf3_ref,
                o_ref):
    cd = wc1_ref.dtype                      # MXU operand dtype (bf16 or f32)

    def mm(a, b):                           # f32 accumulation on the MXU
        return jnp.dot(a.astype(cd), b.astype(cd),
                       preferred_element_type=jnp.float32)

    # Hoist constant loads out of the per-image loop.
    wc1 = wc1_ref[...]                      # (96, 180)  fused conv1 Toeplitz
    wc2 = wc2_ref[...]                      # (537, 208) fused conv2 Toeplitz (col-pool folded)
    r1e, r1o = r1e_ref[...], r1o_ref[...]   # (15, 30) row-parity selectors
    r2e, r2o = r2e_ref[...], r2o_ref[...]   # (6, 13)
    bc1, bc2 = bc1_ref[...], bc2_ref[...]   # (1,180), (1,208) f32 biases

    B = x_ref.shape[0]
    feats = []
    for b in range(B):                      # unrolled: independent chains
        xb = x_ref[b]                                                   # (32, 32)

        # conv1: ONE fused width-Toeplitz matmul, cols = oc*30 + ow
        lhs1 = jnp.concatenate([xb[0:30, :], xb[1:31, :], xb[2:32, :]], axis=1)
        out1 = mm(lhs1, wc1) + bc1                                      # (30, 180)

        # 2x2 maxpool + ReLU: rows via even/odd selector matmuls,
        # cols via shifted pairwise max (even-col selection folded into wc2).
        rmax1 = jnp.maximum(mm(r1e, out1), mm(r1o, out1))               # (15, 180)
        m1 = jnp.maximum(jnp.maximum(rmax1[:, :179], rmax1[:, 1:180]), 0.0)  # (15, 179)

        # conv2: ONE fused matmul, cols = oc*13 + ow
        lhs2 = jnp.concatenate([m1[0:13, :], m1[1:14, :], m1[2:15, :]], axis=1)
        out2 = mm(lhs2, wc2) + bc2                                      # (13, 208)

        rmax2 = jnp.maximum(mm(r2e, out2), mm(r2o, out2))               # (6, 208)
        m2 = jnp.maximum(jnp.maximum(rmax2[:, :207], rmax2[:, 1:208]), 0.0)  # (6, 207)

        # Per-image feature row (PyTorch flatten order handled in the fc1 prep).
        feats.append(jnp.concatenate([m2[h:h + 1, :] for h in range(6)],
                                     axis=1))                           # (1, 1242)

    # FC section: batch stacked along M, 128-padded lanes (pads stay exactly 0).
    f = jnp.concatenate(feats, axis=0)                                  # (B, 1242)
    y = jnp.maximum(mm(f, wf1_ref[...]) + bf1_ref[...], 0.0)            # (B, 128)
    y = jnp.maximum(mm(y, wf2_ref[...]) + bf2_ref[...], 0.0)            # (B, 128)
    y = mm(y, wf3_ref[...]) + bf3_ref[...]                              # (B, 128)
    o_ref[...] = y                                   # wrapper slices [:, :10]


# ----------------------------------------------------------------------------
# Host-side (one-time) parameter preparation
# ----------------------------------------------------------------------------
def _conv1_toeplitz(w, b):
    """Fused conv1 Toeplitz: W[ki*32 + (ow+kj), oc*30 + ow] = w[oc,0,ki,kj]."""
    oc, iw, ow = 6, 32, 30
    W = np.zeros((3 * iw, oc * ow), np.float32)
    for ki in range(3):
        for c in range(oc):
            for o in range(ow):
                for kj in range(3):
                    W[ki * iw + o + kj, c * ow + o] = w[c, 0, ki, kj]
    bias = np.zeros((1, oc * ow), np.float32)
    for c in range(oc):
        bias[0, c * ow:(c + 1) * ow] = b[c]
    return W, bias


def _conv2_toeplitz_folded(w, b):
    """Fused conv2 Toeplitz with the pool-1 even-column selection folded in.

    Input lanes are m1 columns (cin*30 + col, pairwise-maxed, width 179);
    pooled column j of channel ci lives at lane ci*30 + 2j.
    W[ki*179 + ci*30 + 2*(ow+kj), oc*13 + ow] = w[oc,ci,ki,kj].
    """
    oc, cin, L, ow = 16, 6, 179, 13
    W = np.zeros((3 * L, oc * ow), np.float32)
    for ki in range(3):
        for c in range(oc):
            for ci in range(cin):
                for o in range(ow):
                    for kj in range(3):
                        W[ki * L + ci * 30 + 2 * (o + kj), c * ow + o] = w[c, ci, ki, kj]
    bias = np.zeros((1, oc * ow), np.float32)
    for c in range(oc):
        bias[0, c * ow:(c + 1) * ow] = b[c]
    return W, bias


def _row_selectors(out_rows, in_rows):
    e = np.zeros((out_rows, in_rows), np.float32)
    o = np.zeros((out_rows, in_rows), np.float32)
    for i in range(out_rows):
        e[i, 2 * i] = 1.0
        o[i, 2 * i + 1] = 1.0
    return e, o


def prepare_params(params, compute_dtype=jnp.bfloat16):
    P = {k: np.asarray(v, np.float32) for k, v in params.items()}

    wc1, bc1 = _conv1_toeplitz(P["conv1_w"], P["conv1_b"])      # (96,180),(1,180)
    wc2, bc2 = _conv2_toeplitz_folded(P["conv2_w"], P["conv2_b"])  # (537,208),(1,208)
    r1e, r1o = _row_selectors(15, 30)
    r2e, r2o = _row_selectors(6, 13)

    # fc1 with the pool-2 even-column selection folded in.  Per-image feature
    # lane = h*207 + cin*13 + col; PyTorch flatten index = c*36 + h*6 + j with
    # pooled column j at lane c*13 + 2j.
    fc1w = P["fc1_w"]                                            # (120, 576)
    wf1 = np.zeros((6 * 207, 128), np.float32)
    for h in range(6):
        for c in range(16):
            for j in range(6):
                wf1[h * 207 + c * 13 + 2 * j, :120] = fc1w[:, c * 36 + h * 6 + j]
    bf1 = np.zeros((1, 128), np.float32); bf1[0, :120] = P["fc1_b"]

    wf2 = np.zeros((128, 128), np.float32); wf2[:120, :84] = P["fc2_w"].T
    bf2 = np.zeros((1, 128), np.float32); bf2[0, :84] = P["fc2_b"]
    wf3 = np.zeros((128, 128), np.float32); wf3[:84, :10] = P["fc3_w"].T
    bf3 = np.zeros((1, 128), np.float32); bf3[0, :10] = P["fc3_b"]

    mats = dict(wc1=wc1, r1e=r1e, r1o=r1o, wc2=wc2, r2e=r2e, r2o=r2o,
                wf1=wf1, wf2=wf2, wf3=wf3)
    biases = dict(bc1=bc1, bc2=bc2, bf1=bf1, bf2=bf2, bf3=bf3)
    out = {k: jnp.asarray(v, compute_dtype) for k, v in mats.items()}
    out.update({k: jnp.asarray(v, jnp.float32) for k, v in biases.items()})
    return out


# ----------------------------------------------------------------------------
# Forward wrapper: one pallas_call per forward, B_TILE images per grid step
# ----------------------------------------------------------------------------
def net_forward(prepped, x, block_b=8):
    n = x.shape[0]
    xs = x.reshape(n, 32, 32)                       # squeeze the channel dim
    n_pad = (-(-n // block_b)) * block_b
    if n_pad != n:
        xs = jnp.pad(xs, ((0, n_pad - n), (0, 0), (0, 0)))
    consts = [prepped[k] for k in _CONST_KEYS]

    def const_spec(a):
        nd = a.ndim
        return pl.BlockSpec(a.shape, lambda i, _nd=nd: (0,) * _nd)

    grid_spec = pltpu.PrefetchScalarGridSpec(
        num_scalar_prefetch=0,
        grid=(n_pad // block_b,),
        in_specs=[pl.BlockSpec((block_b, 32, 32), lambda i: (i, 0, 0))]
                 + [const_spec(a) for a in consts],
        out_specs=pl.BlockSpec((block_b, 128), lambda i: (i, 0)),
    )
    out = pl.pallas_call(
        _net_kernel,
        out_shape=jax.ShapeDtypeStruct((n_pad, 128), jnp.float32),
        grid_spec=grid_spec,
        compiler_params=pltpu.CompilerParams(
            dimension_semantics=("parallel",)),
    )(xs, *consts)
    return out[:n, :10]


# ----------------------------------------------------------------------------
# Parameter init (PyTorch-style uniform) and a pure-JAX reference
# ----------------------------------------------------------------------------
def init_params(key):
    ks = jax.random.split(key, 10)

    def uni(k, shape, fan_in):
        bound = 1.0 / jnp.sqrt(fan_in)
        return jax.random.uniform(k, shape, jnp.float32, -bound, bound)

    return {
        "conv1_w": uni(ks[0], (6, 1, 3, 3), 1 * 3 * 3),
        "conv1_b": uni(ks[1], (6,), 1 * 3 * 3),
        "conv2_w": uni(ks[2], (16, 6, 3, 3), 6 * 3 * 3),
        "conv2_b": uni(ks[3], (16,), 6 * 3 * 3),
        "fc1_w": uni(ks[4], (120, 576), 576),
        "fc1_b": uni(ks[5], (120,), 576),
        "fc2_w": uni(ks[6], (84, 120), 120),
        "fc2_b": uni(ks[7], (84,), 120),
        "fc3_w": uni(ks[8], (10, 84), 84),
        "fc3_b": uni(ks[9], (10,), 84),
    }


def net_forward_ref(params, x):
    prec = jax.lax.Precision.HIGHEST

    def conv_relu(x, w, b):
        oc, cin, kh, kw = w.shape
        n, _, ih, iw = x.shape
        oh, ow = ih - kh + 1, iw - kw + 1
        cols = []
        for ci in range(cin):
            for ki in range(kh):
                for kj in range(kw):
                    cols.append(x[:, ci, ki:ki + oh, kj:kj + ow])
        p = jnp.stack(cols, axis=-1).reshape(n * oh * ow, cin * kh * kw)
        y = jnp.dot(p, w.reshape(oc, -1).T, precision=prec) + b[None, :]
        y = jnp.maximum(y, 0.0)
        return y.reshape(n, oh, ow, oc).transpose(0, 3, 1, 2)

    def pool(x):
        n, c, h, w = x.shape
        oh, ow = h // 2, w // 2
        xt = x[:, :, :2 * oh, :2 * ow].reshape(n, c, oh, 2, ow, 2)
        return xt.max(axis=(3, 5))

    x = pool(conv_relu(x, params["conv1_w"], params["conv1_b"]))
    x = pool(conv_relu(x, params["conv2_w"], params["conv2_b"]))
    x = x.reshape(x.shape[0], -1)
    x = jnp.maximum(jnp.dot(x, params["fc1_w"].T, precision=prec) + params["fc1_b"], 0.0)
    x = jnp.maximum(jnp.dot(x, params["fc2_w"].T, precision=prec) + params["fc2_b"], 0.0)
    return jnp.dot(x, params["fc3_w"].T, precision=prec) + params["fc3_b"]


if __name__ == "__main__":
    key = jax.random.PRNGKey(0)
    pkey, xkey = jax.random.split(key)
    params = init_params(pkey)
    x = jax.random.normal(xkey, (2, 1, 32, 32), jnp.float32)

    ref = jax.block_until_ready(net_forward_ref(params, x))
    fwd = jax.jit(net_forward)

    # f32 build: tight check that the Toeplitz / selector-folding / fc prep is exact.
    prepped_f32 = prepare_params(params, jnp.float32)
    out_f32 = jax.block_until_ready(fwd(prepped_f32, x))
    assert out_f32.shape == (2, 10), out_f32.shape
    assert jnp.allclose(out_f32, ref, atol=1e-3, rtol=1e-3), float(
        jnp.max(jnp.abs(out_f32 - ref)))

    # bf16-MXU build (steady-state perf config); tolerance sized for bf16
    # operand rounding through 5 matmul layers.
    prepped_bf16 = prepare_params(params, jnp.bfloat16)
    out_bf16 = jax.block_until_ready(fwd(prepped_bf16, x))
    assert out_bf16.shape == (2, 10), out_bf16.shape
    assert jnp.allclose(out_bf16, ref, atol=5e-2, rtol=5e-2), float(
        jnp.max(jnp.abs(out_bf16 - ref)))

    print("KERNEL_OK")
</pallas_src>

<mosaic_0001>
module attributes {stable_mosaic.version = 11 : i64} {
  func.func @_net_kernel(%arg0: i32, %arg1: memref<8x32x32xf32, #tpu.memory_space<vmem>>, %arg2: memref<96x180xf32, #tpu.memory_space<vmem>>, %arg3: memref<1x180xf32, #tpu.memory_space<vmem>>, %arg4: memref<15x30xf32, #tpu.memory_space<vmem>>, %arg5: memref<15x30xf32, #tpu.memory_space<vmem>>, %arg6: memref<537x208xf32, #tpu.memory_space<vmem>>, %arg7: memref<1x208xf32, #tpu.memory_space<vmem>>, %arg8: memref<6x13xf32, #tpu.memory_space<vmem>>, %arg9: memref<6x13xf32, #tpu.memory_space<vmem>>, %arg10: memref<1242x128xf32, #tpu.memory_space<vmem>>, %arg11: memref<1x128xf32, #tpu.memory_space<vmem>>, %arg12: memref<128x128xf32, #tpu.memory_space<vmem>>, %arg13: memref<1x128xf32, #tpu.memory_space<vmem>>, %arg14: memref<128x128xf32, #tpu.memory_space<vmem>>, %arg15: memref<1x128xf32, #tpu.memory_space<vmem>>, %arg16: memref<8x128xf32, #tpu.memory_space<vmem>>) attributes {dimension_semantics = [#tpu.dimension_semantics<parallel>], iteration_bounds = array<i64: 1>, scalar_prefetch = 0 : i64, scratch_operands = 0 : i64, tpu.core_type = #tpu.core_type<tc>, window_params = [{transform_indices = @transform_0, window_bounds = array<i64: 8, 32, 32>}, {pipeline_mode = #tpu.pipeline_mode<synchronous>, transform_indices = @transform_1, window_bounds = array<i64: 96, 180>}, {pipeline_mode = #tpu.pipeline_mode<synchronous>, transform_indices = @transform_2, window_bounds = array<i64: 1, 180>}, {pipeline_mode = #tpu.pipeline_mode<synchronous>, transform_indices = @transform_3, window_bounds = array<i64: 15, 30>}, {pipeline_mode = #tpu.pipeline_mode<synchronous>, transform_indices = @transform_4, window_bounds = array<i64: 15, 30>}, {pipeline_mode = #tpu.pipeline_mode<synchronous>, transform_indices = @transform_5, window_bounds = array<i64: 537, 208>}, {pipeline_mode = #tpu.pipeline_mode<synchronous>, transform_indices = @transform_6, window_bounds = array<i64: 1, 208>}, {pipeline_mode = #tpu.pipeline_mode<synchronous>, transform_indices = @transform_7, window_bounds = array<i64: 6, 13>}, {pipeline_mode = #tpu.pipeline_mode<synchronous>, transform_indices = @transform_8, window_bounds = array<i64: 6, 13>}, {pipeline_mode = #tpu.pipeline_mode<synchronous>, transform_indices = @transform_9, window_bounds = array<i64: 1242, 128>}, {pipeline_mode = #tpu.pipeline_mode<synchronous>, transform_indices = @transform_10, window_bounds = array<i64: 1, 128>}, {pipeline_mode = #tpu.pipeline_mode<synchronous>, transform_indices = @transform_11, window_bounds = array<i64: 128, 128>}, {pipeline_mode = #tpu.pipeline_mode<synchronous>, transform_indices = @transform_12, window_bounds = array<i64: 1, 128>}, {pipeline_mode = #tpu.pipeline_mode<synchronous>, transform_indices = @transform_13, window_bounds = array<i64: 128, 128>}, {pipeline_mode = #tpu.pipeline_mode<synchronous>, transform_indices = @transform_14, window_bounds = array<i64: 1, 128>}, {transform_indices = @transform_15, window_bounds = array<i64: 8, 128>}]} {
    %c0 = arith.constant 0 : index
    %c0_0 = arith.constant 0 : index
    %0 = vector.load %arg2[%c0, %c0_0] : memref<96x180xf32, #tpu.memory_space<vmem>>, vector<96x180xf32>
    %c0_1 = arith.constant 0 : index
    %c0_2 = arith.constant 0 : index
    %1 = vector.load %arg6[%c0_1, %c0_2] : memref<537x208xf32, #tpu.memory_space<vmem>>, vector<537x208xf32>
    %c0_3 = arith.constant 0 : index
    %c0_4 = arith.constant 0 : index
    %2 = vector.load %arg4[%c0_3, %c0_4] : memref<15x30xf32, #tpu.memory_space<vmem>>, vector<15x30xf32>
    %c0_5 = arith.constant 0 : index
    %c0_6 = arith.constant 0 : index
    %3 = vector.load %arg5[%c0_5, %c0_6] : memref<15x30xf32, #tpu.memory_space<vmem>>, vector<15x30xf32>
    %c0_7 = arith.constant 0 : index
    %c0_8 = arith.constant 0 : index
    %4 = vector.load %arg8[%c0_7, %c0_8] : memref<6x13xf32, #tpu.memory_space<vmem>>, vector<6x13xf32>
    %c0_9 = arith.constant 0 : index
    %c0_10 = arith.constant 0 : index
    %5 = vector.load %arg9[%c0_9, %c0_10] : memref<6x13xf32, #tpu.memory_space<vmem>>, vector<6x13xf32>
    %c0_11 = arith.constant 0 : index
    %c0_12 = arith.constant 0 : index
    %6 = vector.load %arg3[%c0_11, %c0_12] : memref<1x180xf32, #tpu.memory_space<vmem>>, vector<1x180xf32>
    %c0_13 = arith.constant 0 : index
    %c0_14 = arith.constant 0 : index
    %7 = vector.load %arg7[%c0_13, %c0_14] : memref<1x208xf32, #tpu.memory_space<vmem>>, vector<1x208xf32>
    %c0_15 = arith.constant 0 : index
    %c0_16 = arith.constant 0 : index
    %c0_17 = arith.constant 0 : index
    %8 = vector.load %arg1[%c0_15, %c0_16, %c0_17] : memref<8x32x32xf32, #tpu.memory_space<vmem>>, vector<1x32x32xf32>
    %9 = vector.shape_cast %8 : vector<1x32x32xf32> to vector<32x32xf32>
    %10 = vector.extract_strided_slice %9 {offsets = [0, 0], sizes = [30, 32], strides = [1, 1]} : vector<32x32xf32> to vector<30x32xf32>
    %11 = vector.extract_strided_slice %9 {offsets = [1, 0], sizes = [30, 32], strides = [1, 1]} : vector<32x32xf32> to vector<30x32xf32>
    %12 = vector.extract_strided_slice %9 {offsets = [2, 0], sizes = [30, 32], strides = [1, 1]} : vector<32x32xf32> to vector<30x32xf32>
    %13 = tpu.concatenate %10, %11, %12 in 1 : vector<30x32xf32>, vector<30x32xf32>, vector<30x32xf32> -> vector<30x96xf32>
    %cst = arith.constant dense<0.000000e+00> : vector<30x180xf32>
    %14 = tpu.matmul %13, %0, %cst {dimension_numbers = #tpu.dot_dimension_numbers<[1], [0], [0], [1], [0, 0, 1, 1], [], []>} : vector<30x96xf32>, vector<96x180xf32>, vector<30x180xf32> -> vector<30x180xf32>
    %15 = vector.broadcast %6 : vector<1x180xf32> to vector<30x180xf32>
    %16 = arith.addf %14, %15 : vector<30x180xf32>
    %cst_18 = arith.constant dense<0.000000e+00> : vector<15x180xf32>
    %17 = tpu.matmul %2, %16, %cst_18 {dimension_numbers = #tpu.dot_dimension_numbers<[1], [0], [0], [1], [0, 0, 1, 1], [], []>} : vector<15x30xf32>, vector<30x180xf32>, vector<15x180xf32> -> vector<15x180xf32>
    %cst_19 = arith.constant dense<0.000000e+00> : vector<15x180xf32>
    %18 = tpu.matmul %3, %16, %cst_19 {dimension_numbers = #tpu.dot_dimension_numbers<[1], [0], [0], [1], [0, 0, 1, 1], [], []>} : vector<15x30xf32>, vector<30x180xf32>, vector<15x180xf32> -> vector<15x180xf32>
    %19 = arith.maximumf %17, %18 : vector<15x180xf32>
    %20 = vector.extract_strided_slice %19 {offsets = [0, 0], sizes = [15, 179], strides = [1, 1]} : vector<15x180xf32> to vector<15x179xf32>
    %21 = vector.extract_strided_slice %19 {offsets = [0, 1], sizes = [15, 179], strides = [1, 1]} : vector<15x180xf32> to vector<15x179xf32>
    %22 = arith.maximumf %20, %21 : vector<15x179xf32>
    %cst_20 = arith.constant 0.000000e+00 : f32
    %23 = vector.broadcast %cst_20 : f32 to vector<15x179xf32>
    %24 = arith.maximumf %22, %23 : vector<15x179xf32>
    %25 = vector.extract_strided_slice %24 {offsets = [0, 0], sizes = [13, 179], strides = [1, 1]} : vector<15x179xf32> to vector<13x179xf32>
    %26 = vector.extract_strided_slice %24 {offsets = [1, 0], sizes = [13, 179], strides = [1, 1]} : vector<15x179xf32> to vector<13x179xf32>
    %27 = vector.extract_strided_slice %24 {offsets = [2, 0], sizes = [13, 179], strides = [1, 1]} : vector<15x179xf32> to vector<13x179xf32>
    %28 = tpu.concatenate %25, %26, %27 in 1 : vector<13x179xf32>, vector<13x179xf32>, vector<13x179xf32> -> vector<13x537xf32>
    %cst_21 = arith.constant dense<0.000000e+00> : vector<13x208xf32>
    %29 = tpu.matmul %28, %1, %cst_21 {dimension_numbers = #tpu.dot_dimension_numbers<[1], [0], [0], [1], [0, 0, 1, 1], [], []>} : vector<13x537xf32>, vector<537x208xf32>, vector<13x208xf32> -> vector<13x208xf32>
    %30 = vector.broadcast %7 : vector<1x208xf32> to vector<13x208xf32>
    %31 = arith.addf %29, %30 : vector<13x208xf32>
    %cst_22 = arith.constant dense<0.000000e+00> : vector<6x208xf32>
    %32 = tpu.matmul %4, %31, %cst_22 {dimension_numbers = #tpu.dot_dimension_numbers<[1], [0], [0], [1], [0, 0, 1, 1], [], []>} : vector<6x13xf32>, vector<13x208xf32>, vector<6x208xf32> -> vector<6x208xf32>
    %cst_23 = arith.constant dense<0.000000e+00> : vector<6x208xf32>
    %33 = tpu.matmul %5, %31, %cst_23 {dimension_numbers = #tpu.dot_dimension_numbers<[1], [0], [0], [1], [0, 0, 1, 1], [], []>} : vector<6x13xf32>, vector<13x208xf32>, vector<6x208xf32> -> vector<6x208xf32>
    %34 = arith.maximumf %32, %33 : vector<6x208xf32>
    %35 = vector.extract_strided_slice %34 {offsets = [0, 0], sizes = [6, 207], strides = [1, 1]} : vector<6x208xf32> to vector<6x207xf32>
    %36 = vector.extract_strided_slice %34 {offsets = [0, 1], sizes = [6, 207], strides = [1, 1]} : vector<6x208xf32> to vector<6x207xf32>
    %37 = arith.maximumf %35, %36 : vector<6x207xf32>
    %cst_24 = arith.constant 0.000000e+00 : f32
    %38 = vector.broadcast %cst_24 : f32 to vector<6x207xf32>
    %39 = arith.maximumf %37, %38 : vector<6x207xf32>
    %40 = vector.extract_strided_slice %39 {offsets = [0, 0], sizes = [1, 207], strides = [1, 1]} : vector<6x207xf32> to vector<1x207xf32>
    %41 = vector.extract_strided_slice %39 {offsets = [1, 0], sizes = [1, 207], strides = [1, 1]} : vector<6x207xf32> to vector<1x207xf32>
    %42 = vector.extract_strided_slice %39 {offsets = [2, 0], sizes = [1, 207], strides = [1, 1]} : vector<6x207xf32> to vector<1x207xf32>
    %43 = vector.extract_strided_slice %39 {offsets = [3, 0], sizes = [1, 207], strides = [1, 1]} : vector<6x207xf32> to vector<1x207xf32>
    %44 = vector.extract_strided_slice %39 {offsets = [4, 0], sizes = [1, 207], strides = [1, 1]} : vector<6x207xf32> to vector<1x207xf32>
    %45 = vector.extract_strided_slice %39 {offsets = [5, 0], sizes = [1, 207], strides = [1, 1]} : vector<6x207xf32> to vector<1x207xf32>
    %46 = tpu.concatenate %40, %41, %42, %43, %44, %45 in 1 : vector<1x207xf32>, vector<1x207xf32>, vector<1x207xf32>, vector<1x207xf32>, vector<1x207xf32>, vector<1x207xf32> -> vector<1x1242xf32>
    %c1 = arith.constant 1 : index
    %c0_25 = arith.constant 0 : index
    %c0_26 = arith.constant 0 : index
    %47 = vector.load %arg1[%c1, %c0_25, %c0_26] : memref<8x32x32xf32, #tpu.memory_space<vmem>>, vector<1x32x32xf32>
    %48 = vector.shape_cast %47 : vector<1x32x32xf32> to vector<32x32xf32>
    %49 = vector.extract_strided_slice %48 {offsets = [0, 0], sizes = [30, 32], strides = [1, 1]} : vector<32x32xf32> to vector<30x32xf32>
    %50 = vector.extract_strided_slice %48 {offsets = [1, 0], sizes = [30, 32], strides = [1, 1]} : vector<32x32xf32> to vector<30x32xf32>
    %51 = vector.extract_strided_slice %48 {offsets = [2, 0], sizes = [30, 32], strides = [1, 1]} : vector<32x32xf32> to vector<30x32xf32>
    %52 = tpu.concatenate %49, %50, %51 in 1 : vector<30x32xf32>, vector<30x32xf32>, vector<30x32xf32> -> vector<30x96xf32>
    %cst_27 = arith.constant dense<0.000000e+00> : vector<30x180xf32>
    %53 = tpu.matmul %52, %0, %cst_27 {dimension_numbers = #tpu.dot_dimension_numbers<[1], [0], [0], [1], [0, 0, 1, 1], [], []>} : vector<30x96xf32>, vector<96x180xf32>, vector<30x180xf32> -> vector<30x180xf32>
    %54 = vector.broadcast %6 : vector<1x180xf32> to vector<30x180xf32>
    %55 = arith.addf %53, %54 : vector<30x180xf32>
    %cst_28 = arith.constant dense<0.000000e+00> : vector<15x180xf32>
    %56 = tpu.matmul %2, %55, %cst_28 {dimension_numbers = #tpu.dot_dimension_numbers<[1], [0], [0], [1], [0, 0, 1, 1], [], []>} : vector<15x30xf32>, vector<30x180xf32>, vector<15x180xf32> -> vector<15x180xf32>
    %cst_29 = arith.constant dense<0.000000e+00> : vector<15x180xf32>
    %57 = tpu.matmul %3, %55, %cst_29 {dimension_numbers = #tpu.dot_dimension_numbers<[1], [0], [0], [1], [0, 0, 1, 1], [], []>} : vector<15x30xf32>, vector<30x180xf32>, vector<15x180xf32> -> vector<15x180xf32>
    %58 = arith.maximumf %56, %57 : vector<15x180xf32>
    %59 = vector.extract_strided_slice %58 {offsets = [0, 0], sizes = [15, 179], strides = [1, 1]} : vector<15x180xf32> to vector<15x179xf32>
    %60 = vector.extract_strided_slice %58 {offsets = [0, 1], sizes = [15, 179], strides = [1, 1]} : vector<15x180xf32> to vector<15x179xf32>
    %61 = arith.maximumf %59, %60 : vector<15x179xf32>
    %cst_30 = arith.constant 0.000000e+00 : f32
    %62 = vector.broadcast %cst_30 : f32 to vector<15x179xf32>
    %63 = arith.maximumf %61, %62 : vector<15x179xf32>
    %64 = vector.extract_strided_slice %63 {offsets = [0, 0], sizes = [13, 179], strides = [1, 1]} : vector<15x179xf32> to vector<13x179xf32>
    %65 = vector.extract_strided_slice %63 {offsets = [1, 0], sizes = [13, 179], strides = [1, 1]} : vector<15x179xf32> to vector<13x179xf32>
    %66 = vector.extract_strided_slice %63 {offsets = [2, 0], sizes = [13, 179], strides = [1, 1]} : vector<15x179xf32> to vector<13x179xf32>
    %67 = tpu.concatenate %64, %65, %66 in 1 : vector<13x179xf32>, vector<13x179xf32>, vector<13x179xf32> -> vector<13x537xf32>
    %cst_31 = arith.constant dense<0.000000e+00> : vector<13x208xf32>
    %68 = tpu.matmul %67, %1, %cst_31 {dimension_numbers = #tpu.dot_dimension_numbers<[1], [0], [0], [1], [0, 0, 1, 1], [], []>} : vector<13x537xf32>, vector<537x208xf32>, vector<13x208xf32> -> vector<13x208xf32>
    %69 = vector.broadcast %7 : vector<1x208xf32> to vector<13x208xf32>
    %70 = arith.addf %68, %69 : vector<13x208xf32>
    %cst_32 = arith.constant dense<0.000000e+00> : vector<6x208xf32>
    %71 = tpu.matmul %4, %70, %cst_32 {dimension_numbers = #tpu.dot_dimension_numbers<[1], [0], [0], [1], [0, 0, 1, 1], [], []>} : vector<6x13xf32>, vector<13x208xf32>, vector<6x208xf32> -> vector<6x208xf32>
    %cst_33 = arith.constant dense<0.000000e+00> : vector<6x208xf32>
    %72 = tpu.matmul %5, %70, %cst_33 {dimension_numbers = #tpu.dot_dimension_numbers<[1], [0], [0], [1], [0, 0, 1, 1], [], []>} : vector<6x13xf32>, vector<13x208xf32>, vector<6x208xf32> -> vector<6x208xf32>
    %73 = arith.maximumf %71, %72 : vector<6x208xf32>
    %74 = vector.extract_strided_slice %73 {offsets = [0, 0], sizes = [6, 207], strides = [1, 1]} : vector<6x208xf32> to vector<6x207xf32>
    %75 = vector.extract_strided_slice %73 {offsets = [0, 1], sizes = [6, 207], strides = [1, 1]} : vector<6x208xf32> to vector<6x207xf32>
    %76 = arith.maximumf %74, %75 : vector<6x207xf32>
    %cst_34 = arith.constant 0.000000e+00 : f32
    %77 = vector.broadcast %cst_34 : f32 to vector<6x207xf32>
    %78 = arith.maximumf %76, %77 : vector<6x207xf32>
    %79 = vector.extract_strided_slice %78 {offsets = [0, 0], sizes = [1, 207], strides = [1, 1]} : vector<6x207xf32> to vector<1x207xf32>
    %80 = vector.extract_strided_slice %78 {offsets = [1, 0], sizes = [1, 207], strides = [1, 1]} : vector<6x207xf32> to vector<1x207xf32>
    %81 = vector.extract_strided_slice %78 {offsets = [2, 0], sizes = [1, 207], strides = [1, 1]} : vector<6x207xf32> to vector<1x207xf32>
    %82 = vector.extract_strided_slice %78 {offsets = [3, 0], sizes = [1, 207], strides = [1, 1]} : vector<6x207xf32> to vector<1x207xf32>
    %83 = vector.extract_strided_slice %78 {offsets = [4, 0], sizes = [1, 207], strides = [1, 1]} : vector<6x207xf32> to vector<1x207xf32>
    %84 = vector.extract_strided_slice %78 {offsets = [5, 0], sizes = [1, 207], strides = [1, 1]} : vector<6x207xf32> to vector<1x207xf32>
    %85 = tpu.concatenate %79, %80, %81, %82, %83, %84 in 1 : vector<1x207xf32>, vector<1x207xf32>, vector<1x207xf32>, vector<1x207xf32>, vector<1x207xf32>, vector<1x207xf32> -> vector<1x1242xf32>
    %c2 = arith.constant 2 : index
    %c0_35 = arith.constant 0 : index
    %c0_36 = arith.constant 0 : index
    %86 = vector.load %arg1[%c2, %c0_35, %c0_36] : memref<8x32x32xf32, #tpu.memory_space<vmem>>, vector<1x32x32xf32>
    %87 = vector.shape_cast %86 : vector<1x32x32xf32> to vector<32x32xf32>
    %88 = vector.extract_strided_slice %87 {offsets = [0, 0], sizes = [30, 32], strides = [1, 1]} : vector<32x32xf32> to vector<30x32xf32>
    %89 = vector.extract_strided_slice %87 {offsets = [1, 0], sizes = [30, 32], strides = [1, 1]} : vector<32x32xf32> to vector<30x32xf32>
    %90 = vector.extract_strided_slice %87 {offsets = [2, 0], sizes = [30, 32], strides = [1, 1]} : vector<32x32xf32> to vector<30x32xf32>
    %91 = tpu.concatenate %88, %89, %90 in 1 : vector<30x32xf32>, vector<30x32xf32>, vector<30x32xf32> -> vector<30x96xf32>
    %cst_37 = arith.constant dense<0.000000e+00> : vector<30x180xf32>
    %92 = tpu.matmul %91, %0, %cst_37 {dimension_numbers = #tpu.dot_dimension_numbers<[1], [0], [0], [1], [0, 0, 1, 1], [], []>} : vector<30x96xf32>, vector<96x180xf32>, vector<30x180xf32> -> vector<30x180xf32>
    %93 = vector.broadcast %6 : vector<1x180xf32> to vector<30x180xf32>
    %94 = arith.addf %92, %93 : vector<30x180xf32>
    %cst_38 = arith.constant dense<0.000000e+00> : vector<15x180xf32>
    %95 = tpu.matmul %2, %94, %cst_38 {dimension_numbers = #tpu.dot_dimension_numbers<[1], [0], [0], [1], [0, 0, 1, 1], [], []>} : vector<15x30xf32>, vector<30x180xf32>, vector<15x180xf32> -> vector<15x180xf32>
    %cst_39 = arith.constant dense<0.000000e+00> : vector<15x180xf32>
    %96 = tpu.matmul %3, %94, %cst_39 {dimension_numbers = #tpu.dot_dimension_numbers<[1], [0], [0], [1], [0, 0, 1, 1], [], []>} : vector<15x30xf32>, vector<30x180xf32>, vector<15x180xf32> -> vector<15x180xf32>
    %97 = arith.maximumf %95, %96 : vector<15x180xf32>
    %98 = vector.extract_strided_slice %97 {offsets = [0, 0], sizes = [15, 179], strides = [1, 1]} : vector<15x180xf32> to vector<15x179xf32>
    %99 = vector.extract_strided_slice %97 {offsets = [0, 1], sizes = [15, 179], strides = [1, 1]} : vector<15x180xf32> to vector<15x179xf32>
    %100 = arith.maximumf %98, %99 : vector<15x179xf32>
    %cst_40 = arith.constant 0.000000e+00 : f32
    %101 = vector.broadcast %cst_40 : f32 to vector<15x179xf32>
    %102 = arith.maximumf %100, %101 : vector<15x179xf32>
    %103 = vector.extract_strided_slice %102 {offsets = [0, 0], sizes = [13, 179], strides = [1, 1]} : vector<15x179xf32> to vector<13x179xf32>
    %104 = vector.extract_strided_slice %102 {offsets = [1, 0], sizes = [13, 179], strides = [1, 1]} : vector<15x179xf32> to vector<13x179xf32>
    %105 = vector.extract_strided_slice %102 {offsets = [2, 0], sizes = [13, 179], strides = [1, 1]} : vector<15x179xf32> to vector<13x179xf32>
    %106 = tpu.concatenate %103, %104, %105 in 1 : vector<13x179xf32>, vector<13x179xf32>, vector<13x179xf32> -> vector<13x537xf32>
    %cst_41 = arith.constant dense<0.000000e+00> : vector<13x208xf32>
    %107 = tpu.matmul %106, %1, %cst_41 {dimension_numbers = #tpu.dot_dimension_numbers<[1], [0], [0], [1], [0, 0, 1, 1], [], []>} : vector<13x537xf32>, vector<537x208xf32>, vector<13x208xf32> -> vector<13x208xf32>
    %108 = vector.broadcast %7 : vector<1x208xf32> to vector<13x208xf32>
    %109 = arith.addf %107, %108 : vector<13x208xf32>
    %cst_42 = arith.constant dense<0.000000e+00> : vector<6x208xf32>
    %110 = tpu.matmul %4, %109, %cst_42 {dimension_numbers = #tpu.dot_dimension_numbers<[1], [0], [0], [1], [0, 0, 1, 1], [], []>} : vector<6x13xf32>, vector<13x208xf32>, vector<6x208xf32> -> vector<6x208xf32>
    %cst_43 = arith.constant dense<0.000000e+00> : vector<6x208xf32>
    %111 = tpu.matmul %5, %109, %cst_43 {dimension_numbers = #tpu.dot_dimension_numbers<[1], [0], [0], [1], [0, 0, 1, 1], [], []>} : vector<6x13xf32>, vector<13x208xf32>, vector<6x208xf32> -> vector<6x208xf32>
    %112 = arith.maximumf %110, %111 : vector<6x208xf32>
    %113 = vector.extract_strided_slice %112 {offsets = [0, 0], sizes = [6, 207], strides = [1, 1]} : vector<6x208xf32> to vector<6x207xf32>
    %114 = vector.extract_strided_slice %112 {offsets = [0, 1], sizes = [6, 207], strides = [1, 1]} : vector<6x208xf32> to vector<6x207xf32>
    %115 = arith.maximumf %113, %114 : vector<6x207xf32>
    %cst_44 = arith.constant 0.000000e+00 : f32
    %116 = vector.broadcast %cst_44 : f32 to vector<6x207xf32>
    %117 = arith.maximumf %115, %116 : vector<6x207xf32>
    %118 = vector.extract_strided_slice %117 {offsets = [0, 0], sizes = [1, 207], strides = [1, 1]} : vector<6x207xf32> to vector<1x207xf32>
    %119 = vector.extract_strided_slice %117 {offsets = [1, 0], sizes = [1, 207], strides = [1, 1]} : vector<6x207xf32> to vector<1x207xf32>
    %120 = vector.extract_strided_slice %117 {offsets = [2, 0], sizes = [1, 207], strides = [1, 1]} : vector<6x207xf32> to vector<1x207xf32>
    %121 = vector.extract_strided_slice %117 {offsets = [3, 0], sizes = [1, 207], strides = [1, 1]} : vector<6x207xf32> to vector<1x207xf32>
    %122 = vector.extract_strided_slice %117 {offsets = [4, 0], sizes = [1, 207], strides = [1, 1]} : vector<6x207xf32> to vector<1x207xf32>
    %123 = vector.extract_strided_slice %117 {offsets = [5, 0], sizes = [1, 207], strides = [1, 1]} : vector<6x207xf32> to vector<1x207xf32>
    %124 = tpu.concatenate %118, %119, %120, %121, %122, %123 in 1 : vector<1x207xf32>, vector<1x207xf32>, vector<1x207xf32>, vector<1x207xf32>, vector<1x207xf32>, vector<1x207xf32> -> vector<1x1242xf32>
    %c3 = arith.constant 3 : index
    %c0_45 = arith.constant 0 : index
    %c0_46 = arith.constant 0 : index
    %125 = vector.load %arg1[%c3, %c0_45, %c0_46] : memref<8x32x32xf32, #tpu.memory_space<vmem>>, vector<1x32x32xf32>
    %126 = vector.shape_cast %125 : vector<1x32x32xf32> to vector<32x32xf32>
    %127 = vector.extract_strided_slice %126 {offsets = [0, 0], sizes = [30, 32], strides = [1, 1]} : vector<32x32xf32> to vector<30x32xf32>
    %128 = vector.extract_strided_slice %126 {offsets = [1, 0], sizes = [30, 32], strides = [1, 1]} : vector<32x32xf32> to vector<30x32xf32>
    %129 = vector.extract_strided_slice %126 {offsets = [2, 0], sizes = [30, 32], strides = [1, 1]} : vector<32x32xf32> to vector<30x32xf32>
    %130 = tpu.concatenate %127, %128, %129 in 1 : vector<30x32xf32>, vector<30x32xf32>, vector<30x32xf32> -> vector<30x96xf32>
    %cst_47 = arith.constant dense<0.000000e+00> : vector<30x180xf32>
    %131 = tpu.matmul %130, %0, %cst_47 {dimension_numbers = #tpu.dot_dimension_numbers<[1], [0], [0], [1], [0, 0, 1, 1], [], []>} : vector<30x96xf32>, vector<96x180xf32>, vector<30x180xf32> -> vector<30x180xf32>
    %132 = vector.broadcast %6 : vector<1x180xf32> to vector<30x180xf32>
    %133 = arith.addf %131, %132 : vector<30x180xf32>
    %cst_48 = arith.constant dense<0.000000e+00> : vector<15x180xf32>
    %134 = tpu.matmul %2, %133, %cst_48 {dimension_numbers = #tpu.dot_dimension_numbers<[1], [0], [0], [1], [0, 0, 1, 1], [], []>} : vector<15x30xf32>, vector<30x180xf32>, vector<15x180xf32> -> vector<15x180xf32>
    %cst_49 = arith.constant dense<0.000000e+00> : vector<15x180xf32>
    %135 = tpu.matmul %3, %133, %cst_49 {dimension_numbers = #tpu.dot_dimension_numbers<[1], [0], [0], [1], [0, 0, 1, 1], [], []>} : vector<15x30xf32>, vector<30x180xf32>, vector<15x180xf32> -> vector<15x180xf32>
    %136 = arith.maximumf %134, %135 : vector<15x180xf32>
    %137 = vector.extract_strided_slice %136 {offsets = [0, 0], sizes = [15, 179], strides = [1, 1]} : vector<15x180xf32> to vector<15x179xf32>
    %138 = vector.extract_strided_slice %136 {offsets = [0, 1], sizes = [15, 179], strides = [1, 1]} : vector<15x180xf32> to vector<15x179xf32>
    %139 = arith.maximumf %137, %138 : vector<15x179xf32>
    %cst_50 = arith.constant 0.000000e+00 : f32
    %140 = vector.broadcast %cst_50 : f32 to vector<15x179xf32>
    %141 = arith.maximumf %139, %140 : vector<15x179xf32>
    %142 = vector.extract_strided_slice %141 {offsets = [0, 0], sizes = [13, 179], strides = [1, 1]} : vector<15x179xf32> to vector<13x179xf32>
    %143 = vector.extract_strided_slice %141 {offsets = [1, 0], sizes = [13, 179], strides = [1, 1]} : vector<15x179xf32> to vector<13x179xf32>
    %144 = vector.extract_strided_slice %141 {offsets = [2, 0], sizes = [13, 179], strides = [1, 1]} : vector<15x179xf32> to vector<13x179xf32>
    %145 = tpu.concatenate %142, %143, %144 in 1 : vector<13x179xf32>, vector<13x179xf32>, vector<13x179xf32> -> vector<13x537xf32>
    %cst_51 = arith.constant dense<0.000000e+00> : vector<13x208xf32>
    %146 = tpu.matmul %145, %1, %cst_51 {dimension_numbers = #tpu.dot_dimension_numbers<[1], [0], [0], [1], [0, 0, 1, 1], [], []>} : vector<13x537xf32>, vector<537x208xf32>, vector<13x208xf32> -> vector<13x208xf32>
    %147 = vector.broadcast %7 : vector<1x208xf32> to vector<13x208xf32>
    %148 = arith.addf %146, %147 : vector<13x208xf32>
    %cst_52 = arith.constant dense<0.000000e+00> : vector<6x208xf32>
    %149 = tpu.matmul %4, %148, %cst_52 {dimension_numbers = #tpu.dot_dimension_numbers<[1], [0], [0], [1], [0, 0, 1, 1], [], []>} : vector<6x13xf32>, vector<13x208xf32>, vector<6x208xf32> -> vector<6x208xf32>
    %cst_53 = arith.constant dense<0.000000e+00> : vector<6x208xf32>
    %150 = tpu.matmul %5, %148, %cst_53 {dimension_numbers = #tpu.dot_dimension_numbers<[1], [0], [0], [1], [0, 0, 1, 1], [], []>} : vector<6x13xf32>, vector<13x208xf32>, vector<6x208xf32> -> vector<6x208xf32>
    %151 = arith.maximumf %149, %150 : vector<6x208xf32>
    %152 = vector.extract_strided_slice %151 {offsets = [0, 0], sizes = [6, 207], strides = [1, 1]} : vector<6x208xf32> to vector<6x207xf32>
    %153 = vector.extract_strided_slice %151 {offsets = [0, 1], sizes = [6, 207], strides = [1, 1]} : vector<6x208xf32> to vector<6x207xf32>
    %154 = arith.maximumf %152, %153 : vector<6x207xf32>
    %cst_54 = arith.constant 0.000000e+00 : f32
    %155 = vector.broadcast %cst_54 : f32 to vector<6x207xf32>
    %156 = arith.maximumf %154, %155 : vector<6x207xf32>
    %157 = vector.extract_strided_slice %156 {offsets = [0, 0], sizes = [1, 207], strides = [1, 1]} : vector<6x207xf32> to vector<1x207xf32>
    %158 = vector.extract_strided_slice %156 {offsets = [1, 0], sizes = [1, 207], strides = [1, 1]} : vector<6x207xf32> to vector<1x207xf32>
    %159 = vector.extract_strided_slice %156 {offsets = [2, 0], sizes = [1, 207], strides = [1, 1]} : vector<6x207xf32> to vector<1x207xf32>
    %160 = vector.extract_strided_slice %156 {offsets = [3, 0], sizes = [1, 207], strides = [1, 1]} : vector<6x207xf32> to vector<1x207xf32>
    %161 = vector.extract_strided_slice %156 {offsets = [4, 0], sizes = [1, 207], strides = [1, 1]} : vector<6x207xf32> to vector<1x207xf32>
    %162 = vector.extract_strided_slice %156 {offsets = [5, 0], sizes = [1, 207], strides = [1, 1]} : vector<6x207xf32> to vector<1x207xf32>
    %163 = tpu.concatenate %157, %158, %159, %160, %161, %162 in 1 : vector<1x207xf32>, vector<1x207xf32>, vector<1x207xf32>, vector<1x207xf32>, vector<1x207xf32>, vector<1x207xf32> -> vector<1x1242xf32>
    %c4 = arith.constant 4 : index
    %c0_55 = arith.constant 0 : index
    %c0_56 = arith.constant 0 : index
    %164 = vector.load %arg1[%c4, %c0_55, %c0_56] : memref<8x32x32xf32, #tpu.memory_space<vmem>>, vector<1x32x32xf32>
    %165 = vector.shape_cast %164 : vector<1x32x32xf32> to vector<32x32xf32>
    %166 = vector.extract_strided_slice %165 {offsets = [0, 0], sizes = [30, 32], strides = [1, 1]} : vector<32x32xf32> to vector<30x32xf32>
    %167 = vector.extract_strided_slice %165 {offsets = [1, 0], sizes = [30, 32], strides = [1, 1]} : vector<32x32xf32> to vector<30x32xf32>
    %168 = vector.extract_strided_slice %165 {offsets = [2, 0], sizes = [30, 32], strides = [1, 1]} : vector<32x32xf32> to vector<30x32xf32>
    %169 = tpu.concatenate %166, %167, %168 in 1 : vector<30x32xf32>, vector<30x32xf32>, vector<30x32xf32> -> vector<30x96xf32>
    %cst_57 = arith.constant dense<0.000000e+00> : vector<30x180xf32>
    %170 = tpu.matmul %169, %0, %cst_57 {dimension_numbers = #tpu.dot_dimension_numbers<[1], [0], [0], [1], [0, 0, 1, 1], [], []>} : vector<30x96xf32>, vector<96x180xf32>, vector<30x180xf32> -> vector<30x180xf32>
    %171 = vector.broadcast %6 : vector<1x180xf32> to vector<30x180xf32>
    %172 = arith.addf %170, %171 : vector<30x180xf32>
    %cst_58 = arith.constant dense<0.000000e+00> : vector<15x180xf32>
    %173 = tpu.matmul %2, %172, %cst_58 {dimension_numbers = #tpu.dot_dimension_numbers<[1], [0], [0], [1], [0, 0, 1, 1], [], []>} : vector<15x30xf32>, vector<30x180xf32>, vector<15x180xf32> -> vector<15x180xf32>
    %cst_59 = arith.constant dense<0.000000e+00> : vector<15x180xf32>
    %174 = tpu.matmul %3, %172, %cst_59 {dimension_numbers = #tpu.dot_dimension_numbers<[1], [0], [0], [1], [0, 0, 1, 1], [], []>} : vector<15x30xf32>, vector<30x180xf32>, vector<15x180xf32> -> vector<15x180xf32>
    %175 = arith.maximumf %173, %174 : vector<15x180xf32>
    %176 = vector.extract_strided_slice %175 {offsets = [0, 0], sizes = [15, 179], strides = [1, 1]} : vector<15x180xf32> to vector<15x179xf32>
    %177 = vector.extract_strided_slice %175 {offsets = [0, 1], sizes = [15, 179], strides = [1, 1]} : vector<15x180xf32> to vector<15x179xf32>
    %178 = arith.maximumf %176, %177 : vector<15x179xf32>
    %cst_60 = arith.constant 0.000000e+00 : f32
    %179 = vector.broadcast %cst_60 : f32 to vector<15x179xf32>
    %180 = arith.maximumf %178, %179 : vector<15x179xf32>
    %181 = vector.extract_strided_slice %180 {offsets = [0, 0], sizes = [13, 179], strides = [1, 1]} : vector<15x179xf32> to vector<13x179xf32>
    %182 = vector.extract_strided_slice %180 {offsets = [1, 0], sizes = [13, 179], strides = [1, 1]} : vector<15x179xf32> to vector<13x179xf32>
    %183 = vector.extract_strided_slice %180 {offsets = [2, 0], sizes = [13, 179], strides = [1, 1]} : vector<15x179xf32> to vector<13x179xf32>
    %184 = tpu.concatenate %181, %182, %183 in 1 : vector<13x179xf32>, vector<13x179xf32>, vector<13x179xf32> -> vector<13x537xf32>
    %cst_61 = arith.constant dense<0.000000e+00> : vector<13x208xf32>
    %185 = tpu.matmul %184, %1, %cst_61 {dimension_numbers = #tpu.dot_dimension_numbers<[1], [0], [0], [1], [0, 0, 1, 1], [], []>} : vector<13x537xf32>, vector<537x208xf32>, vector<13x208xf32> -> vector<13x208xf32>
    %186 = vector.broadcast %7 : vector<1x208xf32> to vector<13x208xf32>
    %187 = arith.addf %185, %186 : vector<13x208xf32>
    %cst_62 = arith.constant dense<0.000000e+00> : vector<6x208xf32>
    %188 = tpu.matmul %4, %187, %cst_62 {dimension_numbers = #tpu.dot_dimension_numbers<[1], [0], [0], [1], [0, 0, 1, 1], [], []>} : vector<6x13xf32>, vector<13x208xf32>, vector<6x208xf32> -> vector<6x208xf32>
    %cst_63 = arith.constant dense<0.000000e+00> : vector<6x208xf32>
    %189 = tpu.matmul %5, %187, %cst_63 {dimension_numbers = #tpu.dot_dimension_numbers<[1], [0], [0], [1], [0, 0, 1, 1], [], []>} : vector<6x13xf32>, vector<13x208xf32>, vector<6x208xf32> -> vector<6x208xf32>
    %190 = arith.maximumf %188, %189 : vector<6x208xf32>
    %191 = vector.extract_strided_slice %190 {offsets = [0, 0], sizes = [6, 207], strides = [1, 1]} : vector<6x208xf32> to vector<6x207xf32>
    %192 = vector.extract_strided_slice %190 {offsets = [0, 1], sizes = [6, 207], strides = [1, 1]} : vector<6x208xf32> to vector<6x207xf32>
    %193 = arith.maximumf %191, %192 : vector<6x207xf32>
    %cst_64 = arith.constant 0.000000e+00 : f32
    %194 = vector.broadcast %cst_64 : f32 to vector<6x207xf32>
    %195 = arith.maximumf %193, %194 : vector<6x207xf32>
    %196 = vector.extract_strided_slice %195 {offsets = [0, 0], sizes = [1, 207], strides = [1, 1]} : vector<6x207xf32> to vector<1x207xf32>
    %197 = vector.extract_strided_slice %195 {offsets = [1, 0], sizes = [1, 207], strides = [1, 1]} : vector<6x207xf32> to vector<1x207xf32>
    %198 = vector.extract_strided_slice %195 {offsets = [2, 0], sizes = [1, 207], strides = [1, 1]} : vector<6x207xf32> to vector<1x207xf32>
    %199 = vector.extract_strided_slice %195 {offsets = [3, 0], sizes = [1, 207], strides = [1, 1]} : vector<6x207xf32> to vector<1x207xf32>
    %200 = vector.extract_strided_slice %195 {offsets = [4, 0], sizes = [1, 207], strides = [1, 1]} : vector<6x207xf32> to vector<1x207xf32>
    %201 = vector.extract_strided_slice %195 {offsets = [5, 0], sizes = [1, 207], strides = [1, 1]} : vector<6x207xf32> to vector<1x207xf32>
    %202 = tpu.concatenate %196, %197, %198, %199, %200, %201 in 1 : vector<1x207xf32>, vector<1x207xf32>, vector<1x207xf32>, vector<1x207xf32>, vector<1x207xf32>, vector<1x207xf32> -> vector<1x1242xf32>
    %c5 = arith.constant 5 : index
    %c0_65 = arith.constant 0 : index
    %c0_66 = arith.constant 0 : index
    %203 = vector.load %arg1[%c5, %c0_65, %c0_66] : memref<8x32x32xf32, #tpu.memory_space<vmem>>, vector<1x32x32xf32>
    %204 = vector.shape_cast %203 : vector<1x32x32xf32> to vector<32x32xf32>
    %205 = vector.extract_strided_slice %204 {offsets = [0, 0], sizes = [30, 32], strides = [1, 1]} : vector<32x32xf32> to vector<30x32xf32>
    %206 = vector.extract_strided_slice %204 {offsets = [1, 0], sizes = [30, 32], strides = [1, 1]} : vector<32x32xf32> to vector<30x32xf32>
    %207 = vector.extract_strided_slice %204 {offsets = [2, 0], sizes = [30, 32], strides = [1, 1]} : vector<32x32xf32> to vector<30x32xf32>
    %208 = tpu.concatenate %205, %206, %207 in 1 : vector<30x32xf32>, vector<30x32xf32>, vector<30x32xf32> -> vector<30x96xf32>
    %cst_67 = arith.constant dense<0.000000e+00> : vector<30x180xf32>
    %209 = tpu.matmul %208, %0, %cst_67 {dimension_numbers = #tpu.dot_dimension_numbers<[1], [0], [0], [1], [0, 0, 1, 1], [], []>} : vector<30x96xf32>, vector<96x180xf32>, vector<30x180xf32> -> vector<30x180xf32>
    %210 = vector.broadcast %6 : vector<1x180xf32> to vector<30x180xf32>
    %211 = arith.addf %209, %210 : vector<30x180xf32>
    %cst_68 = arith.constant dense<0.000000e+00> : vector<15x180xf32>
    %212 = tpu.matmul %2, %211, %cst_68 {dimension_numbers = #tpu.dot_dimension_numbers<[1], [0], [0], [1], [0, 0, 1, 1], [], []>} : vector<15x30xf32>, vector<30x180xf32>, vector<15x180xf32> -> vector<15x180xf32>
    %cst_69 = arith.constant dense<0.000000e+00> : vector<15x180xf32>
    %213 = tpu.matmul %3, %211, %cst_69 {dimension_numbers = #tpu.dot_dimension_numbers<[1], [0], [0], [1], [0, 0, 1, 1], [], []>} : vector<15x30xf32>, vector<30x180xf32>, vector<15x180xf32> -> vector<15x180xf32>
    %214 = arith.maximumf %212, %213 : vector<15x180xf32>
    %215 = vector.extract_strided_slice %214 {offsets = [0, 0], sizes = [15, 179], strides = [1, 1]} : vector<15x180xf32> to vector<15x179xf32>
    %216 = vector.extract_strided_slice %214 {offsets = [0, 1], sizes = [15, 179], strides = [1, 1]} : vector<15x180xf32> to vector<15x179xf32>
    %217 = arith.maximumf %215, %216 : vector<15x179xf32>
    %cst_70 = arith.constant 0.000000e+00 : f32
    %218 = vector.broadcast %cst_70 : f32 to vector<15x179xf32>
    %219 = arith.maximumf %217, %218 : vector<15x179xf32>
    %220 = vector.extract_strided_slice %219 {offsets = [0, 0], sizes = [13, 179], strides = [1, 1]} : vector<15x179xf32> to vector<13x179xf32>
    %221 = vector.extract_strided_slice %219 {offsets = [1, 0], sizes = [13, 179], strides = [1, 1]} : vector<15x179xf32> to vector<13x179xf32>
    %222 = vector.extract_strided_slice %219 {offsets = [2, 0], sizes = [13, 179], strides = [1, 1]} : vector<15x179xf32> to vector<13x179xf32>
    %223 = tpu.concatenate %220, %221, %222 in 1 : vector<13x179xf32>, vector<13x179xf32>, vector<13x179xf32> -> vector<13x537xf32>
    %cst_71 = arith.constant dense<0.000000e+00> : vector<13x208xf32>
    %224 = tpu.matmul %223, %1, %cst_71 {dimension_numbers = #tpu.dot_dimension_numbers<[1], [0], [0], [1], [0, 0, 1, 1], [], []>} : vector<13x537xf32>, vector<537x208xf32>, vector<13x208xf32> -> vector<13x208xf32>
    %225 = vector.broadcast %7 : vector<1x208xf32> to vector<13x208xf32>
    %226 = arith.addf %224, %225 : vector<13x208xf32>
    %cst_72 = arith.constant dense<0.000000e+00> : vector<6x208xf32>
    %227 = tpu.matmul %4, %226, %cst_72 {dimension_numbers = #tpu.dot_dimension_numbers<[1], [0], [0], [1], [0, 0, 1, 1], [], []>} : vector<6x13xf32>, vector<13x208xf32>, vector<6x208xf32> -> vector<6x208xf32>
    %cst_73 = arith.constant dense<0.000000e+00> : vector<6x208xf32>
    %228 = tpu.matmul %5, %226, %cst_73 {dimension_numbers = #tpu.dot_dimension_numbers<[1], [0], [0], [1], [0, 0, 1, 1], [], []>} : vector<6x13xf32>, vector<13x208xf32>, vector<6x208xf32> -> vector<6x208xf32>
    %229 = arith.maximumf %227, %228 : vector<6x208xf32>
    %230 = vector.extract_strided_slice %229 {offsets = [0, 0], sizes = [6, 207], strides = [1, 1]} : vector<6x208xf32> to vector<6x207xf32>
    %231 = vector.extract_strided_slice %229 {offsets = [0, 1], sizes = [6, 207], strides = [1, 1]} : vector<6x208xf32> to vector<6x207xf32>
    %232 = arith.maximumf %230, %231 : vector<6x207xf32>
    %cst_74 = arith.constant 0.000000e+00 : f32
    %233 = vector.broadcast %cst_74 : f32 to vector<6x207xf32>
    %234 = arith.maximumf %232, %233 : vector<6x207xf32>
    %235 = vector.extract_strided_slice %234 {offsets = [0, 0], sizes = [1, 207], strides = [1, 1]} : vector<6x207xf32> to vector<1x207xf32>
    %236 = vector.extract_strided_slice %234 {offsets = [1, 0], sizes = [1, 207], strides = [1, 1]} : vector<6x207xf32> to vector<1x207xf32>
    %237 = vector.extract_strided_slice %234 {offsets = [2, 0], sizes = [1, 207], strides = [1, 1]} : vector<6x207xf32> to vector<1x207xf32>
    %238 = vector.extract_strided_slice %234 {offsets = [3, 0], sizes = [1, 207], strides = [1, 1]} : vector<6x207xf32> to vector<1x207xf32>
    %239 = vector.extract_strided_slice %234 {offsets = [4, 0], sizes = [1, 207], strides = [1, 1]} : vector<6x207xf32> to vector<1x207xf32>
    %240 = vector.extract_strided_slice %234 {offsets = [5, 0], sizes = [1, 207], strides = [1, 1]} : vector<6x207xf32> to vector<1x207xf32>
    %241 = tpu.concatenate %235, %236, %237, %238, %239, %240 in 1 : vector<1x207xf32>, vector<1x207xf32>, vector<1x207xf32>, vector<1x207xf32>, vector<1x207xf32>, vector<1x207xf32> -> vector<1x1242xf32>
    %c6 = arith.constant 6 : index
    %c0_75 = arith.constant 0 : index
    %c0_76 = arith.constant 0 : index
    %242 = vector.load %arg1[%c6, %c0_75, %c0_76] : memref<8x32x32xf32, #tpu.memory_space<vmem>>, vector<1x32x32xf32>
    %243 = vector.shape_cast %242 : vector<1x32x32xf32> to vector<32x32xf32>
    %244 = vector.extract_strided_slice %243 {offsets = [0, 0], sizes = [30, 32], strides = [1, 1]} : vector<32x32xf32> to vector<30x32xf32>
    %245 = vector.extract_strided_slice %243 {offsets = [1, 0], sizes = [30, 32], strides = [1, 1]} : vector<32x32xf32> to vector<30x32xf32>
    %246 = vector.extract_strided_slice %243 {offsets = [2, 0], sizes = [30, 32], strides = [1, 1]} : vector<32x32xf32> to vector<30x32xf32>
    %247 = tpu.concatenate %244, %245, %246 in 1 : vector<30x32xf32>, vector<30x32xf32>, vector<30x32xf32> -> vector<30x96xf32>
    %cst_77 = arith.constant dense<0.000000e+00> : vector<30x180xf32>
    %248 = tpu.matmul %247, %0, %cst_77 {dimension_numbers = #tpu.dot_dimension_numbers<[1], [0], [0], [1], [0, 0, 1, 1], [], []>} : vector<30x96xf32>, vector<96x180xf32>, vector<30x180xf32> -> vector<30x180xf32>
    %249 = vector.broadcast %6 : vector<1x180xf32> to vector<30x180xf32>
    %250 = arith.addf %248, %249 : vector<30x180xf32>
    %cst_78 = arith.constant dense<0.000000e+00> : vector<15x180xf32>
    %251 = tpu.matmul %2, %250, %cst_78 {dimension_numbers = #tpu.dot_dimension_numbers<[1], [0], [0], [1], [0, 0, 1, 1], [], []>} : vector<15x30xf32>, vector<30x180xf32>, vector<15x180xf32> -> vector<15x180xf32>
    %cst_79 = arith.constant dense<0.000000e+00> : vector<15x180xf32>
    %252 = tpu.matmul %3, %250, %cst_79 {dimension_numbers = #tpu.dot_dimension_numbers<[1], [0], [0], [1], [0, 0, 1, 1], [], []>} : vector<15x30xf32>, vector<30x180xf32>, vector<15x180xf32> -> vector<15x180xf32>
    %253 = arith.maximumf %251, %252 : vector<15x180xf32>
    %254 = vector.extract_strided_slice %253 {offsets = [0, 0], sizes = [15, 179], strides = [1, 1]} : vector<15x180xf32> to vector<15x179xf32>
    %255 = vector.extract_strided_slice %253 {offsets = [0, 1], sizes = [15, 179], strides = [1, 1]} : vector<15x180xf32> to vector<15x179xf32>
    %256 = arith.maximumf %254, %255 : vector<15x179xf32>
    %cst_80 = arith.constant 0.000000e+00 : f32
    %257 = vector.broadcast %cst_80 : f32 to vector<15x179xf32>
    %258 = arith.maximumf %256, %257 : vector<15x179xf32>
    %259 = vector.extract_strided_slice %258 {offsets = [0, 0], sizes = [13, 179], strides = [1, 1]} : vector<15x179xf32> to vector<13x179xf32>
    %260 = vector.extract_strided_slice %258 {offsets = [1, 0], sizes = [13, 179], strides = [1, 1]} : vector<15x179xf32> to vector<13x179xf32>
    %261 = vector.extract_strided_slice %258 {offsets = [2, 0], sizes = [13, 179], strides = [1, 1]} : vector<15x179xf32> to vector<13x179xf32>
    %262 = tpu.concatenate %259, %260, %261 in 1 : vector<13x179xf32>, vector<13x179xf32>, vector<13x179xf32> -> vector<13x537xf32>
    %cst_81 = arith.constant dense<0.000000e+00> : vector<13x208xf32>
    %263 = tpu.matmul %262, %1, %cst_81 {dimension_numbers = #tpu.dot_dimension_numbers<[1], [0], [0], [1], [0, 0, 1, 1], [], []>} : vector<13x537xf32>, vector<537x208xf32>, vector<13x208xf32> -> vector<13x208xf32>
    %264 = vector.broadcast %7 : vector<1x208xf32> to vector<13x208xf32>
    %265 = arith.addf %263, %264 : vector<13x208xf32>
    %cst_82 = arith.constant dense<0.000000e+00> : vector<6x208xf32>
    %266 = tpu.matmul %4, %265, %cst_82 {dimension_numbers = #tpu.dot_dimension_numbers<[1], [0], [0], [1], [0, 0, 1, 1], [], []>} : vector<6x13xf32>, vector<13x208xf32>, vector<6x208xf32> -> vector<6x208xf32>
    %cst_83 = arith.constant dense<0.000000e+00> : vector<6x208xf32>
    %267 = tpu.matmul %5, %265, %cst_83 {dimension_numbers = #tpu.dot_dimension_numbers<[1], [0], [0], [1], [0, 0, 1, 1], [], []>} : vector<6x13xf32>, vector<13x208xf32>, vector<6x208xf32> -> vector<6x208xf32>
    %268 = arith.maximumf %266, %267 : vector<6x208xf32>
    %269 = vector.extract_strided_slice %268 {offsets = [0, 0], sizes = [6, 207], strides = [1, 1]} : vector<6x208xf32> to vector<6x207xf32>
    %270 = vector.extract_strided_slice %268 {offsets = [0, 1], sizes = [6, 207], strides = [1, 1]} : vector<6x208xf32> to vector<6x207xf32>
    %271 = arith.maximumf %269, %270 : vector<6x207xf32>
    %cst_84 = arith.constant 0.000000e+00 : f32
    %272 = vector.broadcast %cst_84 : f32 to vector<6x207xf32>
    %273 = arith.maximumf %271, %272 : vector<6x207xf32>
    %274 = vector.extract_strided_slice %273 {offsets = [0, 0], sizes = [1, 207], strides = [1, 1]} : vector<6x207xf32> to vector<1x207xf32>
    %275 = vector.extract_strided_slice %273 {offsets = [1, 0], sizes = [1, 207], strides = [1, 1]} : vector<6x207xf32> to vector<1x207xf32>
    %276 = vector.extract_strided_slice %273 {offsets = [2, 0], sizes = [1, 207], strides = [1, 1]} : vector<6x207xf32> to vector<1x207xf32>
    %277 = vector.extract_strided_slice %273 {offsets = [3, 0], sizes = [1, 207], strides = [1, 1]} : vector<6x207xf32> to vector<1x207xf32>
    %278 = vector.extract_strided_slice %273 {offsets = [4, 0], sizes = [1, 207], strides = [1, 1]} : vector<6x207xf32> to vector<1x207xf32>
    %279 = vector.extract_strided_slice %273 {offsets = [5, 0], sizes = [1, 207], strides = [1, 1]} : vector<6x207xf32> to vector<1x207xf32>
    %280 = tpu.concatenate %274, %275, %276, %277, %278, %279 in 1 : vector<1x207xf32>, vector<1x207xf32>, vector<1x207xf32>, vector<1x207xf32>, vector<1x207xf32>, vector<1x207xf32> -> vector<1x1242xf32>
    %c7 = arith.constant 7 : index
    %c0_85 = arith.constant 0 : index
    %c0_86 = arith.constant 0 : index
    %281 = vector.load %arg1[%c7, %c0_85, %c0_86] : memref<8x32x32xf32, #tpu.memory_space<vmem>>, vector<1x32x32xf32>
    %282 = vector.shape_cast %281 : vector<1x32x32xf32> to vector<32x32xf32>
    %283 = vector.extract_strided_slice %282 {offsets = [0, 0], sizes = [30, 32], strides = [1, 1]} : vector<32x32xf32> to vector<30x32xf32>
    %284 = vector.extract_strided_slice %282 {offsets = [1, 0], sizes = [30, 32], strides = [1, 1]} : vector<32x32xf32> to vector<30x32xf32>
    %285 = vector.extract_strided_slice %282 {offsets = [2, 0], sizes = [30, 32], strides = [1, 1]} : vector<32x32xf32> to vector<30x32xf32>
    %286 = tpu.concatenate %283, %284, %285 in 1 : vector<30x32xf32>, vector<30x32xf32>, vector<30x32xf32> -> vector<30x96xf32>
    %cst_87 = arith.constant dense<0.000000e+00> : vector<30x180xf32>
    %287 = tpu.matmul %286, %0, %cst_87 {dimension_numbers = #tpu.dot_dimension_numbers<[1], [0], [0], [1], [0, 0, 1, 1], [], []>} : vector<30x96xf32>, vector<96x180xf32>, vector<30x180xf32> -> vector<30x180xf32>
    %288 = vector.broadcast %6 : vector<1x180xf32> to vector<30x180xf32>
    %289 = arith.addf %287, %288 : vector<30x180xf32>
    %cst_88 = arith.constant dense<0.000000e+00> : vector<15x180xf32>
    %290 = tpu.matmul %2, %289, %cst_88 {dimension_numbers = #tpu.dot_dimension_numbers<[1], [0], [0], [1], [0, 0, 1, 1], [], []>} : vector<15x30xf32>, vector<30x180xf32>, vector<15x180xf32> -> vector<15x180xf32>
    %cst_89 = arith.constant dense<0.000000e+00> : vector<15x180xf32>
    %291 = tpu.matmul %3, %289, %cst_89 {dimension_numbers = #tpu.dot_dimension_numbers<[1], [0], [0], [1], [0, 0, 1, 1], [], []>} : vector<15x30xf32>, vector<30x180xf32>, vector<15x180xf32> -> vector<15x180xf32>
    %292 = arith.maximumf %290, %291 : vector<15x180xf32>
    %293 = vector.extract_strided_slice %292 {offsets = [0, 0], sizes = [15, 179], strides = [1, 1]} : vector<15x180xf32> to vector<15x179xf32>
    %294 = vector.extract_strided_slice %292 {offsets = [0, 1], sizes = [15, 179], strides = [1, 1]} : vector<15x180xf32> to vector<15x179xf32>
    %295 = arith.maximumf %293, %294 : vector<15x179xf32>
    %cst_90 = arith.constant 0.000000e+00 : f32
    %296 = vector.broadcast %cst_90 : f32 to vector<15x179xf32>
    %297 = arith.maximumf %295, %296 : vector<15x179xf32>
    %298 = vector.extract_strided_slice %297 {offsets = [0, 0], sizes = [13, 179], strides = [1, 1]} : vector<15x179xf32> to vector<13x179xf32>
    %299 = vector.extract_strided_slice %297 {offsets = [1, 0], sizes = [13, 179], strides = [1, 1]} : vector<15x179xf32> to vector<13x179xf32>
    %300 = vector.extract_strided_slice %297 {offsets = [2, 0], sizes = [13, 179], strides = [1, 1]} : vector<15x179xf32> to vector<13x179xf32>
    %301 = tpu.concatenate %298, %299, %300 in 1 : vector<13x179xf32>, vector<13x179xf32>, vector<13x179xf32> -> vector<13x537xf32>
    %cst_91 = arith.constant dense<0.000000e+00> : vector<13x208xf32>
    %302 = tpu.matmul %301, %1, %cst_91 {dimension_numbers = #tpu.dot_dimension_numbers<[1], [0], [0], [1], [0, 0, 1, 1], [], []>} : vector<13x537xf32>, vector<537x208xf32>, vector<13x208xf32> -> vector<13x208xf32>
    %303 = vector.broadcast %7 : vector<1x208xf32> to vector<13x208xf32>
    %304 = arith.addf %302, %303 : vector<13x208xf32>
    %cst_92 = arith.constant dense<0.000000e+00> : vector<6x208xf32>
    %305 = tpu.matmul %4, %304, %cst_92 {dimension_numbers = #tpu.dot_dimension_numbers<[1], [0], [0], [1], [0, 0, 1, 1], [], []>} : vector<6x13xf32>, vector<13x208xf32>, vector<6x208xf32> -> vector<6x208xf32>
    %cst_93 = arith.constant dense<0.000000e+00> : vector<6x208xf32>
    %306 = tpu.matmul %5, %304, %cst_93 {dimension_numbers = #tpu.dot_dimension_numbers<[1], [0], [0], [1], [0, 0, 1, 1], [], []>} : vector<6x13xf32>, vector<13x208xf32>, vector<6x208xf32> -> vector<6x208xf32>
    %307 = arith.maximumf %305, %306 : vector<6x208xf32>
    %308 = vector.extract_strided_slice %307 {offsets = [0, 0], sizes = [6, 207], strides = [1, 1]} : vector<6x208xf32> to vector<6x207xf32>
    %309 = vector.extract_strided_slice %307 {offsets = [0, 1], sizes = [6, 207], strides = [1, 1]} : vector<6x208xf32> to vector<6x207xf32>
    %310 = arith.maximumf %308, %309 : vector<6x207xf32>
    %cst_94 = arith.constant 0.000000e+00 : f32
    %311 = vector.broadcast %cst_94 : f32 to vector<6x207xf32>
    %312 = arith.maximumf %310, %311 : vector<6x207xf32>
    %313 = vector.extract_strided_slice %312 {offsets = [0, 0], sizes = [1, 207], strides = [1, 1]} : vector<6x207xf32> to vector<1x207xf32>
    %314 = vector.extract_strided_slice %312 {offsets = [1, 0], sizes = [1, 207], strides = [1, 1]} : vector<6x207xf32> to vector<1x207xf32>
    %315 = vector.extract_strided_slice %312 {offsets = [2, 0], sizes = [1, 207], strides = [1, 1]} : vector<6x207xf32> to vector<1x207xf32>
    %316 = vector.extract_strided_slice %312 {offsets = [3, 0], sizes = [1, 207], strides = [1, 1]} : vector<6x207xf32> to vector<1x207xf32>
    %317 = vector.extract_strided_slice %312 {offsets = [4, 0], sizes = [1, 207], strides = [1, 1]} : vector<6x207xf32> to vector<1x207xf32>
    %318 = vector.extract_strided_slice %312 {offsets = [5, 0], sizes = [1, 207], strides = [1, 1]} : vector<6x207xf32> to vector<1x207xf32>
    %319 = tpu.concatenate %313, %314, %315, %316, %317, %318 in 1 : vector<1x207xf32>, vector<1x207xf32>, vector<1x207xf32>, vector<1x207xf32>, vector<1x207xf32>, vector<1x207xf32> -> vector<1x1242xf32>
    %320 = tpu.concatenate %46, %85, %124, %163, %202, %241, %280, %319 in 0 : vector<1x1242xf32>, vector<1x1242xf32>, vector<1x1242xf32>, vector<1x1242xf32>, vector<1x1242xf32>, vector<1x1242xf32>, vector<1x1242xf32>, vector<1x1242xf32> -> vector<8x1242xf32>
    %c0_95 = arith.constant 0 : index
    %c0_96 = arith.constant 0 : index
    %321 = vector.load %arg10[%c0_95, %c0_96] : memref<1242x128xf32, #tpu.memory_space<vmem>>, vector<1242x128xf32>
    %cst_97 = arith.constant dense<0.000000e+00> : vector<8x128xf32>
    %322 = tpu.matmul %320, %321, %cst_97 {dimension_numbers = #tpu.dot_dimension_numbers<[1], [0], [0], [1], [0, 0, 1, 1], [], []>} : vector<8x1242xf32>, vector<1242x128xf32>, vector<8x128xf32> -> vector<8x128xf32>
    %c0_98 = arith.constant 0 : index
    %c0_99 = arith.constant 0 : index
    %323 = vector.load %arg11[%c0_98, %c0_99] : memref<1x128xf32, #tpu.memory_space<vmem>>, vector<1x128xf32>
    %324 = vector.broadcast %323 : vector<1x128xf32> to vector<8x128xf32>
    %325 = arith.addf %322, %324 : vector<8x128xf32>
    %cst_100 = arith.constant 0.000000e+00 : f32
    %326 = vector.broadcast %cst_100 : f32 to vector<8x128xf32>
    %327 = arith.maximumf %325, %326 : vector<8x128xf32>
    %c0_101 = arith.constant 0 : index
    %c0_102 = arith.constant 0 : index
    %328 = vector.load %arg12[%c0_101, %c0_102] : memref<128x128xf32, #tpu.memory_space<vmem>>, vector<128x128xf32>
    %cst_103 = arith.constant dense<0.000000e+00> : vector<8x128xf32>
    %329 = tpu.matmul %327, %328, %cst_103 {dimension_numbers = #tpu.dot_dimension_numbers<[1], [0], [0], [1], [0, 0, 1, 1], [], []>} : vector<8x128xf32>, vector<128x128xf32>, vector<8x128xf32> -> vector<8x128xf32>
    %c0_104 = arith.constant 0 : index
    %c0_105 = arith.constant 0 : index
    %330 = vector.load %arg13[%c0_104, %c0_105] : memref<1x128xf32, #tpu.memory_space<vmem>>, vector<1x128xf32>
    %331 = vector.broadcast %330 : vector<1x128xf32> to vector<8x128xf32>
    %332 = arith.addf %329, %331 : vector<8x128xf32>
    %cst_106 = arith.constant 0.000000e+00 : f32
    %333 = vector.broadcast %cst_106 : f32 to vector<8x128xf32>
    %334 = arith.maximumf %332, %333 : vector<8x128xf32>
    %c0_107 = arith.constant 0 : index
    %c0_108 = arith.constant 0 : index
    %335 = vector.load %arg14[%c0_107, %c0_108] : memref<128x128xf32, #tpu.memory_space<vmem>>, vector<128x128xf32>
    %cst_109 = arith.constant dense<0.000000e+00> : vector<8x128xf32>
    %336 = tpu.matmul %334, %335, %cst_109 {dimension_numbers = #tpu.dot_dimension_numbers<[1], [0], [0], [1], [0, 0, 1, 1], [], []>} : vector<8x128xf32>, vector<128x128xf32>, vector<8x128xf32> -> vector<8x128xf32>
    %c0_110 = arith.constant 0 : index
    %c0_111 = arith.constant 0 : index
    %337 = vector.load %arg15[%c0_110, %c0_111] : memref<1x128xf32, #tpu.memory_space<vmem>>, vector<1x128xf32>
    %338 = vector.broadcast %337 : vector<1x128xf32> to vector<8x128xf32>
    %339 = arith.addf %336, %338 : vector<8x128xf32>
    %c0_112 = arith.constant 0 : index
    %c0_113 = arith.constant 0 : index
    %340 = vector.load %arg16[%c0_112, %c0_113] : memref<8x128xf32, #tpu.memory_space<vmem>>, vector<8x128xf32>
    tpu.vector_store %arg16[%c0_112, %c0_113], %339 {strides = array<i32>} : memref<8x128xf32, #tpu.memory_space<vmem>>, vector<8x128xf32>,
    return
  }
  func.func @transform_0(%arg0: i32) -> (i32, i32, i32) {
    %c0_i32 = arith.constant 0 : i32
    %c0_i32_0 = arith.constant 0 : i32
    %c0_i32_1 = arith.constant 0 : i32
    return %arg0, %c0_i32, %c0_i32_0 : i32, i32, i32
  }
  func.func @transform_1(%arg0: i32) -> (i32, i32) {
    %c0_i32 = arith.constant 0 : i32
    %c0_i32_0 = arith.constant 0 : i32
    %c0_i32_1 = arith.constant 0 : i32
    return %c0_i32, %c0_i32_0 : i32, i32
  }
  func.func @transform_2(%arg0: i32) -> (i32, i32) {
    %c0_i32 = arith.constant 0 : i32
    %c0_i32_0 = arith.constant 0 : i32
    %c0_i32_1 = arith.constant 0 : i32
    return %c0_i32, %c0_i32_0 : i32, i32
  }
  func.func @transform_3(%arg0: i32) -> (i32, i32) {
    %c0_i32 = arith.constant 0 : i32
    %c0_i32_0 = arith.constant 0 : i32
    %c0_i32_1 = arith.constant 0 : i32
    return %c0_i32, %c0_i32_0 : i32, i32
  }
  func.func @transform_4(%arg0: i32) -> (i32, i32) {
    %c0_i32 = arith.constant 0 : i32
    %c0_i32_0 = arith.constant 0 : i32
    %c0_i32_1 = arith.constant 0 : i32
    return %c0_i32, %c0_i32_0 : i32, i32
  }
  func.func @transform_5(%arg0: i32) -> (i32, i32) {
    %c0_i32 = arith.constant 0 : i32
    %c0_i32_0 = arith.constant 0 : i32
    %c0_i32_1 = arith.constant 0 : i32
    return %c0_i32, %c0_i32_0 : i32, i32
  }
  func.func @transform_6(%arg0: i32) -> (i32, i32) {
    %c0_i32 = arith.constant 0 : i32
    %c0_i32_0 = arith.constant 0 : i32
    %c0_i32_1 = arith.constant 0 : i32
    return %c0_i32, %c0_i32_0 : i32, i32
  }
  func.func @transform_7(%arg0: i32) -> (i32, i32) {
    %c0_i32 = arith.constant 0 : i32
    %c0_i32_0 = arith.constant 0 : i32
    %c0_i32_1 = arith.constant 0 : i32
    return %c0_i32, %c0_i32_0 : i32, i32
  }
  func.func @transform_8(%arg0: i32) -> (i32, i32) {
    %c0_i32 = arith.constant 0 : i32
    %c0_i32_0 = arith.constant 0 : i32
    %c0_i32_1 = arith.constant 0 : i32
    return %c0_i32, %c0_i32_0 : i32, i32
  }
  func.func @transform_9(%arg0: i32) -> (i32, i32) {
    %c0_i32 = arith.constant 0 : i32
    %c0_i32_0 = arith.constant 0 : i32
    %c0_i32_1 = arith.constant 0 : i32
    return %c0_i32, %c0_i32_0 : i32, i32
  }
  func.func @transform_10(%arg0: i32) -> (i32, i32) {
    %c0_i32 = arith.constant 0 : i32
    %c0_i32_0 = arith.constant 0 : i32
    %c0_i32_1 = arith.constant 0 : i32
    return %c0_i32, %c0_i32_0 : i32, i32
  }
  func.func @transform_11(%arg0: i32) -> (i32, i32) {
    %c0_i32 = arith.constant 0 : i32
    %c0_i32_0 = arith.constant 0 : i32
    %c0_i32_1 = arith.constant 0 : i32
    return %c0_i32, %c0_i32_0 : i32, i32
  }
  func.func @transform_12(%arg0: i32) -> (i32, i32) {
    %c0_i32 = arith.constant 0 : i32
    %c0_i32_0 = arith.constant 0 : i32
    %c0_i32_1 = arith.constant 0 : i32
    return %c0_i32, %c0_i32_0 : i32, i32
  }
  func.func @transform_13(%arg0: i32) -> (i32, i32) {
    %c0_i32 = arith.constant 0 : i32
    %c0_i32_0 = arith.constant 0 : i32
    %c0_i32_1 = arith.constant 0 : i32
    return %c0_i32, %c0_i32_0 : i32, i32
  }
  func.func @transform_14(%arg0: i32) -> (i32, i32) {
    %c0_i32 = arith.constant 0 : i32
    %c0_i32_0 = arith.constant 0 : i32
    %c0_i32_1 = arith.constant 0 : i32
    return %c0_i32, %c0_i32_0 : i32, i32
  }
  func.func @transform_15(%arg0: i32) -> (i32, i32) {
    %c0_i32 = arith.constant 0 : i32
    %c0_i32_0 = arith.constant 0 : i32
    return %arg0, %c0_i32 : i32, i32
  }
}

</mosaic_0001>

<bundles_post_ra>
// kernel: net_forward.1
= control target key start
LH: loop header
LB: loop body
LE: loop exit
PB: predicated region body
PF: predicated region fallthrough
CT: control target
= control target key end

     0   :  { %vm226_vm0 = vcmask 1046528   ;;  %v14952_v9 = vmov 0.0   ;;  %vm246_vm1 = vcmask 1045504   ;;  %s10581_s23 = smov 32   ;;  %s10582_s17 = smov 64   ;;  %vm266_vm2 = vcmask 261120   ;;  %s14934_s0 = inlined_call_operand.vmem [shape: f32[8,32,32], index: 0, kind: input, shape index: {}]   ;;  %s14935_s1 = inlined_call_operand.vmem [shape: f32[96,180], index: 1, kind: input, shape index: {}]   ;;  %s14936_s2 = inlined_call_operand.vmem [shape: f32[1,180], index: 2, kind: input, shape index: {}]   ;;  %s14937_s3 = inlined_call_operand.vmem [shape: f32[15,30], index: 3, kind: input, shape index: {}]   ;;  %s14938_s4 = inlined_call_operand.vmem [shape: f32[15,30], index: 4, kind: input, shape index: {}]   ;;  %s14939_s5 = inlined_call_operand.vmem [shape: f32[537,208], index: 5, kind: input, shape index: {}]   ;;  %s14940_s6 = inlined_call_operand.vmem [shape: f32[1,208], index: 6, kind: input, shape index: {}]   ;;  %s14941_s7 = inlined_call_operand.vmem [shape: f32[6,13], index: 7, kind: input, shape index: {}]   ;;  %s14942_s8 = inlined_call_operand.vmem [shape: f32[6,13], index: 8, kind: input, shape index: {}]   ;;  %s14943_s9 = inlined_call_operand.vmem [shape: f32[1242,128], index: 9, kind: input, shape index: {}]   ;;  %s14944_s11 = inlined_call_operand.vmem [shape: f32[128,128], index: 11, kind: input, shape index: {}]   ;;  %s14945_s10 = inlined_call_operand.vmem [shape: f32[1,128], index: 10, kind: input, shape index: {}]   ;;  %s14946_s13 = inlined_call_operand.vmem [shape: f32[128,128], index: 13, kind: input, shape index: {}]   ;;  %s14947_s12 = inlined_call_operand.vmem [shape: f32[1,128], index: 12, kind: input, shape index: {}]   ;;  %s14948_s14 = inlined_call_operand.vmem [shape: f32[1,128], index: 14, kind: input, shape index: {}]   ;;  %s14949_s15 = inlined_call_operand.vmem [shape: f32[8,128], index: 15, kind: output, shape index: {}]  }
   0x1   :  { %v10677_v0 = vld [vmem:[%s14934_s0] sm:$0xff]  ;;  %v10682_v1 = vld [vmem:[%s14934_s0 + $0x8] sm:$0xff]  ;;  %v10687_v2 = vld [vmem:[%s14934_s0 + $0x10] sm:$0xff]  ;;  %364 = vmatprep.mubr.f32.mxu0 %v14952_v9  ;;  %466 = vmatprep.mubr.f32.mxu1 %v14952_v9  ;;  %vm271_vm3 = vcmask 523264   ;;  %vm287_vm4 = vcmask 785408   ;;  %vm10583_vm5 = vmmov 1  }
   0x2   :  { %v227_v3 = vrot.slane %v10677_v0, 1  ;;  %v228_v4 = vrot.slane %v10682_v1, 1  ;;  %v230_v5 = vrot.slane %v10687_v2, 1  ;;  %v247_v6 = vrot.slane %v10677_v0, 2  ;;  %v10696_v7 = vld [vmem:[%s14934_s0 + $0x18] sm:$0xff]  ;;  %v51_v8 = vld [vmem:[%s14935_s1 + $0x8] sm:$0xff]  ;;  %vm10871_vm6 = vmpackc.low %vm246_vm1, %vm10583_vm5 }
   0x3   :  { %v248_v10 = vrot.slane %v10682_v1, 2  ;;  %v250_v11 = vrot.slane %v10687_v2, 2  ;;  %v53_v12 = vld [vmem:[%s14935_s1 + $0x18] sm:$0xff]  ;;  %v50_v13 = vld [vmem:[%s14935_s1] sm:$0xff]  ;;  %v52_v17 = vld [vmem:[%s14935_s1 + $0x10] sm:$0xff]  ;;  %v232_v20 = vrot.slane %v10696_v7, 1 }
   0x4   :  { %v229_v14 = vsel %vm226_vm0, %v227_v3, %v228_v4  ;;  %v231_v15 = vsel %vm226_vm0, %v228_v4, %v230_v5  ;;  %v10713_v16 = vpack.c.bf16 %v53_v12, %v51_v8  ;;  %v55_v18 = vld [vmem:[%s14935_s1 + $0x28] sm:$0xff]  ;;  %v57_v19 = vld [vmem:[%s14935_s1 + $0x38] sm:$0xff]  ;;  %v252_v21 = vrot.slane %v10696_v7, 2  ;;  %v54_v22 = vld [vmem:[%s14935_s1 + $0x20] sm:$0xff]  ;;  %s10584_s29 = smov 127   ;;  %s10585_s22 = smov 51  }
   0x5   :  { %234 = vrot.lane.b32.xlu0 %v229_v14, %s10581_s23  ;;  %236 = vrot.lane.b32.xlu1 %v231_v15, %s10581_s23  ;;  %v56_v23 = vld [vmem:[%s14935_s1 + $0x30] sm:$0xff]  ;;  %v249_v24 = vsel %vm246_vm1, %v247_v6, %v248_v10  ;;  %v251_v25 = vsel %vm246_vm1, %v248_v10, %v250_v11  ;;  %v10737_v26 = vpack.c.bf16 %v52_v17, %v50_v13  ;;  %v59_v28 = vld [vmem:[%s14935_s1 + $0x48] sm:$0xff]  ;;  %vm389_vm7 = vcmask 244736   ;;  %s10586_s24 = smov 102   ;;  %s10590_s19 = smov 60  }
   0x6   :  { %15194 = vst [vmem:[#allocation2_spill] sm:$0xff] %v10713_v16  ;;  %8438 = vmatprep.subr.bf16.mxu0 %v10713_v16  ;;  %v10739_v27 = vpack.c.bf16 %v57_v19, %v55_v18  ;;  %v61_v29 = vld [vmem:[%s14935_s1 + $0x58] sm:$0xff]  ;;  %v10748_v30 = vpack.c.bf16 %v56_v23, %v54_v22  ;;  %v58_v31 = vld [vmem:[%s14935_s1 + $0x40] sm:$0xff]  ;;  %v60_v32 = vld [vmem:[%s14935_s1 + $0x50] sm:$0xff]  ;;  %v233_v33 = vsel %vm226_vm0, %v230_v5, %v232_v20  ;;  %vm15051_vm8 = vcmask 1040384  }
   0x7   :  { %15195 = vst [vmem:[#allocation3_spill] sm:$0xff] %v10737_v26  ;;  %8440 = vmatpush1.bf16.msra.mxu0 %v10737_v26  ;;  %v253_v34 = vsel %vm246_vm1, %v250_v11, %v252_v21  ;;  %v10761_v35 = vpack.c.bf16 %v61_v29, %v59_v28  ;;  %v63_v36 = vld [vmem:[%s14935_s1 + $0x68] sm:$0xff]  ;;  %v65_v37 = vld [vmem:[%s14935_s1 + $0x78] sm:$0xff]  ;;  %v10770_v38 = vpack.c.bf16 %v60_v32, %v58_v31  ;;  %v62_v39 = vld [vmem:[%s14935_s1 + $0x60] sm:$0xff]  ;;  %vm578_vm9 = vcmask 1039360  }
   0x8   :  { %15196 = vst [vmem:[#allocation4_spill] sm:$0xff] %v10739_v27  ;;  %15197 = vst [vmem:[#allocation5_spill] sm:$0xff] %v10748_v30  ;;  %8442 = vmatprep.subr.bf16.mxu0 %v10739_v27  ;;  %v64_v40 = vld [vmem:[%s14935_s1 + $0x70] sm:$0xff]  ;;  %v10781_v41 = vpack.c.bf16 %v65_v37, %v63_v36  ;;  %v67_v42 = vld [vmem:[%s14935_s1 + $0x88] sm:$0xff]  ;;  %vm611_vm11 = vcmask 416768   ;;  %vm654_vm12 = vcmask 203776  }
   0x9   :  { %254 = vrot.lane.b32.xlu0 %v249_v24, %s10582_s17  ;;  %256 = vrot.lane.b32.xlu1 %v251_v25, %s10582_s17  ;;  %15198 = vst [vmem:[#allocation6_spill] sm:$0xff] %v10761_v35  ;;  %15199 = vst [vmem:[#allocation7_spill] sm:$0xff] %v10770_v38  ;;  %v69_v43 = vld [vmem:[%s14935_s1 + $0x98] sm:$0xff]  ;;  %v10790_v44 = vpack.c.bf16 %v64_v40, %v62_v39  ;;  %v66_v46 = vld [vmem:[%s14935_s1 + $0x80] sm:$0xff]  ;;  %v15208_v40 = vmov 0  ;;  %vm632_vm13 = vcmask 834560  }
   0xa   :  { %15200 = vst [vmem:[#allocation8_spill] sm:$0xff] %v10781_v41  ;;  %v10794_v45 = vpack.c.bf16 %v69_v43, %v67_v42  ;;  %v68_v47 = vld [vmem:[%s14935_s1 + $0x90] sm:$0xff]  ;;  %v71_v48 = vld [vmem:[%s14935_s1 + $0xa8] sm:$0xff]  ;;  %v73_v49 = vld [vmem:[%s14935_s1 + $0xb8] sm:$0xff]  ;;  %v15209_v40 = vsel %vm10871_vm6, 4294967295, %v15208_v40  ;;  %vm901_vm14 = vcmask 1044480  }
   0xb   :  { %8444 = vmatpush1.bf16.msra.mxu0 %v10748_v30  ;;  %15201 = vst [vmem:[#allocation9_spill] sm:$0xff] %v10790_v44  ;;  %v10810_v50 = vpack.c.bf16 %v68_v47, %v66_v46  ;;  %v10813_v51 = vpack.c.bf16 %v73_v49, %v71_v48  ;;  %v70_v52 = vld [vmem:[%s14935_s1 + $0xa0] sm:$0xff]  ;;  %v72_v53 = vld [vmem:[%s14935_s1 + $0xb0] sm:$0xff]  ;;  %15210 = vst [vmem:[#allocation16_spill] sm:$0xff] %v15209_v40 }
   0xc   :  { %8446 = vmatprep.subr.bf16.mxu0 %v10761_v35  ;;  %15202 = vst [vmem:[#allocation10_spill] sm:$0xff] %v10794_v45  ;;  %v10822_v54 = vpack.c.bf16 %v72_v53, %v70_v52  ;;  %v216_v12 = vld [vmem:[%s14936_s2] sm:$0x3]  ;;  %v10890_v46 = vld [vmem:[%s14937_s3 + $0x8] sm:$0x7f]  ;;  %vm11253_vm10 = vmpackc.low %vm15051_vm8, %vm10583_vm5  ;;  %vm897_vm8 = vcmask 105472  }
   0xd   :  { %238 = vrot.lane.b32.xlu0 %v233_v33, %s10581_s23  ;;  %258 = vrot.lane.b32.xlu1 %v253_v34, %s10582_s17  ;;  %15203 = vst [vmem:[#allocation11_spill] sm:$0xff] %v10810_v50  ;;  %15204 = vst [vmem:[#allocation12_spill] sm:$0xff] %v10813_v51  ;;  %v10882_v43 = vld [vmem:[%s14937_s3] sm:$0xff]  ;;  %v10910_v48 = vld [vmem:[%s14938_s4 + $0x8] sm:$0x7f] }
   0xe   :  { %15205 = vst [vmem:[#allocation13_spill] sm:$0xff] %v10822_v54  ;;  %v10902_v47 = vld [vmem:[%s14938_s4] sm:$0xff]  ;;  %vm11680_vm15 = vmpackc.low %vm901_vm14, %vm10583_vm5 }
   0xf   :  { %8448 = vmatpush1.bf16.msra.mxu0 %v10770_v38 }
  0x10   :  { %8450 = vmatprep.subr.bf16.mxu0 %v10781_v41 }
  0x11   :  { %240 = vrot.lane.b32.xlu0 %v232_v20, %s10581_s23  ;;  %260 = vrot.lane.b32.xlu1 %v252_v21, %s10582_s17 }
  0x13   :  { %8452 = vmatpush1.bf16.msra.mxu0 %v10790_v44 }
  0x14   :  { %8454 = vmatprep.subr.bf16.mxu0 %v10794_v45 }
  0x17   :  { %8456 = vmatpush1.bf16.msra.mxu0 %v10810_v50 }
  0x18   :  { %8458 = vmatprep.subr.bf16.mxu0 %v10813_v51 }
  0x1b   :  { %8460 = vmatpush1.bf16.msra.mxu0 %v10822_v54 }
  0x77   :  { %v235_v55 = vpop.permute.xlu0 %234  ;;  %v237_v56 = vpop.permute.xlu1 %236 }
  0x78   :  { %v267_v57 = vsel %vm266_vm2, %v10677_v0, %v235_v55  ;;  %v268_v61 = vsel %vm266_vm2, %v10682_v1, %v237_v56 }
  0x7b   :  { %v255_v58 = vpop.permute.xlu0 %254  ;;  %v257_v59 = vpop.permute.xlu1 %256 }
  0x7c   :  { %v272_v60 = vsel %vm271_vm3, %v267_v57, %v255_v58  ;;  %v273_v3 = vsel %vm271_vm3, %v268_v61, %v257_v59 }
  0x7d   :  { %7984 = vmatmul.mubr.msk.f32.vlgmr.msra.gmra.mrb[0].mxu0 %vm287_vm4, %v272_v60 }
  0x7e   :  { %370 = vmatprep.mubr.f32.mxu0 %v14952_v9 }
  0x7f   :  { %v239_v62 = vpop.permute.xlu0 %238  ;;  %v259_v63 = vpop.permute.xlu1 %258 }
  0x80   :  { %v269_v4 = vsel %vm266_vm2, %v10687_v2, %v239_v62  ;;  %v277_v2 = vlaneseq }
  0x81   :  { %7985 = vmatmul.mubr.msk.f32.gmra.mrb[2].mxu0 %vm287_vm4, %v273_v3  ;;  %v274_v0 = vsel %vm271_vm3, %v269_v4, %v259_v63  ;;  %v75_v4 = vld [vmem:[%s14939_s5 + $0x8] sm:$0xff] }
  0x82   :  { %376 = vmatprep.mubr.f32.mxu0 %v14952_v9  ;;  %v10846_v10 = vshrl.u32 %v277_v2, 7  ;;  %v81_v2 = vld [vmem:[%s14939_s5 + $0x38] sm:$0xff] }
  0x83   :  { %v241_v5 = vpop.permute.xlu0 %240  ;;  %v261_v6 = vpop.permute.xlu1 %260 }
  0x84   :  { %v270_v1 = vsel %vm266_vm2, %v10696_v7, %v241_v5  ;;  %v14951_v11 = vsub.s32 0, %v10846_v10  ;;  %v14950_v7 = vsub.s32 1, %v10846_v10  ;;  %v74_v5 = vld [vmem:[%s14939_s5] sm:$0xff] }
  0x85   :  { %7986 = vmatmul.mubr.msk.f32.gmra.mrb[4].mxu0 %vm287_vm4, %v274_v0  ;;  %v275_v8 = vsel %vm271_vm3, %v270_v1, %v261_v6  ;;  %v77_v0 = vld [vmem:[%s14939_s5 + $0x18] sm:$0xff]  ;;  %v76_v1 = vld [vmem:[%s14939_s5 + $0x10] sm:$0xff] }
  0x86   :  { %382 = vmatprep.mubr.f32.mxu0 %v14952_v9  ;;  %v10855_v14 = vrot.slane %v216_v12, %v14951_v11  ;;  %v10859_v17 = vrot.slane %v216_v12, %v14950_v7  ;;  %v10938_v6 = vpack.c.bf16 %v77_v0, %v75_v4  ;;  %v10949_v12 = vpack.c.bf16 %v76_v1, %v74_v5  ;;  %v98_v0 = vld [vmem:[%s14939_s5 + $0xc0] sm:$0xff]  ;;  %v203_v5 = vld [vmem:[%s14939_s5 + $0x408] sm:$0xff]  ;;  %v136_v11 = vld [vmem:[%s14939_s5 + $0x1f0] sm:$0xff] }
  0x87   :  { %v135_v7 = vld [vmem:[%s14939_s5 + $0x1e8] sm:$0xff] }
  0x88   :  { %15206 = vst [vmem:[#allocation14_spill] sm:$0xff] %v10855_v14  ;;  %15207 = vst [vmem:[#allocation15_spill] sm:$0xff] %v10859_v17 }
  0x89   :  { %7987 = vmatmul.mubr.msk.f32.gmra.mrb[6].mxu0 %vm287_vm4, %v275_v8  ;;  %15211 = vst [vmem:[#allocation17_spill] sm:$0xff] %v10938_v6  ;;  %v79_v8 = vld [vmem:[%s14939_s5 + $0x28] sm:$0xff]  ;;  %15212 = vst [vmem:[#allocation18_spill] sm:$0xff] %v10949_v12 }
  0x8a   :  { %884 = vmatprep.mubr.f32.mxu0 %v14952_v9 }
 0x150   :  { %v366_v13 = vpop.f32.mrb[0].mxu0 }
 0x151   :  { %v368_v15 = vpop.f32.mrb[1].mxu0  ;;  %v367_v19 = vadd.f32 %v366_v13, %v10855_v14  ;;  %v10951_v13 = vpack.c.bf16 %v81_v2, %v79_v8  ;;  %v100_v8 = vld [vmem:[%s14939_s5 + $0xd0] sm:$0xff]  ;;  %v103_v2 = vld [vmem:[%s14939_s5 + $0xe8] sm:$0xff] }
 0x152   :  { %v369_v22 = vadd.f32 %v368_v15, %v10859_v17  ;;  %v78_v15 = vld [vmem:[%s14939_s5 + $0x20] sm:$0xff] }
 0x153   :  { %15213 = vst [vmem:[#allocation19_spill] sm:$0xff] %v10951_v13 }
 0x154   :  { %v372_v18 = vpop.f32.mrb[2].mxu0 }
 0x155   :  { %v373_v20 = vadd.f32 %v372_v18, %v10855_v14  ;;  %v374_v21 = vpop.f32.mrb[3].mxu0  ;;  %v80_v18 = vld [vmem:[%s14939_s5 + $0x30] sm:$0xff] }
 0x156   :  { %v375_v23 = vadd.f32 %v374_v21, %v10859_v17  ;;  %v10967_v21 = vpack.c.bf16 %v80_v18, %v78_v15  ;;  %v205_v15 = vld [vmem:[%s14939_s5 + $0x418] sm:$0xff] }
 0x157   :  { %v8463_v24 = vpack.c.bf16 %v373_v20, %v367_v19  ;;  %v83_v19 = vld [vmem:[%s14939_s5 + $0x48] sm:$0xff]  ;;  %v85_v20 = vld [vmem:[%s14939_s5 + $0x58] sm:$0xff] }
 0x158   :  { %v378_v25 = vpop.f32.mrb[4].mxu0  ;;  %v8461_v28 = vpack.c.bf16 %v375_v23, %v369_v22  ;;  %15214 = vst [vmem:[#allocation20_spill] sm:$0xff] %v10967_v21  ;;  %v10970_v22 = vpack.c.bf16 %v85_v20, %v83_v19  ;;  %v82_v23 = vld [vmem:[%s14939_s5 + $0x40] sm:$0xff]  ;;  %v105_v18 = vld [vmem:[%s14939_s5 + $0xf8] sm:$0xff]  ;;  %v11062_v19 = vpack.c.bf16 %v205_v15, %v203_v5  ;;  %v112_v5 = vld [vmem:[%s14939_s5 + $0x130] sm:$0xff] }
 0x159   :  { %v380_v29 = vpop.f32.mrb[5].mxu0  ;;  %v379_v32 = vadd.f32 %v378_v25, %v10855_v14  ;;  %v87_v25 = vld [vmem:[%s14939_s5 + $0x68] sm:$0xff]  ;;  %v202_v20 = vld [vmem:[%s14939_s5 + $0x400] sm:$0xff] }
 0x15a   :  { %8462 = vmatprep.subr.bf16.mxu1 %v8461_v28  ;;  %v381_v36 = vadd.f32 %v380_v29, %v10859_v17  ;;  %15215 = vst [vmem:[#allocation21_spill] sm:$0xff] %v10970_v22  ;;  %15224 = vst [vmem:[#allocation30_spill] sm:$0xff] %v11062_v19  ;;  %8610 = vmatprep.subr.bf16.mxu0 %v11062_v19 }
 0x15b   :  { %8464 = vmatpush1.bf16.msra.mxu1 %v8463_v24 }
 0x15c   :  { %v384_v31 = vpop.f32.mrb[6].mxu0 }
 0x15d   :  { %v385_v33 = vadd.f32 %v384_v31, %v10855_v14  ;;  %v386_v34 = vpop.f32.mrb[7].mxu0 }
 0x15e   :  { %v387_v37 = vadd.f32 %v386_v34, %v10859_v17  ;;  %v91_v34 = vld [vmem:[%s14939_s5 + $0x88] sm:$0xff] }
 0x15f   :  { %v8468_v39 = vpack.c.bf16 %v385_v33, %v379_v32  ;;  %v86_v32 = vld [vmem:[%s14939_s5 + $0x60] sm:$0xff]  ;;  %v88_v33 = vld [vmem:[%s14939_s5 + $0x70] sm:$0xff] }
 0x160   :  { %v8465_v42 = vpack.c.bf16 %v387_v37, %v381_v36  ;;  %v93_v36 = vld [vmem:[%s14939_s5 + $0x98] sm:$0xff]  ;;  %v11003_v37 = vpack.c.bf16 %v88_v33, %v86_v32  ;;  %v102_v32 = vld [vmem:[%s14939_s5 + $0xe0] sm:$0xff]  ;;  %v104_v33 = vld [vmem:[%s14939_s5 + $0xf0] sm:$0xff] }
 0x162   :  { %8467 = vmatprep.subr.msk.bf16.mxu1 %vm10871_vm6, %v8465_v42  ;;  %15218 = vst [vmem:[#allocation24_spill] sm:$0xff] %v11003_v37 }
 0x163   :  { %8470 = vmatpush1.bf16.msk.msra.mxu1 %vm10871_vm6, %v8468_v39 }
 0x164   :  { %8472 = vmatprep.subr.bf16.mxu1 %v8461_v28  ;;  %v89_v28 = vld [vmem:[%s14939_s5 + $0x78] sm:$0xff] }
 0x165   :  { %v10988_v31 = vpack.c.bf16 %v89_v28, %v87_v25  ;;  %v11073_v25 = vpack.c.bf16 %v100_v8, %v98_v0  ;;  %v11077_v28 = vpack.c.bf16 %v105_v18, %v103_v2  ;;  %v110_v0 = vld [vmem:[%s14939_s5 + $0x120] sm:$0xff]  ;;  %v115_v8 = vld [vmem:[%s14939_s5 + $0x148] sm:$0xff]  ;;  %v117_v2 = vld [vmem:[%s14939_s5 + $0x158] sm:$0xff] }
 0x166   :  { %7990 = vmatmul.mubr.msk.f32.vlgmr.msra.gmra.mrb[0].mxu1 %vm389_vm7, %v10882_v43  ;;  %v11129_v15 = vpack.c.bf16 %v112_v5, %v110_v0  ;;  %v11132_v18 = vpack.c.bf16 %v117_v2, %v115_v8  ;;  %v122_v8 = vld [vmem:[%s14939_s5 + $0x180] sm:$0xff]  ;;  %v124_v2 = vld [vmem:[%s14939_s5 + $0x190] sm:$0xff] }
 0x167   :  { %8474 = vmatpush1.bf16.msra.mxu1 %v8463_v24  ;;  %472 = vmatprep.mubr.f32.mxu1 %v14952_v9  ;;  %v84_v24 = vld [vmem:[%s14939_s5 + $0x50] sm:$0xff]  ;;  %15217 = vst [vmem:[#allocation23_spill] sm:$0xff] %v10988_v31  ;;  %15226 = vst [vmem:[#allocation32_spill] sm:$0xff] %v11073_v25 }
 0x168   :  { %8477 = vmatprep.subr.msk.bf16.mxu1 %vm10871_vm6, %v8465_v42  ;;  %v10985_v29 = vpack.c.bf16 %v84_v24, %v82_v23  ;;  %v90_v42 = vld [vmem:[%s14939_s5 + $0x80] sm:$0xff]  ;;  %v204_v23 = vld [vmem:[%s14939_s5 + $0x410] sm:$0xff]  ;;  %15227 = vst [vmem:[#allocation33_spill] sm:$0xff] %v11077_v28  ;;  %15232 = vst [vmem:[#allocation38_spill] sm:$0xff] %v11129_v15 }
 0x169   :  { %v11070_v24 = vpack.c.bf16 %v204_v23, %v202_v20  ;;  %15233 = vst [vmem:[#allocation39_spill] sm:$0xff] %v11132_v18  ;;  %v114_v20 = vld [vmem:[%s14939_s5 + $0x140] sm:$0xff]  ;;  %v116_v23 = vld [vmem:[%s14939_s5 + $0x150] sm:$0xff] }
 0x16a   :  { %7991 = vmatmul.mubr.msk.f32.gmra.mrb[2].mxu1 %vm389_vm7, %v10890_v46  ;;  %15216 = vst [vmem:[#allocation22_spill] sm:$0xff] %v10985_v29 }
 0x16b   :  { %8480 = vmatpush1.bf16.msk.msra.mxu1 %vm10871_vm6, %v8468_v39  ;;  %549 = vmatprep.mubr.f32.mxu1 %v14952_v9  ;;  %v11006_v39 = vpack.c.bf16 %v93_v36, %v91_v34  ;;  %15225 = vst [vmem:[#allocation31_spill] sm:$0xff] %v11070_v24  ;;  %v107_v34 = vld [vmem:[%s14939_s5 + $0x108] sm:$0xff]  ;;  %v109_v36 = vld [vmem:[%s14939_s5 + $0x118] sm:$0xff] }
 0x16c   :  { %8482 = vmatprep.subr.bf16.mxu1 %v10938_v6  ;;  %8612 = vmatpush1.bf16.msra.mxu0 %v11070_v24 }
 0x16d   :  { %15219 = vst [vmem:[#allocation25_spill] sm:$0xff] %v11006_v39 }
 0x16e   :  { %7994 = vmatmul.mubr.msk.f32.vlgmr.msra.gmra.mrb[4].mxu1 %vm389_vm7, %v10902_v47 }
 0x16f   :  { %555 = vmatprep.mubr.f32.mxu1 %v14952_v9  ;;  %8484 = vmatpush1.bf16.msra.mxu1 %v10949_v12 }
 0x170   :  { %8486 = vmatprep.subr.bf16.mxu1 %v10951_v13 }
 0x172   :  { %7995 = vmatmul.mubr.msk.f32.gmra.mrb[6].mxu1 %vm389_vm7, %v10910_v48 }
 0x173   :  { %8488 = vmatpush1.bf16.msra.mxu1 %v10967_v21 }
 0x174   :  { %8490 = vmatprep.subr.bf16.mxu1 %v10970_v22 }
 0x177   :  { %8492 = vmatpush1.bf16.msra.mxu1 %v10985_v29 }
 0x178   :  { %8494 = vmatprep.subr.bf16.mxu1 %v10988_v31 }
 0x17b   :  { %8496 = vmatpush1.bf16.msra.mxu1 %v11003_v37 }
 0x17c   :  { %8498 = vmatprep.subr.bf16.mxu1 %v11006_v39 }
 0x239   :  { %v468_v49 = vpop.f32.mrb[0].mxu1 }
 0x23a   :  { %v470_v52 = vpop.f32.mrb[1].mxu1 }
 0x23d   :  { %v474_v53 = vpop.f32.mrb[2].mxu1 }
 0x23e   :  { %v476_v55 = vpop.f32.mrb[3].mxu1 }
 0x241   :  { %v551_v56 = vpop.f32.mrb[4].mxu1 }
 0x242   :  { %v10914_v57 = vmax.f32 %v468_v49, %v551_v56  ;;  %v553_v58 = vpop.f32.mrb[5].mxu1  ;;  %v92_v49 = vld [vmem:[%s14939_s5 + $0x90] sm:$0xff] }
 0x243   :  { %v10916_v59 = vmax.f32 %v470_v52, %v553_v58  ;;  %v95_v52 = vld [vmem:[%s14939_s5 + $0xa8] sm:$0xff]  ;;  %v94_v58 = vld [vmem:[%s14939_s5 + $0xa0] sm:$0xff] }
 0x245   :  { %572 = vrot.lane.b32.xlu1 %v10916_v59, %s10584_s29  ;;  %v557_v60 = vpop.f32.mrb[6].mxu1 }
 0x246   :  { %v10920_v61 = vmax.f32 %v474_v53, %v557_v60  ;;  %v559_v62 = vpop.f32.mrb[7].mxu1  ;;  %v97_v53 = vld [vmem:[%s14939_s5 + $0xb8] sm:$0xff]  ;;  %v96_v60 = vld [vmem:[%s14939_s5 + $0xb0] sm:$0xff] }
 0x247   :  { %v10922_v63 = vmax.f32 %v476_v55, %v559_v62  ;;  %v11021_v55 = vpack.c.bf16 %v92_v49, %v90_v42  ;;  %v11024_v56 = vpack.c.bf16 %v97_v53, %v95_v52  ;;  %v99_v62 = vld [vmem:[%s14939_s5 + $0xc8] sm:$0xff]  ;;  %v11039_v4 = vpack.c.bf16 %v96_v60, %v94_v58  ;;  %v106_v52 = vld [vmem:[%s14939_s5 + $0x100] sm:$0xff]  ;;  %v108_v53 = vld [vmem:[%s14939_s5 + $0x110] sm:$0xff] }
 0x248   :  { %v10322_v3 = vpack.i.bf16 %v10920_v61, %v10914_v57  ;;  %v11093_v42 = vpack.c.bf16 %v104_v33, %v102_v32  ;;  %v11096_v49 = vpack.c.bf16 %v109_v36, %v107_v34  ;;  %v111_v58 = vld [vmem:[%s14939_s5 + $0x128] sm:$0xff]  ;;  %v113_v60 = vld [vmem:[%s14939_s5 + $0x138] sm:$0xff]  ;;  %v11147_v34 = vpack.c.bf16 %v116_v23, %v114_v20 }
 0x249   :  { %15220 = vst [vmem:[#allocation26_spill] sm:$0xff] %v11021_v55  ;;  %15221 = vst [vmem:[#allocation27_spill] sm:$0xff] %v11024_v56  ;;  %8500 = vmatpush1.bf16.msra.mxu1 %v11021_v55  ;;  %v119_v32 = vld [vmem:[%s14939_s5 + $0x168] sm:$0xff]  ;;  %v121_v33 = vld [vmem:[%s14939_s5 + $0x178] sm:$0xff] }
 0x24a   :  { %10323 = vrot.lane.b32.xlu0 %v10322_v3, %s10584_s29  ;;  %v101_v3 = vld [vmem:[%s14939_s5 + $0xd8] sm:$0xff]  ;;  %15222 = vst [vmem:[#allocation28_spill] sm:$0xff] %v11039_v4  ;;  %8502 = vmatprep.subr.bf16.mxu1 %v11024_v56  ;;  %15228 = vst [vmem:[#allocation34_spill] sm:$0xff] %v11093_v42  ;;  %v11150_v36 = vpack.c.bf16 %v121_v33, %v119_v32  ;;  %v127_v20 = vld [vmem:[%s14939_s5 + $0x1a8] sm:$0xff]  ;;  %v11183_v32 = vpack.c.bf16 %v124_v2, %v122_v8 }
 0x24b   :  { %v11048_v1 = vpack.c.bf16 %v101_v3, %v99_v62  ;;  %15229 = vst [vmem:[#allocation35_spill] sm:$0xff] %v11096_v49  ;;  %v11111_v62 = vpack.c.bf16 %v108_v53, %v106_v52  ;;  %v11114_v3 = vpack.c.bf16 %v113_v60, %v111_v58  ;;  %15234 = vst [vmem:[#allocation40_spill] sm:$0xff] %v11147_v34  ;;  %v118_v52 = vld [vmem:[%s14939_s5 + $0x160] sm:$0xff]  ;;  %v120_v53 = vld [vmem:[%s14939_s5 + $0x170] sm:$0xff] }
 0x24c   :  { %15235 = vst [vmem:[#allocation41_spill] sm:$0xff] %v11150_v36  ;;  %v123_v58 = vld [vmem:[%s14939_s5 + $0x188] sm:$0xff]  ;;  %v125_v60 = vld [vmem:[%s14939_s5 + $0x198] sm:$0xff]  ;;  %v11165_v0 = vpack.c.bf16 %v120_v53, %v118_v52  ;;  %15238 = vst [vmem:[#allocation44_spill] sm:$0xff] %v11183_v32 }
 0x24d   :  { %15223 = vst [vmem:[#allocation29_spill] sm:$0xff] %v11048_v1  ;;  %8504 = vmatpush1.bf16.msra.mxu1 %v11039_v4  ;;  %15230 = vst [vmem:[#allocation36_spill] sm:$0xff] %v11111_v62  ;;  %v11168_v5 = vpack.c.bf16 %v125_v60, %v123_v58  ;;  %v129_v23 = vld [vmem:[%s14939_s5 + $0x1b8] sm:$0xff]  ;;  %v126_v52 = vld [vmem:[%s14939_s5 + $0x1a0] sm:$0xff] }
 0x24e   :  { %576 = vrot.lane.b32.xlu0 %v10922_v63, %s10584_s29  ;;  %8506 = vmatprep.subr.bf16.mxu1 %v11048_v1  ;;  %15231 = vst [vmem:[#allocation37_spill] sm:$0xff] %v11114_v3  ;;  %15236 = vst [vmem:[#allocation42_spill] sm:$0xff] %v11165_v0  ;;  %v11186_v33 = vpack.c.bf16 %v129_v23, %v127_v20  ;;  %v128_v53 = vld [vmem:[%s14939_s5 + $0x1b0] sm:$0xff]  ;;  %v131_v58 = vld [vmem:[%s14939_s5 + $0x1c8] sm:$0xff] }
 0x24f   :  { %15237 = vst [vmem:[#allocation43_spill] sm:$0xff] %v11168_v5  ;;  %v133_v60 = vld [vmem:[%s14939_s5 + $0x1d8] sm:$0xff]  ;;  %v11201_v8 = vpack.c.bf16 %v128_v53, %v126_v52  ;;  %v130_v20 = vld [vmem:[%s14939_s5 + $0x1c0] sm:$0xff]  ;;  %v132_v23 = vld [vmem:[%s14939_s5 + $0x1d0] sm:$0xff] }
 0x250   :  { %15239 = vst [vmem:[#allocation45_spill] sm:$0xff] %v11186_v33  ;;  %v11204_v2 = vpack.c.bf16 %v133_v60, %v131_v58  ;;  %v137_v52 = vld [vmem:[%s14939_s5 + $0x1f8] sm:$0xff]  ;;  %v11219_v53 = vpack.c.bf16 %v132_v23, %v130_v20  ;;  %v134_v60 = vld [vmem:[%s14939_s5 + $0x1e0] sm:$0xff] }
 0x251   :  { %8508 = vmatpush1.bf16.msra.mxu1 %v11073_v25  ;;  %15240 = vst [vmem:[#allocation46_spill] sm:$0xff] %v11201_v8  ;;  %v11222_v58 = vpack.c.bf16 %v137_v52, %v135_v7  ;;  %v11231_v9 = vpack.c.bf16 %v136_v11, %v134_v60  ;;  %v139_v7 = vld [vmem:[%s14939_s5 + $0x208] sm:$0xff]  ;;  %v141_v23 = vld [vmem:[%s14939_s5 + $0x218] sm:$0xff] }
 0x252   :  { %8510 = vmatprep.subr.bf16.mxu1 %v11077_v28  ;;  %15241 = vst [vmem:[#allocation47_spill] sm:$0xff] %v11204_v2  ;;  %15242 = vst [vmem:[#allocation48_spill] sm:$0xff] %v11219_v53  ;;  %v207_v52 = vld [vmem:[%s14939_s5 + $0x428] sm:$0xff]  ;;  %v209_v11 = vld [vmem:[%s14939_s5 + $0x438] sm:$0x1] }
 0x253   :  { %15243 = vst [vmem:[#allocation49_spill] sm:$0xff] %v11222_v58  ;;  %15244 = vst [vmem:[#allocation50_spill] sm:$0xff] %v11231_v9 }
 0x255   :  { %8512 = vmatpush1.bf16.msra.mxu1 %v11093_v42 }
 0x256   :  { %8514 = vmatprep.subr.bf16.mxu1 %v11096_v49 }
 0x259   :  { %8516 = vmatpush1.bf16.msra.mxu1 %v11111_v62 }
 0x25a   :  { %8518 = vmatprep.subr.bf16.mxu1 %v11114_v3 }
 0x25d   :  { %8520 = vmatpush1.bf16.msra.mxu1 %v11129_v15 }
 0x25e   :  { %8522 = vmatprep.subr.bf16.mxu1 %v11132_v18 }
 0x261   :  { %8524 = vmatpush1.bf16.msra.mxu1 %v11147_v34 }
 0x262   :  { %8526 = vmatprep.subr.bf16.mxu1 %v11150_v36 }
 0x265   :  { %8528 = vmatpush1.bf16.msra.mxu1 %v11165_v0 }
 0x266   :  { %8530 = vmatprep.subr.bf16.mxu1 %v11168_v5 }
 0x269   :  { %8532 = vmatpush1.bf16.msra.mxu1 %v11183_v32 }
 0x26a   :  { %8534 = vmatprep.subr.bf16.mxu1 %v11186_v33 }
 0x26d   :  { %8536 = vmatpush1.bf16.msra.mxu1 %v11201_v8 }
 0x26e   :  { %8538 = vmatprep.subr.bf16.mxu1 %v11204_v2 }
 0x271   :  { %8540 = vmatpush1.bf16.msra.mxu1 %v11219_v53  ;;  %v11244_v53 = vpack.c.bf16 %v141_v23, %v139_v7  ;;  %v206_v7 = vld [vmem:[%s14939_s5 + $0x420] sm:$0xff]  ;;  %v208_v23 = vld [vmem:[%s14939_s5 + $0x430] sm:$0x1] }
 0x272   :  { %8542 = vmatprep.subr.bf16.mxu1 %v11222_v58  ;;  %v15247_v58 = vmov 0 }
 0x273   :  { %15245 = vst [vmem:[#allocation51_spill] sm:$0xff] %v11244_v53  ;;  %v15248_v58 = vsel %vm11253_vm10, 4294967295, %v15247_v58 }
 0x274   :  { %15249 = vst [vmem:[#allocation53_spill] sm:$0xff] %v15248_v58 }
 0x275   :  { %8544 = vmatpush1.bf16.msra.mxu1 %v11231_v9  ;;  %v11249_v9 = vpack.c.bf16 %v209_v11, %v207_v52  ;;  %v11265_v52 = vpack.c.bf16 %v208_v23, %v206_v7 }
 0x276   :  { %8546 = vmatprep.subr.bf16.mxu1 %v11244_v53 }
 0x277   :  { %15246 = vst [vmem:[#allocation52_spill] sm:$0xff] %v11249_v9  ;;  %15250 = vst [vmem:[#allocation54_spill] sm:$0xff] %v11265_v52  ;;  %8615 = vmatprep.subr.msk.bf16.mxu0 %vm11253_vm10, %v11249_v9 }
 0x278   :  { %8618 = vmatpush1.bf16.msk.msra.mxu0 %vm11253_vm10, %v11265_v52 }
 0x2b7   :  { %v573_v20 = vpop.permute.xlu1 %572 }
 0x2b8   :  { %v586_v2 = vmax.f32 %v10916_v59, %v573_v20 }
 0x2ba   :  { %v590_v59 = vmax.f32 %v586_v2, 0.0 }
 0x2bc   :  { %v10324_v60 = vpop.permute.xlu0 %10323 }
 0x2bd   :  { %v10325_v8 = vunpack.i.l.bf16 %v10324_v60  ;;  %v10326_v11 = vunpack.i.h.bf16 %v10324_v60  ;;  %v600_v60 = vrot.slane %v590_v59, 1 }
 0x2bf   :  { %v579_v33 = vsel %vm578_vm9, %v10325_v8, %v573_v20 }
 0x2c0   :  { %v585_v32 = vmax.f32 %v10914_v57, %v579_v33  ;;  %v577_v5 = vpop.permute.xlu0 %576 }
 0x2c1   :  { %v580_v0 = vsel %vm578_vm9, %v10326_v11, %v577_v5  ;;  %v588_v7 = vmax.f32 %v10922_v63, %v577_v5 }
 0x2c2   :  { %v589_v23 = vmax.f32 %v585_v32, 0.0  ;;  %v587_v53 = vmax.f32 %v10920_v61, %v580_v0  ;;  %v621_v61 = vrot.slane %v590_v59, 2 }
 0x2c3   :  { %v592_v36 = vmax.f32 %v588_v7, 0.0 }
 0x2c4   :  { %v11278_v34 = vmax.f32 %v587_v53, 0.0  ;;  %v597_v20 = vrot.slane %v589_v23, 1  ;;  %v618_v32 = vrot.slane %v589_v23, 2  ;;  %v11306_v53 = vld [vmem:[%s14934_s0 + $0x30] sm:$0xff] }
 0x2c5   :  { %v601_v8 = vrot.slane %v592_v36, 1  ;;  %v622_v63 = vrot.slane %v592_v36, 2 }
 0x2c6   :  { %v598_v18 = vrot.slane %v11278_v34, 1  ;;  %v619_v0 = vrot.slane %v11278_v34, 2 }
 0x2c7   :  { %v602_v15 = vsel %vm226_vm0, %v600_v60, %v601_v8  ;;  %v623_v5 = vsel %vm246_vm1, %v621_v61, %v622_v63 }
 0x2c8   :  { %v599_v57 = vsel %vm226_vm0, %v597_v20, %v598_v18  ;;  %v10327_v33 = vpack.i.bf16 %v602_v15, %v598_v18  ;;  %v620_v2 = vsel %vm246_vm1, %v618_v32, %v619_v0  ;;  %v11296_v15 = vld [vmem:[%s14934_s0 + $0x20] sm:$0xff]  ;;  %v11301_v18 = vld [vmem:[%s14934_s0 + $0x28] sm:$0xff]  ;;  %v14983_v20 = vrot.slane %v11306_v53, 1  ;;  %v140_v32 = vld [vmem:[%s14939_s5 + $0x210] sm:$0xff] }
 0x2c9   :  { %603 = vrot.lane.b32.xlu1 %v599_v57, %s10585_s22  ;;  %v1136_v11 = vrot.slane %v11296_v15, 1  ;;  %v1137_v7 = vrot.slane %v11301_v18, 1  ;;  %v1155_v60 = vrot.slane %v11296_v15, 2  ;;  %v14982_v57 = vrot.slane %v11306_v53, 2 }
 0x2ca   :  { %10328 = vrot.lane.b32.xlu0 %v10327_v33, %s10585_s22 }
 0x2cb   :  { %v1138_v33 = vsel %vm226_vm0, %v1136_v11, %v1137_v7  ;;  %v1140_v61 = vsel %vm226_vm0, %v1137_v7, %v14983_v20  ;;  %v145_v11 = vld [vmem:[%s14939_s5 + $0x238] sm:$0xff] }
 0x2cd   :  { %609 = vrot.lane.b32.xlu1 %v601_v8, %s10585_s22  ;;  %v1156_v8 = vrot.slane %v11301_v18, 2 }
 0x2ce   :  { %626 = vrot.lane.b32.xlu0 %v623_v5, %s10586_s24  ;;  %v138_v5 = vld [vmem:[%s14939_s5 + $0x200] sm:$0xff] }
 0x2d1   :  { %624 = vrot.lane.b32.xlu1 %v620_v2, %s10586_s24  ;;  %v143_v2 = vld [vmem:[%s14939_s5 + $0x228] sm:$0xff] }
 0x2d2   :  { %628 = vrot.lane.b32.xlu0 %v619_v0, %s10586_s24  ;;  %v1159_v0 = vsel %vm246_vm1, %v1156_v8, %v14982_v57 }
 0x2d5   :  { %630 = vrot.lane.b32.xlu1 %v622_v63, %s10586_s24  ;;  %v1157_v63 = vsel %vm246_vm1, %v1155_v60, %v1156_v8  ;;  %v11340_v60 = vpack.c.bf16 %v140_v32, %v138_v5  ;;  %v147_v5 = vld [vmem:[%s14939_s5 + $0x248] sm:$0xff] }
 0x2d6   :  { %1143 = vrot.lane.b32.xlu0 %v1138_v33, %s10581_s23 }
 0x2d7   :  { %15251 = vst [vmem:[#allocation55_spill] sm:$0xff] %v11340_v60 }
 0x2d9   :  { %1162 = vrot.lane.b32.xlu1 %v1157_v63, %s10582_s17  ;;  %v11346_v63 = vpack.c.bf16 %v145_v11, %v143_v2 }
 0x2da   :  { %1145 = vrot.lane.b32.xlu0 %v1140_v61, %s10581_s23  ;;  %v142_v61 = vld [vmem:[%s14939_s5 + $0x220] sm:$0xff] }
 0x2db   :  { %15252 = vst [vmem:[#allocation56_spill] sm:$0xff] %v11346_v63 }
 0x2dd   :  { %1164 = vrot.lane.b32.xlu1 %v1159_v0, %s10582_s17  ;;  %v144_v0 = vld [vmem:[%s14939_s5 + $0x230] sm:$0xff] }
 0x2de   :  { %v11367_v11 = vpack.c.bf16 %v144_v0, %v142_v61  ;;  %v153_v61 = vld [vmem:[%s14939_s5 + $0x278] sm:$0xff]  ;;  %v15254_v0 = vmov 0.0  }
 0x33b   :  { %v11338_v7 = vpop.permute.xlu1 %603 }
 0x33c   :  { %v11342_v8 = vpop.permute.xlu0 %10328  ;;  %v639_v33 = vsel %vm611_vm11, %v590_v59, %v11338_v7  ;;  %v149_v59 = vld [vmem:[%s14939_s5 + $0x258] sm:$0xff] }
 0x33d   :  { %v14986_v57 = vunpack.i.l.bf16 %v11342_v8  ;;  %730 = vmatprep.mubr.f32.mxu1 %v639_v33  ;;  %v11370_v20 = vpack.c.bf16 %v149_v59, %v147_v5 }
 0x33e   :  { %731 = vmatmul.mubr.f32.vlgmr.msra.gmra.mrb[8].mxu1 %v589_v23  ;;  %v146_v23 = vld [vmem:[%s14939_s5 + $0x240] sm:$0xff] }
 0x33f   :  { %8548 = vmatpush1.bf16.msra.mxu1 %v11340_v60  ;;  %v11362_v32 = vpop.permute.xlu1 %609  ;;  %v640_v2 = vsel %vm611_vm11, %v592_v36, %v14986_v57  ;;  %15253 = vst [vmem:[#allocation57_spill] sm:$0xff] %v11370_v20  ;;  %v148_v60 = vld [vmem:[%s14939_s5 + $0x250] sm:$0xff]  ;;  %v151_v36 = vld [vmem:[%s14939_s5 + $0x268] sm:$0xff] }
 0x340   :  { %v627_v33 = vpop.permute.xlu0 %626  ;;  %736 = vmatprep.mubr.f32.mxu1 %v640_v2  ;;  %8550 = vmatprep.subr.bf16.mxu1 %v11346_v63  ;;  %v11390_v59 = vpack.c.bf16 %v148_v60, %v146_v23  ;;  %v11395_v57 = vpack.c.bf16 %v153_v61, %v151_v36  ;;  %v150_v63 = vld [vmem:[%s14939_s5 + $0x260] sm:$0xff]  ;;  %v155_v60 = vld [vmem:[%s14939_s5 + $0x288] sm:$0xff]  ;;  %v157_v23 = vld [vmem:[%s14939_s5 + $0x298] sm:$0xff] }
 0x341   :  { %7998 = vmatmul.mubr.msk.f32.vlgmr.msra.gmra.mrb[8].mxu0 %vm654_vm12, %v627_v33  ;;  %v11413_v36 = vpack.c.bf16 %v157_v23, %v155_v60  ;;  %v154_v61 = vld [vmem:[%s14939_s5 + $0x280] sm:$0xff] }
 0x342   :  { %737 = vmatmul.mubr.f32.gmra.mrb[10].mxu1 %v11278_v34  ;;  %972 = vmatprep.mubr.f32.mxu0 %v15254_v0  ;;  %15255 = vst [vmem:[#allocation58_spill] sm:$0xff] %v11390_v59  ;;  %15256 = vst [vmem:[#allocation59_spill] sm:$0xff] %v11395_v57  ;;  %v152_v34 = vld [vmem:[%s14939_s5 + $0x270] sm:$0xff]  ;;  %v158_v23 = vld [vmem:[%s14939_s5 + $0x2a0] sm:$0xff] }
 0x343   :  { %8552 = vmatpush1.bf16.msra.mxu1 %v11367_v11  ;;  %v11388_v5 = vpop.permute.xlu1 %624  ;;  %15258 = vst [vmem:[#allocation61_spill] sm:$0xff] %v11413_v36 }
 0x344   :  { %8554 = vmatprep.subr.bf16.mxu1 %v11370_v20  ;;  %v633_v2 = vsel %vm632_vm13, %v11388_v5, %v627_v33  ;;  %v11410_v33 = vpack.c.bf16 %v152_v34, %v150_v63  ;;  %v159_v20 = vld [vmem:[%s14939_s5 + $0x2a8] sm:$0xff]  ;;  %v161_v63 = vld [vmem:[%s14939_s5 + $0x2b8] sm:$0xff] }
 0x345   :  { %807 = vmatprep.mubr.f32.mxu1 %v633_v2  ;;  %v156_v2 = vld [vmem:[%s14939_s5 + $0x290] sm:$0xff]  ;;  %v11431_v60 = vpack.c.bf16 %v161_v63, %v159_v20  ;;  %v162_v63 = vld [vmem:[%s14939_s5 + $0x2c0] sm:$0xff] }
 0x346   :  { %15257 = vst [vmem:[#allocation60_spill] sm:$0xff] %v11410_v33  ;;  %v11428_v34 = vpack.c.bf16 %v156_v2, %v154_v61  ;;  %v165_v61 = vld [vmem:[%s14939_s5 + $0x2d8] sm:$0xff] }
 0x347   :  { %8556 = vmatpush1.bf16.msra.mxu1 %v11390_v59  ;;  %15260 = vst [vmem:[#allocation63_spill] sm:$0xff] %v11431_v60  ;;  %v163_v59 = vld [vmem:[%s14939_s5 + $0x2c8] sm:$0xff] }
 0x348   :  { %8558 = vmatprep.subr.bf16.mxu1 %v11395_v57  ;;  %15259 = vst [vmem:[#allocation62_spill] sm:$0xff] %v11428_v34  ;;  %v160_v57 = vld [vmem:[%s14939_s5 + $0x2b0] sm:$0xff]  ;;  %v11449_v2 = vpack.c.bf16 %v165_v61, %v163_v59  ;;  %v166_v61 = vld [vmem:[%s14939_s5 + $0x2e0] sm:$0xff] }
 0x349   :  { %v11446_v20 = vpack.c.bf16 %v160_v57, %v158_v23  ;;  %v169_v57 = vld [vmem:[%s14939_s5 + $0x2f8] sm:$0xff] }
 0x34a   :  { %15262 = vst [vmem:[#allocation65_spill] sm:$0xff] %v11449_v2 }
 0x34b   :  { %8560 = vmatpush1.bf16.msra.mxu1 %v11410_v33  ;;  %15261 = vst [vmem:[#allocation64_spill] sm:$0xff] %v11446_v20  ;;  %v167_v33 = vld [vmem:[%s14939_s5 + $0x2e8] sm:$0xff] }
 0x34c   :  { %8562 = vmatprep.subr.bf16.mxu1 %v11413_v36  ;;  %v164_v36 = vld [vmem:[%s14939_s5 + $0x2d0] sm:$0xff]  ;;  %v11467_v23 = vpack.c.bf16 %v169_v57, %v167_v33  ;;  %v170_v57 = vld [vmem:[%s14939_s5 + $0x300] sm:$0xff] }
 0x34d   :  { %v11464_v59 = vpack.c.bf16 %v164_v36, %v162_v63  ;;  %v173_v36 = vld [vmem:[%s14939_s5 + $0x318] sm:$0xff] }
 0x34e   :  { %15264 = vst [vmem:[#allocation67_spill] sm:$0xff] %v11467_v23 }
 0x34f   :  { %8564 = vmatpush1.bf16.msra.mxu1 %v11428_v34  ;;  %15263 = vst [vmem:[#allocation66_spill] sm:$0xff] %v11464_v59  ;;  %v171_v34 = vld [vmem:[%s14939_s5 + $0x308] sm:$0xff] }
 0x350   :  { %8566 = vmatprep.subr.bf16.mxu1 %v11431_v60  ;;  %v168_v60 = vld [vmem:[%s14939_s5 + $0x2f0] sm:$0xff]  ;;  %v11485_v63 = vpack.c.bf16 %v173_v36, %v171_v34  ;;  %v174_v36 = vld [vmem:[%s14939_s5 + $0x320] sm:$0xff] }
 0x351   :  { %v11482_v33 = vpack.c.bf16 %v168_v60, %v166_v61  ;;  %v177_v60 = vld [vmem:[%s14939_s5 + $0x338] sm:$0xff] }
 0x352   :  { %15266 = vst [vmem:[#allocation69_spill] sm:$0xff] %v11485_v63 }
 0x353   :  { %8568 = vmatpush1.bf16.msra.mxu1 %v11446_v20  ;;  %15265 = vst [vmem:[#allocation68_spill] sm:$0xff] %v11482_v33  ;;  %v175_v20 = vld [vmem:[%s14939_s5 + $0x328] sm:$0xff] }
 0x354   :  { %8570 = vmatprep.subr.bf16.mxu1 %v11449_v2  ;;  %v172_v2 = vld [vmem:[%s14939_s5 + $0x310] sm:$0xff]  ;;  %v11503_v61 = vpack.c.bf16 %v177_v60, %v175_v20  ;;  %v178_v60 = vld [vmem:[%s14939_s5 + $0x340] sm:$0xff] }
 0x355   :  { %v11500_v34 = vpack.c.bf16 %v172_v2, %v170_v57  ;;  %v181_v2 = vld [vmem:[%s14939_s5 + $0x358] sm:$0xff] }
 0x356   :  { %15268 = vst [vmem:[#allocation71_spill] sm:$0xff] %v11503_v61 }
 0x357   :  { %8572 = vmatpush1.bf16.msra.mxu1 %v11464_v59  ;;  %15267 = vst [vmem:[#allocation70_spill] sm:$0xff] %v11500_v34  ;;  %v179_v59 = vld [vmem:[%s14939_s5 + $0x348] sm:$0xff] }
 0x358   :  { %8574 = vmatprep.subr.bf16.mxu1 %v11467_v23  ;;  %v176_v23 = vld [vmem:[%s14939_s5 + $0x330] sm:$0xff]  ;;  %v11521_v57 = vpack.c.bf16 %v181_v2, %v179_v59  ;;  %v182_v2 = vld [vmem:[%s14939_s5 + $0x360] sm:$0xff] }
 0x359   :  { %v11518_v20 = vpack.c.bf16 %v176_v23, %v174_v36  ;;  %v185_v23 = vld [vmem:[%s14939_s5 + $0x378] sm:$0xff] }
 0x35a   :  { %15270 = vst [vmem:[#allocation73_spill] sm:$0xff] %v11521_v57 }
 0x35b   :  { %8576 = vmatpush1.bf16.msra.mxu1 %v11482_v33  ;;  %15269 = vst [vmem:[#allocation72_spill] sm:$0xff] %v11518_v20  ;;  %v183_v33 = vld [vmem:[%s14939_s5 + $0x368] sm:$0xff] }
 0x35c   :  { %8578 = vmatprep.subr.bf16.mxu1 %v11485_v63  ;;  %v180_v63 = vld [vmem:[%s14939_s5 + $0x350] sm:$0xff]  ;;  %v11539_v36 = vpack.c.bf16 %v185_v23, %v183_v33  ;;  %v186_v23 = vld [vmem:[%s14939_s5 + $0x380] sm:$0xff] }
 0x35d   :  { %v11536_v59 = vpack.c.bf16 %v180_v63, %v178_v60  ;;  %v189_v63 = vld [vmem:[%s14939_s5 + $0x398] sm:$0xff] }
 0x35e   :  { %15272 = vst [vmem:[#allocation75_spill] sm:$0xff] %v11539_v36 }
 0x35f   :  { %8580 = vmatpush1.bf16.msra.mxu1 %v11500_v34  ;;  %15271 = vst [vmem:[#allocation74_spill] sm:$0xff] %v11536_v59  ;;  %v187_v34 = vld [vmem:[%s14939_s5 + $0x388] sm:$0xff] }
 0x360   :  { %8582 = vmatprep.subr.bf16.mxu1 %v11503_v61  ;;  %v184_v61 = vld [vmem:[%s14939_s5 + $0x370] sm:$0xff]  ;;  %v11557_v60 = vpack.c.bf16 %v189_v63, %v187_v34  ;;  %v190_v63 = vld [vmem:[%s14939_s5 + $0x3a0] sm:$0xff] }
 0x361   :  { %v11554_v33 = vpack.c.bf16 %v184_v61, %v182_v2  ;;  %v193_v61 = vld [vmem:[%s14939_s5 + $0x3b8] sm:$0xff] }
 0x362   :  { %15274 = vst [vmem:[#allocation77_spill] sm:$0xff] %v11557_v60 }
 0x363   :  { %8584 = vmatpush1.bf16.msra.mxu1 %v11518_v20  ;;  %15273 = vst [vmem:[#allocation76_spill] sm:$0xff] %v11554_v33  ;;  %v191_v20 = vld [vmem:[%s14939_s5 + $0x3a8] sm:$0xff] }
 0x364   :  { %8586 = vmatprep.subr.bf16.mxu1 %v11521_v57  ;;  %v188_v57 = vld [vmem:[%s14939_s5 + $0x390] sm:$0xff]  ;;  %v11575_v2 = vpack.c.bf16 %v193_v61, %v191_v20  ;;  %v194_v61 = vld [vmem:[%s14939_s5 + $0x3c0] sm:$0xff] }
 0x365   :  { %v11572_v34 = vpack.c.bf16 %v188_v57, %v186_v23  ;;  %v197_v57 = vld [vmem:[%s14939_s5 + $0x3d8] sm:$0xff] }
 0x366   :  { %15276 = vst [vmem:[#allocation79_spill] sm:$0xff] %v11575_v2 }
 0x367   :  { %8588 = vmatpush1.bf16.msra.mxu1 %v11536_v59  ;;  %15275 = vst [vmem:[#allocation78_spill] sm:$0xff] %v11572_v34  ;;  %v195_v59 = vld [vmem:[%s14939_s5 + $0x3c8] sm:$0xff] }
 0x368   :  { %8590 = vmatprep.subr.bf16.mxu1 %v11539_v36  ;;  %v192_v36 = vld [vmem:[%s14939_s5 + $0x3b0] sm:$0xff]  ;;  %v11593_v23 = vpack.c.bf16 %v197_v57, %v195_v59  ;;  %v198_v57 = vld [vmem:[%s14939_s5 + $0x3e0] sm:$0xff] }
 0x369   :  { %v11590_v20 = vpack.c.bf16 %v192_v36, %v190_v63  ;;  %v201_v36 = vld [vmem:[%s14939_s5 + $0x3f8] sm:$0xff] }
 0x36a   :  { %15278 = vst [vmem:[#allocation81_spill] sm:$0xff] %v11593_v23 }
 0x36b   :  { %8592 = vmatpush1.bf16.msra.mxu1 %v11554_v33  ;;  %15277 = vst [vmem:[#allocation80_spill] sm:$0xff] %v11590_v20  ;;  %v199_v33 = vld [vmem:[%s14939_s5 + $0x3e8] sm:$0xff] }
 0x36c   :  { %8594 = vmatprep.subr.bf16.mxu1 %v11557_v60  ;;  %v196_v60 = vld [vmem:[%s14939_s5 + $0x3d0] sm:$0xff]  ;;  %v11611_v63 = vpack.c.bf16 %v201_v36, %v199_v33  ;;  %v629_v36 = vpop.permute.xlu0 %628 }
 0x36d   :  { %v11608_v59 = vpack.c.bf16 %v196_v60, %v194_v61  ;;  %v631_v60 = vpop.permute.xlu1 %630 }
 0x36e   :  { %15280 = vst [vmem:[#allocation83_spill] sm:$0xff] %v11611_v63 }
 0x36f   :  { %8596 = vmatpush1.bf16.msra.mxu1 %v11572_v34  ;;  %15279 = vst [vmem:[#allocation82_spill] sm:$0xff] %v11608_v59 }
 0x370   :  { %8598 = vmatprep.subr.bf16.mxu1 %v11575_v2  ;;  %v200_v2 = vld [vmem:[%s14939_s5 + $0x3f0] sm:$0xff] }
 0x371   :  { %v11620_v34 = vpack.c.bf16 %v200_v2, %v198_v57  ;;  %v634_v2 = vsel %vm632_vm13, %v629_v36, %v631_v60  ;;  %v15282_v57 = vunpack.i.l.bf16 %v11342_v8 }
 0x373   :  { %8600 = vmatpush1.bf16.msra.mxu1 %v11590_v20  ;;  %15281 = vst [vmem:[#allocation84_spill] sm:$0xff] %v11620_v34  ;;  %v10331_v20 = vunpack.i.h.bf16 %v11342_v8  ;;  %v11649_v8 = vld [vmem:[%s14934_s0 + $0x38] sm:$0xff] }
 0x374   :  { %8602 = vmatprep.subr.bf16.mxu1 %v11593_v23 }
 0x375   :  { %v612_v33 = vsel %vm611_vm11, %v11338_v7, %v10331_v20 }
 0x376   :  { %v641_v61 = vsel %vm632_vm13, %v612_v33, %v11388_v5  ;;  %v1160_v5 = vrot.slane %v11649_v8, 2  ;;  %v15284_v33 = vrot.slane %v11306_v53, 2 }
 0x377   :  { %8604 = vmatpush1.bf16.msra.mxu1 %v11608_v59 }
 0x378   :  { %8606 = vmatprep.subr.bf16.mxu1 %v11611_v63 }
 0x37b   :  { %8608 = vmatpush1.bf16.msra.mxu1 %v11620_v34  ;;  %v613_v34 = vsel %vm611_vm11, %v15282_v57, %v11362_v32  ;;  %v1141_v32 = vrot.slane %v11649_v8, 1  ;;  %v15285_v57 = vsub.s32 0, %v10846_v10 }
 0x37c   :  { %10208 = vmatprep.subr.bf16.mxu1 %v11062_v19  ;;  %v642_v7 = vsel %vm632_vm13, %v613_v34, %v629_v36  ;;  %v15283_v34 = vrot.slane %v11306_v53, 1 }
 0x37e   :  { %808 = vmatmul.mubr.f32.vlgmr.msra.gmra.mrb[8].mxu1 %v641_v61  ;;  %v1142_v20 = vsel %vm226_vm0, %v15283_v34, %v1141_v32  ;;  %v15286_v34 = vsub.s32 1, %v10846_v10  ;;  %v15288_v10 = vmov 0 }
 0x37f   :  { %813 = vmatprep.mubr.f32.mxu1 %v634_v2  ;;  %10210 = vmatpush1.bf16.msra.mxu1 %v11070_v24  ;;  %v217_v2 = vld [vmem:[%s14940_s6] sm:$0x3]  ;;  %v15289_v10 = vsel %vm11680_vm15, 4294967295, %v15288_v10 }
 0x380   :  { %10209 = vmatprep.subr.msk.bf16.mxu1 %vm11253_vm10, %v11249_v9  ;;  %1147 = vrot.lane.b32.xlu0 %v1142_v20, %s10581_s23  ;;  %v11672_v20 = vrot.slane %v217_v2, %v15286_v34  ;;  %15290 = vst [vmem:[#allocation86_spill] sm:$0xff] %v15289_v10 }
 0x382   :  { %814 = vmatmul.mubr.f32.gmra.mrb[10].mxu1 %v642_v7  ;;  %v11668_v7 = vrot.slane %v217_v2, %v15285_v57  ;;  %15287 = vst [vmem:[#allocation85_spill] sm:$0xff] %v11672_v20 }
 0x383   :  { %10211 = vmatpush1.bf16.msk.msra.mxu1 %vm11253_vm10, %v11265_v52  ;;  %890 = vmatprep.mubr.f32.mxu1 %v15254_v0 }
 0x384   :  { %1149 = vrot.lane.b32.xlu0 %v1141_v32, %s10581_s23 }
 0x38a   :  { %7999 = vmatmul.mubr.msk.f32.vlgmr.msra.gmra.mrb[10].mxu1 %vm654_vm12, %v631_v60  ;;  %v1161_v60 = vsel %vm246_vm1, %v15284_v33, %v1160_v5 }
 0x38b   :  { %1826 = vmatprep.mubr.f32.mxu1 %v15254_v0  ;;  %1166 = vrot.lane.b32.xlu1 %v1161_v60, %s10582_s17 }
 0x38f   :  { %1168 = vrot.lane.b32.xlu1 %v1160_v5, %s10582_s17 }
 0x414   :  { %v886_v61 = vpop.f32.mrb[8].mxu0 }
 0x415   :  { %v888_v36 = vpop.f32.mrb[9].mxu0 }
 0x451   :  { %v809_v33 = vpop.f32.mrb[8].mxu1 }
 0x452   :  { %v10212_v60 = vadd.f32 %v809_v33, %v11668_v7  ;;  %v811_v32 = vpop.f32.mrb[9].mxu1 }
 0x453   :  { %v10214_v5 = vadd.f32 %v811_v32, %v11672_v20 }
 0x454   :  { %v10213_v52 = vadd.f32 %v10212_v60, %v886_v61 }
 0x455   :  { %v10215_v58 = vadd.f32 %v10214_v5, %v888_v36 }
 0x45d   :  { %v892_v9 = vpop.f32.mrb[10].mxu1 }
 0x45e   :  { %v10216_v24 = vadd.f32 %v892_v9, %v11668_v7  ;;  %v894_v19 = vpop.f32.mrb[11].mxu1  ;;  %v11691_v9 = vld [vmem:[%s14941_s7] sm:$0x3f] }
 0x45f   :  { %v10217_v57 = vadd.f32 %v894_v19, %v11672_v20  ;;  %v11703_v19 = vld [vmem:[%s14942_s8] sm:$0x3f] }
 0x460   :  { %v8622_v63 = vpack.c.bf16 %v10216_v24, %v10213_v52  ;;  %v1144_v24 = vpop.permute.xlu0 %1143 }
 0x461   :  { %v8619_v2 = vpack.c.bf16 %v10217_v57, %v10215_v58  ;;  %v1163_v58 = vpop.permute.xlu1 %1162 }
 0x463   :  { %8621 = vmatprep.subr.msk.bf16.mxu0 %vm11680_vm15, %v8619_v2 }
 0x464   :  { %8624 = vmatpush1.bf16.msk.msra.mxu0 %vm11680_vm15, %v8622_v63  ;;  %v1146_v52 = vpop.permute.xlu0 %1145 }
 0x465   :  { %8627 = vmatprep.subr.msk.bf16.mxu0 %vm11680_vm15, %v8619_v2  ;;  %v1165_v61 = vpop.permute.xlu1 %1164  ;;  %v1175_v33 = vsel %vm266_vm2, %v11301_v18, %v1146_v52 }
 0x466   :  { %v1179_v32 = vsel %vm271_vm3, %v1175_v33, %v1165_v61 }
 0x467   :  { %8002 = vmatmul.mubr.msk.f32.vlgmr.msra.gmra.mrb[10].mxu0 %vm897_vm8, %v11691_v9 }
 0x468   :  { %8630 = vmatpush1.bf16.msk.msra.mxu0 %vm11680_vm15, %v8622_v63  ;;  %1046 = vmatprep.mubr.f32.mxu0 %v15254_v0  ;;  %v1174_v63 = vsel %vm266_vm2, %v11296_v15, %v1144_v24  ;;  %v1148_v34 = vpop.permute.xlu0 %1147 }
 0x469   :  { %8632 = vmatprep.subr.bf16.mxu0 %v10713_v16  ;;  %v1178_v36 = vsel %vm271_vm3, %v1174_v63, %v1163_v58  ;;  %v1167_v60 = vpop.permute.xlu1 %1166  ;;  %v1176_v5 = vsel %vm266_vm2, %v11306_v53, %v1148_v34 }
 0x46a   :  { %v1180_v57 = vsel %vm271_vm3, %v1176_v5, %v1167_v60 }
 0x46b   :  { %8005 = vmatmul.mubr.msk.f32.vlgmr.msra.gmra.mrb[12].mxu0 %vm897_vm8, %v11703_v19 }
 0x46c   :  { %8634 = vmatpush1.bf16.msra.mxu0 %v10737_v26  ;;  %1258 = vmatprep.mubr.f32.mxu0 %v15254_v0  ;;  %v1150_v15 = vpop.permute.xlu0 %1149 }
 0x46d   :  { %8636 = vmatprep.subr.bf16.mxu0 %v10739_v27  ;;  %v1177_v18 = vsel %vm266_vm2, %v11649_v8, %v1150_v15  ;;  %v1169_v2 = vpop.permute.xlu1 %1168 }
 0x46e   :  { %v1181_v24 = vsel %vm271_vm3, %v1177_v18, %v1169_v2 }
 0x470   :  { %8638 = vmatpush1.bf16.msra.mxu0 %v10748_v30 }
 0x471   :  { %8640 = vmatprep.subr.bf16.mxu0 %v10761_v35 }
 0x474   :  { %8642 = vmatpush1.bf16.msra.mxu0 %v10770_v38 }
 0x475   :  { %8644 = vmatprep.subr.bf16.mxu0 %v10781_v41 }
 0x478   :  { %8646 = vmatpush1.bf16.msra.mxu0 %v10790_v44 }
 0x479   :  { %8648 = vmatprep.subr.bf16.mxu0 %v10794_v45 }
 0x47c   :  { %8650 = vmatpush1.bf16.msra.mxu0 %v10810_v50 }
 0x47d   :  { %8652 = vmatprep.subr.bf16.mxu0 %v10813_v51 }
 0x480   :  { %8654 = vmatpush1.bf16.msra.mxu0 %v10822_v54 }
 0x483   :  { %8010 = vmatmul.mubr.msk.f32.vlgmr.msra.gmra.mrb[14].mxu0 %vm287_vm4, %v1178_v36 }
 0x484   :  { %1264 = vmatprep.mubr.f32.mxu0 %v15254_v0 }
 0x487   :  { %8011 = vmatmul.mubr.msk.f32.gmra.mrb[16].mxu0 %vm287_vm4, %v1179_v32 }
 0x488   :  { %1270 = vmatprep.mubr.f32.mxu0 %v15254_v0 }
 0x48b   :  { %8012 = vmatmul.mubr.msk.f32.gmra.mrb[18].mxu0 %vm287_vm4, %v1180_v57 }
 0x48c   :  { %1276 = vmatprep.mubr.f32.mxu0 %v15254_v0 }
 0x48f   :  { %8013 = vmatmul.mubr.msk.f32.gmra.mrb[20].mxu0 %vm287_vm4, %v1181_v24 }
 0x490   :  { %1353 = vmatprep.mubr.f32.mxu0 %v15254_v0 }
 0x53a   :  { %v974_v53 = vpop.f32.mrb[10].mxu0 }
 0x53b   :  { %v976_v58 = vpop.f32.mrb[11].mxu0 }
 0x53e   :  { %v1048_v52 = vpop.f32.mrb[12].mxu0 }
 0x53f   :  { %v11740_v63 = vmax.f32 %v974_v53, %v1048_v52  ;;  %v1050_v61 = vpop.f32.mrb[13].mxu0 }
 0x540   :  { %v11742_v36 = vmax.f32 %v976_v58, %v1050_v61 }
 0x541   :  { %15291 = vst [vmem:[#allocation87_spill] sm:$0xff] %v11740_v63 }
 0x542   :  { %15292 = vst [vmem:[#allocation88_spill] sm:$0xff] %v11742_v36 }
 0x556   :  { %v1260_v8 = vpop.f32.mrb[14].mxu0 }
 0x557   :  { %v1262_v34 = vpop.f32.mrb[15].mxu0  ;;  %v1261_v60 = vadd.f32 %v1260_v8, %v10855_v14 }
 0x558   :  { %v1263_v15 = vadd.f32 %v1262_v34, %v10859_v17 }
 0x55a   :  { %v1266_v33 = vpop.f32.mrb[16].mxu0 }
 0x55b   :  { %v1267_v32 = vadd.f32 %v1266_v33, %v10855_v14  ;;  %v1268_v5 = vpop.f32.mrb[17].mxu0 }
 0x55c   :  { %v1269_v57 = vadd.f32 %v1268_v5, %v10859_v17  ;;  %v15301_v5 = vld [vmem:[#allocation46_spill] sm:$0xff] }
 0x55d   :  { %v8657_v18 = vpack.c.bf16 %v1267_v32, %v1261_v60  ;;  %v15299_v60 = vld [vmem:[#allocation44_spill] sm:$0xff]  ;;  %v15300_v32 = vld [vmem:[#allocation45_spill] sm:$0xff] }
 0x55e   :  { %v8655_v2 = vpack.c.bf16 %v1269_v57, %v1263_v15  ;;  %v1272_v24 = vpop.f32.mrb[18].mxu0  ;;  %v15302_v15 = vld [vmem:[#allocation47_spill] sm:$0xff]  ;;  %v15303_v57 = vld [vmem:[#allocation48_spill] sm:$0xff] }
 0x55f   :  { %v1274_v53 = vpop.f32.mrb[19].mxu0  ;;  %v1273_v52 = vadd.f32 %v1272_v24, %v10855_v14  ;;  %v15306_v24 = vld [vmem:[#allocation51_spill] sm:$0xff] }
 0x560   :  { %8656 = vmatprep.subr.bf16.mxu0 %v8655_v2  ;;  %v1275_v8 = vadd.f32 %v1274_v53, %v10859_v17 }
 0x561   :  { %8658 = vmatpush1.bf16.msra.mxu0 %v8657_v18 }
 0x562   :  { %v1278_v58 = vpop.f32.mrb[20].mxu0 }
 0x563   :  { %v1279_v61 = vadd.f32 %v1278_v58, %v10855_v14  ;;  %v1280_v36 = vpop.f32.mrb[21].mxu0 }
 0x564   :  { %v1281_v33 = vadd.f32 %v1280_v36, %v10859_v17  ;;  %v15298_v36 = vld [vmem:[#allocation43_spill] sm:$0xff] }
 0x565   :  { %v8662_v63 = vpack.c.bf16 %v1279_v61, %v1273_v52 }
 0x566   :  { %v8659_v34 = vpack.c.bf16 %v1281_v33, %v1275_v8 }
 0x568   :  { %8661 = vmatprep.subr.msk.bf16.mxu0 %vm10871_vm6, %v8659_v34 }
 0x569   :  { %8664 = vmatpush1.bf16.msk.msra.mxu0 %vm10871_vm6, %v8662_v63 }
 0x56a   :  { %8666 = vmatprep.subr.bf16.mxu0 %v8655_v2  ;;  %v15305_v2 = vld [vmem:[#allocation50_spill] sm:$0xff] }
 0x56c   :  { %8016 = vmatmul.mubr.msk.f32.vlgmr.msra.gmra.mrb[22].mxu0 %vm389_vm7, %v10882_v43  ;;  %v15293_v43 = vld [vmem:[#allocation38_spill] sm:$0xff] }
 0x56d   :  { %8668 = vmatpush1.bf16.msra.mxu0 %v8657_v18  ;;  %1359 = vmatprep.mubr.f32.mxu0 %v15254_v0  ;;  %v15304_v18 = vld [vmem:[#allocation49_spill] sm:$0xff] }
 0x56e   :  { %8671 = vmatprep.subr.msk.bf16.mxu0 %vm10871_vm6, %v8659_v34 }
 0x570   :  { %8017 = vmatmul.mubr.msk.f32.gmra.mrb[24].mxu0 %vm389_vm7, %v10890_v46  ;;  %v15294_v46 = vld [vmem:[#allocation39_spill] sm:$0xff] }
 0x571   :  { %8674 = vmatpush1.bf16.msk.msra.mxu0 %vm10871_vm6, %v8662_v63  ;;  %1430 = vmatprep.mubr.f32.mxu0 %v15254_v0  ;;  %v15297_v63 = vld [vmem:[#allocation42_spill] sm:$0xff] }
 0x572   :  { %8676 = vmatprep.subr.bf16.mxu0 %v10938_v6 }
 0x574   :  { %8020 = vmatmul.mubr.msk.f32.vlgmr.msra.gmra.mrb[26].mxu0 %vm389_vm7, %v10902_v47  ;;  %v15295_v47 = vld [vmem:[#allocation40_spill] sm:$0xff] }
 0x575   :  { %1436 = vmatprep.mubr.f32.mxu0 %v15254_v0  ;;  %8678 = vmatpush1.bf16.msra.mxu0 %v10949_v12 }
 0x576   :  { %8680 = vmatprep.subr.bf16.mxu0 %v10951_v13 }
 0x578   :  { %8021 = vmatmul.mubr.msk.f32.gmra.mrb[28].mxu0 %vm389_vm7, %v10910_v48  ;;  %v15296_v48 = vld [vmem:[#allocation41_spill] sm:$0xff] }
 0x579   :  { %8682 = vmatpush1.bf16.msra.mxu0 %v10967_v21 }
 0x57a   :  { %8684 = vmatprep.subr.bf16.mxu0 %v10970_v22 }
 0x57d   :  { %8686 = vmatpush1.bf16.msra.mxu0 %v10985_v29 }
 0x57e   :  { %8688 = vmatprep.subr.bf16.mxu0 %v10988_v31 }
 0x581   :  { %8690 = vmatpush1.bf16.msra.mxu0 %v11003_v37 }
 0x582   :  { %8692 = vmatprep.subr.bf16.mxu0 %v11006_v39 }
 0x585   :  { %8694 = vmatpush1.bf16.msra.mxu0 %v11021_v55 }
 0x586   :  { %8696 = vmatprep.subr.bf16.mxu0 %v11024_v56 }
 0x589   :  { %8698 = vmatpush1.bf16.msra.mxu0 %v11039_v4 }
 0x58a   :  { %8700 = vmatprep.subr.bf16.mxu0 %v11048_v1 }
 0x58d   :  { %8702 = vmatpush1.bf16.msra.mxu0 %v11073_v25 }
 0x58e   :  { %8704 = vmatprep.subr.bf16.mxu0 %v11077_v28 }
 0x591   :  { %8706 = vmatpush1.bf16.msra.mxu0 %v11093_v42 }
 0x592   :  { %8708 = vmatprep.subr.bf16.mxu0 %v11096_v49 }
 0x595   :  { %8710 = vmatpush1.bf16.msra.mxu0 %v11111_v62 }
 0x596   :  { %8712 = vmatprep.subr.bf16.mxu0 %v11114_v3 }
 0x599   :  { %8714 = vmatpush1.bf16.msra.mxu0 %v15293_v43 }
 0x59a   :  { %8716 = vmatprep.subr.bf16.mxu0 %v15294_v46 }
 0x59d   :  { %8718 = vmatpush1.bf16.msra.mxu0 %v15295_v47 }
 0x59e   :  { %8720 = vmatprep.subr.bf16.mxu0 %v15296_v48 }
 0x5a1   :  { %8722 = vmatpush1.bf16.msra.mxu0 %v15297_v63 }
 0x5a2   :  { %8724 = vmatprep.subr.bf16.mxu0 %v15298_v36 }
 0x5a5   :  { %8726 = vmatpush1.bf16.msra.mxu0 %v15299_v60 }
 0x5a6   :  { %8728 = vmatprep.subr.bf16.mxu0 %v15300_v32 }
 0x5a9   :  { %8730 = vmatpush1.bf16.msra.mxu0 %v15301_v5 }
 0x5aa   :  { %8732 = vmatprep.subr.bf16.mxu0 %v15302_v15 }
 0x5ad   :  { %8734 = vmatpush1.bf16.msra.mxu0 %v15303_v57 }
 0x5ae   :  { %8736 = vmatprep.subr.bf16.mxu0 %v15304_v18 }
 0x5b1   :  { %8738 = vmatpush1.bf16.msra.mxu0 %v15305_v2 }
 0x5b2   :  { %8740 = vmatprep.subr.bf16.mxu0 %v15306_v24 }
 0x63f   :  { %v1355_v53 = vpop.f32.mrb[22].mxu0 }
 0x640   :  { %v1357_v58 = vpop.f32.mrb[23].mxu0 }
 0x643   :  { %v1361_v52 = vpop.f32.mrb[24].mxu0 }
 0x644   :  { %v1363_v61 = vpop.f32.mrb[25].mxu0 }
 0x647   :  { %v1432_v8 = vpop.f32.mrb[26].mxu0 }
 0x648   :  { %v1443_v33 = vmax.f32 %v1355_v53, %v1432_v8  ;;  %v1434_v34 = vpop.f32.mrb[27].mxu0 }
 0x649   :  { %v1444_v32 = vmax.f32 %v1357_v58, %v1434_v34 }
 0x64b   :  { %1453 = vrot.lane.b32.xlu1 %v1444_v32, %s10584_s29  ;;  %v1438_v5 = vpop.f32.mrb[28].mxu0 }
 0x64c   :  { %v1445_v15 = vmax.f32 %v1361_v52, %v1438_v5  ;;  %v1440_v60 = vpop.f32.mrb[29].mxu0 }
 0x64d   :  { %v1446_v57 = vmax.f32 %v1363_v61, %v1440_v60 }
 0x64e   :  { %v10332_v36 = vpack.i.bf16 %v1445_v15, %v1443_v33 }
 0x650   :  { %10333 = vrot.lane.b32.xlu0 %v10332_v36, %s10584_s29 }
 0x654   :  { %1457 = vrot.lane.b32.xlu0 %v1446_v57, %s10584_s29 }
 0x6bd   :  { %v1454_v24 = vpop.permute.xlu1 %1453 }
 0x6be   :  { %v1466_v18 = vmax.f32 %v1444_v32, %v1454_v24 }
 0x6c0   :  { %v1470_v34 = vmax.f32 %v1466_v18, 0.0 }
 0x6c2   :  { %v10334_v2 = vpop.permute.xlu0 %10333  ;;  %v1480_v36 = vrot.slane %v1470_v34, 1 }
 0x6c3   :  { %v10335_v63 = vunpack.i.l.bf16 %v10334_v2  ;;  %v10336_v48 = vunpack.i.h.bf16 %v10334_v2 }
 0x6c5   :  { %v1459_v53 = vsel %vm578_vm9, %v10335_v63, %v1454_v24 }
 0x6c6   :  { %v1465_v8 = vmax.f32 %v1443_v33, %v1459_v53  ;;  %v1458_v58 = vpop.permute.xlu0 %1457 }
 0x6c7   :  { %v1460_v47 = vsel %vm578_vm9, %v10336_v48, %v1458_v58  ;;  %v1468_v5 = vmax.f32 %v1446_v57, %v1458_v58  ;;  %v1500_v48 = vrot.slane %v1470_v34, 2 }
 0x6c8   :  { %v1469_v52 = vmax.f32 %v1465_v8, 0.0  ;;  %v1467_v60 = vmax.f32 %v1445_v15, %v1460_v47 }
 0x6c9   :  { %v1472_v61 = vmax.f32 %v1468_v5, 0.0  ;;  %v11844_v5 = vld [vmem:[%s14934_s0 + $0x58] sm:$0xff] }
 0x6ca   :  { %v1471_v46 = vmax.f32 %v1467_v60, 0.0  ;;  %v1477_v3 = vrot.slane %v1469_v52, 1  ;;  %v1497_v15 = vrot.slane %v1469_v52, 2 }
 0x6cb   :  { %v1481_v43 = vrot.slane %v1472_v61, 1  ;;  %v1501_v63 = vrot.slane %v1472_v61, 2 }
 0x6cc   :  { %v1478_v62 = vrot.slane %v1471_v46, 1  ;;  %v1498_v57 = vrot.slane %v1471_v46, 2 }
 0x6cd   :  { %v1482_v32 = vsel %vm226_vm0, %v1480_v36, %v1481_v43  ;;  %v1502_v47 = vsel %vm246_vm1, %v1500_v48, %v1501_v63  ;;  %v2003_v48 = vrot.slane %v11844_v5, 2 }
 0x6ce   :  { %v1479_v2 = vsel %vm226_vm0, %v1477_v3, %v1478_v62  ;;  %v10337_v49 = vpack.i.bf16 %v1482_v32, %v1478_v62  ;;  %v1499_v18 = vsel %vm246_vm1, %v1497_v15, %v1498_v57  ;;  %v11828_v62 = vld [vmem:[%s14934_s0 + $0x48] sm:$0xff]  ;;  %v11833_v3 = vld [vmem:[%s14934_s0 + $0x50] sm:$0xff] }
 0x6cf   :  { %1483 = vrot.lane.b32.xlu1 %v1479_v2, %s10585_s22  ;;  %v1980_v24 = vrot.slane %v11828_v62, 1  ;;  %v1999_v53 = vrot.slane %v11828_v62, 2  ;;  %v1982_v8 = vrot.slane %v11833_v3, 1  ;;  %v2001_v58 = vrot.slane %v11833_v3, 2 }
 0x6d0   :  { %10338 = vrot.lane.b32.xlu0 %v10337_v49, %s10585_s22  ;;  %v11823_v49 = vld [vmem:[%s14934_s0 + $0x40] sm:$0xff] }
 0x6d1   :  { %v1998_v33 = vrot.slane %v11823_v49, 2  ;;  %v1983_v32 = vsel %vm226_vm0, %v1980_v24, %v1982_v8  ;;  %v2002_v2 = vsel %vm246_vm1, %v1999_v53, %v2001_v58 }
 0x6d3   :  { %1489 = vrot.lane.b32.xlu1 %v1481_v43, %s10585_s22  ;;  %v1979_v43 = vrot.slane %v11823_v49, 1  ;;  %v2000_v36 = vsel %vm246_vm1, %v1998_v33, %v1999_v53  ;;  %v15307_v33 = vld [vmem:[#allocation55_spill] sm:$0xff] }
 0x6d4   :  { %1505 = vrot.lane.b32.xlu0 %v1502_v47, %s10586_s24  ;;  %v2004_v47 = vsel %vm246_vm1, %v2001_v58, %v2003_v48  ;;  %v15308_v58 = vld [vmem:[#allocation56_spill] sm:$0xff] }
 0x6d5   :  { %v1981_v60 = vsel %vm226_vm0, %v1979_v43, %v1980_v24 }
 0x6d7   :  { %1503 = vrot.lane.b32.xlu1 %v1499_v18, %s10586_s24 }
 0x6d8   :  { %1507 = vrot.lane.b32.xlu0 %v1498_v57, %s10586_s24 }
 0x6db   :  { %1509 = vrot.lane.b32.xlu1 %v1501_v63, %s10586_s24  ;;  %v1984_v63 = vrot.slane %v11844_v5, 1 }
 0x6dc   :  { %1986 = vrot.lane.b32.xlu0 %v1981_v60, %s10581_s23 }
 0x6dd   :  { %v1985_v57 = vsel %vm226_vm0, %v1982_v8, %v1984_v63 }
 0x6df   :  { %2005 = vrot.lane.b32.xlu1 %v2000_v36, %s10582_s17 }
 0x6e0   :  { %1988 = vrot.lane.b32.xlu0 %v1983_v32, %s10581_s23  ;;  %v15309_v32 = vld [vmem:[#allocation57_spill] sm:$0xff] }
 0x6e3   :  { %2007 = vrot.lane.b32.xlu1 %v2002_v2, %s10582_s17  ;;  %v15310_v2 = vld [vmem:[#allocation58_spill] sm:$0xff] }
 0x6e4   :  { %1990 = vrot.lane.b32.xlu0 %v1985_v57, %s10581_s23  ;;  %v15316_v57 = vld [vmem:[#allocation64_spill] sm:$0xff] }
 0x6e7   :  { %2009 = vrot.lane.b32.xlu1 %v2004_v47, %s10582_s17  ;;  %v15317_v47 = vld [vmem:[#allocation65_spill] sm:$0xff] }
 0x6e8   :  { %1992 = vrot.lane.b32.xlu0 %v1984_v63, %s10581_s23  ;;  %v15312_v63 = vld [vmem:[#allocation60_spill] sm:$0xff] }
 0x6eb   :  { %2011 = vrot.lane.b32.xlu1 %v2003_v48, %s10582_s17  ;;  %v15314_v48 = vld [vmem:[#allocation62_spill] sm:$0xff] }
 0x741   :  { %v1484_v15 = vpop.permute.xlu1 %1483 }
 0x742   :  { %v10339_v18 = vpop.permute.xlu0 %10338  ;;  %v1517_v43 = vsel %vm611_vm11, %v1470_v34, %v1484_v15 }
 0x743   :  { %v10340_v24 = vunpack.i.l.bf16 %v10339_v18  ;;  %1589 = vmatprep.mubr.f32.mxu0 %v1517_v43  ;;  %v15318_v43 = vld [vmem:[#allocation66_spill] sm:$0xff] }
 0x744   :  { %1590 = vmatmul.mubr.f32.vlgmr.msra.gmra.mrb[30].mxu0 %v1469_v52  ;;  %v15311_v52 = vld [vmem:[#allocation59_spill] sm:$0xff] }
 0x745   :  { %8742 = vmatpush1.bf16.msra.mxu0 %v15307_v33  ;;  %v1490_v53 = vpop.permute.xlu1 %1489  ;;  %v1518_v8 = vsel %vm611_vm11, %v1472_v61, %v10340_v24  ;;  %v15313_v61 = vld [vmem:[#allocation61_spill] sm:$0xff] }
 0x746   :  { %1595 = vmatprep.mubr.f32.mxu0 %v1518_v8  ;;  %8744 = vmatprep.subr.bf16.mxu0 %v15308_v58  ;;  %v1506_v60 = vpop.permute.xlu0 %1505  ;;  %v15319_v8 = vld [vmem:[#allocation67_spill] sm:$0xff] }
 0x748   :  { %1596 = vmatmul.mubr.f32.gmra.mrb[32].mxu0 %v1471_v46  ;;  %v15315_v46 = vld [vmem:[#allocation63_spill] sm:$0xff] }
 0x749   :  { %8746 = vmatpush1.bf16.msra.mxu0 %v11367_v11  ;;  %v1504_v36 = vpop.permute.xlu1 %1503 }
 0x74a   :  { %8748 = vmatprep.subr.bf16.mxu0 %v15309_v32  ;;  %v1511_v34 = vsel %vm632_vm13, %v1504_v36, %v1506_v60 }
 0x74b   :  { %1666 = vmatprep.mubr.f32.mxu0 %v1511_v34  ;;  %v15320_v34 = vld [vmem:[#allocation68_spill] sm:$0xff] }
 0x74d   :  { %8750 = vmatpush1.bf16.msra.mxu0 %v15310_v2  ;;  %v15321_v2 = vld [vmem:[#allocation69_spill] sm:$0xff] }
 0x74e   :  { %8752 = vmatprep.subr.bf16.mxu0 %v15311_v52  ;;  %v15322_v52 = vld [vmem:[#allocation70_spill] sm:$0xff] }
 0x751   :  { %8754 = vmatpush1.bf16.msra.mxu0 %v15312_v63  ;;  %v15323_v63 = vld [vmem:[#allocation71_spill] sm:$0xff] }
 0x752   :  { %8756 = vmatprep.subr.bf16.mxu0 %v15313_v61  ;;  %v15324_v61 = vld [vmem:[#allocation72_spill] sm:$0xff] }
 0x755   :  { %8758 = vmatpush1.bf16.msra.mxu0 %v15314_v48  ;;  %v15325_v48 = vld [vmem:[#allocation73_spill] sm:$0xff] }
 0x756   :  { %8760 = vmatprep.subr.bf16.mxu0 %v15315_v46  ;;  %v15326_v46 = vld [vmem:[#allocation74_spill] sm:$0xff] }
 0x759   :  { %8762 = vmatpush1.bf16.msra.mxu0 %v15316_v57  ;;  %v15327_v57 = vld [vmem:[#allocation75_spill] sm:$0xff] }
 0x75a   :  { %8764 = vmatprep.subr.bf16.mxu0 %v15317_v47  ;;  %v15328_v47 = vld [vmem:[#allocation76_spill] sm:$0xff] }
 0x75d   :  { %8766 = vmatpush1.bf16.msra.mxu0 %v15318_v43  ;;  %v15329_v43 = vld [vmem:[#allocation77_spill] sm:$0xff] }
 0x75e   :  { %8768 = vmatprep.subr.bf16.mxu0 %v15319_v8  ;;  %v15330_v8 = vld [vmem:[#allocation78_spill] sm:$0xff] }
 0x761   :  { %8770 = vmatpush1.bf16.msra.mxu0 %v15320_v34  ;;  %v15331_v34 = vld [vmem:[#allocation79_spill] sm:$0xff] }
 0x762   :  { %8772 = vmatprep.subr.bf16.mxu0 %v15321_v2  ;;  %v15332_v2 = vld [vmem:[#allocation80_spill] sm:$0xff] }
 0x765   :  { %8774 = vmatpush1.bf16.msra.mxu0 %v15322_v52 }
 0x766   :  { %8776 = vmatprep.subr.bf16.mxu0 %v15323_v63  ;;  %v15334_v63 = vld [vmem:[#allocation84_spill] sm:$0xff] }
 0x769   :  { %8778 = vmatpush1.bf16.msra.mxu0 %v15324_v61  ;;  %v10341_v61 = vunpack.i.h.bf16 %v10339_v18  ;;  %v1492_v18 = vsel %vm611_vm11, %v10340_v24, %v1490_v53 }
 0x76a   :  { %8780 = vmatprep.subr.bf16.mxu0 %v15325_v48  ;;  %v15333_v48 = vld [vmem:[#allocation83_spill] sm:$0xff] }
 0x76d   :  { %8782 = vmatpush1.bf16.msra.mxu0 %v15326_v46  ;;  %v1510_v46 = vpop.permute.xlu1 %1509 }
 0x76e   :  { %8784 = vmatprep.subr.bf16.mxu0 %v15327_v57  ;;  %v15335_v57 = vld [vmem:[#allocation30_spill] sm:$0xff] }
 0x771   :  { %8786 = vmatpush1.bf16.msra.mxu0 %v15328_v47  ;;  %v1491_v47 = vsel %vm611_vm11, %v1484_v15, %v10341_v61  ;;  %v15339_v15 = vld [vmem:[#allocation54_spill] sm:$0xff] }
 0x772   :  { %8788 = vmatprep.subr.bf16.mxu0 %v15329_v43  ;;  %v1508_v43 = vpop.permute.xlu0 %1507 }
 0x775   :  { %8790 = vmatpush1.bf16.msra.mxu0 %v15330_v8  ;;  %v1519_v8 = vsel %vm632_vm13, %v1491_v47, %v1504_v36 }
 0x776   :  { %8792 = vmatprep.subr.bf16.mxu0 %v15331_v34 }
 0x779   :  { %8794 = vmatpush1.bf16.msra.mxu0 %v15332_v2  ;;  %v1512_v2 = vsel %vm632_vm13, %v1508_v43, %v1510_v46 }
 0x77a   :  { %8796 = vmatprep.subr.bf16.mxu0 %v11593_v23  ;;  %v15336_v23 = vld [vmem:[#allocation31_spill] sm:$0xff] }
 0x77d   :  { %8798 = vmatpush1.bf16.msra.mxu0 %v11608_v59  ;;  %v15337_v59 = vld [vmem:[#allocation52_spill] sm:$0xff] }
 0x77e   :  { %8800 = vmatprep.subr.bf16.mxu0 %v15333_v48  ;;  %v15646_v48 = vld [vmem:[#allocation85_spill] sm:$0xff] }
 0x781   :  { %8802 = vmatpush1.bf16.msra.mxu0 %v15334_v63  ;;  %v1520_v63 = vsel %vm632_vm13, %v1492_v18, %v1508_v43 }
 0x782   :  { %8804 = vmatprep.subr.bf16.mxu0 %v15335_v57 }
 0x784   :  { %1667 = vmatmul.mubr.f32.vlgmr.msra.gmra.mrb[30].mxu0 %v1519_v8 }
 0x785   :  { %1672 = vmatprep.mubr.f32.mxu0 %v1512_v2  ;;  %8806 = vmatpush1.bf16.msra.mxu0 %v15336_v23 }
 0x786   :  { %8809 = vmatprep.subr.msk.bf16.mxu0 %vm11253_vm10, %v15337_v59 }
 0x788   :  { %1673 = vmatmul.mubr.f32.gmra.mrb[32].mxu0 %v1520_v63 }
 0x789   :  { %8812 = vmatpush1.bf16.msk.msra.mxu0 %vm11253_vm10, %v15339_v15  ;;  %1743 = vmatprep.mubr.f32.mxu0 %v15254_v0 }
 0x78c   :  { %8024 = vmatmul.mubr.msk.f32.vlgmr.msra.gmra.mrb[30].mxu0 %vm654_vm12, %v1506_v60 }
 0x78d   :  { %1749 = vmatprep.mubr.f32.mxu0 %v15254_v0 }
 0x790   :  { %8025 = vmatmul.mubr.msk.f32.gmra.mrb[32].mxu0 %vm654_vm12, %v1510_v46  ;;  %v2006_v46 = vpop.permute.xlu1 %2005 }
 0x791   :  { %2669 = vmatprep.mubr.f32.mxu0 %v15254_v0 }
 0x85f   :  { %v1745_v24 = vpop.f32.mrb[30].mxu0 }
 0x860   :  { %v1747_v53 = vpop.f32.mrb[31].mxu0  ;;  %v10218_v2 = vadd.f32 %v1745_v24, %v11668_v7  ;;  %v2008_v24 = vpop.permute.xlu1 %2007 }
 0x861   :  { %v10219_v47 = vadd.f32 %v1747_v53, %v11672_v20 }
 0x863   :  { %v1751_v36 = vpop.f32.mrb[32].mxu0 }
 0x864   :  { %v10220_v63 = vadd.f32 %v1751_v36, %v11668_v7  ;;  %v1753_v61 = vpop.f32.mrb[33].mxu0 }
 0x865   :  { %v10221_v43 = vadd.f32 %v1753_v61, %v11672_v20 }
 0x866   :  { %v8816_v8 = vpack.c.bf16 %v10220_v63, %v10218_v2  ;;  %v2010_v63 = vpop.permute.xlu1 %2009 }
 0x867   :  { %v8813_v60 = vpack.c.bf16 %v10221_v43, %v10219_v47 }
 0x869   :  { %8815 = vmatprep.subr.msk.bf16.mxu1 %vm11680_vm15, %v8813_v60 }
 0x86a   :  { %8818 = vmatpush1.bf16.msk.msra.mxu1 %vm11680_vm15, %v8816_v8 }
 0x86b   :  { %8821 = vmatprep.subr.msk.bf16.mxu1 %vm11680_vm15, %v8813_v60 }
 0x86d   :  { %8028 = vmatmul.mubr.msk.f32.vlgmr.msra.gmra.mrb[12].mxu1 %vm897_vm8, %v11691_v9  ;;  %v1987_v9 = vpop.permute.xlu0 %1986 }
 0x86e   :  { %8824 = vmatpush1.bf16.msk.msra.mxu1 %vm11680_vm15, %v8816_v8  ;;  %1897 = vmatprep.mubr.f32.mxu1 %v15254_v0  ;;  %v2017_v18 = vsel %vm266_vm2, %v11823_v49, %v1987_v9  ;;  %v2012_v8 = vpop.permute.xlu1 %2011 }
 0x86f   :  { %8826 = vmatprep.subr.bf16.mxu1 %v10713_v16  ;;  %v2021_v53 = vsel %vm271_vm3, %v2017_v18, %v2006_v46 }
 0x871   :  { %8031 = vmatmul.mubr.msk.f32.vlgmr.msra.gmra.mrb[14].mxu1 %vm897_vm8, %v11703_v19  ;;  %v1989_v19 = vpop.permute.xlu0 %1988 }
 0x872   :  { %8828 = vmatpush1.bf16.msra.mxu1 %v10737_v26  ;;  %2101 = vmatprep.mubr.f32.mxu1 %v15254_v0  ;;  %v2018_v2 = vsel %vm266_vm2, %v11828_v62, %v1989_v19 }
 0x873   :  { %8830 = vmatprep.subr.bf16.mxu1 %v10739_v27  ;;  %v2022_v61 = vsel %vm271_vm3, %v2018_v2, %v2008_v24 }
 0x875   :  { %v1991_v36 = vpop.permute.xlu0 %1990 }
 0x876   :  { %8832 = vmatpush1.bf16.msra.mxu1 %v10748_v30  ;;  %v2019_v47 = vsel %vm266_vm2, %v11833_v3, %v1991_v36 }
 0x877   :  { %8834 = vmatprep.subr.bf16.mxu1 %v10761_v35  ;;  %v2023_v43 = vsel %vm271_vm3, %v2019_v47, %v2010_v63 }
 0x879   :  { %v1993_v49 = vpop.permute.xlu0 %1992 }
 0x87a   :  { %8836 = vmatpush1.bf16.msra.mxu1 %v10770_v38  ;;  %v2020_v62 = vsel %vm266_vm2, %v11844_v5, %v1993_v49 }
 0x87b   :  { %8838 = vmatprep.subr.bf16.mxu1 %v10781_v41  ;;  %v2024_v60 = vsel %vm271_vm3, %v2020_v62, %v2012_v8 }
 0x87e   :  { %8840 = vmatpush1.bf16.msra.mxu1 %v10790_v44 }
 0x87f   :  { %8842 = vmatprep.subr.bf16.mxu1 %v10794_v45 }
 0x882   :  { %8844 = vmatpush1.bf16.msra.mxu1 %v10810_v50 }
 0x883   :  { %8846 = vmatprep.subr.bf16.mxu1 %v10813_v51 }
 0x886   :  { %8848 = vmatpush1.bf16.msra.mxu1 %v10822_v54 }
 0x889   :  { %8036 = vmatmul.mubr.msk.f32.vlgmr.msra.gmra.mrb[16].mxu1 %vm287_vm4, %v2021_v53 }
 0x88a   :  { %2107 = vmatprep.mubr.f32.mxu1 %v15254_v0 }
 0x88d   :  { %8037 = vmatmul.mubr.msk.f32.gmra.mrb[18].mxu1 %vm287_vm4, %v2022_v61 }
 0x88e   :  { %2113 = vmatprep.mubr.f32.mxu1 %v15254_v0 }
 0x891   :  { %8038 = vmatmul.mubr.msk.f32.gmra.mrb[20].mxu1 %vm287_vm4, %v2023_v43 }
 0x892   :  { %2119 = vmatprep.mubr.f32.mxu1 %v15254_v0 }
 0x895   :  { %8039 = vmatmul.mubr.msk.f32.gmra.mrb[22].mxu1 %vm287_vm4, %v2024_v60 }
 0x896   :  { %2196 = vmatprep.mubr.f32.mxu1 %v15254_v0 }
 0x940   :  { %v1828_v3 = vpop.f32.mrb[12].mxu1 }
 0x941   :  { %v1830_v9 = vpop.f32.mrb[13].mxu1 }
 0x944   :  { %v1899_v46 = vpop.f32.mrb[14].mxu1 }
 0x945   :  { %v11964_v19 = vmax.f32 %v1828_v3, %v1899_v46  ;;  %v1901_v18 = vpop.f32.mrb[15].mxu1 }
 0x946   :  { %v11966_v24 = vmax.f32 %v1830_v9, %v1901_v18 }
 0x947   :  { %15340 = vst [vmem:[#allocation55_spill] sm:$0xff] %v11964_v19  ;;  %v15355_v19 = vld [vmem:[#allocation48_spill] sm:$0xff] }
 0x948   :  { %15341 = vst [vmem:[#allocation56_spill] sm:$0xff] %v11966_v24 }
 0x95c   :  { %v2103_v5 = vpop.f32.mrb[16].mxu1 }
 0x95d   :  { %v2105_v53 = vpop.f32.mrb[17].mxu1  ;;  %v2104_v2 = vadd.f32 %v2103_v5, %v10855_v14 }
 0x95e   :  { %v2106_v47 = vadd.f32 %v2105_v53, %v10859_v17 }
 0x960   :  { %v2109_v36 = vpop.f32.mrb[18].mxu1 }
 0x961   :  { %v2110_v63 = vadd.f32 %v2109_v36, %v10855_v14  ;;  %v2111_v61 = vpop.f32.mrb[19].mxu1 }
 0x962   :  { %v2112_v49 = vadd.f32 %v2111_v61, %v10859_v17  ;;  %v12004_v61 = vld [vmem:[%s14938_s4] sm:$0xff] }
 0x963   :  { %v8851_v43 = vpack.c.bf16 %v2110_v63, %v2104_v2  ;;  %v11983_v2 = vld [vmem:[%s14937_s3] sm:$0xff]  ;;  %v11993_v63 = vld [vmem:[%s14937_s3 + $0x8] sm:$0x7f] }
 0x964   :  { %v8849_v62 = vpack.c.bf16 %v2112_v49, %v2106_v47  ;;  %v2115_v8 = vpop.f32.mrb[20].mxu1  ;;  %v15342_v47 = vld [vmem:[#allocation35_spill] sm:$0xff]  ;;  %v15343_v49 = vld [vmem:[#allocation36_spill] sm:$0xff] }
 0x965   :  { %v2117_v60 = vpop.f32.mrb[21].mxu1  ;;  %v2116_v9 = vadd.f32 %v2115_v8, %v10855_v14  ;;  %v15346_v8 = vld [vmem:[#allocation39_spill] sm:$0xff] }
 0x966   :  { %8850 = vmatprep.subr.bf16.mxu1 %v8849_v62  ;;  %v2118_v5 = vadd.f32 %v2117_v60, %v10859_v17  ;;  %v15347_v60 = vld [vmem:[#allocation40_spill] sm:$0xff] }
 0x967   :  { %8852 = vmatpush1.bf16.msra.mxu1 %v8851_v43 }
 0x968   :  { %v2121_v3 = vpop.f32.mrb[22].mxu1 }
 0x969   :  { %v2122_v46 = vadd.f32 %v2121_v3, %v10855_v14  ;;  %v2123_v18 = vpop.f32.mrb[23].mxu1  ;;  %v15348_v3 = vld [vmem:[#allocation41_spill] sm:$0xff] }
 0x96a   :  { %v2124_v36 = vadd.f32 %v2123_v18, %v10859_v17  ;;  %v15351_v18 = vld [vmem:[#allocation44_spill] sm:$0xff] }
 0x96b   :  { %v8856_v24 = vpack.c.bf16 %v2122_v46, %v2116_v9  ;;  %v15349_v9 = vld [vmem:[#allocation42_spill] sm:$0xff]  ;;  %v15350_v46 = vld [vmem:[#allocation43_spill] sm:$0xff] }
 0x96c   :  { %v8853_v53 = vpack.c.bf16 %v2124_v36, %v2118_v5  ;;  %v15352_v5 = vld [vmem:[#allocation45_spill] sm:$0xff]  ;;  %v15353_v36 = vld [vmem:[#allocation46_spill] sm:$0xff] }
 0x96e   :  { %8855 = vmatprep.subr.msk.bf16.mxu1 %vm10871_vm6, %v8853_v53 }
 0x96f   :  { %8858 = vmatpush1.bf16.msk.msra.mxu1 %vm10871_vm6, %v8856_v24 }
 0x970   :  { %8860 = vmatprep.subr.bf16.mxu1 %v8849_v62  ;;  %v15345_v62 = vld [vmem:[#allocation38_spill] sm:$0xff] }
 0x972   :  { %8042 = vmatmul.mubr.msk.f32.vlgmr.msra.gmra.mrb[24].mxu1 %vm389_vm7, %v11983_v2 }
 0x973   :  { %8862 = vmatpush1.bf16.msra.mxu1 %v8851_v43  ;;  %2202 = vmatprep.mubr.f32.mxu1 %v15254_v0  ;;  %v15344_v43 = vld [vmem:[#allocation37_spill] sm:$0xff] }
 0x974   :  { %8865 = vmatprep.subr.msk.bf16.mxu1 %vm10871_vm6, %v8853_v53  ;;  %v15354_v53 = vld [vmem:[#allocation47_spill] sm:$0xff] }
 0x976   :  { %8043 = vmatmul.mubr.msk.f32.gmra.mrb[26].mxu1 %vm389_vm7, %v11993_v63 }
 0x977   :  { %8868 = vmatpush1.bf16.msk.msra.mxu1 %vm10871_vm6, %v8856_v24  ;;  %2273 = vmatprep.mubr.f32.mxu1 %v15254_v0  ;;  %v12014_v24 = vld [vmem:[%s14938_s4 + $0x8] sm:$0x7f] }
 0x978   :  { %8870 = vmatprep.subr.bf16.mxu1 %v10938_v6 }
 0x97a   :  { %8046 = vmatmul.mubr.msk.f32.vlgmr.msra.gmra.mrb[28].mxu1 %vm389_vm7, %v12004_v61 }
 0x97b   :  { %2279 = vmatprep.mubr.f32.mxu1 %v15254_v0  ;;  %8872 = vmatpush1.bf16.msra.mxu1 %v10949_v12 }
 0x97c   :  { %8874 = vmatprep.subr.bf16.mxu1 %v10951_v13 }
 0x97e   :  { %8047 = vmatmul.mubr.msk.f32.gmra.mrb[30].mxu1 %vm389_vm7, %v12014_v24 }
 0x97f   :  { %8876 = vmatpush1.bf16.msra.mxu1 %v10967_v21 }
 0x980   :  { %8878 = vmatprep.subr.bf16.mxu1 %v10970_v22 }
 0x983   :  { %8880 = vmatpush1.bf16.msra.mxu1 %v10985_v29 }
 0x984   :  { %8882 = vmatprep.subr.bf16.mxu1 %v10988_v31 }
 0x987   :  { %8884 = vmatpush1.bf16.msra.mxu1 %v11003_v37 }
 0x988   :  { %8886 = vmatprep.subr.bf16.mxu1 %v11006_v39 }
 0x98b   :  { %8888 = vmatpush1.bf16.msra.mxu1 %v11021_v55 }
 0x98c   :  { %8890 = vmatprep.subr.bf16.mxu1 %v11024_v56 }
 0x98f   :  { %8892 = vmatpush1.bf16.msra.mxu1 %v11039_v4 }
 0x990   :  { %8894 = vmatprep.subr.bf16.mxu1 %v11048_v1 }
 0x993   :  { %8896 = vmatpush1.bf16.msra.mxu1 %v11073_v25 }
 0x994   :  { %8898 = vmatprep.subr.bf16.mxu1 %v11077_v28 }
 0x997   :  { %8900 = vmatpush1.bf16.msra.mxu1 %v11093_v42 }
 0x998   :  { %8902 = vmatprep.subr.bf16.mxu1 %v15342_v47 }
 0x99b   :  { %8904 = vmatpush1.bf16.msra.mxu1 %v15343_v49 }
 0x99c   :  { %8906 = vmatprep.subr.bf16.mxu1 %v15344_v43 }
 0x99f   :  { %8908 = vmatpush1.bf16.msra.mxu1 %v15345_v62  ;;  %v15356_v62 = vld [vmem:[#allocation49_spill] sm:$0xff] }
 0x9a0   :  { %8910 = vmatprep.subr.bf16.mxu1 %v15346_v8  ;;  %v15357_v8 = vld [vmem:[#allocation50_spill] sm:$0xff] }
 0x9a3   :  { %8912 = vmatpush1.bf16.msra.mxu1 %v15347_v60  ;;  %v15358_v60 = vld [vmem:[#allocation51_spill] sm:$0xff] }
 0x9a4   :  { %8914 = vmatprep.subr.bf16.mxu1 %v15348_v3 }
 0x9a7   :  { %8916 = vmatpush1.bf16.msra.mxu1 %v15349_v9 }
 0x9a8   :  { %8918 = vmatprep.subr.bf16.mxu1 %v15350_v46 }
 0x9ab   :  { %8920 = vmatpush1.bf16.msra.mxu1 %v15351_v18 }
 0x9ac   :  { %8922 = vmatprep.subr.bf16.mxu1 %v15352_v5 }
 0x9af   :  { %8924 = vmatpush1.bf16.msra.mxu1 %v15353_v36 }
 0x9b0   :  { %8926 = vmatprep.subr.bf16.mxu1 %v15354_v53 }
 0x9b3   :  { %8928 = vmatpush1.bf16.msra.mxu1 %v15355_v19 }
 0x9b4   :  { %8930 = vmatprep.subr.bf16.mxu1 %v15356_v62 }
 0x9b7   :  { %8932 = vmatpush1.bf16.msra.mxu1 %v15357_v8 }
 0x9b8   :  { %8934 = vmatprep.subr.bf16.mxu1 %v15358_v60 }
 0xa45   :  { %v2198_v3 = vpop.f32.mrb[24].mxu1 }
 0xa46   :  { %v2200_v9 = vpop.f32.mrb[25].mxu1 }
 0xa49   :  { %v2204_v43 = vpop.f32.mrb[26].mxu1 }
 0xa4a   :  { %v2206_v46 = vpop.f32.mrb[27].mxu1 }
 0xa4d   :  { %v2275_v49 = vpop.f32.mrb[28].mxu1 }
 0xa4e   :  { %v2286_v18 = vmax.f32 %v2198_v3, %v2275_v49  ;;  %v2277_v47 = vpop.f32.mrb[29].mxu1 }
 0xa4f   :  { %v2287_v5 = vmax.f32 %v2200_v9, %v2277_v47 }
 0xa51   :  { %2296 = vrot.lane.b32.xlu1 %v2287_v5, %s10584_s29  ;;  %v2281_v36 = vpop.f32.mrb[30].mxu1 }
 0xa52   :  { %v2288_v53 = vmax.f32 %v2204_v43, %v2281_v36  ;;  %v2283_v42 = vpop.f32.mrb[31].mxu1 }
 0xa53   :  { %v2289_v19 = vmax.f32 %v2206_v46, %v2283_v42 }
 0xa54   :  { %v10342_v28 = vpack.i.bf16 %v2288_v53, %v2286_v18 }
 0xa56   :  { %10343 = vrot.lane.b32.xlu0 %v10342_v28, %s10584_s29 }
 0xa5a   :  { %2300 = vrot.lane.b32.xlu0 %v2289_v19, %s10584_s29 }
 0xac3   :  { %v2297_v60 = vpop.permute.xlu1 %2296 }
 0xac4   :  { %v2309_v62 = vmax.f32 %v2287_v5, %v2297_v60 }
 0xac6   :  { %v2313_v9 = vmax.f32 %v2309_v62, 0.0 }
 0xac8   :  { %v10344_v8 = vpop.permute.xlu0 %10343  ;;  %v2323_v28 = vrot.slane %v2313_v9, 1 }
 0xac9   :  { %v10345_v25 = vunpack.i.l.bf16 %v10344_v8  ;;  %v10346_v1 = vunpack.i.h.bf16 %v10344_v8 }
 0xacb   :  { %v2302_v49 = vsel %vm578_vm9, %v10345_v25, %v2297_v60 }
 0xacc   :  { %v2308_v3 = vmax.f32 %v2286_v18, %v2302_v49  ;;  %v2301_v47 = vpop.permute.xlu0 %2300 }
 0xacd   :  { %v2303_v4 = vsel %vm578_vm9, %v10346_v1, %v2301_v47  ;;  %v2311_v43 = vmax.f32 %v2289_v19, %v2301_v47  ;;  %v2343_v1 = vrot.slane %v2313_v9, 2 }
 0xace   :  { %v2312_v36 = vmax.f32 %v2308_v3, 0.0  ;;  %v2310_v42 = vmax.f32 %v2288_v53, %v2303_v4 }
 0xacf   :  { %v2315_v46 = vmax.f32 %v2311_v43, 0.0  ;;  %v12088_v43 = vld [vmem:[%s14934_s0 + $0x78] sm:$0xff] }
 0xad0   :  { %v2314_v56 = vmax.f32 %v2310_v42, 0.0  ;;  %v2320_v39 = vrot.slane %v2312_v36, 1  ;;  %v2340_v62 = vrot.slane %v2312_v36, 2 }
 0xad1   :  { %v2324_v55 = vrot.slane %v2315_v46, 1  ;;  %v2344_v25 = vrot.slane %v2315_v46, 2 }
 0xad2   :  { %v2321_v37 = vrot.slane %v2314_v56, 1  ;;  %v2341_v19 = vrot.slane %v2314_v56, 2 }
 0xad3   :  { %v2325_v5 = vsel %vm226_vm0, %v2323_v28, %v2324_v55  ;;  %v2345_v4 = vsel %vm246_vm1, %v2343_v1, %v2344_v25  ;;  %v2846_v1 = vrot.slane %v12088_v43, 2 }
 0xad4   :  { %v2322_v8 = vsel %vm226_vm0, %v2320_v39, %v2321_v37  ;;  %v10347_v31 = vpack.i.bf16 %v2325_v5, %v2321_v37  ;;  %v2342_v60 = vsel %vm246_vm1, %v2340_v62, %v2341_v19  ;;  %v12072_v37 = vld [vmem:[%s14934_s0 + $0x68] sm:$0xff]  ;;  %v12077_v39 = vld [vmem:[%s14934_s0 + $0x70] sm:$0xff] }
 0xad5   :  { %2326 = vrot.lane.b32.xlu1 %v2322_v8, %s10585_s22  ;;  %v2823_v18 = vrot.slane %v12072_v37, 1  ;;  %v2842_v49 = vrot.slane %v12072_v37, 2  ;;  %v2825_v3 = vrot.slane %v12077_v39, 1  ;;  %v2844_v47 = vrot.slane %v12077_v39, 2 }
 0xad6   :  { %10348 = vrot.lane.b32.xlu0 %v10347_v31, %s10585_s22  ;;  %v12067_v31 = vld [vmem:[%s14934_s0 + $0x60] sm:$0xff] }
 0xad7   :  { %v2841_v53 = vrot.slane %v12067_v31, 2  ;;  %v2826_v5 = vsel %vm226_vm0, %v2823_v18, %v2825_v3  ;;  %v2845_v8 = vsel %vm246_vm1, %v2842_v49, %v2844_v47 }
 0xad9   :  { %2332 = vrot.lane.b32.xlu1 %v2324_v55, %s10585_s22  ;;  %v2822_v55 = vrot.slane %v12067_v31, 1  ;;  %v2843_v28 = vsel %vm246_vm1, %v2841_v53, %v2842_v49 }
 0xada   :  { %2348 = vrot.lane.b32.xlu0 %v2345_v4, %s10586_s24  ;;  %v2847_v4 = vsel %vm246_vm1, %v2844_v47, %v2846_v1 }
 0xadb   :  { %v2824_v42 = vsel %vm226_vm0, %v2822_v55, %v2823_v18 }
 0xadd   :  { %2346 = vrot.lane.b32.xlu1 %v2342_v60, %s10586_s24 }
 0xade   :  { %2350 = vrot.lane.b32.xlu0 %v2341_v19, %s10586_s24 }
 0xae1   :  { %2352 = vrot.lane.b32.xlu1 %v2344_v25, %s10586_s24  ;;  %v2827_v25 = vrot.slane %v12088_v43, 1 }
 0xae2   :  { %2829 = vrot.lane.b32.xlu0 %v2824_v42, %s10581_s23  ;;  %v15359_v42 = vld [vmem:[#allocation58_spill] sm:$0xff] }
 0xae3   :  { %v2828_v19 = vsel %vm226_vm0, %v2825_v3, %v2827_v25 }
 0xae5   :  { %2848 = vrot.lane.b32.xlu1 %v2843_v28, %s10582_s17  ;;  %v15361_v28 = vld [vmem:[#allocation60_spill] sm:$0xff] }
 0xae6   :  { %2831 = vrot.lane.b32.xlu0 %v2826_v5, %s10581_s23  ;;  %v15363_v5 = vld [vmem:[#allocation62_spill] sm:$0xff] }
 0xae9   :  { %2850 = vrot.lane.b32.xlu1 %v2845_v8, %s10582_s17  ;;  %v15365_v8 = vld [vmem:[#allocation64_spill] sm:$0xff] }
 0xaea   :  { %2833 = vrot.lane.b32.xlu0 %v2828_v19, %s10581_s23  ;;  %v15368_v19 = vld [vmem:[#allocation67_spill] sm:$0xff] }
 0xaed   :  { %2852 = vrot.lane.b32.xlu1 %v2847_v4, %s10582_s17  ;;  %v15369_v4 = vld [vmem:[#allocation68_spill] sm:$0xff] }
 0xaee   :  { %2835 = vrot.lane.b32.xlu0 %v2827_v25, %s10581_s23  ;;  %v15366_v25 = vld [vmem:[#allocation65_spill] sm:$0xff] }
 0xaf1   :  { %2854 = vrot.lane.b32.xlu1 %v2846_v1, %s10582_s17  ;;  %v15367_v1 = vld [vmem:[#allocation66_spill] sm:$0xff] }
 0xb47   :  { %v2327_v62 = vpop.permute.xlu1 %2326 }
 0xb48   :  { %v10349_v60 = vpop.permute.xlu0 %10348  ;;  %v2360_v55 = vsel %vm611_vm11, %v2313_v9, %v2327_v62 }
 0xb49   :  { %v10350_v18 = vunpack.i.l.bf16 %v10349_v60  ;;  %2432 = vmatprep.mubr.f32.mxu1 %v2360_v55  ;;  %v15370_v55 = vld [vmem:[#allocation69_spill] sm:$0xff] }
 0xb4a   :  { %2433 = vmatmul.mubr.f32.vlgmr.msra.gmra.mrb[32].mxu1 %v2312_v36  ;;  %v15360_v36 = vld [vmem:[#allocation59_spill] sm:$0xff] }
 0xb4b   :  { %8936 = vmatpush1.bf16.msra.mxu1 %v15307_v33  ;;  %v2333_v53 = vpop.permute.xlu1 %2332  ;;  %v2361_v49 = vsel %vm611_vm11, %v2315_v46, %v10350_v18  ;;  %v15362_v46 = vld [vmem:[#allocation61_spill] sm:$0xff] }
 0xb4c   :  { %2438 = vmatprep.mubr.f32.mxu1 %v2361_v49  ;;  %8938 = vmatprep.subr.bf16.mxu1 %v15308_v58  ;;  %v2349_v3 = vpop.permute.xlu0 %2348  ;;  %v15371_v49 = vld [vmem:[#allocation71_spill] sm:$0xff] }
 0xb4e   :  { %2439 = vmatmul.mubr.f32.gmra.mrb[34].mxu1 %v2314_v56  ;;  %v15364_v56 = vld [vmem:[#allocation63_spill] sm:$0xff] }
 0xb4f   :  { %8940 = vmatpush1.bf16.msra.mxu1 %v11367_v11  ;;  %v2347_v47 = vpop.permute.xlu1 %2346 }
 0xb50   :  { %8942 = vmatprep.subr.bf16.mxu1 %v15309_v32  ;;  %v2354_v9 = vsel %vm632_vm13, %v2347_v47, %v2349_v3 }
 0xb51   :  { %2509 = vmatprep.mubr.f32.mxu1 %v2354_v9  ;;  %v15372_v9 = vld [vmem:[#allocation72_spill] sm:$0xff] }
 0xb53   :  { %8944 = vmatpush1.bf16.msra.mxu1 %v15359_v42 }
 0xb54   :  { %8946 = vmatprep.subr.bf16.mxu1 %v15360_v36 }
 0xb57   :  { %8948 = vmatpush1.bf16.msra.mxu1 %v15361_v28 }
 0xb58   :  { %8950 = vmatprep.subr.bf16.mxu1 %v15362_v46 }
 0xb5b   :  { %8952 = vmatpush1.bf16.msra.mxu1 %v15363_v5  ;;  %v15373_v5 = vld [vmem:[#allocation73_spill] sm:$0xff] }
 0xb5c   :  { %8954 = vmatprep.subr.bf16.mxu1 %v15364_v56  ;;  %v15374_v56 = vld [vmem:[#allocation74_spill] sm:$0xff] }
 0xb5f   :  { %8956 = vmatpush1.bf16.msra.mxu1 %v15365_v8  ;;  %v15375_v8 = vld [vmem:[#allocation75_spill] sm:$0xff] }
 0xb60   :  { %8958 = vmatprep.subr.bf16.mxu1 %v15366_v25  ;;  %v15376_v25 = vld [vmem:[#allocation76_spill] sm:$0xff] }
 0xb63   :  { %8960 = vmatpush1.bf16.msra.mxu1 %v15367_v1  ;;  %v15377_v1 = vld [vmem:[#allocation77_spill] sm:$0xff] }
 0xb64   :  { %8962 = vmatprep.subr.bf16.mxu1 %v15368_v19  ;;  %v15378_v19 = vld [vmem:[#allocation78_spill] sm:$0xff] }
 0xb67   :  { %8964 = vmatpush1.bf16.msra.mxu1 %v15369_v4  ;;  %v15383_v4 = vld [vmem:[#allocation84_spill] sm:$0xff] }
 0xb68   :  { %8966 = vmatprep.subr.bf16.mxu1 %v15370_v55  ;;  %v15379_v55 = vld [vmem:[#allocation80_spill] sm:$0xff] }
 0xb6b   :  { %8968 = vmatpush1.bf16.msra.mxu1 %v15322_v52  ;;  %v15380_v52 = vld [vmem:[#allocation81_spill] sm:$0xff] }
 0xb6c   :  { %8970 = vmatprep.subr.bf16.mxu1 %v15371_v49  ;;  %v15381_v49 = vld [vmem:[#allocation82_spill] sm:$0xff] }
 0xb6f   :  { %8972 = vmatpush1.bf16.msra.mxu1 %v15372_v9  ;;  %v10351_v9 = vunpack.i.h.bf16 %v10349_v60  ;;  %v2335_v60 = vsel %vm611_vm11, %v10350_v18, %v2333_v53 }
 0xb70   :  { %8974 = vmatprep.subr.bf16.mxu1 %v15373_v5  ;;  %v15382_v5 = vld [vmem:[#allocation83_spill] sm:$0xff] }
 0xb73   :  { %8976 = vmatpush1.bf16.msra.mxu1 %v15374_v56  ;;  %v2353_v56 = vpop.permute.xlu1 %2352 }
 0xb74   :  { %8978 = vmatprep.subr.bf16.mxu1 %v15375_v8 }
 0xb77   :  { %8980 = vmatpush1.bf16.msra.mxu1 %v15376_v25  ;;  %v2334_v25 = vsel %vm611_vm11, %v2327_v62, %v10351_v9  ;;  %v12182_v9 = vld [vmem:[%s14942_s8] sm:$0x3f] }
 0xb78   :  { %8982 = vmatprep.subr.bf16.mxu1 %v15377_v1  ;;  %v2351_v1 = vpop.permute.xlu0 %2350 }
 0xb7b   :  { %8984 = vmatpush1.bf16.msra.mxu1 %v15378_v19  ;;  %v2362_v19 = vsel %vm632_vm13, %v2334_v25, %v2347_v47 }
 0xb7c   :  { %8986 = vmatprep.subr.bf16.mxu1 %v15331_v34 }
 0xb7f   :  { %8988 = vmatpush1.bf16.msra.mxu1 %v15379_v55  ;;  %v2355_v55 = vsel %vm632_vm13, %v2351_v1, %v2353_v56 }
 0xb80   :  { %8990 = vmatprep.subr.bf16.mxu1 %v15380_v52 }
 0xb83   :  { %8992 = vmatpush1.bf16.msra.mxu1 %v15381_v49 }
 0xb84   :  { %8994 = vmatprep.subr.bf16.mxu1 %v15382_v5 }
 0xb87   :  { %8996 = vmatpush1.bf16.msra.mxu1 %v15383_v4  ;;  %v2363_v4 = vsel %vm632_vm13, %v2335_v60, %v2351_v1  ;;  %v2830_v60 = vpop.permute.xlu0 %2829 }
 0xb88   :  { %8998 = vmatprep.subr.bf16.mxu1 %v15335_v57 }
 0xb8a   :  { %2510 = vmatmul.mubr.f32.vlgmr.msra.gmra.mrb[32].mxu1 %v2362_v19 }
 0xb8b   :  { %2515 = vmatprep.mubr.f32.mxu1 %v2355_v55  ;;  %9000 = vmatpush1.bf16.msra.mxu1 %v15336_v23 }
 0xb8c   :  { %9003 = vmatprep.subr.msk.bf16.mxu1 %vm11253_vm10, %v15337_v59 }
 0xb8e   :  { %2516 = vmatmul.mubr.f32.gmra.mrb[34].mxu1 %v2363_v4 }
 0xb8f   :  { %9006 = vmatpush1.bf16.msk.msra.mxu1 %vm11253_vm10, %v15339_v15  ;;  %2586 = vmatprep.mubr.f32.mxu1 %v15254_v0 }
 0xb92   :  { %8050 = vmatmul.mubr.msk.f32.vlgmr.msra.gmra.mrb[32].mxu1 %vm654_vm12, %v2349_v3 }
 0xb93   :  { %2592 = vmatprep.mubr.f32.mxu1 %v15254_v0 }
 0xb96   :  { %8051 = vmatmul.mubr.msk.f32.gmra.mrb[34].mxu1 %vm654_vm12, %v2353_v56  ;;  %v12171_v56 = vld [vmem:[%s14941_s7] sm:$0x3f] }
 0xb97   :  { %3512 = vmatprep.mubr.f32.mxu1 %v15254_v0 }
 0xc65   :  { %v2588_v62 = vpop.f32.mrb[32].mxu1 }
 0xc66   :  { %v2590_v18 = vpop.f32.mrb[33].mxu1  ;;  %v10222_v47 = vadd.f32 %v2588_v62, %v11668_v7  ;;  %v2849_v62 = vpop.permute.xlu1 %2848 }
 0xc67   :  { %v10223_v19 = vadd.f32 %v2590_v18, %v11672_v20  ;;  %v2832_v18 = vpop.permute.xlu0 %2831 }
 0xc69   :  { %v2594_v53 = vpop.f32.mrb[34].mxu1 }
 0xc6a   :  { %v10224_v25 = vadd.f32 %v2594_v53, %v11668_v7  ;;  %v2596_v1 = vpop.f32.mrb[35].mxu1  ;;  %v2860_v53 = vsel %vm266_vm2, %v12067_v31, %v2830_v60 }
 0xc6b   :  { %v10225_v4 = vadd.f32 %v2596_v1, %v11672_v20  ;;  %v2834_v1 = vpop.permute.xlu0 %2833 }
 0xc6c   :  { %v9010_v55 = vpack.c.bf16 %v10224_v25, %v10222_v47  ;;  %v2851_v47 = vpop.permute.xlu1 %2850  ;;  %v2864_v25 = vsel %vm271_vm3, %v2860_v53, %v2849_v62 }
 0xc6d   :  { %v9007_v3 = vpack.c.bf16 %v10225_v4, %v10223_v19  ;;  %v2861_v19 = vsel %vm266_vm2, %v12072_v37, %v2832_v18 }
 0xc6f   :  { %9009 = vmatprep.subr.msk.bf16.mxu0 %vm11680_vm15, %v9007_v3  ;;  %v2836_v31 = vpop.permute.xlu0 %2835 }
 0xc70   :  { %9012 = vmatpush1.bf16.msk.msra.mxu0 %vm11680_vm15, %v9010_v55  ;;  %v2853_v4 = vpop.permute.xlu1 %2852  ;;  %v2863_v37 = vsel %vm266_vm2, %v12088_v43, %v2836_v31 }
 0xc71   :  { %9015 = vmatprep.subr.msk.bf16.mxu0 %vm11680_vm15, %v9007_v3  ;;  %v2862_v3 = vsel %vm266_vm2, %v12077_v39, %v2834_v1 }
 0xc72   :  { %v2866_v60 = vsel %vm271_vm3, %v2862_v3, %v2853_v4 }
 0xc73   :  { %8054 = vmatmul.mubr.msk.f32.vlgmr.msra.gmra.mrb[34].mxu0 %vm897_vm8, %v12171_v56 }
 0xc74   :  { %9018 = vmatpush1.bf16.msk.msra.mxu0 %vm11680_vm15, %v9010_v55  ;;  %2740 = vmatprep.mubr.f32.mxu0 %v15254_v0  ;;  %v2865_v55 = vsel %vm271_vm3, %v2861_v19, %v2851_v47  ;;  %v2855_v62 = vpop.permute.xlu1 %2854 }
 0xc75   :  { %9020 = vmatprep.subr.bf16.mxu0 %v10713_v16  ;;  %v2867_v18 = vsel %vm271_vm3, %v2863_v37, %v2855_v62 }
 0xc77   :  { %8057 = vmatmul.mubr.msk.f32.vlgmr.msra.gmra.mrb[36].mxu0 %vm897_vm8, %v12182_v9 }
 0xc78   :  { %9022 = vmatpush1.bf16.msra.mxu0 %v10737_v26  ;;  %2944 = vmatprep.mubr.f32.mxu0 %v15254_v0 }
 0xc79   :  { %9024 = vmatprep.subr.bf16.mxu0 %v10739_v27 }
 0xc7c   :  { %9026 = vmatpush1.bf16.msra.mxu0 %v10748_v30 }
 0xc7d   :  { %9028 = vmatprep.subr.bf16.mxu0 %v10761_v35 }
 0xc80   :  { %9030 = vmatpush1.bf16.msra.mxu0 %v10770_v38 }
 0xc81   :  { %9032 = vmatprep.subr.bf16.mxu0 %v10781_v41 }
 0xc84   :  { %9034 = vmatpush1.bf16.msra.mxu0 %v10790_v44 }
 0xc85   :  { %9036 = vmatprep.subr.bf16.mxu0 %v10794_v45 }
 0xc88   :  { %9038 = vmatpush1.bf16.msra.mxu0 %v10810_v50 }
 0xc89   :  { %9040 = vmatprep.subr.bf16.mxu0 %v10813_v51 }
 0xc8c   :  { %9042 = vmatpush1.bf16.msra.mxu0 %v10822_v54 }
 0xc8f   :  { %8062 = vmatmul.mubr.msk.f32.vlgmr.msra.gmra.mrb[38].mxu0 %vm287_vm4, %v2864_v25 }
 0xc90   :  { %2950 = vmatprep.mubr.f32.mxu0 %v15254_v0 }
 0xc93   :  { %8063 = vmatmul.mubr.msk.f32.gmra.mrb[40].mxu0 %vm287_vm4, %v2865_v55 }
 0xc94   :  { %2956 = vmatprep.mubr.f32.mxu0 %v15254_v0 }
 0xc97   :  { %8064 = vmatmul.mubr.msk.f32.gmra.mrb[42].mxu0 %vm287_vm4, %v2866_v60 }
 0xc98   :  { %2962 = vmatprep.mubr.f32.mxu0 %v15254_v0 }
 0xc9b   :  { %8065 = vmatmul.mubr.msk.f32.gmra.mrb[44].mxu0 %vm287_vm4, %v2867_v18 }
 0xc9c   :  { %3039 = vmatprep.mubr.f32.mxu0 %v15254_v0 }
 0xd46   :  { %v2671_v39 = vpop.f32.mrb[34].mxu0 }
 0xd47   :  { %v2673_v53 = vpop.f32.mrb[35].mxu0 }
 0xd4a   :  { %v2742_v47 = vpop.f32.mrb[36].mxu0 }
 0xd4b   :  { %v12218_v25 = vmax.f32 %v2671_v39, %v2742_v47  ;;  %v2744_v1 = vpop.f32.mrb[37].mxu0 }
 0xd4c   :  { %v12220_v19 = vmax.f32 %v2673_v53, %v2744_v1 }
 0xd4d   :  { %15384 = vst [vmem:[#allocation57_spill] sm:$0xff] %v12218_v25 }
 0xd4e   :  { %15385 = vst [vmem:[#allocation79_spill] sm:$0xff] %v12220_v19 }
 0xd62   :  { %v2946_v43 = vpop.f32.mrb[38].mxu0 }
 0xd63   :  { %v2948_v4 = vpop.f32.mrb[39].mxu0  ;;  %v2947_v3 = vadd.f32 %v2946_v43, %v10855_v14 }
 0xd64   :  { %v2949_v37 = vadd.f32 %v2948_v4, %v10859_v17 }
 0xd66   :  { %v2952_v55 = vpop.f32.mrb[40].mxu0 }
 0xd67   :  { %v2953_v31 = vadd.f32 %v2952_v55, %v10855_v14  ;;  %v2954_v60 = vpop.f32.mrb[41].mxu0 }
 0xd68   :  { %v2955_v62 = vadd.f32 %v2954_v60, %v10859_v17  ;;  %v15396_v60 = vld [vmem:[#allocation35_spill] sm:$0xff] }
 0xd69   :  { %v9045_v18 = vpack.c.bf16 %v2953_v31, %v2947_v3  ;;  %v15394_v3 = vld [vmem:[#allocation33_spill] sm:$0xff]  ;;  %v15395_v31 = vld [vmem:[#allocation34_spill] sm:$0xff] }
 0xd6a   :  { %v9043_v54 = vpack.c.bf16 %v2955_v62, %v2949_v37  ;;  %v2958_v51 = vpop.f32.mrb[42].mxu0  ;;  %v15397_v37 = vld [vmem:[#allocation36_spill] sm:$0xff]  ;;  %v15398_v62 = vld [vmem:[#allocation37_spill] sm:$0xff] }
 0xd6b   :  { %v2960_v39 = vpop.f32.mrb[43].mxu0  ;;  %v2959_v47 = vadd.f32 %v2958_v51, %v10855_v14  ;;  %v15386_v51 = vld [vmem:[#allocation23_spill] sm:$0xff] }
 0xd6c   :  { %9044 = vmatprep.subr.bf16.mxu0 %v9043_v54  ;;  %v2961_v43 = vadd.f32 %v2960_v39, %v10859_v17  ;;  %v15400_v39 = vld [vmem:[#allocation39_spill] sm:$0xff] }
 0xd6d   :  { %9046 = vmatpush1.bf16.msra.mxu0 %v9045_v18 }
 0xd6e   :  { %v2964_v53 = vpop.f32.mrb[44].mxu0 }
 0xd6f   :  { %v2965_v1 = vadd.f32 %v2964_v53, %v10855_v14  ;;  %v2966_v19 = vpop.f32.mrb[45].mxu0  ;;  %v15401_v53 = vld [vmem:[#allocation40_spill] sm:$0xff] }
 0xd70   :  { %v2967_v55 = vadd.f32 %v2966_v19, %v10859_v17  ;;  %v15392_v19 = vld [vmem:[#allocation29_spill] sm:$0xff] }
 0xd71   :  { %v9050_v25 = vpack.c.bf16 %v2965_v1, %v2959_v47  ;;  %v15402_v47 = vld [vmem:[#allocation41_spill] sm:$0xff]  ;;  %v15403_v1 = vld [vmem:[#allocation42_spill] sm:$0xff] }
 0xd72   :  { %v9047_v4 = vpack.c.bf16 %v2967_v55, %v2961_v43  ;;  %v15404_v43 = vld [vmem:[#allocation43_spill] sm:$0xff]  ;;  %v15405_v55 = vld [vmem:[#allocation44_spill] sm:$0xff] }
 0xd74   :  { %9049 = vmatprep.subr.msk.bf16.mxu0 %vm10871_vm6, %v9047_v4 }
 0xd75   :  { %9052 = vmatpush1.bf16.msk.msra.mxu0 %vm10871_vm6, %v9050_v25 }
 0xd76   :  { %9054 = vmatprep.subr.bf16.mxu0 %v9043_v54  ;;  %v15387_v54 = vld [vmem:[#allocation24_spill] sm:$0xff] }
 0xd78   :  { %8068 = vmatmul.mubr.msk.f32.vlgmr.msra.gmra.mrb[46].mxu0 %vm389_vm7, %v11983_v2  ;;  %v15388_v2 = vld [vmem:[#allocation25_spill] sm:$0xff] }
 0xd79   :  { %9056 = vmatpush1.bf16.msra.mxu0 %v9045_v18  ;;  %3045 = vmatprep.mubr.f32.mxu0 %v15254_v0  ;;  %v15399_v18 = vld [vmem:[#allocation38_spill] sm:$0xff] }
 0xd7a   :  { %9059 = vmatprep.subr.msk.bf16.mxu0 %vm10871_vm6, %v9047_v4  ;;  %v15406_v4 = vld [vmem:[#allocation45_spill] sm:$0xff] }
 0xd7c   :  { %8069 = vmatmul.mubr.msk.f32.gmra.mrb[48].mxu0 %vm389_vm7, %v11993_v63  ;;  %v15389_v63 = vld [vmem:[#allocation26_spill] sm:$0xff] }
 0xd7d   :  { %9062 = vmatpush1.bf16.msk.msra.mxu0 %vm10871_vm6, %v9050_v25  ;;  %3116 = vmatprep.mubr.f32.mxu0 %v15254_v0  ;;  %v15391_v25 = vld [vmem:[#allocation28_spill] sm:$0xff] }
 0xd7e   :  { %9064 = vmatprep.subr.bf16.mxu0 %v10938_v6 }
 0xd80   :  { %8072 = vmatmul.mubr.msk.f32.vlgmr.msra.gmra.mrb[50].mxu0 %vm389_vm7, %v12004_v61  ;;  %v15390_v61 = vld [vmem:[#allocation27_spill] sm:$0xff] }
 0xd81   :  { %3122 = vmatprep.mubr.f32.mxu0 %v15254_v0  ;;  %9066 = vmatpush1.bf16.msra.mxu0 %v10949_v12 }
 0xd82   :  { %9068 = vmatprep.subr.bf16.mxu0 %v10951_v13 }
 0xd84   :  { %8073 = vmatmul.mubr.msk.f32.gmra.mrb[52].mxu0 %vm389_vm7, %v12014_v24  ;;  %v15393_v24 = vld [vmem:[#allocation32_spill] sm:$0xff] }
 0xd85   :  { %9070 = vmatpush1.bf16.msra.mxu0 %v10967_v21 }
 0xd86   :  { %9072 = vmatprep.subr.bf16.mxu0 %v10970_v22 }
 0xd89   :  { %9074 = vmatpush1.bf16.msra.mxu0 %v10985_v29 }
 0xd8a   :  { %9076 = vmatprep.subr.bf16.mxu0 %v15386_v51 }
 0xd8d   :  { %9078 = vmatpush1.bf16.msra.mxu0 %v15387_v54 }
 0xd8e   :  { %9080 = vmatprep.subr.bf16.mxu0 %v15388_v2 }
 0xd91   :  { %9082 = vmatpush1.bf16.msra.mxu0 %v15389_v63 }
 0xd92   :  { %9084 = vmatprep.subr.bf16.mxu0 %v15390_v61 }
 0xd95   :  { %9086 = vmatpush1.bf16.msra.mxu0 %v15391_v25 }
 0xd96   :  { %9088 = vmatprep.subr.bf16.mxu0 %v15392_v19 }
 0xd99   :  { %9090 = vmatpush1.bf16.msra.mxu0 %v15393_v24 }
 0xd9a   :  { %9092 = vmatprep.subr.bf16.mxu0 %v15394_v3 }
 0xd9d   :  { %9094 = vmatpush1.bf16.msra.mxu0 %v15395_v31 }
 0xd9e   :  { %9096 = vmatprep.subr.bf16.mxu0 %v15396_v60  ;;  %v15407_v60 = vld [vmem:[#allocation46_spill] sm:$0xff] }
 0xda1   :  { %9098 = vmatpush1.bf16.msra.mxu0 %v15397_v37  ;;  %v15408_v37 = vld [vmem:[#allocation47_spill] sm:$0xff] }
 0xda2   :  { %9100 = vmatprep.subr.bf16.mxu0 %v15398_v62  ;;  %v15409_v62 = vld [vmem:[#allocation48_spill] sm:$0xff] }
 0xda5   :  { %9102 = vmatpush1.bf16.msra.mxu0 %v15399_v18  ;;  %v15410_v18 = vld [vmem:[#allocation49_spill] sm:$0xff] }
 0xda6   :  { %9104 = vmatprep.subr.bf16.mxu0 %v15400_v39  ;;  %v15411_v39 = vld [vmem:[#allocation50_spill] sm:$0xff] }
 0xda9   :  { %9106 = vmatpush1.bf16.msra.mxu0 %v15401_v53  ;;  %v15412_v53 = vld [vmem:[#allocation51_spill] sm:$0xff] }
 0xdaa   :  { %9108 = vmatprep.subr.bf16.mxu0 %v15402_v47 }
 0xdad   :  { %9110 = vmatpush1.bf16.msra.mxu0 %v15403_v1 }
 0xdae   :  { %9112 = vmatprep.subr.bf16.mxu0 %v15404_v43 }
 0xdb1   :  { %9114 = vmatpush1.bf16.msra.mxu0 %v15405_v55 }
 0xdb2   :  { %9116 = vmatprep.subr.bf16.mxu0 %v15406_v4 }
 0xdb5   :  { %9118 = vmatpush1.bf16.msra.mxu0 %v15407_v60 }
 0xdb6   :  { %9120 = vmatprep.subr.bf16.mxu0 %v15408_v37 }
 0xdb9   :  { %9122 = vmatpush1.bf16.msra.mxu0 %v15409_v62 }
 0xdba   :  { %9124 = vmatprep.subr.bf16.mxu0 %v15410_v18 }
 0xdbd   :  { %9126 = vmatpush1.bf16.msra.mxu0 %v15411_v39 }
 0xdbe   :  { %9128 = vmatprep.subr.bf16.mxu0 %v15412_v53 }
 0xe4b   :  { %v3041_v47 = vpop.f32.mrb[46].mxu0 }
 0xe4c   :  { %v3043_v1 = vpop.f32.mrb[47].mxu0 }
 0xe4f   :  { %v3047_v31 = vpop.f32.mrb[48].mxu0 }
 0xe50   :  { %v3049_v43 = vpop.f32.mrb[49].mxu0 }
 0xe53   :  { %v3118_v3 = vpop.f32.mrb[50].mxu0 }
 0xe54   :  { %v3129_v55 = vmax.f32 %v3041_v47, %v3118_v3  ;;  %v3120_v24 = vpop.f32.mrb[51].mxu0 }
 0xe55   :  { %v3130_v4 = vmax.f32 %v3043_v1, %v3120_v24 }
 0xe57   :  { %3139 = vrot.lane.b32.xlu1 %v3130_v4, %s10584_s29  ;;  %v3124_v60 = vpop.f32.mrb[52].mxu0 }
 0xe58   :  { %v3131_v37 = vmax.f32 %v3047_v31, %v3124_v60  ;;  %v3126_v19 = vpop.f32.mrb[53].mxu0 }
 0xe59   :  { %v3132_v62 = vmax.f32 %v3049_v43, %v3126_v19 }
 0xe5a   :  { %v10352_v25 = vpack.i.bf16 %v3131_v37, %v3129_v55 }
 0xe5c   :  { %10353 = vrot.lane.b32.xlu0 %v10352_v25, %s10584_s29 }
 0xe60   :  { %3143 = vrot.lane.b32.xlu0 %v3132_v62, %s10584_s29 }
 0xec9   :  { %v3140_v53 = vpop.permute.xlu1 %3139 }
 0xeca   :  { %v3152_v18 = vmax.f32 %v3130_v4, %v3140_v53 }
 0xecc   :  { %v3156_v1 = vmax.f32 %v3152_v18, 0.0 }
 0xece   :  { %v10354_v39 = vpop.permute.xlu0 %10353  ;;  %v3166_v25 = vrot.slane %v3156_v1, 1 }
 0xecf   :  { %v10355_v61 = vunpack.i.l.bf16 %v10354_v39  ;;  %v10356_v63 = vunpack.i.h.bf16 %v10354_v39 }
 0xed1   :  { %v3145_v3 = vsel %vm578_vm9, %v10355_v61, %v3140_v53 }
 0xed2   :  { %v3151_v47 = vmax.f32 %v3129_v55, %v3145_v3  ;;  %v3144_v24 = vpop.permute.xlu0 %3143 }
 0xed3   :  { %v3146_v2 = vsel %vm578_vm9, %v10356_v63, %v3144_v24  ;;  %v3154_v31 = vmax.f32 %v3132_v62, %v3144_v24  ;;  %v3186_v63 = vrot.slane %v3156_v1, 2 }
 0xed4   :  { %v3155_v60 = vmax.f32 %v3151_v47, 0.0  ;;  %v3153_v19 = vmax.f32 %v3131_v37, %v3146_v2 }
 0xed5   :  { %v3158_v43 = vmax.f32 %v3154_v31, 0.0  ;;  %v12322_v31 = vld [vmem:[%s14934_s0 + $0x98] sm:$0xff] }
 0xed6   :  { %v3157_v54 = vmax.f32 %v3153_v19, 0.0  ;;  %v3163_v29 = vrot.slane %v3155_v60, 1  ;;  %v3183_v37 = vrot.slane %v3155_v60, 2 }
 0xed7   :  { %v3167_v51 = vrot.slane %v3158_v43, 1  ;;  %v3187_v61 = vrot.slane %v3158_v43, 2 }
 0xed8   :  { %v3164_v22 = vrot.slane %v3157_v54, 1  ;;  %v3184_v62 = vrot.slane %v3157_v54, 2 }
 0xed9   :  { %v3168_v4 = vsel %vm226_vm0, %v3166_v25, %v3167_v51  ;;  %v3188_v2 = vsel %vm246_vm1, %v3186_v63, %v3187_v61  ;;  %v3689_v63 = vrot.slane %v12322_v31, 2 }
 0xeda   :  { %v3165_v39 = vsel %vm226_vm0, %v3163_v29, %v3164_v22  ;;  %v10357_v21 = vpack.i.bf16 %v3168_v4, %v3164_v22  ;;  %v3185_v18 = vsel %vm246_vm1, %v3183_v37, %v3184_v62  ;;  %v12306_v22 = vld [vmem:[%s14934_s0 + $0x88] sm:$0xff]  ;;  %v12311_v29 = vld [vmem:[%s14934_s0 + $0x90] sm:$0xff] }
 0xedb   :  { %3169 = vrot.lane.b32.xlu1 %v3165_v39, %s10585_s22  ;;  %v3666_v53 = vrot.slane %v12306_v22, 1  ;;  %v3685_v3 = vrot.slane %v12306_v22, 2  ;;  %v3668_v47 = vrot.slane %v12311_v29, 1  ;;  %v3687_v24 = vrot.slane %v12311_v29, 2 }
 0xedc   :  { %10358 = vrot.lane.b32.xlu0 %v10357_v21, %s10585_s22  ;;  %v12301_v21 = vld [vmem:[%s14934_s0 + $0x80] sm:$0xff] }
 0xedd   :  { %v3684_v55 = vrot.slane %v12301_v21, 2  ;;  %v3669_v4 = vsel %vm226_vm0, %v3666_v53, %v3668_v47  ;;  %v3688_v39 = vsel %vm246_vm1, %v3685_v3, %v3687_v24 }
 0xedf   :  { %3175 = vrot.lane.b32.xlu1 %v3167_v51, %s10585_s22  ;;  %v3665_v51 = vrot.slane %v12301_v21, 1  ;;  %v3686_v25 = vsel %vm246_vm1, %v3684_v55, %v3685_v3 }
 0xee0   :  { %3191 = vrot.lane.b32.xlu0 %v3188_v2, %s10586_s24  ;;  %v3690_v2 = vsel %vm246_vm1, %v3687_v24, %v3689_v63 }
 0xee1   :  { %v3667_v19 = vsel %vm226_vm0, %v3665_v51, %v3666_v53 }
 0xee3   :  { %3189 = vrot.lane.b32.xlu1 %v3185_v18, %s10586_s24 }
 0xee4   :  { %3193 = vrot.lane.b32.xlu0 %v3184_v62, %s10586_s24 }
 0xee7   :  { %3195 = vrot.lane.b32.xlu1 %v3187_v61, %s10586_s24  ;;  %v3670_v61 = vrot.slane %v12322_v31, 1 }
 0xee8   :  { %3672 = vrot.lane.b32.xlu0 %v3667_v19, %s10581_s23  ;;  %v15416_v19 = vld [vmem:[#allocation65_spill] sm:$0xff] }
 0xee9   :  { %v3671_v62 = vsel %vm226_vm0, %v3668_v47, %v3670_v61 }
 0xeeb   :  { %3691 = vrot.lane.b32.xlu1 %v3686_v25, %s10582_s17  ;;  %v15417_v25 = vld [vmem:[#allocation66_spill] sm:$0xff] }
 0xeec   :  { %3674 = vrot.lane.b32.xlu0 %v3669_v4, %s10581_s23  ;;  %v15418_v4 = vld [vmem:[#allocation67_spill] sm:$0xff] }
 0xeef   :  { %3693 = vrot.lane.b32.xlu1 %v3688_v39, %s10582_s17  ;;  %v15419_v39 = vld [vmem:[#allocation68_spill] sm:$0xff] }
 0xef0   :  { %3676 = vrot.lane.b32.xlu0 %v3671_v62, %s10581_s23  ;;  %v15422_v62 = vld [vmem:[#allocation71_spill] sm:$0xff] }
 0xef3   :  { %3695 = vrot.lane.b32.xlu1 %v3690_v2, %s10582_s17  ;;  %v15423_v2 = vld [vmem:[#allocation72_spill] sm:$0xff] }
 0xef4   :  { %3678 = vrot.lane.b32.xlu0 %v3670_v61, %s10581_s23  ;;  %v15420_v61 = vld [vmem:[#allocation69_spill] sm:$0xff] }
 0xef7   :  { %3697 = vrot.lane.b32.xlu1 %v3689_v63, %s10582_s17  ;;  %v15421_v63 = vld [vmem:[#allocation70_spill] sm:$0xff] }
 0xf4d   :  { %v3170_v37 = vpop.permute.xlu1 %3169 }
 0xf4e   :  { %v10359_v18 = vpop.permute.xlu0 %10358  ;;  %v3203_v51 = vsel %vm611_vm11, %v3156_v1, %v3170_v37 }
 0xf4f   :  { %v10360_v53 = vunpack.i.l.bf16 %v10359_v18  ;;  %3275 = vmatprep.mubr.f32.mxu0 %v3203_v51  ;;  %v15424_v51 = vld [vmem:[#allocation73_spill] sm:$0xff] }
 0xf50   :  { %3276 = vmatmul.mubr.f32.vlgmr.msra.gmra.mrb[54].mxu0 %v3155_v60  ;;  %v15413_v60 = vld [vmem:[#allocation62_spill] sm:$0xff] }
 0xf51   :  { %9130 = vmatpush1.bf16.msra.mxu0 %v15307_v33  ;;  %v3176_v55 = vpop.permute.xlu1 %3175  ;;  %v3204_v3 = vsel %vm611_vm11, %v3158_v43, %v10360_v53  ;;  %v15415_v43 = vld [vmem:[#allocation64_spill] sm:$0xff] }
 0xf52   :  { %3281 = vmatprep.mubr.f32.mxu0 %v3204_v3  ;;  %9132 = vmatprep.subr.bf16.mxu0 %v15308_v58  ;;  %v3192_v47 = vpop.permute.xlu0 %3191  ;;  %v15425_v3 = vld [vmem:[#allocation74_spill] sm:$0xff] }
 0xf54   :  { %3282 = vmatmul.mubr.f32.gmra.mrb[56].mxu0 %v3157_v54  ;;  %v15414_v54 = vld [vmem:[#allocation63_spill] sm:$0xff] }
 0xf55   :  { %9134 = vmatpush1.bf16.msra.mxu0 %v11367_v11  ;;  %v3190_v24 = vpop.permute.xlu1 %3189 }
 0xf56   :  { %9136 = vmatprep.subr.bf16.mxu0 %v15309_v32  ;;  %v3197_v1 = vsel %vm632_vm13, %v3190_v24, %v3192_v47 }
 0xf57   :  { %3352 = vmatprep.mubr.f32.mxu0 %v3197_v1  ;;  %v15426_v1 = vld [vmem:[#allocation76_spill] sm:$0xff] }
 0xf59   :  { %9138 = vmatpush1.bf16.msra.mxu0 %v15359_v42 }
 0xf5a   :  { %9140 = vmatprep.subr.bf16.mxu0 %v15360_v36 }
 0xf5d   :  { %9142 = vmatpush1.bf16.msra.mxu0 %v15361_v28 }
 0xf5e   :  { %9144 = vmatprep.subr.bf16.mxu0 %v15362_v46 }
 0xf61   :  { %9146 = vmatpush1.bf16.msra.mxu0 %v15413_v60 }
 0xf62   :  { %9148 = vmatprep.subr.bf16.mxu0 %v15414_v54 }
 0xf65   :  { %9150 = vmatpush1.bf16.msra.mxu0 %v15415_v43 }
 0xf66   :  { %9152 = vmatprep.subr.bf16.mxu0 %v15416_v19 }
 0xf69   :  { %9154 = vmatpush1.bf16.msra.mxu0 %v15417_v25  ;;  %v15427_v25 = vld [vmem:[#allocation77_spill] sm:$0xff] }
 0xf6a   :  { %9156 = vmatprep.subr.bf16.mxu0 %v15418_v4  ;;  %v15428_v4 = vld [vmem:[#allocation78_spill] sm:$0xff] }
 0xf6d   :  { %9158 = vmatpush1.bf16.msra.mxu0 %v15419_v39 }
 0xf6e   :  { %9160 = vmatprep.subr.bf16.mxu0 %v15420_v61  ;;  %v15429_v61 = vld [vmem:[#allocation80_spill] sm:$0xff] }
 0xf71   :  { %9162 = vmatpush1.bf16.msra.mxu0 %v15421_v63 }
 0xf72   :  { %9164 = vmatprep.subr.bf16.mxu0 %v15422_v62 }
 0xf75   :  { %9166 = vmatpush1.bf16.msra.mxu0 %v15423_v2  ;;  %v10361_v2 = vunpack.i.h.bf16 %v10359_v18  ;;  %v3178_v18 = vsel %vm611_vm11, %v10360_v53, %v3176_v55 }
 0xf76   :  { %9168 = vmatprep.subr.bf16.mxu0 %v15424_v51  ;;  %v15430_v51 = vld [vmem:[#allocation84_spill] sm:$0xff] }
 0xf79   :  { %9170 = vmatpush1.bf16.msra.mxu0 %v15425_v3  ;;  %v3196_v3 = vpop.permute.xlu1 %3195 }
 0xf7a   :  { %9172 = vmatprep.subr.bf16.mxu0 %v15375_v8 }
 0xf7d   :  { %9174 = vmatpush1.bf16.msra.mxu0 %v15426_v1  ;;  %v3177_v1 = vsel %vm611_vm11, %v3170_v37, %v10361_v2 }
 0xf7e   :  { %9176 = vmatprep.subr.bf16.mxu0 %v15427_v25  ;;  %v3194_v25 = vpop.permute.xlu0 %3193 }
 0xf81   :  { %9178 = vmatpush1.bf16.msra.mxu0 %v15428_v4  ;;  %v3205_v4 = vsel %vm632_vm13, %v3177_v1, %v3190_v24  ;;  %v15431_v1 = vld [vmem:[#allocation12_spill] sm:$0xff] }
 0xf82   :  { %9180 = vmatprep.subr.bf16.mxu0 %v15331_v34 }
 0xf85   :  { %9182 = vmatpush1.bf16.msra.mxu0 %v15429_v61  ;;  %v3198_v61 = vsel %vm632_vm13, %v3194_v25, %v3196_v3 }
 0xf86   :  { %9184 = vmatprep.subr.bf16.mxu0 %v15380_v52 }
 0xf89   :  { %9186 = vmatpush1.bf16.msra.mxu0 %v15381_v49 }
 0xf8a   :  { %9188 = vmatprep.subr.bf16.mxu0 %v15382_v5 }
 0xf8d   :  { %9190 = vmatpush1.bf16.msra.mxu0 %v15430_v51  ;;  %v3206_v51 = vsel %vm632_vm13, %v3178_v18, %v3194_v25 }
 0xf8e   :  { %9192 = vmatprep.subr.bf16.mxu0 %v15335_v57 }
 0xf90   :  { %3353 = vmatmul.mubr.f32.vlgmr.msra.gmra.mrb[54].mxu0 %v3205_v4 }
 0xf91   :  { %3358 = vmatprep.mubr.f32.mxu0 %v3198_v61  ;;  %9194 = vmatpush1.bf16.msra.mxu0 %v15336_v23 }
 0xf92   :  { %9197 = vmatprep.subr.msk.bf16.mxu0 %vm11253_vm10, %v15337_v59 }
 0xf94   :  { %3359 = vmatmul.mubr.f32.gmra.mrb[56].mxu0 %v3206_v51 }
 0xf95   :  { %9200 = vmatpush1.bf16.msk.msra.mxu0 %vm11253_vm10, %v15339_v15  ;;  %3429 = vmatprep.mubr.f32.mxu0 %v15254_v0 }
 0xf98   :  { %8076 = vmatmul.mubr.msk.f32.vlgmr.msra.gmra.mrb[54].mxu0 %vm654_vm12, %v3192_v47 }
 0xf99   :  { %3435 = vmatprep.mubr.f32.mxu0 %v15254_v0 }
 0xf9c   :  { %8077 = vmatmul.mubr.msk.f32.gmra.mrb[56].mxu0 %vm654_vm12, %v3196_v3  ;;  %v3692_v3 = vpop.permute.xlu1 %3691 }
 0xf9d   :  { %4355 = vmatprep.mubr.f32.mxu0 %v15254_v0 }
0x106b   :  { %v3431_v37 = vpop.f32.mrb[54].mxu0 }
0x106c   :  { %v3433_v53 = vpop.f32.mrb[55].mxu0  ;;  %v10226_v24 = vadd.f32 %v3431_v37, %v11668_v7  ;;  %v3694_v37 = vpop.permute.xlu1 %3693 }
0x106d   :  { %v10227_v61 = vadd.f32 %v3433_v53, %v11672_v20  ;;  %v15432_v53 = vld [vmem:[#allocation13_spill] sm:$0xff] }
0x106f   :  { %v3437_v55 = vpop.f32.mrb[56].mxu0 }
0x1070   :  { %v10228_v25 = vadd.f32 %v3437_v55, %v11668_v7  ;;  %v3439_v4 = vpop.f32.mrb[57].mxu0 }
0x1071   :  { %v10229_v2 = vadd.f32 %v3439_v4, %v11672_v20  ;;  %v3696_v4 = vpop.permute.xlu1 %3695 }
0x1072   :  { %v9204_v51 = vpack.c.bf16 %v10228_v25, %v10226_v24 }
0x1073   :  { %v9201_v47 = vpack.c.bf16 %v10229_v2, %v10227_v61 }
0x1075   :  { %9203 = vmatprep.subr.msk.bf16.mxu1 %vm11680_vm15, %v9201_v47 }
0x1076   :  { %9206 = vmatpush1.bf16.msk.msra.mxu1 %vm11680_vm15, %v9204_v51 }
0x1077   :  { %9209 = vmatprep.subr.msk.bf16.mxu1 %vm11680_vm15, %v9201_v47  ;;  %v3698_v47 = vpop.permute.xlu1 %3697 }
0x1079   :  { %8080 = vmatmul.mubr.msk.f32.vlgmr.msra.gmra.mrb[36].mxu1 %vm897_vm8, %v12171_v56  ;;  %v3673_v56 = vpop.permute.xlu0 %3672 }
0x107a   :  { %9212 = vmatpush1.bf16.msk.msra.mxu1 %vm11680_vm15, %v9204_v51  ;;  %3583 = vmatprep.mubr.f32.mxu1 %v15254_v0  ;;  %v3703_v18 = vsel %vm266_vm2, %v12301_v21, %v3673_v56 }
0x107b   :  { %9214 = vmatprep.subr.bf16.mxu1 %v10713_v16  ;;  %v3707_v55 = vsel %vm271_vm3, %v3703_v18, %v3692_v3 }
0x107d   :  { %8083 = vmatmul.mubr.msk.f32.vlgmr.msra.gmra.mrb[38].mxu1 %vm897_vm8, %v12182_v9  ;;  %v3675_v9 = vpop.permute.xlu0 %3674 }
0x107e   :  { %9216 = vmatpush1.bf16.msra.mxu1 %v10737_v26  ;;  %3787 = vmatprep.mubr.f32.mxu1 %v15254_v0  ;;  %v3704_v25 = vsel %vm266_vm2, %v12306_v22, %v3675_v9 }
0x107f   :  { %9218 = vmatprep.subr.bf16.mxu1 %v10739_v27  ;;  %v3708_v61 = vsel %vm271_vm3, %v3704_v25, %v3694_v37 }
0x1081   :  { %v3677_v24 = vpop.permute.xlu0 %3676 }
0x1082   :  { %9220 = vmatpush1.bf16.msra.mxu1 %v10748_v30  ;;  %v3705_v2 = vsel %vm266_vm2, %v12311_v29, %v3677_v24 }
0x1083   :  { %9222 = vmatprep.subr.bf16.mxu1 %v10761_v35  ;;  %v3709_v51 = vsel %vm271_vm3, %v3705_v2, %v3696_v4 }
0x1085   :  { %v3679_v21 = vpop.permute.xlu0 %3678 }
0x1086   :  { %9224 = vmatpush1.bf16.msra.mxu1 %v10770_v38  ;;  %v3706_v22 = vsel %vm266_vm2, %v12322_v31, %v3679_v21 }
0x1087   :  { %9226 = vmatprep.subr.bf16.mxu1 %v10781_v41  ;;  %v3710_v56 = vsel %vm271_vm3, %v3706_v22, %v3698_v47 }
0x108a   :  { %9228 = vmatpush1.bf16.msra.mxu1 %v10790_v44 }
0x108b   :  { %9230 = vmatprep.subr.bf16.mxu1 %v10794_v45 }
0x108e   :  { %9232 = vmatpush1.bf16.msra.mxu1 %v10810_v50 }
0x108f   :  { %9234 = vmatprep.subr.bf16.mxu1 %v15431_v1 }
0x1092   :  { %9236 = vmatpush1.bf16.msra.mxu1 %v15432_v53 }
0x1095   :  { %8088 = vmatmul.mubr.msk.f32.vlgmr.msra.gmra.mrb[40].mxu1 %vm287_vm4, %v3707_v55 }
0x1096   :  { %3793 = vmatprep.mubr.f32.mxu1 %v15254_v0 }
0x1099   :  { %8089 = vmatmul.mubr.msk.f32.gmra.mrb[42].mxu1 %vm287_vm4, %v3708_v61 }
0x109a   :  { %3799 = vmatprep.mubr.f32.mxu1 %v15254_v0 }
0x109d   :  { %8090 = vmatmul.mubr.msk.f32.gmra.mrb[44].mxu1 %vm287_vm4, %v3709_v51 }
0x109e   :  { %3805 = vmatprep.mubr.f32.mxu1 %v15254_v0 }
0x10a1   :  { %8091 = vmatmul.mubr.msk.f32.gmra.mrb[46].mxu1 %vm287_vm4, %v3710_v56 }
0x10a2   :  { %3882 = vmatprep.mubr.f32.mxu1 %v15254_v0 }
0x114c   :  { %v3514_v29 = vpop.f32.mrb[36].mxu1 }
0x114d   :  { %v3516_v3 = vpop.f32.mrb[37].mxu1 }
0x1150   :  { %v3585_v9 = vpop.f32.mrb[38].mxu1 }
0x1151   :  { %v12442_v18 = vmax.f32 %v3514_v29, %v3585_v9  ;;  %v3587_v37 = vpop.f32.mrb[39].mxu1 }
0x1152   :  { %v12444_v55 = vmax.f32 %v3516_v3, %v3587_v37 }
0x1153   :  { %15433 = vst [vmem:[#allocation30_spill] sm:$0xff] %v12442_v18 }
0x1154   :  { %15434 = vst [vmem:[#allocation31_spill] sm:$0xff] %v12444_v55 }
0x1168   :  { %v3789_v31 = vpop.f32.mrb[40].mxu1 }
0x1169   :  { %v3791_v24 = vpop.f32.mrb[41].mxu1  ;;  %v3790_v4 = vadd.f32 %v3789_v31, %v10855_v14 }
0x116a   :  { %v3792_v21 = vadd.f32 %v3791_v24, %v10859_v17 }
0x116c   :  { %v3795_v25 = vpop.f32.mrb[42].mxu1 }
0x116d   :  { %v3796_v61 = vadd.f32 %v3795_v25, %v10855_v14  ;;  %v3797_v2 = vpop.f32.mrb[43].mxu1 }
0x116e   :  { %v3798_v51 = vadd.f32 %v3797_v2, %v10859_v17  ;;  %v15439_v2 = vld [vmem:[#allocation20_spill] sm:$0xff] }
0x116f   :  { %v9239_v22 = vpack.c.bf16 %v3796_v61, %v3790_v4  ;;  %v12461_v4 = vld [vmem:[%s14937_s3] sm:$0xff] }
0x1170   :  { %v9237_v47 = vpack.c.bf16 %v3798_v51, %v3792_v21  ;;  %v3801_v56 = vpop.f32.mrb[44].mxu1  ;;  %15435 = vst [vmem:[#allocation52_spill] sm:$0xff] %v12461_v4  ;;  %v12482_v61 = vld [vmem:[%s14938_s4] sm:$0xff]  ;;  %v15440_v21 = vld [vmem:[#allocation21_spill] sm:$0xff] }
0x1171   :  { %v3803_v29 = vpop.f32.mrb[45].mxu1  ;;  %v3802_v9 = vadd.f32 %v3801_v56, %v10855_v14  ;;  %15437 = vst [vmem:[#allocation54_spill] sm:$0xff] %v12482_v61  ;;  %v15441_v51 = vld [vmem:[#allocation22_spill] sm:$0xff]  ;;  %v15444_v56 = vld [vmem:[#allocation25_spill] sm:$0xff] }
0x1172   :  { %9238 = vmatprep.subr.bf16.mxu1 %v9237_v47  ;;  %v3804_v31 = vadd.f32 %v3803_v29, %v10859_v17  ;;  %v15445_v29 = vld [vmem:[#allocation26_spill] sm:$0xff] }
0x1173   :  { %9240 = vmatpush1.bf16.msra.mxu1 %v9239_v22 }
0x1174   :  { %v3807_v3 = vpop.f32.mrb[46].mxu1 }
0x1175   :  { %v3808_v37 = vadd.f32 %v3807_v3, %v10855_v14  ;;  %v3809_v55 = vpop.f32.mrb[47].mxu1  ;;  %v15446_v3 = vld [vmem:[#allocation27_spill] sm:$0xff] }
0x1176   :  { %v3810_v25 = vadd.f32 %v3809_v55, %v10859_v17  ;;  %v12471_v55 = vld [vmem:[%s14937_s3 + $0x8] sm:$0x7f] }
0x1177   :  { %v9244_v18 = vpack.c.bf16 %v3808_v37, %v3802_v9  ;;  %15436 = vst [vmem:[#allocation53_spill] sm:$0xff] %v12471_v55  ;;  %v15447_v9 = vld [vmem:[#allocation28_spill] sm:$0xff]  ;;  %v15448_v37 = vld [vmem:[#allocation29_spill] sm:$0xff] }
0x1178   :  { %v9241_v24 = vpack.c.bf16 %v3810_v25, %v3804_v31  ;;  %v15449_v31 = vld [vmem:[#allocation32_spill] sm:$0xff]  ;;  %v15450_v25 = vld [vmem:[#allocation33_spill] sm:$0xff] }
0x117a   :  { %9243 = vmatprep.subr.msk.bf16.mxu1 %vm10871_vm6, %v9241_v24 }
0x117b   :  { %9246 = vmatpush1.bf16.msk.msra.mxu1 %vm10871_vm6, %v9244_v18 }
0x117c   :  { %9248 = vmatprep.subr.bf16.mxu1 %v9237_v47  ;;  %v15443_v47 = vld [vmem:[#allocation24_spill] sm:$0xff] }
0x117e   :  { %8094 = vmatmul.mubr.msk.f32.vlgmr.msra.gmra.mrb[48].mxu1 %vm389_vm7, %v12461_v4 }
0x117f   :  { %9250 = vmatpush1.bf16.msra.mxu1 %v9239_v22  ;;  %3888 = vmatprep.mubr.f32.mxu1 %v15254_v0  ;;  %v15442_v22 = vld [vmem:[#allocation23_spill] sm:$0xff] }
0x1180   :  { %9253 = vmatprep.subr.msk.bf16.mxu1 %vm10871_vm6, %v9241_v24  ;;  %v15451_v24 = vld [vmem:[#allocation34_spill] sm:$0xff] }
0x1182   :  { %8095 = vmatmul.mubr.msk.f32.gmra.mrb[50].mxu1 %vm389_vm7, %v12471_v55 }
0x1183   :  { %9256 = vmatpush1.bf16.msk.msra.mxu1 %vm10871_vm6, %v9244_v18  ;;  %3959 = vmatprep.mubr.f32.mxu1 %v15254_v0  ;;  %v12492_v18 = vld [vmem:[%s14938_s4 + $0x8] sm:$0x7f] }
0x1184   :  { %9258 = vmatprep.subr.bf16.mxu1 %v10938_v6  ;;  %15438 = vst [vmem:[#allocation58_spill] sm:$0xff] %v12492_v18 }
0x1186   :  { %8098 = vmatmul.mubr.msk.f32.vlgmr.msra.gmra.mrb[52].mxu1 %vm389_vm7, %v12482_v61 }
0x1187   :  { %3965 = vmatprep.mubr.f32.mxu1 %v15254_v0  ;;  %9260 = vmatpush1.bf16.msra.mxu1 %v10949_v12 }
0x1188   :  { %9262 = vmatprep.subr.bf16.mxu1 %v10951_v13 }
0x118a   :  { %8099 = vmatmul.mubr.msk.f32.gmra.mrb[54].mxu1 %vm389_vm7, %v12492_v18 }
0x118b   :  { %9264 = vmatpush1.bf16.msra.mxu1 %v15439_v2 }
0x118c   :  { %9266 = vmatprep.subr.bf16.mxu1 %v15440_v21 }
0x118f   :  { %9268 = vmatpush1.bf16.msra.mxu1 %v15441_v51  ;;  %v15452_v51 = vld [vmem:[#allocation35_spill] sm:$0xff] }
0x1190   :  { %9270 = vmatprep.subr.bf16.mxu1 %v15442_v22  ;;  %v15453_v22 = vld [vmem:[#allocation36_spill] sm:$0xff] }
0x1193   :  { %9272 = vmatpush1.bf16.msra.mxu1 %v15443_v47  ;;  %v15454_v47 = vld [vmem:[#allocation37_spill] sm:$0xff] }
0x1194   :  { %9274 = vmatprep.subr.bf16.mxu1 %v15444_v56  ;;  %v15455_v56 = vld [vmem:[#allocation38_spill] sm:$0xff] }
0x1197   :  { %9276 = vmatpush1.bf16.msra.mxu1 %v15445_v29  ;;  %v15456_v29 = vld [vmem:[#allocation39_spill] sm:$0xff] }
0x1198   :  { %9278 = vmatprep.subr.bf16.mxu1 %v15446_v3  ;;  %v15457_v3 = vld [vmem:[#allocation40_spill] sm:$0xff] }
0x119b   :  { %9280 = vmatpush1.bf16.msra.mxu1 %v15447_v9  ;;  %v15458_v9 = vld [vmem:[#allocation41_spill] sm:$0xff] }
0x119c   :  { %9282 = vmatprep.subr.bf16.mxu1 %v15448_v37  ;;  %v15459_v37 = vld [vmem:[#allocation42_spill] sm:$0xff] }
0x119f   :  { %9284 = vmatpush1.bf16.msra.mxu1 %v15449_v31  ;;  %v15460_v31 = vld [vmem:[#allocation43_spill] sm:$0xff] }
0x11a0   :  { %9286 = vmatprep.subr.bf16.mxu1 %v15450_v25  ;;  %v15461_v25 = vld [vmem:[#allocation44_spill] sm:$0xff] }
0x11a3   :  { %9288 = vmatpush1.bf16.msra.mxu1 %v15451_v24  ;;  %v15462_v24 = vld [vmem:[#allocation45_spill] sm:$0xff] }
0x11a4   :  { %9290 = vmatprep.subr.bf16.mxu1 %v15452_v51  ;;  %v15463_v51 = vld [vmem:[#allocation46_spill] sm:$0xff] }
0x11a7   :  { %9292 = vmatpush1.bf16.msra.mxu1 %v15453_v22  ;;  %v15464_v22 = vld [vmem:[#allocation47_spill] sm:$0xff] }
0x11a8   :  { %9294 = vmatprep.subr.bf16.mxu1 %v15454_v47  ;;  %v15465_v47 = vld [vmem:[#allocation48_spill] sm:$0xff] }
0x11ab   :  { %9296 = vmatpush1.bf16.msra.mxu1 %v15455_v56  ;;  %v15466_v56 = vld [vmem:[#allocation49_spill] sm:$0xff] }
0x11ac   :  { %9298 = vmatprep.subr.bf16.mxu1 %v15456_v29  ;;  %v15467_v29 = vld [vmem:[#allocation50_spill] sm:$0xff] }
0x11af   :  { %9300 = vmatpush1.bf16.msra.mxu1 %v15457_v3  ;;  %v15468_v3 = vld [vmem:[#allocation51_spill] sm:$0xff] }
0x11b0   :  { %9302 = vmatprep.subr.bf16.mxu1 %v15458_v9 }
0x11b3   :  { %9304 = vmatpush1.bf16.msra.mxu1 %v15459_v37 }
0x11b4   :  { %9306 = vmatprep.subr.bf16.mxu1 %v15460_v31 }
0x11b7   :  { %9308 = vmatpush1.bf16.msra.mxu1 %v15461_v25 }
0x11b8   :  { %9310 = vmatprep.subr.bf16.mxu1 %v15462_v24 }
0x11bb   :  { %9312 = vmatpush1.bf16.msra.mxu1 %v15463_v51 }
0x11bc   :  { %9314 = vmatprep.subr.bf16.mxu1 %v15464_v22 }
0x11bf   :  { %9316 = vmatpush1.bf16.msra.mxu1 %v15465_v47 }
0x11c0   :  { %9318 = vmatprep.subr.bf16.mxu1 %v15466_v56 }
0x11c3   :  { %9320 = vmatpush1.bf16.msra.mxu1 %v15467_v29 }
0x11c4   :  { %9322 = vmatprep.subr.bf16.mxu1 %v15468_v3 }
0x1251   :  { %v3884_v9 = vpop.f32.mrb[48].mxu1 }
0x1252   :  { %v3886_v37 = vpop.f32.mrb[49].mxu1 }
0x1255   :  { %v3890_v21 = vpop.f32.mrb[50].mxu1 }
0x1256   :  { %v3892_v31 = vpop.f32.mrb[51].mxu1 }
0x1259   :  { %v3961_v2 = vpop.f32.mrb[52].mxu1 }
0x125a   :  { %v3972_v25 = vmax.f32 %v3884_v9, %v3961_v2  ;;  %v3963_v18 = vpop.f32.mrb[53].mxu1 }
0x125b   :  { %v3973_v24 = vmax.f32 %v3886_v37, %v3963_v18 }
0x125d   :  { %3982 = vrot.lane.b32.xlu1 %v3973_v24, %s10584_s29  ;;  %v3967_v51 = vpop.f32.mrb[54].mxu1 }
0x125e   :  { %v3974_v22 = vmax.f32 %v3890_v21, %v3967_v51  ;;  %v3969_v13 = vpop.f32.mrb[55].mxu1 }
0x125f   :  { %v3975_v47 = vmax.f32 %v3892_v31, %v3969_v13 }
0x1260   :  { %v10362_v12 = vpack.i.bf16 %v3974_v22, %v3972_v25 }
0x1262   :  { %10363 = vrot.lane.b32.xlu0 %v10362_v12, %s10584_s29 }
0x1266   :  { %3986 = vrot.lane.b32.xlu0 %v3975_v47, %s10584_s29 }
0x12cf   :  { %v3983_v3 = vpop.permute.xlu1 %3982 }
0x12d0   :  { %v3995_v56 = vmax.f32 %v3973_v24, %v3983_v3 }
0x12d2   :  { %v3999_v37 = vmax.f32 %v3995_v56, 0.0 }
0x12d4   :  { %v10364_v29 = vpop.permute.xlu0 %10363  ;;  %v4009_v12 = vrot.slane %v3999_v37, 1 }
0x12d5   :  { %v10365_v61 = vunpack.i.l.bf16 %v10364_v29  ;;  %v10366_v6 = vunpack.i.h.bf16 %v10364_v29 }
0x12d7   :  { %v3988_v2 = vsel %vm578_vm9, %v10365_v61, %v3983_v3 }
0x12d8   :  { %v3994_v9 = vmax.f32 %v3972_v25, %v3988_v2  ;;  %v3987_v18 = vpop.permute.xlu0 %3986 }
0x12d9   :  { %v3989_v55 = vsel %vm578_vm9, %v10366_v6, %v3987_v18  ;;  %v3997_v21 = vmax.f32 %v3975_v47, %v3987_v18  ;;  %v4029_v6 = vrot.slane %v3999_v37, 2 }
0x12da   :  { %v3998_v51 = vmax.f32 %v3994_v9, 0.0  ;;  %v3996_v13 = vmax.f32 %v3974_v22, %v3989_v55 }
0x12db   :  { %v4001_v31 = vmax.f32 %v3997_v21, 0.0  ;;  %v12566_v21 = vld [vmem:[%s14934_s0 + $0xb8] sm:$0xff] }
0x12dc   :  { %v4000_v4 = vmax.f32 %v3996_v13, 0.0  ;;  %v4006_v17 = vrot.slane %v3998_v51, 1  ;;  %v4026_v22 = vrot.slane %v3998_v51, 2 }
0x12dd   :  { %v4010_v40 = vrot.slane %v4001_v31, 1  ;;  %v4030_v61 = vrot.slane %v4001_v31, 2 }
0x12de   :  { %v4007_v14 = vrot.slane %v4000_v4, 1  ;;  %v4027_v47 = vrot.slane %v4000_v4, 2 }
0x12df   :  { %v4011_v24 = vsel %vm226_vm0, %v4009_v12, %v4010_v40  ;;  %v4031_v55 = vsel %vm246_vm1, %v4029_v6, %v4030_v61  ;;  %v4532_v6 = vrot.slane %v12566_v21, 2 }
0x12e0   :  { %v4008_v29 = vsel %vm226_vm0, %v4006_v17, %v4007_v14  ;;  %v10367_v53 = vpack.i.bf16 %v4011_v24, %v4007_v14  ;;  %v4028_v56 = vsel %vm246_vm1, %v4026_v22, %v4027_v47  ;;  %v12545_v14 = vld [vmem:[%s14934_s0 + $0xa0] sm:$0xff]  ;;  %v12550_v17 = vld [vmem:[%s14934_s0 + $0xa8] sm:$0xff] }
0x12e1   :  { %4012 = vrot.lane.b32.xlu1 %v4008_v29, %s10585_s22  ;;  %v4509_v3 = vrot.slane %v12550_v17, 1  ;;  %v4527_v25 = vrot.slane %v12545_v14, 2  ;;  %v4528_v2 = vrot.slane %v12550_v17, 2 }
0x12e2   :  { %10368 = vrot.lane.b32.xlu0 %v10367_v53, %s10585_s22  ;;  %v4508_v53 = vrot.slane %v12545_v14, 1 }
0x12e3   :  { %v4529_v12 = vsel %vm246_vm1, %v4527_v25, %v4528_v2 }
0x12e4   :  { %v4510_v13 = vsel %vm226_vm0, %v4508_v53, %v4509_v3 }
0x12e5   :  { %4018 = vrot.lane.b32.xlu1 %v4010_v40, %s10585_s22  ;;  %v12555_v40 = vld [vmem:[%s14934_s0 + $0xb0] sm:$0xff] }
0x12e6   :  { %4034 = vrot.lane.b32.xlu0 %v4031_v55, %s10586_s24  ;;  %v4511_v9 = vrot.slane %v12555_v40, 1  ;;  %v4530_v18 = vrot.slane %v12555_v40, 2 }
0x12e8   :  { %v4512_v24 = vsel %vm226_vm0, %v4509_v3, %v4511_v9  ;;  %v4531_v29 = vsel %vm246_vm1, %v4528_v2, %v4530_v18  ;;  %v4533_v55 = vsel %vm246_vm1, %v4530_v18, %v4532_v6 }
0x12e9   :  { %4032 = vrot.lane.b32.xlu1 %v4028_v56, %s10586_s24 }
0x12ea   :  { %4036 = vrot.lane.b32.xlu0 %v4027_v47, %s10586_s24 }
0x12ed   :  { %4038 = vrot.lane.b32.xlu1 %v4030_v61, %s10586_s24  ;;  %v4513_v61 = vrot.slane %v12566_v21, 1 }
0x12ee   :  { %4515 = vrot.lane.b32.xlu0 %v4510_v13, %s10581_s23  ;;  %v15472_v13 = vld [vmem:[#allocation72_spill] sm:$0xff] }
0x12ef   :  { %v4514_v47 = vsel %vm226_vm0, %v4511_v9, %v4513_v61 }
0x12f1   :  { %4534 = vrot.lane.b32.xlu1 %v4529_v12, %s10582_s17  ;;  %v15473_v12 = vld [vmem:[#allocation73_spill] sm:$0xff] }
0x12f2   :  { %4517 = vrot.lane.b32.xlu0 %v4512_v24, %s10581_s23  ;;  %v15474_v24 = vld [vmem:[#allocation74_spill] sm:$0xff] }
0x12f5   :  { %4536 = vrot.lane.b32.xlu1 %v4531_v29, %s10582_s17  ;;  %v15475_v29 = vld [vmem:[#allocation76_spill] sm:$0xff] }
0x12f6   :  { %4519 = vrot.lane.b32.xlu0 %v4514_v47, %s10581_s23  ;;  %v15478_v47 = vld [vmem:[#allocation80_spill] sm:$0xff] }
0x12f9   :  { %4538 = vrot.lane.b32.xlu1 %v4533_v55, %s10582_s17 }
0x12fa   :  { %4521 = vrot.lane.b32.xlu0 %v4513_v61, %s10581_s23  ;;  %v15476_v61 = vld [vmem:[#allocation77_spill] sm:$0xff] }
0x12fd   :  { %4540 = vrot.lane.b32.xlu1 %v4532_v6, %s10582_s17  ;;  %v15477_v6 = vld [vmem:[#allocation78_spill] sm:$0xff] }
0x1353   :  { %v4013_v22 = vpop.permute.xlu1 %4012 }
0x1354   :  { %v10369_v56 = vpop.permute.xlu0 %10368  ;;  %v4046_v53 = vsel %vm611_vm11, %v3999_v37, %v4013_v22 }
0x1355   :  { %v10370_v3 = vunpack.i.l.bf16 %v10369_v56  ;;  %4118 = vmatprep.mubr.f32.mxu1 %v4046_v53  ;;  %v10371_v55 = vunpack.i.h.bf16 %v10369_v56 }
0x1356   :  { %4119 = vmatmul.mubr.f32.vlgmr.msra.gmra.mrb[56].mxu1 %v3998_v51  ;;  %v15470_v51 = vld [vmem:[#allocation67_spill] sm:$0xff] }
0x1357   :  { %9324 = vmatpush1.bf16.msra.mxu1 %v15307_v33  ;;  %v4019_v25 = vpop.permute.xlu1 %4018  ;;  %v4047_v2 = vsel %vm611_vm11, %v4001_v31, %v10370_v3  ;;  %v15471_v31 = vld [vmem:[#allocation69_spill] sm:$0xff] }
0x1358   :  { %4124 = vmatprep.mubr.f32.mxu1 %v4047_v2  ;;  %9326 = vmatprep.subr.bf16.mxu1 %v15308_v58  ;;  %v4035_v9 = vpop.permute.xlu0 %4034  ;;  %v15479_v2 = vld [vmem:[#allocation84_spill] sm:$0xff]  ;;  %v4021_v56 = vsel %vm611_vm11, %v10370_v3, %v4019_v25 }
0x135a   :  { %4125 = vmatmul.mubr.f32.gmra.mrb[58].mxu1 %v4000_v4  ;;  %v15469_v4 = vld [vmem:[#allocation66_spill] sm:$0xff] }
0x135b   :  { %9328 = vmatpush1.bf16.msra.mxu1 %v11367_v11  ;;  %v4033_v18 = vpop.permute.xlu1 %4032 }
0x135c   :  { %9330 = vmatprep.subr.bf16.mxu1 %v15309_v32  ;;  %v4040_v37 = vsel %vm632_vm13, %v4033_v18, %v4035_v9 }
0x135d   :  { %4195 = vmatprep.mubr.f32.mxu1 %v4040_v37  ;;  %v4020_v37 = vsel %vm611_vm11, %v4013_v22, %v10371_v55 }
0x135f   :  { %9332 = vmatpush1.bf16.msra.mxu1 %v15359_v42  ;;  %v4039_v53 = vpop.permute.xlu1 %4038 }
0x1360   :  { %9334 = vmatprep.subr.bf16.mxu1 %v15360_v36 }
0x1363   :  { %9336 = vmatpush1.bf16.msra.mxu1 %v15361_v28 }
0x1364   :  { %9338 = vmatprep.subr.bf16.mxu1 %v15362_v46 }
0x1367   :  { %9340 = vmatpush1.bf16.msra.mxu1 %v15413_v60 }
0x1368   :  { %9342 = vmatprep.subr.bf16.mxu1 %v15414_v54 }
0x136b   :  { %9344 = vmatpush1.bf16.msra.mxu1 %v15415_v43 }
0x136c   :  { %9346 = vmatprep.subr.bf16.mxu1 %v15416_v19 }
0x136f   :  { %9348 = vmatpush1.bf16.msra.mxu1 %v15469_v4 }
0x1370   :  { %9350 = vmatprep.subr.bf16.mxu1 %v15470_v51 }
0x1373   :  { %9352 = vmatpush1.bf16.msra.mxu1 %v15419_v39 }
0x1374   :  { %9354 = vmatprep.subr.bf16.mxu1 %v15471_v31 }
0x1377   :  { %9356 = vmatpush1.bf16.msra.mxu1 %v15421_v63 }
0x1378   :  { %9358 = vmatprep.subr.bf16.mxu1 %v15422_v62 }
0x137b   :  { %9360 = vmatpush1.bf16.msra.mxu1 %v15472_v13 }
0x137c   :  { %9362 = vmatprep.subr.bf16.mxu1 %v15473_v12 }
0x137f   :  { %9364 = vmatpush1.bf16.msra.mxu1 %v15474_v24 }
0x1380   :  { %9366 = vmatprep.subr.bf16.mxu1 %v15375_v8 }
0x1383   :  { %9368 = vmatpush1.bf16.msra.mxu1 %v15475_v29 }
0x1384   :  { %9370 = vmatprep.subr.bf16.mxu1 %v15476_v61  ;;  %v4037_v61 = vpop.permute.xlu0 %4036 }
0x1387   :  { %9372 = vmatpush1.bf16.msra.mxu1 %v15477_v6  ;;  %v4048_v6 = vsel %vm632_vm13, %v4020_v37, %v4033_v18  ;;  %v12660_v37 = vld [vmem:[%s14942_s8] sm:$0x3f] }
0x1388   :  { %9374 = vmatprep.subr.bf16.mxu1 %v15331_v34 }
0x138b   :  { %9376 = vmatpush1.bf16.msra.mxu1 %v15478_v47  ;;  %v4041_v47 = vsel %vm632_vm13, %v4037_v61, %v4039_v53 }
0x138c   :  { %9378 = vmatprep.subr.bf16.mxu1 %v15380_v52 }
0x138f   :  { %9380 = vmatpush1.bf16.msra.mxu1 %v15381_v49 }
0x1390   :  { %9382 = vmatprep.subr.bf16.mxu1 %v15382_v5 }
0x1393   :  { %9384 = vmatpush1.bf16.msra.mxu1 %v15479_v2  ;;  %v4049_v2 = vsel %vm632_vm13, %v4021_v56, %v4037_v61  ;;  %v4516_v56 = vpop.permute.xlu0 %4515 }
0x1394   :  { %9386 = vmatprep.subr.bf16.mxu1 %v15335_v57 }
0x1396   :  { %4196 = vmatmul.mubr.f32.vlgmr.msra.gmra.mrb[56].mxu1 %v4048_v6 }
0x1397   :  { %4201 = vmatprep.mubr.f32.mxu1 %v4041_v47  ;;  %9388 = vmatpush1.bf16.msra.mxu1 %v15336_v23 }
0x1398   :  { %9391 = vmatprep.subr.msk.bf16.mxu1 %vm11253_vm10, %v15337_v59 }
0x139a   :  { %4202 = vmatmul.mubr.f32.gmra.mrb[58].mxu1 %v4049_v2 }
0x139b   :  { %9394 = vmatpush1.bf16.msk.msra.mxu1 %vm11253_vm10, %v15339_v15  ;;  %4272 = vmatprep.mubr.f32.mxu1 %v15254_v0 }
0x139e   :  { %8102 = vmatmul.mubr.msk.f32.vlgmr.msra.gmra.mrb[56].mxu1 %vm654_vm12, %v4035_v9 }
0x139f   :  { %4278 = vmatprep.mubr.f32.mxu1 %v15254_v0 }
0x13a2   :  { %8103 = vmatmul.mubr.msk.f32.gmra.mrb[58].mxu1 %vm654_vm12, %v4039_v53  ;;  %v12649_v53 = vld [vmem:[%s14941_s7] sm:$0x3f] }
0x13a3   :  { %5198 = vmatprep.mubr.f32.mxu1 %v15254_v0 }
0x1471   :  { %v4274_v22 = vpop.f32.mrb[56].mxu1 }
0x1472   :  { %v4276_v3 = vpop.f32.mrb[57].mxu1  ;;  %v10230_v18 = vadd.f32 %v4274_v22, %v11668_v7  ;;  %v4535_v22 = vpop.permute.xlu1 %4534 }
0x1473   :  { %v10231_v47 = vadd.f32 %v4276_v3, %v11672_v20  ;;  %v4518_v3 = vpop.permute.xlu0 %4517 }
0x1475   :  { %v4280_v25 = vpop.f32.mrb[58].mxu1 }
0x1476   :  { %v10232_v61 = vadd.f32 %v4280_v25, %v11668_v7  ;;  %v4282_v6 = vpop.f32.mrb[59].mxu1  ;;  %v4546_v25 = vsel %vm266_vm2, %v12545_v14, %v4516_v56 }
0x1477   :  { %v10233_v55 = vadd.f32 %v4282_v6, %v11672_v20  ;;  %v4550_v6 = vsel %vm271_vm3, %v4546_v25, %v4535_v22 }
0x1478   :  { %v9398_v2 = vpack.c.bf16 %v10232_v61, %v10230_v18  ;;  %v4537_v18 = vpop.permute.xlu1 %4536  ;;  %v15480_v61 = vld [vmem:[#allocation13_spill] sm:$0xff] }
0x1479   :  { %v9395_v9 = vpack.c.bf16 %v10233_v55, %v10231_v47  ;;  %v4520_v47 = vpop.permute.xlu0 %4519  ;;  %v4547_v55 = vsel %vm266_vm2, %v12550_v17, %v4518_v3 }
0x147b   :  { %9397 = vmatprep.subr.msk.bf16.mxu0 %vm11680_vm15, %v9395_v9 }
0x147c   :  { %9400 = vmatpush1.bf16.msk.msra.mxu0 %vm11680_vm15, %v9398_v2 }
0x147d   :  { %9403 = vmatprep.subr.msk.bf16.mxu0 %vm11680_vm15, %v9395_v9  ;;  %v4551_v9 = vsel %vm271_vm3, %v4547_v55, %v4537_v18  ;;  %v4522_v14 = vpop.permute.xlu0 %4521 }
0x147e   :  { %v4549_v17 = vsel %vm266_vm2, %v12566_v21, %v4522_v14 }
0x147f   :  { %8106 = vmatmul.mubr.msk.f32.vlgmr.msra.gmra.mrb[58].mxu0 %vm897_vm8, %v12649_v53 }
0x1480   :  { %9406 = vmatpush1.bf16.msk.msra.mxu0 %vm11680_vm15, %v9398_v2  ;;  %4426 = vmatprep.mubr.f32.mxu0 %v15254_v0  ;;  %v4539_v2 = vpop.permute.xlu1 %4538 }
0x1481   :  { %9408 = vmatprep.subr.bf16.mxu0 %v10713_v16 }
0x1483   :  { %8109 = vmatmul.mubr.msk.f32.vlgmr.msra.gmra.mrb[60].mxu0 %vm897_vm8, %v12660_v37 }
0x1484   :  { %9410 = vmatpush1.bf16.msra.mxu0 %v10737_v26  ;;  %4630 = vmatprep.mubr.f32.mxu0 %v15254_v0  ;;  %v4541_v22 = vpop.permute.xlu1 %4540 }
0x1485   :  { %9412 = vmatprep.subr.bf16.mxu0 %v10739_v27  ;;  %v4553_v3 = vsel %vm271_vm3, %v4549_v17, %v4541_v22  ;;  %v15484_v22 = vld [vmem:[#allocation15_spill] sm:$0xff] }
0x1488   :  { %9414 = vmatpush1.bf16.msra.mxu0 %v10748_v30 }
0x1489   :  { %9416 = vmatprep.subr.bf16.mxu0 %v10761_v35 }
0x148c   :  { %9418 = vmatpush1.bf16.msra.mxu0 %v10770_v38 }
0x148d   :  { %9420 = vmatprep.subr.bf16.mxu0 %v10781_v41 }
0x1490   :  { %9422 = vmatpush1.bf16.msra.mxu0 %v10790_v44 }
0x1491   :  { %9424 = vmatprep.subr.bf16.mxu0 %v10794_v45 }
0x1494   :  { %9426 = vmatpush1.bf16.msra.mxu0 %v10810_v50 }
0x1495   :  { %9428 = vmatprep.subr.bf16.mxu0 %v15431_v1  ;;  %v4548_v1 = vsel %vm266_vm2, %v12555_v40, %v4520_v47 }
0x1496   :  { %v4552_v56 = vsel %vm271_vm3, %v4548_v1, %v4539_v2 }
0x1498   :  { %9430 = vmatpush1.bf16.msra.mxu0 %v15480_v61 }
0x149b   :  { %8114 = vmatmul.mubr.msk.f32.vlgmr.msra.gmra.mrb[62].mxu0 %vm287_vm4, %v4550_v6 }
0x149c   :  { %4636 = vmatprep.mubr.f32.mxu0 %v15254_v0 }
0x149f   :  { %8115 = vmatmul.mubr.msk.f32.gmra.mrb[64].mxu0 %vm287_vm4, %v4551_v9  ;;  %v15483_v9 = vld [vmem:[#allocation14_spill] sm:$0xff] }
0x14a0   :  { %4642 = vmatprep.mubr.f32.mxu0 %v15254_v0 }
0x14a3   :  { %8116 = vmatmul.mubr.msk.f32.gmra.mrb[66].mxu0 %vm287_vm4, %v4552_v56 }
0x14a4   :  { %4648 = vmatprep.mubr.f32.mxu0 %v15254_v0 }
0x14a7   :  { %8117 = vmatmul.mubr.msk.f32.gmra.mrb[68].mxu0 %vm287_vm4, %v4553_v3 }
0x14a8   :  { %4725 = vmatprep.mubr.f32.mxu0 %v15254_v0 }
0x1552   :  { %v4357_v40 = vpop.f32.mrb[58].mxu0 }
0x1553   :  { %v4359_v25 = vpop.f32.mrb[59].mxu0 }
0x1556   :  { %v4428_v18 = vpop.f32.mrb[60].mxu0 }
0x1557   :  { %v12696_v1 = vmax.f32 %v4357_v40, %v4428_v18  ;;  %v4430_v6 = vpop.f32.mrb[61].mxu0 }
0x1558   :  { %v12698_v47 = vmax.f32 %v4359_v25, %v4430_v6 }
0x1559   :  { %15481 = vst [vmem:[#allocation59_spill] sm:$0xff] %v12696_v1 }
0x155a   :  { %15482 = vst [vmem:[#allocation60_spill] sm:$0xff] %v12698_v47 }
0x156e   :  { %v4632_v21 = vpop.f32.mrb[62].mxu0 }
0x156f   :  { %v4634_v55 = vpop.f32.mrb[63].mxu0  ;;  %v4633_v14 = vadd.f32 %v4632_v21, %v15483_v9 }
0x1570   :  { %v4635_v3 = vadd.f32 %v4634_v55, %v15484_v22 }
0x1572   :  { %v4638_v2 = vpop.f32.mrb[64].mxu0 }
0x1573   :  { %v4639_v56 = vadd.f32 %v4638_v2, %v15483_v9  ;;  %v4640_v17 = vpop.f32.mrb[65].mxu0 }
0x1574   :  { %v4641_v61 = vadd.f32 %v4640_v17, %v15484_v22  ;;  %v15493_v17 = vld [vmem:[#allocation20_spill] sm:$0xff] }
0x1575   :  { %v9433_v50 = vpack.c.bf16 %v4639_v56, %v4633_v14  ;;  %v15491_v14 = vld [vmem:[#allocation19_spill] sm:$0xff]  ;;  %v15492_v56 = vld [vmem:[#allocation58_spill] sm:$0xff] }
0x1576   :  { %v9431_v45 = vpack.c.bf16 %v4641_v61, %v4635_v3  ;;  %v4644_v44 = vpop.f32.mrb[66].mxu0  ;;  %v15486_v61 = vld [vmem:[#allocation52_spill] sm:$0xff]  ;;  %v15494_v3 = vld [vmem:[#allocation21_spill] sm:$0xff] }
0x1577   :  { %v4646_v40 = vpop.f32.mrb[67].mxu0  ;;  %v4645_v18 = vadd.f32 %v4644_v44, %v15483_v9  ;;  %v15487_v44 = vld [vmem:[#allocation53_spill] sm:$0xff] }
0x1578   :  { %9432 = vmatprep.subr.bf16.mxu0 %v9431_v45  ;;  %v4647_v21 = vadd.f32 %v4646_v40, %v15484_v22  ;;  %v15496_v40 = vld [vmem:[#allocation23_spill] sm:$0xff] }
0x1579   :  { %9434 = vmatpush1.bf16.msra.mxu0 %v9433_v50 }
0x157a   :  { %v4650_v25 = vpop.f32.mrb[68].mxu0 }
0x157b   :  { %v4651_v6 = vadd.f32 %v4650_v25, %v15483_v9  ;;  %v4652_v47 = vpop.f32.mrb[69].mxu0  ;;  %v15497_v25 = vld [vmem:[#allocation24_spill] sm:$0xff] }
0x157c   :  { %v4653_v2 = vadd.f32 %v4652_v47, %v15484_v22  ;;  %v15488_v47 = vld [vmem:[#allocation17_spill] sm:$0xff] }
0x157d   :  { %v9438_v1 = vpack.c.bf16 %v4651_v6, %v4645_v18  ;;  %v15498_v18 = vld [vmem:[#allocation25_spill] sm:$0xff]  ;;  %v15499_v6 = vld [vmem:[#allocation26_spill] sm:$0xff] }
0x157e   :  { %v9435_v55 = vpack.c.bf16 %v4653_v2, %v4647_v21  ;;  %v15500_v21 = vld [vmem:[#allocation27_spill] sm:$0xff]  ;;  %v15501_v2 = vld [vmem:[#allocation28_spill] sm:$0xff] }
0x1580   :  { %9437 = vmatprep.subr.msk.bf16.mxu0 %vm10871_vm6, %v9435_v55 }
0x1581   :  { %9440 = vmatpush1.bf16.msk.msra.mxu0 %vm10871_vm6, %v9438_v1 }
0x1582   :  { %9442 = vmatprep.subr.bf16.mxu0 %v9431_v45  ;;  %v15489_v45 = vld [vmem:[#allocation54_spill] sm:$0xff] }
0x1584   :  { %8120 = vmatmul.mubr.msk.f32.vlgmr.msra.gmra.mrb[70].mxu0 %vm389_vm7, %v15486_v61  ;;  %v15503_v61 = vld [vmem:[#allocation32_spill] sm:$0xff] }
0x1585   :  { %9444 = vmatpush1.bf16.msra.mxu0 %v9433_v50  ;;  %4731 = vmatprep.mubr.f32.mxu0 %v15254_v0  ;;  %v15490_v50 = vld [vmem:[#allocation18_spill] sm:$0xff] }
0x1586   :  { %9447 = vmatprep.subr.msk.bf16.mxu0 %vm10871_vm6, %v9435_v55  ;;  %v15502_v55 = vld [vmem:[#allocation29_spill] sm:$0xff] }
0x1588   :  { %8121 = vmatmul.mubr.msk.f32.gmra.mrb[72].mxu0 %vm389_vm7, %v15487_v44  ;;  %v15504_v44 = vld [vmem:[#allocation33_spill] sm:$0xff] }
0x1589   :  { %9450 = vmatpush1.bf16.msk.msra.mxu0 %vm10871_vm6, %v9438_v1  ;;  %4802 = vmatprep.mubr.f32.mxu0 %v15254_v0  ;;  %v15495_v1 = vld [vmem:[#allocation22_spill] sm:$0xff] }
0x158a   :  { %9452 = vmatprep.subr.bf16.mxu0 %v15488_v47 }
0x158c   :  { %8124 = vmatmul.mubr.msk.f32.vlgmr.msra.gmra.mrb[74].mxu0 %vm389_vm7, %v15489_v45  ;;  %v15505_v45 = vld [vmem:[#allocation34_spill] sm:$0xff] }
0x158d   :  { %4808 = vmatprep.mubr.f32.mxu0 %v15254_v0  ;;  %9454 = vmatpush1.bf16.msra.mxu0 %v15490_v50 }
0x158e   :  { %9456 = vmatprep.subr.bf16.mxu0 %v15491_v14 }
0x1590   :  { %8125 = vmatmul.mubr.msk.f32.gmra.mrb[76].mxu0 %vm389_vm7, %v15492_v56  ;;  %v15506_v56 = vld [vmem:[#allocation35_spill] sm:$0xff] }
0x1591   :  { %9458 = vmatpush1.bf16.msra.mxu0 %v15493_v17 }
0x1592   :  { %9460 = vmatprep.subr.bf16.mxu0 %v15494_v3 }
0x1595   :  { %9462 = vmatpush1.bf16.msra.mxu0 %v15495_v1 }
0x1596   :  { %9464 = vmatprep.subr.bf16.mxu0 %v15496_v40  ;;  %v15507_v40 = vld [vmem:[#allocation36_spill] sm:$0xff] }
0x1599   :  { %9466 = vmatpush1.bf16.msra.mxu0 %v15497_v25  ;;  %v15508_v25 = vld [vmem:[#allocation37_spill] sm:$0xff] }
0x159a   :  { %9468 = vmatprep.subr.bf16.mxu0 %v15498_v18  ;;  %v15509_v18 = vld [vmem:[#allocation38_spill] sm:$0xff] }
0x159d   :  { %9470 = vmatpush1.bf16.msra.mxu0 %v15499_v6  ;;  %v15510_v6 = vld [vmem:[#allocation39_spill] sm:$0xff] }
0x159e   :  { %9472 = vmatprep.subr.bf16.mxu0 %v15500_v21  ;;  %v15511_v21 = vld [vmem:[#allocation40_spill] sm:$0xff] }
0x15a1   :  { %9474 = vmatpush1.bf16.msra.mxu0 %v15501_v2  ;;  %v15512_v2 = vld [vmem:[#allocation41_spill] sm:$0xff] }
0x15a2   :  { %9476 = vmatprep.subr.bf16.mxu0 %v15502_v55  ;;  %v15513_v55 = vld [vmem:[#allocation42_spill] sm:$0xff] }
0x15a5   :  { %9478 = vmatpush1.bf16.msra.mxu0 %v15503_v61  ;;  %v15514_v61 = vld [vmem:[#allocation43_spill] sm:$0xff] }
0x15a6   :  { %9480 = vmatprep.subr.bf16.mxu0 %v15504_v44  ;;  %v15515_v44 = vld [vmem:[#allocation44_spill] sm:$0xff] }
0x15a9   :  { %9482 = vmatpush1.bf16.msra.mxu0 %v15505_v45  ;;  %v15516_v45 = vld [vmem:[#allocation45_spill] sm:$0xff] }
0x15aa   :  { %9484 = vmatprep.subr.bf16.mxu0 %v15506_v56  ;;  %v15517_v56 = vld [vmem:[#allocation46_spill] sm:$0xff] }
0x15ad   :  { %9486 = vmatpush1.bf16.msra.mxu0 %v15507_v40  ;;  %v15518_v40 = vld [vmem:[#allocation47_spill] sm:$0xff] }
0x15ae   :  { %9488 = vmatprep.subr.bf16.mxu0 %v15508_v25  ;;  %v15519_v25 = vld [vmem:[#allocation48_spill] sm:$0xff] }
0x15b1   :  { %9490 = vmatpush1.bf16.msra.mxu0 %v15509_v18  ;;  %v15520_v18 = vld [vmem:[#allocation49_spill] sm:$0xff] }
0x15b2   :  { %9492 = vmatprep.subr.bf16.mxu0 %v15510_v6  ;;  %v15521_v6 = vld [vmem:[#allocation50_spill] sm:$0xff] }
0x15b5   :  { %9494 = vmatpush1.bf16.msra.mxu0 %v15511_v21  ;;  %v15522_v21 = vld [vmem:[#allocation51_spill] sm:$0xff] }
0x15b6   :  { %9496 = vmatprep.subr.bf16.mxu0 %v15512_v2 }
0x15b9   :  { %9498 = vmatpush1.bf16.msra.mxu0 %v15513_v55 }
0x15ba   :  { %9500 = vmatprep.subr.bf16.mxu0 %v15514_v61 }
0x15bd   :  { %9502 = vmatpush1.bf16.msra.mxu0 %v15515_v44 }
0x15be   :  { %9504 = vmatprep.subr.bf16.mxu0 %v15516_v45 }
0x15c1   :  { %9506 = vmatpush1.bf16.msra.mxu0 %v15517_v56 }
0x15c2   :  { %9508 = vmatprep.subr.bf16.mxu0 %v15518_v40 }
0x15c5   :  { %9510 = vmatpush1.bf16.msra.mxu0 %v15519_v25 }
0x15c6   :  { %9512 = vmatprep.subr.bf16.mxu0 %v15520_v18 }
0x15c9   :  { %9514 = vmatpush1.bf16.msra.mxu0 %v15521_v6 }
0x15ca   :  { %9516 = vmatprep.subr.bf16.mxu0 %v15522_v21 }
0x1657   :  { %v4727_v2 = vpop.f32.mrb[70].mxu0 }
0x1658   :  { %v4729_v55 = vpop.f32.mrb[71].mxu0 }
0x165b   :  { %v4733_v1 = vpop.f32.mrb[72].mxu0 }
0x165c   :  { %v4735_v61 = vpop.f32.mrb[73].mxu0 }
0x165f   :  { %v4804_v3 = vpop.f32.mrb[74].mxu0 }
0x1660   :  { %v4815_v44 = vmax.f32 %v4727_v2, %v4804_v3  ;;  %v4806_v17 = vpop.f32.mrb[75].mxu0 }
0x1661   :  { %v4816_v45 = vmax.f32 %v4729_v55, %v4806_v17 }
0x1663   :  { %4825 = vrot.lane.b32.xlu1 %v4816_v45, %s10584_s29  ;;  %v4810_v56 = vpop.f32.mrb[76].mxu0 }
0x1664   :  { %v4817_v40 = vmax.f32 %v4733_v1, %v4810_v56  ;;  %v4812_v14 = vpop.f32.mrb[77].mxu0 }
0x1665   :  { %v4818_v25 = vmax.f32 %v4735_v61, %v4812_v14 }
0x1666   :  { %v10372_v50 = vpack.i.bf16 %v4817_v40, %v4815_v44 }
0x1668   :  { %10373 = vrot.lane.b32.xlu0 %v10372_v50, %s10584_s29 }
0x166c   :  { %4829 = vrot.lane.b32.xlu0 %v4818_v25, %s10584_s29 }
0x16d5   :  { %v4826_v21 = vpop.permute.xlu1 %4825 }
0x16d6   :  { %v4838_v18 = vmax.f32 %v4816_v45, %v4826_v21 }
0x16d8   :  { %v4842_v55 = vmax.f32 %v4838_v18, 0.0 }
0x16da   :  { %v10374_v6 = vpop.permute.xlu0 %10373  ;;  %v4852_v50 = vrot.slane %v4842_v55, 1 }
0x16db   :  { %v10375_v47 = vunpack.i.l.bf16 %v10374_v6  ;;  %v10376_v41 = vunpack.i.h.bf16 %v10374_v6 }
0x16dd   :  { %v4831_v3 = vsel %vm578_vm9, %v10375_v47, %v4826_v21 }
0x16de   :  { %v4837_v2 = vmax.f32 %v4815_v44, %v4831_v3  ;;  %v4830_v17 = vpop.permute.xlu0 %4829 }
0x16df   :  { %v4832_v22 = vsel %vm578_vm9, %v10376_v41, %v4830_v17  ;;  %v4840_v1 = vmax.f32 %v4818_v25, %v4830_v17  ;;  %v4872_v41 = vrot.slane %v4842_v55, 2 }
0x16e0   :  { %v4841_v56 = vmax.f32 %v4837_v2, 0.0  ;;  %v4839_v14 = vmax.f32 %v4817_v40, %v4832_v22 }
0x16e1   :  { %v4844_v61 = vmax.f32 %v4840_v1, 0.0  ;;  %v12800_v1 = vld [vmem:[%s14934_s0 + $0xd8] sm:$0xff] }
0x16e2   :  { %v4843_v9 = vmax.f32 %v4839_v14, 0.0  ;;  %v4849_v35 = vrot.slane %v4841_v56, 1  ;;  %v4869_v40 = vrot.slane %v4841_v56, 2 }
0x16e3   :  { %v4853_v38 = vrot.slane %v4844_v61, 1  ;;  %v4873_v47 = vrot.slane %v4844_v61, 2 }
0x16e4   :  { %v4850_v30 = vrot.slane %v4843_v9, 1  ;;  %v4870_v25 = vrot.slane %v4843_v9, 2 }
0x16e5   :  { %v4854_v45 = vsel %vm226_vm0, %v4852_v50, %v4853_v38  ;;  %v4874_v22 = vsel %vm246_vm1, %v4872_v41, %v4873_v47  ;;  %v5375_v41 = vrot.slane %v12800_v1, 2 }
0x16e6   :  { %v4851_v6 = vsel %vm226_vm0, %v4849_v35, %v4850_v30  ;;  %v10377_v27 = vpack.i.bf16 %v4854_v45, %v4850_v30  ;;  %v4871_v18 = vsel %vm246_vm1, %v4869_v40, %v4870_v25  ;;  %v12784_v30 = vld [vmem:[%s14934_s0 + $0xc8] sm:$0xff]  ;;  %v12789_v35 = vld [vmem:[%s14934_s0 + $0xd0] sm:$0xff] }
0x16e7   :  { %4855 = vrot.lane.b32.xlu1 %v4851_v6, %s10585_s22  ;;  %v5352_v21 = vrot.slane %v12784_v30, 1  ;;  %v5371_v3 = vrot.slane %v12784_v30, 2  ;;  %v5354_v2 = vrot.slane %v12789_v35, 1  ;;  %v5373_v17 = vrot.slane %v12789_v35, 2 }
0x16e8   :  { %10378 = vrot.lane.b32.xlu0 %v10377_v27, %s10585_s22  ;;  %v12779_v27 = vld [vmem:[%s14934_s0 + $0xc0] sm:$0xff] }
0x16e9   :  { %v5370_v44 = vrot.slane %v12779_v27, 2  ;;  %v5355_v45 = vsel %vm226_vm0, %v5352_v21, %v5354_v2  ;;  %v5374_v6 = vsel %vm246_vm1, %v5371_v3, %v5373_v17 }
0x16eb   :  { %4861 = vrot.lane.b32.xlu1 %v4853_v38, %s10585_s22  ;;  %v5351_v38 = vrot.slane %v12779_v27, 1  ;;  %v5372_v50 = vsel %vm246_vm1, %v5370_v44, %v5371_v3 }
0x16ec   :  { %4877 = vrot.lane.b32.xlu0 %v4874_v22, %s10586_s24  ;;  %v5376_v22 = vsel %vm246_vm1, %v5373_v17, %v5375_v41 }
0x16ed   :  { %v5353_v14 = vsel %vm226_vm0, %v5351_v38, %v5352_v21 }
0x16ef   :  { %4875 = vrot.lane.b32.xlu1 %v4871_v18, %s10586_s24 }
0x16f0   :  { %4879 = vrot.lane.b32.xlu0 %v4870_v25, %s10586_s24 }
0x16f3   :  { %4881 = vrot.lane.b32.xlu1 %v4873_v47, %s10586_s24  ;;  %v5356_v47 = vrot.slane %v12800_v1, 1 }
0x16f4   :  { %5358 = vrot.lane.b32.xlu0 %v5353_v14, %s10581_s23 }
0x16f5   :  { %v5357_v25 = vsel %vm226_vm0, %v5354_v2, %v5356_v47 }
0x16f7   :  { %5377 = vrot.lane.b32.xlu1 %v5372_v50, %s10582_s17 }
0x16f8   :  { %5360 = vrot.lane.b32.xlu0 %v5355_v45, %s10581_s23  ;;  %v15526_v45 = vld [vmem:[#allocation84_spill] sm:$0xff] }
0x16fb   :  { %5379 = vrot.lane.b32.xlu1 %v5374_v6, %s10582_s17 }
0x16fc   :  { %5362 = vrot.lane.b32.xlu0 %v5357_v25, %s10581_s23 }
0x16ff   :  { %5381 = vrot.lane.b32.xlu1 %v5376_v22, %s10582_s17 }
0x1700   :  { %5364 = vrot.lane.b32.xlu0 %v5356_v47, %s10581_s23 }
0x1703   :  { %5383 = vrot.lane.b32.xlu1 %v5375_v41, %s10582_s17 }
0x1759   :  { %v4856_v40 = vpop.permute.xlu1 %4855 }
0x175a   :  { %v10379_v18 = vpop.permute.xlu0 %10378  ;;  %v4889_v38 = vsel %vm611_vm11, %v4842_v55, %v4856_v40 }
0x175b   :  { %v10380_v21 = vunpack.i.l.bf16 %v10379_v18  ;;  %4961 = vmatprep.mubr.f32.mxu0 %v4889_v38  ;;  %v10381_v14 = vunpack.i.h.bf16 %v10379_v18 }
0x175c   :  { %4962 = vmatmul.mubr.f32.vlgmr.msra.gmra.mrb[78].mxu0 %v4841_v56  ;;  %v15524_v56 = vld [vmem:[#allocation78_spill] sm:$0xff] }
0x175d   :  { %9518 = vmatpush1.bf16.msra.mxu0 %v15307_v33  ;;  %v4862_v44 = vpop.permute.xlu1 %4861  ;;  %v4890_v3 = vsel %vm611_vm11, %v4844_v61, %v10380_v21  ;;  %v15525_v61 = vld [vmem:[#allocation80_spill] sm:$0xff]  ;;  %v4863_v6 = vsel %vm611_vm11, %v4856_v40, %v10381_v14 }
0x175e   :  { %4967 = vmatprep.mubr.f32.mxu0 %v4890_v3  ;;  %9520 = vmatprep.subr.bf16.mxu0 %v15308_v58  ;;  %v4878_v2 = vpop.permute.xlu0 %4877  ;;  %v4864_v22 = vsel %vm611_vm11, %v10380_v21, %v4862_v44 }
0x1760   :  { %4968 = vmatmul.mubr.f32.gmra.mrb[80].mxu0 %v4843_v9  ;;  %v15523_v9 = vld [vmem:[#allocation77_spill] sm:$0xff] }
0x1761   :  { %9522 = vmatpush1.bf16.msra.mxu0 %v11367_v11  ;;  %v4876_v17 = vpop.permute.xlu1 %4875 }
0x1762   :  { %9524 = vmatprep.subr.bf16.mxu0 %v15309_v32  ;;  %v4883_v55 = vsel %vm632_vm13, %v4876_v17, %v4878_v2  ;;  %v4891_v47 = vsel %vm632_vm13, %v4863_v6, %v4876_v17  ;;  %v4880_v41 = vpop.permute.xlu0 %4879 }
0x1763   :  { %5038 = vmatprep.mubr.f32.mxu0 %v4883_v55  ;;  %v4892_v18 = vsel %vm632_vm13, %v4864_v22, %v4880_v41  ;;  %v15531_v22 = vld [vmem:[#allocation8_spill] sm:$0xff] }
0x1765   :  { %9526 = vmatpush1.bf16.msra.mxu0 %v15359_v42  ;;  %v4882_v50 = vpop.permute.xlu1 %4881 }
0x1766   :  { %9528 = vmatprep.subr.bf16.mxu0 %v15360_v36  ;;  %v4884_v25 = vsel %vm632_vm13, %v4880_v41, %v4882_v50  ;;  %v15529_v41 = vld [vmem:[#allocation6_spill] sm:$0xff] }
0x1769   :  { %9530 = vmatpush1.bf16.msra.mxu0 %v15361_v28 }
0x176a   :  { %9532 = vmatprep.subr.bf16.mxu0 %v15362_v46 }
0x176d   :  { %9534 = vmatpush1.bf16.msra.mxu0 %v15413_v60 }
0x176e   :  { %9536 = vmatprep.subr.bf16.mxu0 %v15414_v54 }
0x1771   :  { %9538 = vmatpush1.bf16.msra.mxu0 %v15415_v43 }
0x1772   :  { %9540 = vmatprep.subr.bf16.mxu0 %v15416_v19 }
0x1775   :  { %9542 = vmatpush1.bf16.msra.mxu0 %v15469_v4 }
0x1776   :  { %9544 = vmatprep.subr.bf16.mxu0 %v15470_v51 }
0x1779   :  { %9546 = vmatpush1.bf16.msra.mxu0 %v15419_v39 }
0x177a   :  { %9548 = vmatprep.subr.bf16.mxu0 %v15471_v31 }
0x177d   :  { %9550 = vmatpush1.bf16.msra.mxu0 %v15421_v63 }
0x177e   :  { %9552 = vmatprep.subr.bf16.mxu0 %v15422_v62 }
0x1781   :  { %9554 = vmatpush1.bf16.msra.mxu0 %v15472_v13 }
0x1782   :  { %9556 = vmatprep.subr.bf16.mxu0 %v15473_v12 }
0x1785   :  { %9558 = vmatpush1.bf16.msra.mxu0 %v15474_v24 }
0x1786   :  { %9560 = vmatprep.subr.bf16.mxu0 %v15375_v8 }
0x1789   :  { %9562 = vmatpush1.bf16.msra.mxu0 %v15475_v29 }
0x178a   :  { %9564 = vmatprep.subr.bf16.mxu0 %v15523_v9 }
0x178d   :  { %9566 = vmatpush1.bf16.msra.mxu0 %v15524_v56 }
0x178e   :  { %9568 = vmatprep.subr.bf16.mxu0 %v15331_v34 }
0x1791   :  { %9570 = vmatpush1.bf16.msra.mxu0 %v15525_v61 }
0x1792   :  { %9572 = vmatprep.subr.bf16.mxu0 %v15380_v52 }
0x1795   :  { %9574 = vmatpush1.bf16.msra.mxu0 %v15381_v49 }
0x1796   :  { %9576 = vmatprep.subr.bf16.mxu0 %v15382_v5 }
0x1799   :  { %9578 = vmatpush1.bf16.msra.mxu0 %v15526_v45 }
0x179a   :  { %9580 = vmatprep.subr.bf16.mxu0 %v15335_v57 }
0x179c   :  { %5039 = vmatmul.mubr.f32.vlgmr.msra.gmra.mrb[78].mxu0 %v4891_v47  ;;  %v15528_v47 = vld [vmem:[#allocation5_spill] sm:$0xff] }
0x179d   :  { %5044 = vmatprep.mubr.f32.mxu0 %v4884_v25  ;;  %9582 = vmatpush1.bf16.msra.mxu0 %v15336_v23  ;;  %v5359_v25 = vpop.permute.xlu0 %5358 }
0x179e   :  { %9585 = vmatprep.subr.msk.bf16.mxu0 %vm11253_vm10, %v15337_v59 }
0x17a0   :  { %5045 = vmatmul.mubr.f32.gmra.mrb[80].mxu0 %v4892_v18  ;;  %v5378_v18 = vpop.permute.xlu1 %5377 }
0x17a1   :  { %9588 = vmatpush1.bf16.msk.msra.mxu0 %vm11253_vm10, %v15339_v15  ;;  %5115 = vmatprep.mubr.f32.mxu0 %v15254_v0 }
0x17a4   :  { %8128 = vmatmul.mubr.msk.f32.vlgmr.msra.gmra.mrb[78].mxu0 %vm654_vm12, %v4878_v2 }
0x17a5   :  { %5121 = vmatprep.mubr.f32.mxu0 %v15254_v0 }
0x17a8   :  { %8129 = vmatmul.mubr.msk.f32.gmra.mrb[80].mxu0 %vm654_vm12, %v4882_v50  ;;  %v15527_v50 = vld [vmem:[#allocation4_spill] sm:$0xff] }
0x17a9   :  { %6041 = vmatprep.mubr.f32.mxu0 %v15254_v0 }
0x1877   :  { %v5117_v40 = vpop.f32.mrb[78].mxu0 }
0x1878   :  { %v5119_v38 = vpop.f32.mrb[79].mxu0  ;;  %v10234_v44 = vadd.f32 %v5117_v40, %v11668_v7  ;;  %v15532_v40 = vld [vmem:[#allocation9_spill] sm:$0xff] }
0x1879   :  { %v10235_v55 = vadd.f32 %v5119_v38, %v11672_v20  ;;  %v15533_v38 = vld [vmem:[#allocation10_spill] sm:$0xff] }
0x187b   :  { %v5123_v21 = vpop.f32.mrb[80].mxu0 }
0x187c   :  { %v10236_v3 = vadd.f32 %v5123_v21, %v11668_v7  ;;  %v5125_v17 = vpop.f32.mrb[81].mxu0  ;;  %v15534_v21 = vld [vmem:[#allocation11_spill] sm:$0xff] }
0x187d   :  { %v10237_v14 = vadd.f32 %v5125_v17, %v11672_v20  ;;  %v5380_v17 = vpop.permute.xlu1 %5379 }
0x187e   :  { %v9592_v6 = vpack.c.bf16 %v10236_v3, %v10234_v44  ;;  %v15535_v44 = vld [vmem:[#allocation12_spill] sm:$0xff]  ;;  %v5389_v3 = vsel %vm266_vm2, %v12779_v27, %v5359_v25 }
0x187f   :  { %v9589_v2 = vpack.c.bf16 %v10237_v14, %v10235_v55  ;;  %v15536_v55 = vld [vmem:[#allocation13_spill] sm:$0xff]  ;;  %v5393_v14 = vsel %vm271_vm3, %v5389_v3, %v5378_v18 }
0x1881   :  { %9591 = vmatprep.subr.msk.bf16.mxu1 %vm11680_vm15, %v9589_v2 }
0x1882   :  { %9594 = vmatpush1.bf16.msk.msra.mxu1 %vm11680_vm15, %v9592_v6 }
0x1883   :  { %9597 = vmatprep.subr.msk.bf16.mxu1 %vm11680_vm15, %v9589_v2 }
0x1885   :  { %8132 = vmatmul.mubr.msk.f32.vlgmr.msra.gmra.mrb[60].mxu1 %vm897_vm8, %v12649_v53  ;;  %v15530_v53 = vld [vmem:[#allocation7_spill] sm:$0xff] }
0x1886   :  { %9600 = vmatpush1.bf16.msk.msra.mxu1 %vm11680_vm15, %v9592_v6  ;;  %5269 = vmatprep.mubr.f32.mxu1 %v15254_v0 }
0x1887   :  { %9602 = vmatprep.subr.bf16.mxu1 %v10713_v16 }
0x1889   :  { %8135 = vmatmul.mubr.msk.f32.vlgmr.msra.gmra.mrb[62].mxu1 %vm897_vm8, %v12660_v37  ;;  %v5361_v37 = vpop.permute.xlu0 %5360 }
0x188a   :  { %9604 = vmatpush1.bf16.msra.mxu1 %v10737_v26  ;;  %5473 = vmatprep.mubr.f32.mxu1 %v15254_v0  ;;  %v5390_v2 = vsel %vm266_vm2, %v12784_v30, %v5361_v37 }
0x188b   :  { %9606 = vmatprep.subr.bf16.mxu1 %v15527_v50 }
0x188d   :  { %v5363_v6 = vpop.permute.xlu0 %5362 }
0x188e   :  { %9608 = vmatpush1.bf16.msra.mxu1 %v15528_v47 }
0x188f   :  { %9610 = vmatprep.subr.bf16.mxu1 %v15529_v41 }
0x1891   :  { %v5365_v27 = vpop.permute.xlu0 %5364 }
0x1892   :  { %9612 = vmatpush1.bf16.msra.mxu1 %v15530_v53  ;;  %v5392_v30 = vsel %vm266_vm2, %v12800_v1, %v5365_v27 }
0x1893   :  { %9614 = vmatprep.subr.bf16.mxu1 %v15531_v22 }
0x1896   :  { %9616 = vmatpush1.bf16.msra.mxu1 %v15532_v40  ;;  %v5394_v40 = vsel %vm271_vm3, %v5390_v2, %v5380_v17  ;;  %v15539_v2 = vld [vmem:[#allocation14_spill] sm:$0xff] }
0x1897   :  { %9618 = vmatprep.subr.bf16.mxu1 %v15533_v38  ;;  %v5382_v38 = vpop.permute.xlu1 %5381 }
0x189a   :  { %9620 = vmatpush1.bf16.msra.mxu1 %v15534_v21 }
0x189b   :  { %9622 = vmatprep.subr.bf16.mxu1 %v15535_v44  ;;  %v5391_v44 = vsel %vm266_vm2, %v12789_v35, %v5363_v6  ;;  %v5384_v18 = vpop.permute.xlu1 %5383 }
0x189c   :  { %v5395_v25 = vsel %vm271_vm3, %v5391_v44, %v5382_v38  ;;  %v5396_v37 = vsel %vm271_vm3, %v5392_v30, %v5384_v18  ;;  %v15540_v18 = vld [vmem:[#allocation15_spill] sm:$0xff] }
0x189e   :  { %9624 = vmatpush1.bf16.msra.mxu1 %v15536_v55 }
0x18a1   :  { %8140 = vmatmul.mubr.msk.f32.vlgmr.msra.gmra.mrb[64].mxu1 %vm287_vm4, %v5393_v14 }
0x18a2   :  { %5479 = vmatprep.mubr.f32.mxu1 %v15254_v0 }
0x18a5   :  { %8141 = vmatmul.mubr.msk.f32.gmra.mrb[66].mxu1 %vm287_vm4, %v5394_v40 }
0x18a6   :  { %5485 = vmatprep.mubr.f32.mxu1 %v15254_v0 }
0x18a9   :  { %8142 = vmatmul.mubr.msk.f32.gmra.mrb[68].mxu1 %vm287_vm4, %v5395_v25 }
0x18aa   :  { %5491 = vmatprep.mubr.f32.mxu1 %v15254_v0 }
0x18ad   :  { %8143 = vmatmul.mubr.msk.f32.gmra.mrb[70].mxu1 %vm287_vm4, %v5396_v37 }
0x18ae   :  { %5568 = vmatprep.mubr.f32.mxu1 %v15254_v0 }
0x1958   :  { %v5200_v35 = vpop.f32.mrb[60].mxu1 }
0x1959   :  { %v5202_v40 = vpop.f32.mrb[61].mxu1 }
0x195c   :  { %v5271_v3 = vpop.f32.mrb[62].mxu1 }
0x195d   :  { %v12920_v38 = vmax.f32 %v5200_v35, %v5271_v3  ;;  %v5273_v44 = vpop.f32.mrb[63].mxu1 }
0x195e   :  { %v12922_v17 = vmax.f32 %v5202_v40, %v5273_v44 }
0x195f   :  { %15537 = vst [vmem:[#allocation61_spill] sm:$0xff] %v12920_v38 }
0x1960   :  { %15538 = vst [vmem:[#allocation75_spill] sm:$0xff] %v12922_v17 }
0x1974   :  { %v5475_v1 = vpop.f32.mrb[64].mxu1 }
0x1975   :  { %v5477_v14 = vpop.f32.mrb[65].mxu1  ;;  %v5476_v27 = vadd.f32 %v5475_v1, %v15539_v2 }
0x1976   :  { %v5478_v37 = vadd.f32 %v5477_v14, %v15540_v18 }
0x1978   :  { %v5481_v6 = vpop.f32.mrb[66].mxu1 }
0x1979   :  { %v5482_v25 = vadd.f32 %v5481_v6, %v15539_v2  ;;  %v5483_v30 = vpop.f32.mrb[67].mxu1 }
0x197a   :  { %v5484_v55 = vadd.f32 %v5483_v30, %v15540_v18  ;;  %v15550_v30 = vld [vmem:[#allocation21_spill] sm:$0xff] }
0x197b   :  { %v9627_v21 = vpack.c.bf16 %v5482_v25, %v5476_v27  ;;  %v15547_v27 = vld [vmem:[#allocation19_spill] sm:$0xff]  ;;  %v15549_v25 = vld [vmem:[#allocation20_spill] sm:$0xff] }
0x197c   :  { %v9625_v22 = vpack.c.bf16 %v5484_v55, %v5478_v37  ;;  %v5487_v53 = vpop.f32.mrb[68].mxu1  ;;  %v12949_v55 = vld [vmem:[%s14937_s3 + $0x8] sm:$0x7f]  ;;  %v15551_v37 = vld [vmem:[#allocation22_spill] sm:$0xff] }
0x197d   :  { %v5489_v35 = vpop.f32.mrb[69].mxu1  ;;  %v5488_v3 = vadd.f32 %v5487_v53, %v15539_v2  ;;  %v12939_v53 = vld [vmem:[%s14937_s3] sm:$0xff]  ;;  %15543 = vst [vmem:[#allocation82_spill] sm:$0xff] %v12949_v55 }
0x197e   :  { %9626 = vmatprep.subr.bf16.mxu1 %v9625_v22  ;;  %v5490_v1 = vadd.f32 %v5489_v35, %v15540_v18  ;;  %15542 = vst [vmem:[#allocation81_spill] sm:$0xff] %v12939_v53  ;;  %v15552_v35 = vld [vmem:[#allocation23_spill] sm:$0xff] }
0x197f   :  { %9628 = vmatpush1.bf16.msra.mxu1 %v9627_v21 }
0x1980   :  { %v5493_v40 = vpop.f32.mrb[70].mxu1 }
0x1981   :  { %v5494_v44 = vadd.f32 %v5493_v40, %v15539_v2  ;;  %v5495_v17 = vpop.f32.mrb[71].mxu1  ;;  %v15553_v40 = vld [vmem:[#allocation24_spill] sm:$0xff] }
0x1982   :  { %v5496_v6 = vadd.f32 %v5495_v17, %v15540_v18  ;;  %v15546_v17 = vld [vmem:[#allocation18_spill] sm:$0xff] }
0x1983   :  { %v9632_v38 = vpack.c.bf16 %v5494_v44, %v5488_v3  ;;  %v15554_v3 = vld [vmem:[#allocation25_spill] sm:$0xff]  ;;  %v15555_v44 = vld [vmem:[#allocation26_spill] sm:$0xff] }
0x1984   :  { %v9629_v14 = vpack.c.bf16 %v5496_v6, %v5490_v1  ;;  %v15556_v1 = vld [vmem:[#allocation27_spill] sm:$0xff]  ;;  %v15557_v6 = vld [vmem:[#allocation28_spill] sm:$0xff] }
0x1986   :  { %9631 = vmatprep.subr.msk.bf16.mxu1 %vm10871_vm6, %v9629_v14 }
0x1987   :  { %9634 = vmatpush1.bf16.msk.msra.mxu1 %vm10871_vm6, %v9632_v38 }
0x1988   :  { %9636 = vmatprep.subr.bf16.mxu1 %v9625_v22  ;;  %v15544_v22 = vld [vmem:[#allocation17_spill] sm:$0xff] }
0x198a   :  { %8146 = vmatmul.mubr.msk.f32.vlgmr.msra.gmra.mrb[72].mxu1 %vm389_vm7, %v12939_v53 }
0x198b   :  { %9638 = vmatpush1.bf16.msra.mxu1 %v9627_v21  ;;  %5574 = vmatprep.mubr.f32.mxu1 %v15254_v0  ;;  %v12960_v21 = vld [vmem:[%s14938_s4] sm:$0xff] }
0x198c   :  { %9641 = vmatprep.subr.msk.bf16.mxu1 %vm10871_vm6, %v9629_v14  ;;  %15545 = vst [vmem:[#allocation83_spill] sm:$0xff] %v12960_v21  ;;  %v15558_v14 = vld [vmem:[#allocation29_spill] sm:$0xff] }
0x198e   :  { %8147 = vmatmul.mubr.msk.f32.gmra.mrb[74].mxu1 %vm389_vm7, %v12949_v55 }
0x198f   :  { %9644 = vmatpush1.bf16.msk.msra.mxu1 %vm10871_vm6, %v9632_v38  ;;  %5645 = vmatprep.mubr.f32.mxu1 %v15254_v0  ;;  %v12970_v38 = vld [vmem:[%s14938_s4 + $0x8] sm:$0x7f] }
0x1990   :  { %9646 = vmatprep.subr.bf16.mxu1 %v15544_v22  ;;  %15548 = vst [vmem:[#allocation62_spill] sm:$0xff] %v12970_v38 }
0x1992   :  { %8150 = vmatmul.mubr.msk.f32.vlgmr.msra.gmra.mrb[76].mxu1 %vm389_vm7, %v12960_v21 }
0x1993   :  { %5651 = vmatprep.mubr.f32.mxu1 %v15254_v0  ;;  %9648 = vmatpush1.bf16.msra.mxu1 %v15546_v17 }
0x1994   :  { %9650 = vmatprep.subr.bf16.mxu1 %v15547_v27 }
0x1996   :  { %8151 = vmatmul.mubr.msk.f32.gmra.mrb[78].mxu1 %vm389_vm7, %v12970_v38  ;;  %v15559_v38 = vld [vmem:[#allocation32_spill] sm:$0xff] }
0x1997   :  { %9652 = vmatpush1.bf16.msra.mxu1 %v15549_v25  ;;  %v15560_v25 = vld [vmem:[#allocation33_spill] sm:$0xff] }
0x1998   :  { %9654 = vmatprep.subr.bf16.mxu1 %v15550_v30  ;;  %v15561_v30 = vld [vmem:[#allocation34_spill] sm:$0xff] }
0x199b   :  { %9656 = vmatpush1.bf16.msra.mxu1 %v15551_v37  ;;  %v15562_v37 = vld [vmem:[#allocation35_spill] sm:$0xff] }
0x199c   :  { %9658 = vmatprep.subr.bf16.mxu1 %v15552_v35  ;;  %v15563_v35 = vld [vmem:[#allocation36_spill] sm:$0xff] }
0x199f   :  { %9660 = vmatpush1.bf16.msra.mxu1 %v15553_v40  ;;  %v15564_v40 = vld [vmem:[#allocation37_spill] sm:$0xff] }
0x19a0   :  { %9662 = vmatprep.subr.bf16.mxu1 %v15554_v3  ;;  %v15565_v3 = vld [vmem:[#allocation38_spill] sm:$0xff] }
0x19a3   :  { %9664 = vmatpush1.bf16.msra.mxu1 %v15555_v44  ;;  %v15566_v44 = vld [vmem:[#allocation39_spill] sm:$0xff] }
0x19a4   :  { %9666 = vmatprep.subr.bf16.mxu1 %v15556_v1  ;;  %v15567_v1 = vld [vmem:[#allocation40_spill] sm:$0xff] }
0x19a7   :  { %9668 = vmatpush1.bf16.msra.mxu1 %v15557_v6  ;;  %v15568_v6 = vld [vmem:[#allocation41_spill] sm:$0xff] }
0x19a8   :  { %9670 = vmatprep.subr.bf16.mxu1 %v15558_v14  ;;  %v15569_v14 = vld [vmem:[#allocation42_spill] sm:$0xff] }
0x19ab   :  { %9672 = vmatpush1.bf16.msra.mxu1 %v15559_v38  ;;  %v15570_v38 = vld [vmem:[#allocation43_spill] sm:$0xff] }
0x19ac   :  { %9674 = vmatprep.subr.bf16.mxu1 %v15560_v25  ;;  %v15571_v25 = vld [vmem:[#allocation44_spill] sm:$0xff] }
0x19af   :  { %9676 = vmatpush1.bf16.msra.mxu1 %v15561_v30  ;;  %v15572_v30 = vld [vmem:[#allocation45_spill] sm:$0xff] }
0x19b0   :  { %9678 = vmatprep.subr.bf16.mxu1 %v15562_v37  ;;  %v15573_v37 = vld [vmem:[#allocation46_spill] sm:$0xff] }
0x19b3   :  { %9680 = vmatpush1.bf16.msra.mxu1 %v15563_v35  ;;  %v15574_v35 = vld [vmem:[#allocation47_spill] sm:$0xff] }
0x19b4   :  { %9682 = vmatprep.subr.bf16.mxu1 %v15564_v40  ;;  %v15575_v40 = vld [vmem:[#allocation48_spill] sm:$0xff] }
0x19b7   :  { %9684 = vmatpush1.bf16.msra.mxu1 %v15565_v3  ;;  %v15576_v3 = vld [vmem:[#allocation49_spill] sm:$0xff] }
0x19b8   :  { %9686 = vmatprep.subr.bf16.mxu1 %v15566_v44  ;;  %v15577_v44 = vld [vmem:[#allocation50_spill] sm:$0xff] }
0x19bb   :  { %9688 = vmatpush1.bf16.msra.mxu1 %v15567_v1  ;;  %v15578_v1 = vld [vmem:[#allocation51_spill] sm:$0xff] }
0x19bc   :  { %9690 = vmatprep.subr.bf16.mxu1 %v15568_v6 }
0x19bf   :  { %9692 = vmatpush1.bf16.msra.mxu1 %v15569_v14 }
0x19c0   :  { %9694 = vmatprep.subr.bf16.mxu1 %v15570_v38 }
0x19c3   :  { %9696 = vmatpush1.bf16.msra.mxu1 %v15571_v25 }
0x19c4   :  { %9698 = vmatprep.subr.bf16.mxu1 %v15572_v30 }
0x19c7   :  { %9700 = vmatpush1.bf16.msra.mxu1 %v15573_v37 }
0x19c8   :  { %9702 = vmatprep.subr.bf16.mxu1 %v15574_v35 }
0x19cb   :  { %9704 = vmatpush1.bf16.msra.mxu1 %v15575_v40 }
0x19cc   :  { %9706 = vmatprep.subr.bf16.mxu1 %v15576_v3 }
0x19cf   :  { %9708 = vmatpush1.bf16.msra.mxu1 %v15577_v44 }
0x19d0   :  { %9710 = vmatprep.subr.bf16.mxu1 %v15578_v1 }
0x1a5d   :  { %v5570_v6 = vpop.f32.mrb[72].mxu1 }
0x1a5e   :  { %v5572_v14 = vpop.f32.mrb[73].mxu1 }
0x1a61   :  { %v5576_v27 = vpop.f32.mrb[74].mxu1 }
0x1a62   :  { %v5578_v38 = vpop.f32.mrb[75].mxu1 }
0x1a65   :  { %v5647_v17 = vpop.f32.mrb[76].mxu1 }
0x1a66   :  { %v5658_v25 = vmax.f32 %v5570_v6, %v5647_v17  ;;  %v5649_v21 = vpop.f32.mrb[77].mxu1 }
0x1a67   :  { %v5659_v30 = vmax.f32 %v5572_v14, %v5649_v21 }
0x1a69   :  { %5668 = vrot.lane.b32.xlu1 %v5659_v30, %s10584_s29  ;;  %v5653_v37 = vpop.f32.mrb[78].mxu1 }
0x1a6a   :  { %v5660_v35 = vmax.f32 %v5576_v27, %v5653_v37  ;;  %v5655_v22 = vpop.f32.mrb[79].mxu1 }
0x1a6b   :  { %v5661_v40 = vmax.f32 %v5578_v38, %v5655_v22 }
0x1a6c   :  { %v10382_v55 = vpack.i.bf16 %v5660_v35, %v5658_v25 }
0x1a6e   :  { %10383 = vrot.lane.b32.xlu0 %v10382_v55, %s10584_s29 }
0x1a72   :  { %5672 = vrot.lane.b32.xlu0 %v5661_v40, %s10584_s29 }
0x1adb   :  { %v5669_v1 = vpop.permute.xlu1 %5668 }
0x1adc   :  { %v5681_v3 = vmax.f32 %v5659_v30, %v5669_v1 }
0x1ade   :  { %v5685_v14 = vmax.f32 %v5681_v3, 0.0 }
0x1ae0   :  { %v10384_v44 = vpop.permute.xlu0 %10383  ;;  %v5695_v55 = vrot.slane %v5685_v14, 1 }
0x1ae1   :  { %v10385_v53 = vunpack.i.l.bf16 %v10384_v44  ;;  %v10386_v41 = vunpack.i.h.bf16 %v10384_v44 }
0x1ae3   :  { %v5674_v17 = vsel %vm578_vm9, %v10385_v53, %v5669_v1 }
0x1ae4   :  { %v5680_v6 = vmax.f32 %v5658_v25, %v5674_v17  ;;  %v5673_v21 = vpop.permute.xlu0 %5672 }
0x1ae5   :  { %v5675_v18 = vsel %vm578_vm9, %v10386_v41, %v5673_v21  ;;  %v5683_v27 = vmax.f32 %v5661_v40, %v5673_v21  ;;  %v5715_v41 = vrot.slane %v5685_v14, 2 }
0x1ae6   :  { %v5684_v37 = vmax.f32 %v5680_v6, 0.0  ;;  %v5682_v22 = vmax.f32 %v5660_v35, %v5675_v18 }
0x1ae7   :  { %v5687_v38 = vmax.f32 %v5683_v27, 0.0  ;;  %v13044_v27 = vld [vmem:[%s14934_s0 + $0xf8] sm:$0xff] }
0x1ae8   :  { %v5686_v2 = vmax.f32 %v5682_v22, 0.0  ;;  %v5692_v26 = vrot.slane %v5684_v37, 1  ;;  %v5712_v35 = vrot.slane %v5684_v37, 2 }
0x1ae9   :  { %v5696_v47 = vrot.slane %v5687_v38, 1  ;;  %v5716_v53 = vrot.slane %v5687_v38, 2 }
0x1aea   :  { %v5693_v50 = vrot.slane %v5686_v2, 1  ;;  %v5713_v25 = vrot.slane %v5686_v2, 2 }
0x1aeb   :  { %v5697_v30 = vsel %vm226_vm0, %v5695_v55, %v5696_v47  ;;  %v5717_v18 = vsel %vm246_vm1, %v5715_v41, %v5716_v53  ;;  %v6218_v41 = vrot.slane %v13044_v27, 2 }
0x1aec   :  { %v5694_v44 = vsel %vm226_vm0, %v5692_v26, %v5693_v50  ;;  %v10387_v16 = vpack.i.bf16 %v5697_v30, %v5693_v50  ;;  %v5714_v40 = vsel %vm246_vm1, %v5712_v35, %v5713_v25  ;;  %v13028_v26 = vld [vmem:[%s14934_s0 + $0xe8] sm:$0xff]  ;;  %v13033_v50 = vld [vmem:[%s14934_s0 + $0xf0] sm:$0xff] }
0x1aed   :  { %5698 = vrot.lane.b32.xlu1 %v5694_v44, %s10585_s22  ;;  %v6195_v3 = vrot.slane %v13028_v26, 1  ;;  %v6214_v17 = vrot.slane %v13028_v26, 2  ;;  %v6197_v6 = vrot.slane %v13033_v50, 1  ;;  %v6216_v21 = vrot.slane %v13033_v50, 2 }
0x1aee   :  { %10388 = vrot.lane.b32.xlu0 %v10387_v16, %s10585_s22  ;;  %v13023_v16 = vld [vmem:[%s14934_s0 + $0xe0] sm:$0xff] }
0x1aef   :  { %v6213_v1 = vrot.slane %v13023_v16, 2  ;;  %v6198_v30 = vsel %vm226_vm0, %v6195_v3, %v6197_v6  ;;  %v6217_v44 = vsel %vm246_vm1, %v6214_v17, %v6216_v21 }
0x1af1   :  { %5704 = vrot.lane.b32.xlu1 %v5696_v47, %s10585_s22  ;;  %v6194_v47 = vrot.slane %v13023_v16, 1  ;;  %v6215_v55 = vsel %vm246_vm1, %v6213_v1, %v6214_v17 }
0x1af2   :  { %5720 = vrot.lane.b32.xlu0 %v5717_v18, %s10586_s24  ;;  %v6219_v18 = vsel %vm246_vm1, %v6216_v21, %v6218_v41 }
0x1af3   :  { %v6196_v22 = vsel %vm226_vm0, %v6194_v47, %v6195_v3 }
0x1af5   :  { %5718 = vrot.lane.b32.xlu1 %v5714_v40, %s10586_s24 }
0x1af6   :  { %5722 = vrot.lane.b32.xlu0 %v5713_v25, %s10586_s24 }
0x1af9   :  { %5724 = vrot.lane.b32.xlu1 %v5716_v53, %s10586_s24  ;;  %v6199_v53 = vrot.slane %v13044_v27, 1 }
0x1afa   :  { %6201 = vrot.lane.b32.xlu0 %v6196_v22, %s10581_s23 }
0x1afb   :  { %v6200_v25 = vsel %vm226_vm0, %v6197_v6, %v6199_v53 }
0x1afd   :  { %6220 = vrot.lane.b32.xlu1 %v6215_v55, %s10582_s17 }
0x1afe   :  { %6203 = vrot.lane.b32.xlu0 %v6198_v30, %s10581_s23 }
0x1b01   :  { %6222 = vrot.lane.b32.xlu1 %v6217_v44, %s10582_s17 }
0x1b02   :  { %6205 = vrot.lane.b32.xlu0 %v6200_v25, %s10581_s23 }
0x1b05   :  { %6224 = vrot.lane.b32.xlu1 %v6219_v18, %s10582_s17 }
0x1b06   :  { %6207 = vrot.lane.b32.xlu0 %v6199_v53, %s10581_s23 }
0x1b09   :  { %6226 = vrot.lane.b32.xlu1 %v6218_v41, %s10582_s17 }
0x1b5f   :  { %v5699_v35 = vpop.permute.xlu1 %5698 }
0x1b60   :  { %v10389_v40 = vpop.permute.xlu0 %10388  ;;  %v5732_v47 = vsel %vm611_vm11, %v5685_v14, %v5699_v35 }
0x1b61   :  { %v10390_v3 = vunpack.i.l.bf16 %v10389_v40  ;;  %5804 = vmatprep.mubr.f32.mxu1 %v5732_v47 }
0x1b62   :  { %5805 = vmatmul.mubr.f32.vlgmr.msra.gmra.mrb[80].mxu1 %v5684_v37 }
0x1b63   :  { %9712 = vmatpush1.bf16.msra.mxu1 %v15307_v33  ;;  %v5705_v1 = vpop.permute.xlu1 %5704  ;;  %v5733_v17 = vsel %vm611_vm11, %v5687_v38, %v10390_v3 }
0x1b64   :  { %v5707_v6 = vsel %vm611_vm11, %v10390_v3, %v5705_v1  ;;  %5810 = vmatprep.mubr.f32.mxu1 %v5733_v17  ;;  %9714 = vmatprep.subr.bf16.mxu1 %v15308_v58  ;;  %v5721_v21 = vpop.permute.xlu0 %5720 }
0x1b66   :  { %5811 = vmatmul.mubr.f32.gmra.mrb[82].mxu1 %v5686_v2  ;;  %v10391_v2 = vunpack.i.h.bf16 %v10389_v40 }
0x1b67   :  { %9716 = vmatpush1.bf16.msra.mxu1 %v11367_v11  ;;  %v5719_v22 = vpop.permute.xlu1 %5718 }
0x1b68   :  { %9718 = vmatprep.subr.bf16.mxu1 %v15309_v32  ;;  %v5726_v14 = vsel %vm632_vm13, %v5719_v22, %v5721_v21  ;;  %v5706_v38 = vsel %vm611_vm11, %v5699_v35, %v10391_v2  ;;  %v5723_v30 = vpop.permute.xlu0 %5722  ;;  %v15582_v2 = vld [vmem:[#allocation3_spill] sm:$0xff] }
0x1b69   :  { %5881 = vmatprep.mubr.f32.mxu1 %v5726_v14  ;;  %v5734_v55 = vsel %vm632_vm13, %v5706_v38, %v5719_v22  ;;  %v5735_v53 = vsel %vm632_vm13, %v5707_v6, %v5723_v30  ;;  %v15580_v22 = vld [vmem:[#allocation2_spill] sm:$0xff]  ;;  %v15584_v38 = vld [vmem:[#allocation5_spill] sm:$0xff] }
0x1b6a   :  { %v13138_v14 = vld [vmem:[%s14942_s8] sm:$0x3f]  ;;  %s10588_s8 = smov 109  }
0x1b6b   :  { %9720 = vmatpush1.bf16.msra.mxu1 %v15359_v42  ;;  %v5725_v37 = vpop.permute.xlu1 %5724  ;;  %15581 = vst [vmem:[#allocation64_spill] sm:$0xff] %v13138_v14 }
0x1b6c   :  { %9722 = vmatprep.subr.bf16.mxu1 %v15360_v36  ;;  %v5727_v44 = vsel %vm632_vm13, %v5723_v30, %v5725_v37  ;;  %v15586_v30 = vld [vmem:[#allocation7_spill] sm:$0xff] }
0x1b6f   :  { %9724 = vmatpush1.bf16.msra.mxu1 %v15361_v28 }
0x1b70   :  { %9726 = vmatprep.subr.bf16.mxu1 %v15362_v46 }
0x1b73   :  { %9728 = vmatpush1.bf16.msra.mxu1 %v15413_v60 }
0x1b74   :  { %9730 = vmatprep.subr.bf16.mxu1 %v15414_v54 }
0x1b77   :  { %9732 = vmatpush1.bf16.msra.mxu1 %v15415_v43 }
0x1b78   :  { %9734 = vmatprep.subr.bf16.mxu1 %v15416_v19 }
0x1b7b   :  { %9736 = vmatpush1.bf16.msra.mxu1 %v15469_v4 }
0x1b7c   :  { %9738 = vmatprep.subr.bf16.mxu1 %v15470_v51 }
0x1b7f   :  { %9740 = vmatpush1.bf16.msra.mxu1 %v15419_v39 }
0x1b80   :  { %9742 = vmatprep.subr.bf16.mxu1 %v15471_v31 }
0x1b83   :  { %9744 = vmatpush1.bf16.msra.mxu1 %v15421_v63 }
0x1b84   :  { %9746 = vmatprep.subr.bf16.mxu1 %v15422_v62 }
0x1b87   :  { %9748 = vmatpush1.bf16.msra.mxu1 %v15472_v13 }
0x1b88   :  { %9750 = vmatprep.subr.bf16.mxu1 %v15473_v12 }
0x1b8b   :  { %9752 = vmatpush1.bf16.msra.mxu1 %v15474_v24 }
0x1b8c   :  { %9754 = vmatprep.subr.bf16.mxu1 %v15375_v8 }
0x1b8f   :  { %9756 = vmatpush1.bf16.msra.mxu1 %v15475_v29 }
0x1b90   :  { %9758 = vmatprep.subr.bf16.mxu1 %v15523_v9 }
0x1b93   :  { %9760 = vmatpush1.bf16.msra.mxu1 %v15524_v56 }
0x1b94   :  { %9762 = vmatprep.subr.bf16.mxu1 %v15331_v34 }
0x1b97   :  { %9764 = vmatpush1.bf16.msra.mxu1 %v15525_v61 }
0x1b98   :  { %9766 = vmatprep.subr.bf16.mxu1 %v15380_v52 }
0x1b9b   :  { %9768 = vmatpush1.bf16.msra.mxu1 %v15381_v49 }
0x1b9c   :  { %9770 = vmatprep.subr.bf16.mxu1 %v15382_v5 }
0x1b9f   :  { %9772 = vmatpush1.bf16.msra.mxu1 %v15526_v45 }
0x1ba0   :  { %9774 = vmatprep.subr.bf16.mxu1 %v15335_v57 }
0x1ba2   :  { %5882 = vmatmul.mubr.f32.vlgmr.msra.gmra.mrb[80].mxu1 %v5734_v55  ;;  %v15585_v55 = vld [vmem:[#allocation6_spill] sm:$0xff] }
0x1ba3   :  { %5887 = vmatprep.mubr.f32.mxu1 %v5727_v44  ;;  %9776 = vmatpush1.bf16.msra.mxu1 %v15336_v23  ;;  %v6202_v44 = vpop.permute.xlu0 %6201 }
0x1ba4   :  { %9779 = vmatprep.subr.msk.bf16.mxu1 %vm11253_vm10, %v15337_v59 }
0x1ba6   :  { %5888 = vmatmul.mubr.f32.gmra.mrb[82].mxu1 %v5735_v53  ;;  %v15587_v53 = vld [vmem:[#allocation8_spill] sm:$0xff] }
0x1ba7   :  { %9782 = vmatpush1.bf16.msk.msra.mxu1 %vm11253_vm10, %v15339_v15  ;;  %5958 = vmatprep.mubr.f32.mxu1 %v15254_v0 }
0x1baa   :  { %8154 = vmatmul.mubr.msk.f32.vlgmr.msra.gmra.mrb[80].mxu1 %vm654_vm12, %v5721_v21  ;;  %v13127_v21 = vld [vmem:[%s14941_s7] sm:$0x3f]  ;;  %s10587_s7 = smov 79  }
0x1bab   :  { %5964 = vmatprep.mubr.f32.mxu1 %v15254_v0  ;;  %15579 = vst [vmem:[#allocation63_spill] sm:$0xff] %v13127_v21 }
0x1bae   :  { %8155 = vmatmul.mubr.msk.f32.gmra.mrb[82].mxu1 %vm654_vm12, %v5725_v37  ;;  %v15583_v37 = vld [vmem:[#allocation4_spill] sm:$0xff] }
0x1baf   :  { %6884 = vmatprep.mubr.f32.mxu1 %v15254_v0 }
0x1c7d   :  { %v5960_v41 = vpop.f32.mrb[80].mxu1 }
0x1c7e   :  { %v5962_v25 = vpop.f32.mrb[81].mxu1  ;;  %v10238_v35 = vadd.f32 %v5960_v41, %v11668_v7  ;;  %v6221_v41 = vpop.permute.xlu1 %6220 }
0x1c7f   :  { %v10239_v3 = vadd.f32 %v5962_v25, %v11672_v20  ;;  %v15588_v25 = vld [vmem:[#allocation9_spill] sm:$0xff] }
0x1c81   :  { %v5966_v18 = vpop.f32.mrb[82].mxu1 }
0x1c82   :  { %v10240_v40 = vadd.f32 %v5966_v18, %v11668_v7  ;;  %v5968_v47 = vpop.f32.mrb[83].mxu1  ;;  %v15589_v18 = vld [vmem:[#allocation10_spill] sm:$0xff] }
0x1c83   :  { %v10241_v1 = vadd.f32 %v5968_v47, %v11672_v20  ;;  %v15591_v47 = vld [vmem:[#allocation12_spill] sm:$0xff] }
0x1c84   :  { %v9786_v17 = vpack.c.bf16 %v10240_v40, %v10238_v35  ;;  %v6204_v35 = vpop.permute.xlu0 %6203  ;;  %v15590_v40 = vld [vmem:[#allocation11_spill] sm:$0xff] }
0x1c85   :  { %v9783_v6 = vpack.c.bf16 %v10241_v1, %v10239_v3  ;;  %v6232_v3 = vsel %vm266_vm2, %v13023_v16, %v6202_v44  ;;  %v6223_v1 = vpop.permute.xlu1 %6222 }
0x1c87   :  { %9785 = vmatprep.subr.msk.bf16.mxu0 %vm11680_vm15, %v9783_v6 }
0x1c88   :  { %9788 = vmatpush1.bf16.msk.msra.mxu0 %vm11680_vm15, %v9786_v17 }
0x1c89   :  { %9791 = vmatprep.subr.msk.bf16.mxu0 %vm11680_vm15, %v9783_v6  ;;  %v6236_v6 = vsel %vm271_vm3, %v6232_v3, %v6221_v41 }
0x1c8b   :  { %8158 = vmatmul.mubr.msk.f32.vlgmr.msra.gmra.mrb[82].mxu0 %vm897_vm8, %v13127_v21 }
0x1c8c   :  { %9794 = vmatpush1.bf16.msk.msra.mxu0 %vm11680_vm15, %v9786_v17  ;;  %6112 = vmatprep.mubr.f32.mxu0 %v15254_v0  ;;  %v15592_v17 = vld [vmem:[#allocation13_spill] sm:$0xff] }
0x1c8d   :  { %9796 = vmatprep.subr.bf16.mxu0 %v15580_v22  ;;  %v6206_v22 = vpop.permute.xlu0 %6205 }
0x1c8f   :  { %8161 = vmatmul.mubr.msk.f32.vlgmr.msra.gmra.mrb[84].mxu0 %vm897_vm8, %v13138_v14 }
0x1c90   :  { %9798 = vmatpush1.bf16.msra.mxu0 %v15582_v2  ;;  %6316 = vmatprep.mubr.f32.mxu0 %v15254_v0  ;;  %v6233_v2 = vsel %vm266_vm2, %v13028_v26, %v6204_v35 }
0x1c91   :  { %9800 = vmatprep.subr.bf16.mxu0 %v15583_v37  ;;  %v6225_v37 = vpop.permute.xlu1 %6224  ;;  %v6208_v16 = vpop.permute.xlu0 %6207 }
0x1c92   :  { %v6235_v26 = vsel %vm266_vm2, %v13044_v27, %v6208_v16 }
0x1c94   :  { %9802 = vmatpush1.bf16.msra.mxu0 %v15584_v38  ;;  %v6237_v38 = vsel %vm271_vm3, %v6233_v2, %v6223_v1  ;;  %v15593_v1 = vld [vmem:[#allocation14_spill] sm:$0xff]  ;;  %v15594_v2 = vld [vmem:[#allocation15_spill] sm:$0xff] }
0x1c95   :  { %9804 = vmatprep.subr.bf16.mxu0 %v15585_v55  ;;  %v6234_v55 = vsel %vm266_vm2, %v13033_v50, %v6206_v22  ;;  %v6227_v44 = vpop.permute.xlu1 %6226  ;;  %vm7208_vm2 = vcmask 1041408  }
0x1c98   :  { %9806 = vmatpush1.bf16.msra.mxu0 %v15586_v30  ;;  %v6238_v30 = vsel %vm271_vm3, %v6234_v55, %v6225_v37 }
0x1c99   :  { %9808 = vmatprep.subr.bf16.mxu0 %v15587_v53  ;;  %v6239_v53 = vsel %vm271_vm3, %v6235_v26, %v6227_v44  ;;  %vm7219_vm3 = vcmask 1042432  }
0x1c9c   :  { %9810 = vmatpush1.bf16.msra.mxu0 %v15588_v25 }
0x1c9d   :  { %9812 = vmatprep.subr.bf16.mxu0 %v15589_v18 }
0x1ca0   :  { %9814 = vmatpush1.bf16.msra.mxu0 %v15590_v40 }
0x1ca1   :  { %9816 = vmatprep.subr.bf16.mxu0 %v15591_v47 }
0x1ca4   :  { %9818 = vmatpush1.bf16.msra.mxu0 %v15592_v17 }
0x1ca7   :  { %8166 = vmatmul.mubr.msk.f32.vlgmr.msra.gmra.mrb[86].mxu0 %vm287_vm4, %v6236_v6 }
0x1ca8   :  { %6322 = vmatprep.mubr.f32.mxu0 %v15254_v0 }
0x1cab   :  { %8167 = vmatmul.mubr.msk.f32.gmra.mrb[88].mxu0 %vm287_vm4, %v6237_v38 }
0x1cac   :  { %6328 = vmatprep.mubr.f32.mxu0 %v15254_v0 }
0x1caf   :  { %8168 = vmatmul.mubr.msk.f32.gmra.mrb[90].mxu0 %vm287_vm4, %v6238_v30 }
0x1cb0   :  { %6334 = vmatprep.mubr.f32.mxu0 %v15254_v0 }
0x1cb3   :  { %8169 = vmatmul.mubr.msk.f32.gmra.mrb[92].mxu0 %vm287_vm4, %v6239_v53  ;;  %vm15645_vm4 = vcmask 1040384  }
0x1cb4   :  { %6411 = vmatprep.mubr.f32.mxu0 %v15254_v0 }
0x1d5e   :  { %v6043_v50 = vpop.f32.mrb[82].mxu0 }
0x1d5f   :  { %v6045_v41 = vpop.f32.mrb[83].mxu0 }
0x1d62   :  { %v6114_v25 = vpop.f32.mrb[84].mxu0 }
0x1d63   :  { %v13174_v18 = vmax.f32 %v6043_v50, %v6114_v25  ;;  %v6116_v35 = vpop.f32.mrb[85].mxu0 }
0x1d64   :  { %v13176_v40 = vmax.f32 %v6045_v41, %v6116_v35 }
0x1d7a   :  { %v6318_v27 = vpop.f32.mrb[86].mxu0 }
0x1d7b   :  { %v6320_v47 = vpop.f32.mrb[87].mxu0  ;;  %v6319_v17 = vadd.f32 %v6318_v27, %v15593_v1 }
0x1d7c   :  { %v6321_v37 = vadd.f32 %v6320_v47, %v15594_v2 }
0x1d7e   :  { %v6324_v3 = vpop.f32.mrb[88].mxu0 }
0x1d7f   :  { %v6325_v6 = vadd.f32 %v6324_v3, %v15593_v1  ;;  %v6326_v22 = vpop.f32.mrb[89].mxu0  ;;  %v15615_v3 = vld [vmem:[#allocation34_spill] sm:$0xff] }
0x1d80   :  { %v6327_v38 = vadd.f32 %v6326_v22, %v15594_v2  ;;  %v15599_v22 = vld [vmem:[#allocation83_spill] sm:$0xff] }
0x1d81   :  { %v9821_v55 = vpack.c.bf16 %v6325_v6, %v6319_v17  ;;  %v15596_v17 = vld [vmem:[#allocation81_spill] sm:$0xff] }
0x1d82   :  { %v9819_v16 = vpack.c.bf16 %v6327_v38, %v6321_v37  ;;  %v6330_v30 = vpop.f32.mrb[90].mxu0  ;;  %v15598_v6 = vld [vmem:[#allocation17_spill] sm:$0xff]  ;;  %v15601_v37 = vld [vmem:[#allocation19_spill] sm:$0xff]  ;;  %v15602_v38 = vld [vmem:[#allocation62_spill] sm:$0xff] }
0x1d83   :  { %v6332_v26 = vpop.f32.mrb[91].mxu0  ;;  %v6331_v53 = vadd.f32 %v6330_v30, %v15593_v1  ;;  %v15605_v30 = vld [vmem:[#allocation22_spill] sm:$0xff] }
0x1d84   :  { %9820 = vmatprep.subr.bf16.mxu0 %v9819_v16  ;;  %v6333_v25 = vadd.f32 %v6332_v26, %v15594_v2  ;;  %v15606_v26 = vld [vmem:[#allocation23_spill] sm:$0xff] }
0x1d85   :  { %9822 = vmatpush1.bf16.msra.mxu0 %v9821_v55 }
0x1d86   :  { %v6336_v44 = vpop.f32.mrb[92].mxu0 }
0x1d87   :  { %v6337_v50 = vadd.f32 %v6336_v44, %v15593_v1  ;;  %v6338_v41 = vpop.f32.mrb[93].mxu0  ;;  %v15597_v1 = vld [vmem:[#allocation82_spill] sm:$0xff]  ;;  %v15607_v44 = vld [vmem:[#allocation24_spill] sm:$0xff] }
0x1d88   :  { %v6339_v35 = vadd.f32 %v6338_v41, %v15594_v2  ;;  %v15600_v2 = vld [vmem:[#allocation18_spill] sm:$0xff]  ;;  %v15610_v41 = vld [vmem:[#allocation27_spill] sm:$0xff] }
0x1d89   :  { %v9826_v27 = vpack.c.bf16 %v6337_v50, %v6331_v53  ;;  %v15608_v53 = vld [vmem:[#allocation25_spill] sm:$0xff]  ;;  %v15609_v50 = vld [vmem:[#allocation26_spill] sm:$0xff] }
0x1d8a   :  { %v9823_v47 = vpack.c.bf16 %v6339_v35, %v6333_v25  ;;  %v15611_v25 = vld [vmem:[#allocation28_spill] sm:$0xff]  ;;  %v15612_v35 = vld [vmem:[#allocation29_spill] sm:$0xff] }
0x1d8c   :  { %9825 = vmatprep.subr.msk.bf16.mxu0 %vm10871_vm6, %v9823_v47 }
0x1d8d   :  { %9828 = vmatpush1.bf16.msk.msra.mxu0 %vm10871_vm6, %v9826_v27 }
0x1d8e   :  { %9830 = vmatprep.subr.bf16.mxu0 %v9819_v16  ;;  %v15604_v16 = vld [vmem:[#allocation21_spill] sm:$0xff] }
0x1d90   :  { %8172 = vmatmul.mubr.msk.f32.vlgmr.msra.gmra.mrb[94].mxu0 %vm389_vm7, %v15596_v17  ;;  %v15616_v17 = vld [vmem:[#allocation35_spill] sm:$0xff] }
0x1d91   :  { %9832 = vmatpush1.bf16.msra.mxu0 %v9821_v55  ;;  %6417 = vmatprep.mubr.f32.mxu0 %v15254_v0  ;;  %v15603_v55 = vld [vmem:[#allocation20_spill] sm:$0xff] }
0x1d92   :  { %9835 = vmatprep.subr.msk.bf16.mxu0 %vm10871_vm6, %v9823_v47  ;;  %v15614_v47 = vld [vmem:[#allocation33_spill] sm:$0xff] }
0x1d94   :  { %8173 = vmatmul.mubr.msk.f32.gmra.mrb[96].mxu0 %vm389_vm7, %v15597_v1  ;;  %v15617_v1 = vld [vmem:[#allocation36_spill] sm:$0xff] }
0x1d95   :  { %9838 = vmatpush1.bf16.msk.msra.mxu0 %vm10871_vm6, %v9826_v27  ;;  %6488 = vmatprep.mubr.f32.mxu0 %v15254_v0  ;;  %v15613_v27 = vld [vmem:[#allocation32_spill] sm:$0xff]  ;;  %vm7230_vm6 = vcmask 1043456  }
0x1d96   :  { %9840 = vmatprep.subr.bf16.mxu0 %v15598_v6  ;;  %v15618_v6 = vld [vmem:[#allocation37_spill] sm:$0xff] }
0x1d98   :  { %8176 = vmatmul.mubr.msk.f32.vlgmr.msra.gmra.mrb[98].mxu0 %vm389_vm7, %v15599_v22  ;;  %v15619_v22 = vld [vmem:[#allocation38_spill] sm:$0xff] }
0x1d99   :  { %6494 = vmatprep.mubr.f32.mxu0 %v15254_v0  ;;  %9842 = vmatpush1.bf16.msra.mxu0 %v15600_v2  ;;  %v15620_v2 = vld [vmem:[#allocation39_spill] sm:$0xff] }
0x1d9a   :  { %9844 = vmatprep.subr.bf16.mxu0 %v15601_v37  ;;  %v15621_v37 = vld [vmem:[#allocation40_spill] sm:$0xff] }
0x1d9c   :  { %8177 = vmatmul.mubr.msk.f32.gmra.mrb[100].mxu0 %vm389_vm7, %v15602_v38  ;;  %v15622_v38 = vld [vmem:[#allocation41_spill] sm:$0xff] }
0x1d9d   :  { %9846 = vmatpush1.bf16.msra.mxu0 %v15603_v55  ;;  %v15623_v55 = vld [vmem:[#allocation42_spill] sm:$0xff] }
0x1d9e   :  { %9848 = vmatprep.subr.bf16.mxu0 %v15604_v16  ;;  %v15624_v16 = vld [vmem:[#allocation43_spill] sm:$0xff] }
0x1da1   :  { %9850 = vmatpush1.bf16.msra.mxu0 %v15605_v30  ;;  %v15625_v30 = vld [vmem:[#allocation44_spill] sm:$0xff] }
0x1da2   :  { %9852 = vmatprep.subr.bf16.mxu0 %v15606_v26  ;;  %v15626_v26 = vld [vmem:[#allocation45_spill] sm:$0xff] }
0x1da5   :  { %9854 = vmatpush1.bf16.msra.mxu0 %v15607_v44  ;;  %v15627_v44 = vld [vmem:[#allocation46_spill] sm:$0xff] }
0x1da6   :  { %9856 = vmatprep.subr.bf16.mxu0 %v15608_v53  ;;  %v15628_v53 = vld [vmem:[#allocation47_spill] sm:$0xff] }
0x1da9   :  { %9858 = vmatpush1.bf16.msra.mxu0 %v15609_v50  ;;  %v15629_v50 = vld [vmem:[#allocation48_spill] sm:$0xff] }
0x1daa   :  { %9860 = vmatprep.subr.bf16.mxu0 %v15610_v41  ;;  %v15630_v41 = vld [vmem:[#allocation49_spill] sm:$0xff] }
0x1dad   :  { %9862 = vmatpush1.bf16.msra.mxu0 %v15611_v25  ;;  %v15631_v25 = vld [vmem:[#allocation50_spill] sm:$0xff] }
0x1dae   :  { %9864 = vmatprep.subr.bf16.mxu0 %v15612_v35  ;;  %v15632_v35 = vld [vmem:[#allocation51_spill] sm:$0xff] }
0x1db1   :  { %9866 = vmatpush1.bf16.msra.mxu0 %v15613_v27 }
0x1db2   :  { %9868 = vmatprep.subr.bf16.mxu0 %v15614_v47 }
0x1db5   :  { %9870 = vmatpush1.bf16.msra.mxu0 %v15615_v3 }
0x1db6   :  { %9872 = vmatprep.subr.bf16.mxu0 %v15616_v17 }
0x1db9   :  { %9874 = vmatpush1.bf16.msra.mxu0 %v15617_v1 }
0x1dba   :  { %9876 = vmatprep.subr.bf16.mxu0 %v15618_v6 }
0x1dbd   :  { %9878 = vmatpush1.bf16.msra.mxu0 %v15619_v22 }
0x1dbe   :  { %9880 = vmatprep.subr.bf16.mxu0 %v15620_v2 }
0x1dc1   :  { %9882 = vmatpush1.bf16.msra.mxu0 %v15621_v37 }
0x1dc2   :  { %9884 = vmatprep.subr.bf16.mxu0 %v15622_v38 }
0x1dc5   :  { %9886 = vmatpush1.bf16.msra.mxu0 %v15623_v55 }
0x1dc6   :  { %9888 = vmatprep.subr.bf16.mxu0 %v15624_v16 }
0x1dc9   :  { %9890 = vmatpush1.bf16.msra.mxu0 %v15625_v30 }
0x1dca   :  { %9892 = vmatprep.subr.bf16.mxu0 %v15626_v26 }
0x1dcd   :  { %9894 = vmatpush1.bf16.msra.mxu0 %v15627_v44 }
0x1dce   :  { %9896 = vmatprep.subr.bf16.mxu0 %v15628_v53 }
0x1dd1   :  { %9898 = vmatpush1.bf16.msra.mxu0 %v15629_v50 }
0x1dd2   :  { %9900 = vmatprep.subr.bf16.mxu0 %v15630_v41 }
0x1dd5   :  { %9902 = vmatpush1.bf16.msra.mxu0 %v15631_v25 }
0x1dd6   :  { %9904 = vmatprep.subr.bf16.mxu0 %v15632_v35 }
0x1e63   :  { %v6413_v27 = vpop.f32.mrb[94].mxu0 }
0x1e64   :  { %v6415_v47 = vpop.f32.mrb[95].mxu0 }
0x1e67   :  { %v6419_v3 = vpop.f32.mrb[96].mxu0 }
0x1e68   :  { %v6421_v17 = vpop.f32.mrb[97].mxu0 }
0x1e6b   :  { %v6490_v1 = vpop.f32.mrb[98].mxu0 }
0x1e6c   :  { %v6501_v6 = vmax.f32 %v6413_v27, %v6490_v1  ;;  %v6492_v22 = vpop.f32.mrb[99].mxu0 }
0x1e6d   :  { %v6502_v2 = vmax.f32 %v6415_v47, %v6492_v22 }
0x1e6f   :  { %6511 = vrot.lane.b32.xlu1 %v6502_v2, %s10584_s29  ;;  %v6496_v37 = vpop.f32.mrb[100].mxu0 }
0x1e70   :  { %v6503_v38 = vmax.f32 %v6419_v3, %v6496_v37  ;;  %v6498_v55 = vpop.f32.mrb[101].mxu0 }
0x1e71   :  { %v6504_v16 = vmax.f32 %v6421_v17, %v6498_v55 }
0x1e72   :  { %v10392_v30 = vpack.i.bf16 %v6503_v38, %v6501_v6 }
0x1e74   :  { %10393 = vrot.lane.b32.xlu0 %v10392_v30, %s10584_s29 }
0x1e78   :  { %6515 = vrot.lane.b32.xlu0 %v6504_v16, %s10584_s29 }
0x1ee1   :  { %v6512_v26 = vpop.permute.xlu1 %6511 }
0x1ee2   :  { %v6524_v53 = vmax.f32 %v6502_v2, %v6512_v26 }
0x1ee4   :  { %v6528_v47 = vmax.f32 %v6524_v53, 0.0 }
0x1ee6   :  { %v10394_v44 = vpop.permute.xlu0 %10393  ;;  %v6538_v30 = vrot.slane %v6528_v47, 1 }
0x1ee7   :  { %v10395_v50 = vunpack.i.l.bf16 %v10394_v44  ;;  %v10396_v41 = vunpack.i.h.bf16 %v10394_v44 }
0x1ee9   :  { %v6517_v25 = vsel %vm578_vm9, %v10395_v50, %v6512_v26 }
0x1eea   :  { %v6523_v35 = vmax.f32 %v6501_v6, %v6517_v25  ;;  %v6516_v27 = vpop.permute.xlu0 %6515  ;;  %v6558_v6 = vrot.slane %v6528_v47, 2  ;;  %v15638_v25 = vld [vmem:[#allocation88_spill] sm:$0xff] }
0x1eeb   :  { %v6518_v1 = vsel %vm578_vm9, %v10396_v41, %v6516_v27  ;;  %v6526_v3 = vmax.f32 %v6504_v16, %v6516_v27  ;;  %v15637_v41 = vld [vmem:[#allocation87_spill] sm:$0xff] }
0x1eec   :  { %v6527_v22 = vmax.f32 %v6523_v35, 0.0  ;;  %v6525_v17 = vmax.f32 %v6503_v38, %v6518_v1  ;;  %v15639_v35 = vld [vmem:[#allocation30_spill] sm:$0xff]  ;;  %v15640_v27 = vld [vmem:[#allocation31_spill] sm:$0xff] }
0x1eed   :  { %v6530_v37 = vmax.f32 %v6526_v3, 0.0  ;;  %v15641_v1 = vld [vmem:[#allocation59_spill] sm:$0xff]  ;;  %v15642_v3 = vld [vmem:[#allocation60_spill] sm:$0xff] }
0x1eee   :  { %v6529_v55 = vmax.f32 %v6525_v17, 0.0  ;;  %v6535_v10 = vrot.slane %v6527_v22, 1  ;;  %v6555_v53 = vrot.slane %v6527_v22, 2  ;;  %v15643_v17 = vld [vmem:[#allocation61_spill] sm:$0xff] }
0x1eef   :  { %v6539_v14 = vrot.slane %v6530_v37, 1  ;;  %v6559_v26 = vrot.slane %v6530_v37, 2 }
0x1ef0   :  { %v6536_v21 = vrot.slane %v6529_v55, 1  ;;  %v6556_v16 = vrot.slane %v6529_v55, 2 }
0x1ef1   :  { %v6540_v2 = vsel %vm226_vm0, %v6538_v30, %v6539_v14  ;;  %v6560_v38 = vsel %vm246_vm1, %v6558_v6, %v6559_v26  ;;  %v15644_v30 = vld [vmem:[#allocation75_spill] sm:$0xff] }
0x1ef2   :  { %v6537_v44 = vsel %vm226_vm0, %v6535_v10, %v6536_v21  ;;  %v10397_v20 = vpack.i.bf16 %v6540_v2, %v6536_v21  ;;  %v6557_v50 = vsel %vm246_vm1, %v6555_v53, %v6556_v16  ;;  %v15633_v10 = vld [vmem:[#allocation55_spill] sm:$0xff]  ;;  %v15635_v21 = vld [vmem:[#allocation57_spill] sm:$0xff] }
0x1ef3   :  { %6541 = vrot.lane.b32.xlu1 %v6537_v44, %s10585_s22 }
0x1ef4   :  { %10398 = vrot.lane.b32.xlu0 %v10397_v20, %s10585_s22  ;;  %v15634_v20 = vld [vmem:[#allocation56_spill] sm:$0xff] }
0x1ef7   :  { %6547 = vrot.lane.b32.xlu1 %v6539_v14, %s10585_s22  ;;  %v15636_v14 = vld [vmem:[#allocation79_spill] sm:$0xff] }
0x1ef8   :  { %6563 = vrot.lane.b32.xlu0 %v6560_v38, %s10586_s24 }
0x1efb   :  { %6561 = vrot.lane.b32.xlu1 %v6557_v50, %s10586_s24 }
0x1efc   :  { %6565 = vrot.lane.b32.xlu0 %v6556_v16, %s10586_s24 }
0x1eff   :  { %6567 = vrot.lane.b32.xlu1 %v6559_v26, %s10586_s24 }
0x1f00   :  { %1908 = vrot.lane.b32.xlu0 %v15633_v10, %s10584_s29 }
0x1f03   :  { %1910 = vrot.lane.b32.xlu1 %v15634_v20, %s10584_s29 }
0x1f04   :  { %2751 = vrot.lane.b32.xlu0 %v15635_v21, %s10584_s29 }
0x1f07   :  { %2753 = vrot.lane.b32.xlu1 %v15636_v14, %s10584_s29 }
0x1f08   :  { %1057 = vrot.lane.b32.xlu0 %v15637_v41, %s10584_s29 }
0x1f0b   :  { %1059 = vrot.lane.b32.xlu1 %v15638_v25, %s10584_s29 }
0x1f0c   :  { %3594 = vrot.lane.b32.xlu0 %v15639_v35, %s10584_s29 }
0x1f0f   :  { %3596 = vrot.lane.b32.xlu1 %v15640_v27, %s10584_s29 }
0x1f10   :  { %4437 = vrot.lane.b32.xlu0 %v15641_v1, %s10584_s29 }
0x1f13   :  { %4439 = vrot.lane.b32.xlu1 %v15642_v3, %s10584_s29 }
0x1f14   :  { %5280 = vrot.lane.b32.xlu0 %v15643_v17, %s10584_s29 }
0x1f17   :  { %5282 = vrot.lane.b32.xlu1 %v15644_v30, %s10584_s29 }
0x1f18   :  { %6123 = vrot.lane.b32.xlu0 %v13174_v18, %s10584_s29 }
0x1f1b   :  { %6125 = vrot.lane.b32.xlu1 %v13176_v40, %s10584_s29 }
0x1f65   :  { %v13282_v2 = vpop.permute.xlu1 %6541 }
0x1f66   :  { %v13284_v44 = vpop.permute.xlu0 %10398  ;;  %v6575_v26 = vsel %vm611_vm11, %v6528_v47, %v13282_v2 }
0x1f67   :  { %v10400_v6 = vunpack.i.l.bf16 %v13284_v44  ;;  %6647 = vmatprep.mubr.f32.mxu0 %v6575_v26 }
0x1f68   :  { %6648 = vmatmul.mubr.f32.vlgmr.msra.gmra.mrb[102].mxu0 %v6527_v22 }
0x1f69   :  { %9906 = vmatpush1.bf16.msra.mxu0 %v15307_v33  ;;  %v6548_v16 = vpop.permute.xlu1 %6547  ;;  %v6576_v38 = vsel %vm611_vm11, %v6530_v37, %v10400_v6 }
0x1f6a   :  { %v13292_v53 = vsel %vm611_vm11, %v10400_v6, %v6548_v16  ;;  %v13294_v50 = vpop.permute.xlu0 %6563  ;;  %6653 = vmatprep.mubr.f32.mxu0 %v6576_v38  ;;  %9908 = vmatprep.subr.bf16.mxu0 %v15308_v58 }
0x1f6c   :  { %6654 = vmatmul.mubr.f32.gmra.mrb[104].mxu0 %v6529_v55 }
0x1f6d   :  { %9910 = vmatpush1.bf16.msra.mxu0 %v11367_v11  ;;  %v13298_v47 = vpop.permute.xlu1 %6561 }
0x1f6e   :  { %v13300_v26 = vpop.permute.xlu0 %6565  ;;  %9912 = vmatprep.subr.bf16.mxu0 %v15309_v32  ;;  %v6569_v33 = vsel %vm632_vm13, %v13298_v47, %v13294_v50 }
0x1f6f   :  { %6724 = vmatprep.mubr.f32.mxu0 %v6569_v33 }
0x1f71   :  { %9914 = vmatpush1.bf16.msra.mxu0 %v15359_v42  ;;  %v13307_v22 = vpop.permute.xlu1 %6567 }
0x1f72   :  { %v1909_v37 = vpop.permute.xlu0 %1908  ;;  %9916 = vmatprep.subr.bf16.mxu0 %v15360_v36 }
0x1f75   :  { %9918 = vmatpush1.bf16.msra.mxu0 %v15361_v28  ;;  %v13311_v11 = vpop.permute.xlu1 %1910 }
0x1f76   :  { %v2752_v58 = vpop.permute.xlu0 %2751  ;;  %9920 = vmatprep.subr.bf16.mxu0 %v15362_v46 }
0x1f79   :  { %9922 = vmatpush1.bf16.msra.mxu0 %v15413_v60  ;;  %v13315_v32 = vpop.permute.xlu1 %2753 }
0x1f7a   :  { %v1058_v55 = vpop.permute.xlu0 %1057  ;;  %9924 = vmatprep.subr.bf16.mxu0 %v15414_v54 }
0x1f7d   :  { %9926 = vmatpush1.bf16.msra.mxu0 %v15415_v43  ;;  %v13319_v42 = vpop.permute.xlu1 %1059  ;;  %v1912_v43 = vsel %vm578_vm9, %v1909_v37, %v13311_v11 }
0x1f7e   :  { %v3595_v6 = vpop.permute.xlu0 %3594  ;;  %9928 = vmatprep.subr.bf16.mxu0 %v15416_v19  ;;  %v1915_v16 = vmax.f32 %v15633_v10, %v1912_v43 }
0x1f81   :  { %9930 = vmatpush1.bf16.msra.mxu0 %v15469_v4  ;;  %v13323_v36 = vpop.permute.xlu1 %3596 }
0x1f82   :  { %v4438_v28 = vpop.permute.xlu0 %4437  ;;  %9932 = vmatprep.subr.bf16.mxu0 %v15470_v51  ;;  %v3598_v19 = vsel %vm578_vm9, %v3595_v6, %v13323_v36 }
0x1f83   :  { %v3601_v38 = vmax.f32 %v15639_v35, %v3598_v19 }
0x1f85   :  { %9934 = vmatpush1.bf16.msra.mxu0 %v15419_v39  ;;  %v13327_v46 = vpop.permute.xlu1 %4439  ;;  %v2755_v39 = vsel %vm578_vm9, %v2752_v58, %v13315_v32  ;;  %v13363_v10 = vmax.f32 %v3601_v38, 0.0 }
0x1f86   :  { %9936 = vmatprep.subr.bf16.mxu0 %v15471_v31  ;;  %v5281_v60 = vpop.permute.xlu0 %5280  ;;  %v4441_v4 = vsel %vm578_vm9, %v4438_v28, %v13327_v46 }
0x1f87   :  { %v4444_v37 = vmax.f32 %v15641_v1, %v4441_v4  ;;  %v10401_v4 = vunpack.i.h.bf16 %v13284_v44 }
0x1f89   :  { %9938 = vmatpush1.bf16.msra.mxu0 %v15421_v63  ;;  %v13331_v54 = vpop.permute.xlu1 %5282  ;;  %v1061_v63 = vsel %vm578_vm9, %v1058_v55, %v13319_v42  ;;  %v13367_v28 = vmax.f32 %v4444_v37, 0.0 }
0x1f8a   :  { %9940 = vmatprep.subr.bf16.mxu0 %v15422_v62  ;;  %v5284_v62 = vsel %vm578_vm9, %v5281_v60, %v13331_v54  ;;  %v6124_v31 = vpop.permute.xlu0 %6123  ;;  %v1064_v58 = vmax.f32 %v15637_v41, %v1061_v63  ;;  %v6570_v63 = vsel %vm632_vm13, %v13300_v26, %v13307_v22 }
0x1f8b   :  { %v5287_v55 = vmax.f32 %v15643_v17, %v5284_v62  ;;  %v1916_v62 = vmax.f32 %v15634_v20, %v13311_v11 }
0x1f8d   :  { %9942 = vmatpush1.bf16.msra.mxu0 %v15472_v13  ;;  %v13343_v51 = vpop.permute.xlu1 %6125  ;;  %v2758_v13 = vmax.f32 %v15635_v21, %v2755_v39  ;;  %v13369_v21 = vmax.f32 %v1064_v58, 0.0  ;;  %v13371_v1 = vmax.f32 %v5287_v55, 0.0  ;;  %v13451_v38 = vmax.f32 %v1916_v62, 0.0 }
0x1f8e   :  { %9944 = vmatprep.subr.bf16.mxu0 %v15473_v12  ;;  %v6127_v33 = vsel %vm578_vm9, %v6124_v31, %v13343_v51  ;;  %v13361_v12 = vmax.f32 %v1915_v16, 0.0  ;;  %v2759_v58 = vmax.f32 %v15636_v14, %v13315_v32 }
0x1f8f   :  { %v6130_v6 = vmax.f32 %v13174_v18, %v6127_v33  ;;  %v13365_v35 = vmax.f32 %v2758_v13, 0.0  ;;  %v4477_v18 = vrot.slane %v13367_v28, 4  ;;  %v5311_v60 = vrot.slane %v13371_v1, 3 }
0x1f90   :  { %v1921_v20 = vrot.slane %v13361_v12, 1  ;;  %v1070_v11 = vrot.slane %v13369_v21, 1  ;;  %v1940_v14 = vrot.slane %v13451_v38, 3  ;;  %v13470_v32 = vmax.f32 %v2759_v58, 0.0 }
0x1f91   :  { %9946 = vmatpush1.bf16.msra.mxu0 %v15474_v24  ;;  %v13374_v41 = vmax.f32 %v6130_v6, 0.0  ;;  %v7033_v24 = vrot.slane %v13361_v12, 7  ;;  %v7058_v17 = vrot.slane %v13365_v35, 6  ;;  %v2764_v37 = vrot.slane %v13365_v35, 1 }
0x1f92   :  { %9948 = vmatprep.subr.bf16.mxu0 %v15375_v8  ;;  %v3643_v8 = vrot.slane %v13363_v10, 5  ;;  %v3607_v6 = vrot.slane %v13363_v10, 1 }
0x1f95   :  { %9950 = vmatpush1.bf16.msra.mxu0 %v15475_v29  ;;  %v7198_v29 = vsel %vm15645_vm4, %v13369_v21, %v7033_v24  ;;  %v10402_v24 = vpack.i.bf16 %v2764_v37, %v1921_v20  ;;  %v4459_v37 = vrot.slane %v13367_v28, 2 }
0x1f96   :  { %9952 = vmatprep.subr.bf16.mxu0 %v15523_v9  ;;  %v6145_v9 = vrot.slane %v13374_v41, 2  ;;  %v7209_v43 = vsel %vm7208_vm2, %v7198_v29, %v7058_v17  ;;  %v5293_v17 = vrot.slane %v13371_v1, 1  ;;  %v1939_v29 = vrot.slane %v13361_v12, 3 }
0x1f97   :  { %v7220_v19 = vsel %vm7219_vm3, %v7209_v43, %v3643_v8  ;;  %v1065_v43 = vmax.f32 %v15638_v25, %v13319_v42  ;;  %v2782_v25 = vrot.slane %v13365_v35, 3  ;;  %v2783_v42 = vrot.slane %v13470_v32, 3 }
0x1f99   :  { %9954 = vmatpush1.bf16.msra.mxu0 %v15524_v56  ;;  %v7231_v56 = vsel %vm7230_vm6, %v7220_v19, %v4477_v18  ;;  %v10407_v19 = vpack.i.bf16 %v3607_v6, %v1070_v11 }
0x1f9a   :  { %9956 = vmatprep.subr.bf16.mxu0 %v15331_v34  ;;  %v7241_v39 = vsel %vm901_vm14, %v7231_v56, %v5311_v60  ;;  %v4450_v56 = vrot.slane %v13367_v28, 1 }
0x1f9b   :  { %v13402_v34 = vsel %vm246_vm1, %v7241_v39, %v6145_v9 }
0x1f9c   :  { %v10412_v39 = vpack.i.bf16 %v5293_v17, %v4450_v56  ;;  %v7288_v17 = vld [vmem:[%s14943_s9 + $0x88] sm:$0xff] }
0x1f9d   :  { %9958 = vmatpush1.bf16.msra.mxu0 %v15525_v61  ;;  %v6549_v61 = vsel %vm611_vm11, %v13282_v2, %v10401_v4  ;;  %v10422_v4 = vpack.i.bf16 %v1940_v14, %v1939_v29  ;;  %v7271_v29 = vld [vmem:[%s14943_s9] sm:$0xff]  ;;  %vm15651_vm11 = vmmov %vm15645_vm4 }
0x1f9e   :  { %9960 = vmatprep.subr.bf16.mxu0 %v15380_v52  ;;  %v6577_v52 = vsel %vm632_vm13, %v6549_v61, %v13298_v47  ;;  %v1930_v61 = vrot.slane %v13361_v12, 2 }
0x1fa1   :  { %9962 = vmatpush1.bf16.msra.mxu0 %v15381_v49 }
0x1fa2   :  { %9964 = vmatprep.subr.bf16.mxu0 %v15382_v5  ;;  %v6578_v5 = vsel %vm632_vm13, %v13292_v53, %v13300_v26  ;;  %v15648_v26 = vld [vmem:[#allocation63_spill] sm:$0xff]  ;;  %vm15666_vm13 = vmmov %vm15645_vm4 }
0x1fa5   :  { %9966 = vmatpush1.bf16.msra.mxu0 %v15526_v45 }
0x1fa6   :  { %9968 = vmatprep.subr.bf16.mxu0 %v15335_v57 }
0x1fa8   :  { %6725 = vmatmul.mubr.f32.vlgmr.msra.gmra.mrb[102].mxu0 %v6577_v52  ;;  %v1931_v52 = vrot.slane %v13451_v38, 2 }
0x1fa9   :  { %6730 = vmatprep.mubr.f32.mxu0 %v6570_v63  ;;  %9970 = vmatpush1.bf16.msra.mxu0 %v15336_v23  ;;  %v13479_v63 = vmax.f32 %v1065_v43, 0.0  ;;  %v7272_v43 = vld [vmem:[%s14943_s9 + $0x8] sm:$0xff] }
0x1faa   :  { %9973 = vmatprep.subr.msk.bf16.mxu0 %vm11253_vm10, %v15337_v59  ;;  %v9991_v56 = vpack.c.bf16 %v7272_v43, %v7271_v29  ;;  %v7280_v29 = vld [vmem:[%s14943_s9 + $0x48] sm:$0xff]  ;;  %v7298_v43 = vld [vmem:[%s14943_s9 + $0xd8] sm:$0xff] }
0x1fac   :  { %6731 = vmatmul.mubr.f32.gmra.mrb[104].mxu0 %v6578_v5  ;;  %v3602_v5 = vmax.f32 %v15640_v27, %v13323_v36  ;;  %v1091_v27 = vrot.slane %v13479_v63, 3  ;;  %v4445_v36 = vmax.f32 %v15642_v3, %v13327_v46  ;;  %v5288_v3 = vmax.f32 %v15644_v30, %v13331_v54 }
0x1fad   :  { %9976 = vmatpush1.bf16.msk.msra.mxu0 %vm11253_vm10, %v15339_v15  ;;  %6801 = vmatprep.mubr.f32.mxu0 %v15254_v0  ;;  %v5302_v54 = vrot.slane %v13371_v1, 2  ;;  %vm15650_vm10 = vmmov %vm15645_vm4 }
0x1fb0   :  { %8180 = vmatmul.mubr.msk.f32.vlgmr.msra.gmra.mrb[102].mxu0 %vm654_vm12, %v13294_v50 }
0x1fb1   :  { %6807 = vmatprep.mubr.f32.mxu0 %v15254_v0 }
0x1fb4   :  { %8181 = vmatmul.mubr.msk.f32.gmra.mrb[104].mxu0 %vm654_vm12, %v13307_v22  ;;  %vm15652_vm12 = vmmov %vm15645_vm4 }
0x2083   :  { %v6803_v23 = vpop.f32.mrb[102].mxu0 }
0x2084   :  { %v6805_v59 = vpop.f32.mrb[103].mxu0  ;;  %v10242_v49 = vadd.f32 %v6803_v23, %v11668_v7  ;;  %v10417_v23 = vpack.i.bf16 %v1931_v52, %v1930_v61  ;;  %v7274_v61 = vld [vmem:[%s14943_s9 + $0x18] sm:$0xff]  ;;  %v7291_v52 = vld [vmem:[%s14943_s9 + $0xa0] sm:$0xff] }
0x2085   :  { %v10243_v15 = vadd.f32 %v6805_v59, %v15646_v48  ;;  %v2773_v59 = vrot.slane %v13365_v35, 2 }
0x2087   :  { %v6809_v57 = vpop.f32.mrb[104].mxu0 }
0x2088   :  { %v10244_v45 = vadd.f32 %v6809_v57, %v11668_v7  ;;  %v6811_v2 = vpop.f32.mrb[105].mxu0  ;;  %v15649_v7 = vld [vmem:[#allocation64_spill] sm:$0xff]  ;;  %v2774_v57 = vrot.slane %v13470_v32, 2 }
0x2089   :  { %v10245_v44 = vadd.f32 %v6811_v2, %v15646_v48  ;;  %v1090_v2 = vrot.slane %v13369_v21, 3 }
0x208a   :  { %v9980_v53 = vpack.c.bf16 %v10244_v45, %v10242_v49  ;;  %v13489_v49 = vmax.f32 %v3602_v5, 0.0  ;;  %v10432_v45 = vpack.i.bf16 %v2783_v42, %v2782_v25  ;;  %v10427_v48 = vpack.i.bf16 %v2774_v57, %v2773_v59  ;;  %v7292_v5 = vld [vmem:[%s14943_s9 + $0xa8] sm:$0xff]  ;;  %v7275_v42 = vld [vmem:[%s14943_s9 + $0x20] sm:$0xff] }
0x208b   :  { %v9977_v47 = vpack.c.bf16 %v10245_v44, %v10243_v15  ;;  %v1081_v15 = vrot.slane %v13369_v21, 2  ;;  %v1082_v44 = vrot.slane %v13479_v63, 2  ;;  %v7276_v59 = vld [vmem:[%s14943_s9 + $0x28] sm:$0xff]  ;;  %v7351_v57 = vld [vmem:[%s14943_s9 + $0x280] sm:$0xff] }
0x208c   :  { %v3626_v50 = vrot.slane %v13489_v49, 3 }
0x208d   :  { %9979 = vmatprep.subr.msk.bf16.mxu1 %vm11680_vm15, %v9977_v47  ;;  %v10437_v46 = vpack.i.bf16 %v1082_v44, %v1081_v15  ;;  %v7336_v15 = vld [vmem:[%s14943_s9 + $0x208] sm:$0xff]  ;;  %v9999_v44 = vpack.c.bf16 %v7276_v59, %v7275_v42 }
0x208e   :  { %9982 = vmatpush1.bf16.msk.msra.mxu1 %vm11680_vm15, %v9980_v53 }
0x208f   :  { %9985 = vmatprep.subr.msk.bf16.mxu1 %vm11680_vm15, %v9977_v47  ;;  %v3625_v47 = vrot.slane %v13363_v10, 3 }
0x2091   :  { %8184 = vmatmul.mubr.msk.f32.vlgmr.msra.gmra.mrb[84].mxu1 %vm897_vm8, %v15648_v26  ;;  %v3616_v26 = vrot.slane %v13363_v10, 2  ;;  %v10452_v62 = vpack.i.bf16 %v3626_v50, %v3625_v47  ;;  %v7353_v50 = vld [vmem:[%s14943_s9 + $0x290] sm:$0xff] }
0x2092   :  { %9988 = vmatpush1.bf16.msk.msra.mxu1 %vm11680_vm15, %v9980_v53  ;;  %6955 = vmatprep.mubr.f32.mxu1 %v15254_v0  ;;  %v10442_v53 = vpack.i.bf16 %v1091_v27, %v1090_v2  ;;  %v7293_v2 = vld [vmem:[%s14943_s9 + $0xb0] sm:$0xff]  ;;  %v7294_v27 = vld [vmem:[%s14943_s9 + $0xb8] sm:$0xff]  ;;  %vm15667_vm15 = vmmov %vm15645_vm4  ;;  %vm1118_vm4 = vcmask 89088  }
0x2095   :  { %8187 = vmatmul.mubr.msk.f32.vlgmr.msra.gmra.mrb[86].mxu1 %vm897_vm8, %v15649_v7  ;;  %v3617_v7 = vrot.slane %v13489_v49, 2  ;;  %vm1076_vm8 = vcmask 646144  }
0x2164   :  { %v6886_v22 = vpop.f32.mrb[84].mxu1 }
0x2165   :  { %v6888_v31 = vpop.f32.mrb[85].mxu1 }
0x2168   :  { %v6957_v16 = vpop.f32.mrb[86].mxu1 }
0x2169   :  { %v13453_v33 = vmax.f32 %v6886_v22, %v6957_v16  ;;  %v6959_v13 = vpop.f32.mrb[87].mxu1  ;;  %v13505_v22 = vmax.f32 %v4445_v36, 0.0  ;;  %v13511_v16 = vmax.f32 %v5288_v3, 0.0  ;;  %v7278_v3 = vld [vmem:[%s14943_s9 + $0x38] sm:$0xff] }
0x216a   :  { %v13458_v55 = vmax.f32 %v6888_v31, %v6959_v13  ;;  %v10447_v31 = vpack.i.bf16 %v3617_v7, %v3616_v26  ;;  %v6131_v13 = vmax.f32 %v13176_v40, %v13343_v51  ;;  %v7287_v51 = vld [vmem:[%s14943_s9 + $0x80] sm:$0xff]  ;;  %v7354_v26 = vld [vmem:[%s14943_s9 + $0x298] sm:$0xff]  ;;  %v10001_v7 = vpack.c.bf16 %v7294_v27, %v7293_v2  ;;  %v7284_v2 = vld [vmem:[%s14943_s9 + $0x68] sm:$0xff] }
0x216b   :  { %6966 = vrot.lane.b32.xlu0 %v13453_v33, %s10584_s29  ;;  %v4460_v58 = vrot.slane %v13505_v22, 2  ;;  %v5303_v20 = vrot.slane %v13511_v16, 2  ;;  %v9989_v14 = vpack.c.bf16 %v7288_v17, %v7287_v51  ;;  %v7279_v17 = vld [vmem:[%s14943_s9 + $0x40] sm:$0xff]  ;;  %v7357_v27 = vld [vmem:[%s14943_s9 + $0x2b0] sm:$0xff] }
0x216c   :  { %6968 = vrot.lane.b32.xlu1 %v13458_v55, %s10584_s29  ;;  %s10589_s29 = smov 30   ;;  %v13518_v6 = vmax.f32 %v6131_v13, 0.0  ;;  %v7295_v13 = vld [vmem:[%s14943_s9 + $0xc0] sm:$0xff] }
0x216d   :  { %v10457_v30 = vpack.i.bf16 %v4460_v58, %v4459_v37  ;;  %v10472_v11 = vpack.i.bf16 %v5303_v20, %v5302_v54  ;;  %9990 = vmatprep.subr.bf16.mxu1 %v9989_v14  ;;  %v7296_v37 = vld [vmem:[%s14943_s9 + $0xc8] sm:$0xff]  ;;  %v7297_v14 = vld [vmem:[%s14943_s9 + $0xd0] sm:$0xff] }
0x216e   :  { %9992 = vmatpush3.bf16.msra.mxu1 %v9991_v56  ;;  %v7356_v54 = vld [vmem:[%s14943_s9 + $0x2a8] sm:$0xff]  ;;  %v10005_v51 = vpack.c.bf16 %v7296_v37, %v7295_v13  ;;  %v10009_v56 = vpack.c.bf16 %v7298_v43, %v7297_v14  ;;  %v6136_v13 = vrot.slane %v13374_v41, 1 }
0x216f   :  { %10403 = vrot.lane.b32.xlu0 %v10402_v24, %s10587_s7  ;;  %v6146_v24 = vrot.slane %v13518_v6, 2  ;;  %v7360_v14 = vld [vmem:[%s14943_s9 + $0x2c8] sm:$0xff] }
0x2170   :  { %10408 = vrot.lane.b32.xlu1 %v10407_v19, %s10587_s7  ;;  %v7290_v19 = vld [vmem:[%s14943_s9 + $0x98] sm:$0xff] }
0x2171   :  { %v10482_v40 = vpack.i.bf16 %v6146_v24, %v6145_v9  ;;  %v7289_v9 = vld [vmem:[%s14943_s9 + $0x90] sm:$0xff]  ;;  %v7339_v24 = vld [vmem:[%s14943_s9 + $0x220] sm:$0xff] }
0x2173   :  { %10413 = vrot.lane.b32.xlu0 %v10412_v39, %s10587_s7  ;;  %v9993_v39 = vpack.c.bf16 %v7290_v19, %v7289_v9  ;;  %v10007_v19 = vpack.c.bf16 %v7280_v29, %v7279_v17  ;;  %v7286_v17 = vld [vmem:[%s14943_s9 + $0x78] sm:$0xff]  ;;  %v7359_v29 = vld [vmem:[%s14943_s9 + $0x2c0] sm:$0xff] }
0x2174   :  { %10423 = vrot.lane.b32.xlu1 %v10422_v4, %s10588_s8  ;;  %v7273_v4 = vld [vmem:[%s14943_s9 + $0x10] sm:$0xff] }
0x2175   :  { %v9995_v25 = vpack.c.bf16 %v7274_v61, %v7273_v4  ;;  %9994 = vmatprep.subr.bf16.mxu1 %v9993_v39  ;;  %v7281_v39 = vld [vmem:[%s14943_s9 + $0x50] sm:$0xff]  ;;  %v7282_v4 = vld [vmem:[%s14943_s9 + $0x58] sm:$0xff]  ;;  %v7299_v61 = vld [vmem:[%s14943_s9 + $0xe0] sm:$0xff] }
0x2177   :  { %10418 = vrot.lane.b32.xlu0 %v10417_v23, %s10589_s29  ;;  %v9997_v23 = vpack.c.bf16 %v7292_v5, %v7291_v52  ;;  %9996 = vmatpush3.bf16.msra.mxu1 %v9995_v25  ;;  %v7300_v52 = vld [vmem:[%s14943_s9 + $0xe8] sm:$0xff]  ;;  %v10011_v5 = vpack.c.bf16 %v7282_v4, %v7281_v39 }
0x2178   :  { %10433 = vrot.lane.b32.xlu1 %v10432_v45, %s10588_s8  ;;  %v7352_v45 = vld [vmem:[%s14943_s9 + $0x288] sm:$0xff]  ;;  %v10013_v25 = vpack.c.bf16 %v7300_v52, %v7299_v61  ;;  %v10069_v61 = vpack.c.bf16 %v7360_v14, %v7359_v29  ;;  %v7343_v52 = vld [vmem:[%s14943_s9 + $0x240] sm:$0xff]  ;;  %v7349_v29 = vld [vmem:[%s14943_s9 + $0x270] sm:$0xff] }
0x2179   :  { %v10053_v36 = vpack.c.bf16 %v7352_v45, %v7351_v57  ;;  %9998 = vmatprep.subr.bf16.mxu1 %v9997_v23  ;;  %v7283_v45 = vld [vmem:[%s14943_s9 + $0x60] sm:$0xff]  ;;  %v7320_v39 = vld [vmem:[%s14943_s9 + $0x188] sm:$0xff]  ;;  %v7350_v14 = vld [vmem:[%s14943_s9 + $0x278] sm:$0xff] }
0x217b   :  { %10428 = vrot.lane.b32.xlu0 %v10427_v48, %s10589_s29  ;;  %v7335_v48 = vld [vmem:[%s14943_s9 + $0x200] sm:$0xff]  ;;  %10054 = vmatprep.subr.bf16.mxu0 %v10053_v36 }
0x217c   :  { %10443 = vrot.lane.b32.xlu1 %v10442_v53, %s10588_s8  ;;  %v7277_v53 = vld [vmem:[%s14943_s9 + $0x30] sm:$0xff]  ;;  %v10055_v47 = vpack.c.bf16 %v7336_v15, %v7335_v48  ;;  %10000 = vmatpush3.bf16.msra.mxu1 %v9999_v44  ;;  %v10015_v48 = vpack.c.bf16 %v7284_v2, %v7283_v45  ;;  %v7358_v15 = vld [vmem:[%s14943_s9 + $0x2b8] sm:$0xff]  ;;  %v6155_v45 = vrot.slane %v13518_v6, 3 }
0x217d   :  { %v10003_v20 = vpack.c.bf16 %v7278_v3, %v7277_v53  ;;  %10002 = vmatprep.subr.bf16.mxu1 %v10001_v7  ;;  %v7302_v44 = vld [vmem:[%s14943_s9 + $0xf8] sm:$0xff] }
0x217e   :  { %10056 = vmatpush3.bf16.msra.mxu0 %v10055_v47  ;;  %v10065_v47 = vpack.c.bf16 %v7358_v15, %v7357_v27  ;;  %v7345_v15 = vld [vmem:[%s14943_s9 + $0x250] sm:$0xff] }
0x217f   :  { %10438 = vrot.lane.b32.xlu0 %v10437_v46, %s10589_s29  ;;  %v10057_v46 = vpack.c.bf16 %v7354_v26, %v7353_v50  ;;  %v7342_v26 = vld [vmem:[%s14943_s9 + $0x238] sm:$0xff] }
0x2180   :  { %10453 = vrot.lane.b32.xlu1 %v10452_v62, %s10588_s8  ;;  %v7337_v62 = vld [vmem:[%s14943_s9 + $0x210] sm:$0xff]  ;;  %10004 = vmatpush3.bf16.msra.mxu1 %v10003_v20  ;;  %v4469_v20 = vrot.slane %v13505_v22, 3 }
0x2181   :  { %10058 = vmatprep.subr.bf16.mxu0 %v10057_v46  ;;  %10006 = vmatprep.subr.bf16.mxu1 %v10005_v51  ;;  %v5294_v51 = vrot.slane %v13511_v16, 1 }
0x2183   :  { %10448 = vrot.lane.b32.xlu0 %v10447_v31, %s10589_s29  ;;  %v7338_v31 = vld [vmem:[%s14943_s9 + $0x218] sm:$0xff] }
0x2184   :  { %v10059_v58 = vpack.c.bf16 %v7338_v31, %v7337_v62  ;;  %10008 = vmatpush3.bf16.msra.mxu1 %v10007_v19  ;;  %v4451_v19 = vrot.slane %v13505_v22, 1 }
0x2185   :  { %10010 = vmatprep.subr.bf16.mxu1 %v10009_v56  ;;  %v7319_v56 = vld [vmem:[%s14943_s9 + $0x180] sm:$0xff] }
0x2186   :  { %10060 = vmatpush3.bf16.msra.mxu0 %v10059_v58  ;;  %v2765_v58 = vrot.slane %v13470_v32, 1  ;;  %v10021_v2 = vpack.c.bf16 %v7320_v39, %v7319_v56  ;;  %v10083_v39 = vpack.c.bf16 %v7350_v14, %v7349_v29 }
0x2187   :  { %10458 = vrot.lane.b32.xlu0 %v10457_v30, %s10589_s29  ;;  %v7355_v30 = vld [vmem:[%s14943_s9 + $0x2a0] sm:$0xff] }
0x2188   :  { %10012 = vmatpush3.bf16.msra.mxu1 %v10011_v5  ;;  %v7344_v5 = vld [vmem:[%s14943_s9 + $0x248] sm:$0xff] }
0x2189   :  { %10014 = vmatprep.subr.bf16.mxu1 %v10013_v25  ;;  %v10512_v25 = vpack.i.bf16 %v5294_v51, %v4451_v19  ;;  %v10071_v27 = vpack.c.bf16 %v7344_v5, %v7343_v52  ;;  %v6163_v52 = vrot.slane %v13374_v41, 4  ;;  %v6164_v5 = vrot.slane %v13518_v6, 4 }
0x218b   :  { %10473 = vrot.lane.b32.xlu0 %v10472_v11, %s10589_s29  ;;  %v10061_v11 = vpack.c.bf16 %v7356_v54, %v7355_v30  ;;  %v4468_v54 = vrot.slane %v13367_v28, 3 }
0x218c   :  { %10016 = vmatpush3.bf16.msra.mxu1 %v10015_v48  ;;  %v7361_v48 = vld [vmem:[%s14943_s9 + $0x2d0] sm:$0xff] }
0x218d   :  { %10062 = vmatprep.subr.bf16.mxu0 %v10061_v11  ;;  %v1922_v11 = vrot.slane %v13451_v38, 1  ;;  %v10467_v43 = vpack.i.bf16 %v4469_v20, %v4468_v54  ;;  %v4478_v20 = vrot.slane %v13505_v22, 4 }
0x218f   :  { %10483 = vrot.lane.b32.xlu0 %v10482_v40, %s10589_s29  ;;  %v7340_v40 = vld [vmem:[%s14943_s9 + $0x228] sm:$0xff] }
0x2190   :  { %v10063_v9 = vpack.c.bf16 %v7340_v40, %v7339_v24  ;;  %v7285_v24 = vld [vmem:[%s14943_s9 + $0x70] sm:$0xff]  ;;  %v10497_v40 = vpack.i.bf16 %v2765_v58, %v1922_v11 }
0x2191   :  { %v10019_v4 = vpack.c.bf16 %v7286_v17, %v7285_v24  ;;  %v7365_v58 = vld [vmem:[%s14943_s9 + $0x2f0] sm:$0xff]  ;;  %v3608_v24 = vrot.slane %v13489_v49, 1 }
0x2192   :  { %10064 = vmatpush3.bf16.msra.mxu0 %v10063_v9  ;;  %v5312_v9 = vrot.slane %v13511_v16, 3 }
0x2193   :  { %10066 = vmatprep.subr.bf16.mxu0 %v10065_v47  ;;  %v1102_v47 = vrot.slane %v13479_v63, 4 }
0x21dd   :  { %v6967_v42 = vpop.permute.xlu0 %6966 }
0x21de   :  { %v6969_v23 = vpop.permute.xlu1 %6968 }
0x21df   :  { %v6970_v59 = vsel %vm578_vm9, %v6967_v42, %v6969_v23  ;;  %v6974_v57 = vmax.f32 %v13458_v55, %v6969_v23  ;;  %v7301_v55 = vld [vmem:[%s14943_s9 + $0xf0] sm:$0xff]  ;;  %v1948_v42 = vrot.slane %v13361_v12, 4  ;;  %v1949_v23 = vrot.slane %v13451_v38, 4 }
0x21e0   :  { %v6973_v36 = vmax.f32 %v13453_v33, %v6970_v59  ;;  %v10017_v50 = vpack.c.bf16 %v7302_v44, %v7301_v55  ;;  %v7341_v33 = vld [vmem:[%s14943_s9 + $0x230] sm:$0xff]  ;;  %v10477_v59 = vpack.i.bf16 %v5312_v9, %v5311_v60  ;;  %v7362_v60 = vld [vmem:[%s14943_s9 + $0x2d8] sm:$0xff]  ;;  %v1101_v44 = vrot.slane %v13369_v21, 4 }
0x21e1   :  { %v13663_v53 = vmax.f32 %v6974_v57, 0.0  ;;  %v10067_v3 = vpack.c.bf16 %v7342_v26, %v7341_v33  ;;  %v6154_v57 = vrot.slane %v13374_v41, 3  ;;  %v10522_v55 = vpack.i.bf16 %v1949_v23, %v1948_v42 }
0x21e2   :  { %v13671_v7 = vmax.f32 %v6973_v36, 0.0  ;;  %10018 = vmatprep.subr.bf16.mxu1 %v10017_v50  ;;  %v10532_v54 = vpack.i.bf16 %v1102_v47, %v1101_v44  ;;  %v10542_v9 = vpack.i.bf16 %v4478_v20, %v4477_v18  ;;  %v2791_v18 = vrot.slane %v13365_v35, 4 }
0x21e3   :  { %v6989_v46 = vrot.slane %v13663_v53, 2  ;;  %10068 = vmatpush3.bf16.msra.mxu0 %v10067_v3  ;;  %10020 = vmatpush3.bf16.msra.mxu1 %v10019_v4  ;;  %v10487_v50 = vpack.i.bf16 %v6155_v45, %v6154_v57  ;;  %v6998_v26 = vrot.slane %v13663_v53, 3  ;;  %v7363_v3 = vld [vmem:[%s14943_s9 + $0x2e0] sm:$0xff]  ;;  %v6980_v56 = vrot.slane %v13663_v53, 1 }
0x21e4   :  { %v6988_v62 = vrot.slane %v13671_v7, 2  ;;  %v6979_v31 = vrot.slane %v13671_v7, 1  ;;  %10070 = vmatprep.subr.bf16.mxu0 %v10069_v61  ;;  %10022 = vmatprep.subr.bf16.mxu1 %v10021_v2  ;;  %v6997_v33 = vrot.slane %v13671_v7, 3  ;;  %v6137_v4 = vrot.slane %v13518_v6, 1 }
0x21e5   :  { %v1957_v61 = vrot.slane %v13361_v12, 5  ;;  %v2792_v42 = vrot.slane %v13470_v32, 4  ;;  %v15164_v23 = vmov 0.0|0.0   ;;  %v3634_v57 = vrot.slane %v13363_v10, 4 }
0x21e6   :  { %v10492_v37 = vpack.i.bf16 %v6989_v46, %v6988_v62  ;;  %v10462_v30 = vpack.i.bf16 %v6979_v31, %v6136_v13  ;;  %v13721_v36 = vsel %vm226_vm0, %v13402_v34, %v6979_v31  ;;  %v7346_v34 = vld [vmem:[%s14943_s9 + $0x258] sm:$0xff]  ;;  %v10073_v46 = vpack.c.bf16 %v7362_v60, %v7361_v48  ;;  %v7364_v31 = vld [vmem:[%s14943_s9 + $0x2e8] sm:$0xff]  ;;  %v7347_v13 = vld [vmem:[%s14943_s9 + $0x260] sm:$0xff] }
0x21e7   :  { %10072 = vmatpush3.bf16.msra.mxu0 %v10071_v27  ;;  %v10075_v62 = vpack.c.bf16 %v7346_v34, %v7345_v15  ;;  %v10502_v11 = vpack.i.bf16 %v6998_v26, %v6997_v33  ;;  %v10527_v12 = vpack.i.bf16 %v2792_v42, %v2791_v18  ;;  %v3635_v45 = vrot.slane %v13489_v49, 4  ;;  %v13822_v26 = vpop.permute.xlu0 %10403 }
0x21e8   :  { %10493 = vrot.lane.b32.xlu0 %v10492_v37, %s10589_s29  ;;  %10463 = vrot.lane.b32.xlu1 %v10462_v30, %s10587_s7  ;;  %v7348_v37 = vld [vmem:[%s14943_s9 + $0x268] sm:$0xff]  ;;  %v7366_v30 = vld [vmem:[%s14943_s9 + $0x2f8] sm:$0xff]  ;;  %v2801_v2 = vrot.slane %v13470_v32, 5  ;;  %v5320_v48 = vrot.slane %v13371_v1, 4  ;;  %v5321_v60 = vrot.slane %v13511_v16, 4  ;;  %v1112_v15 = vrot.slane %v13369_v21, 5 }
0x21e9   :  { %10074 = vmatprep.subr.bf16.mxu0 %v10073_v46  ;;  %v10079_v51 = vpack.c.bf16 %v7348_v37, %v7347_v13  ;;  %v10081_v17 = vpack.c.bf16 %v7366_v30, %v7365_v58  ;;  %v10537_v27 = vpack.i.bf16 %v3635_v45, %v3634_v57  ;;  %v4486_v44 = vrot.slane %v13367_v28, 5  ;;  %v13837_v58 = vpop.permute.xlu1 %10408 }
0x21ea   :  { %v10547_v34 = vpack.i.bf16 %v5321_v60, %v5320_v48  ;;  %v2800_v47 = vrot.slane %v13365_v35, 5  ;;  %v5329_v21 = vrot.slane %v13371_v1, 5  ;;  %v6172_v10 = vrot.slane %v13374_v41, 5 }
0x21eb   :  { %10076 = vmatpush3.bf16.msra.mxu0 %v10075_v62  ;;  %v7015_v35 = vrot.slane %v13671_v7, 5  ;;  %v4487_v28 = vrot.slane %v13505_v22, 5  ;;  %v5330_v1 = vrot.slane %v13511_v16, 5  ;;  %v7006_v33 = vrot.slane %v13671_v7, 4  ;;  %v13826_v62 = vpop.permute.xlu0 %10413 }
0x21ec   :  { %10498 = vrot.lane.b32.xlu0 %v10497_v40, %s10587_s7  ;;  %10468 = vrot.lane.b32.xlu1 %v10467_v43, %s10588_s8  ;;  %v10077_v40 = vpack.c.bf16 %v7364_v31, %v7363_v3  ;;  %v1071_v43 = vrot.slane %v13479_v63, 1  ;;  %v7007_v41 = vrot.slane %v13663_v53, 4  ;;  %v6173_v46 = vrot.slane %v13518_v6, 5 }
0x21ed   :  { %v7016_v31 = vrot.slane %v13663_v53, 5  ;;  %vm1096_vm9 = vcmask 891904   ;;  %v15162_v18 = vunpack.i.h.bf16 %v13826_v62 }
0x21ee   :  { %10078 = vmatprep.subr.bf16.mxu0 %v10077_v40  ;;  %v10507_v19 = vpack.i.bf16 %v3608_v24, %v1071_v43  ;;  %v10557_v3 = vpack.i.bf16 %v7007_v41, %v7006_v33  ;;  %v15173_v40 = vunpack.i.h.bf16 %v13822_v26 }
0x21ef   :  { %10080 = vmatpush3.bf16.msra.mxu0 %v10079_v51  ;;  %v13831_v7 = vpop.permute.xlu0 %10418  ;;  %v15166_v51 = vunpack.i.h.bf16 %v13837_v58 }
0x21f0   :  { %10513 = vrot.lane.b32.xlu0 %v10512_v25, %s10587_s7  ;;  %10478 = vrot.lane.b32.xlu1 %v10477_v59, %s10588_s8  ;;  %v10517_v25 = vpack.i.bf16 %v6980_v56, %v6137_v4  ;;  %v10552_v59 = vpack.i.bf16 %v6164_v5, %v6163_v52  ;;  %v2808_v43 = vsel %vm1076_vm8, %v13470_v32, %v15173_v40  ;;  %v10421_v32 = vunpack.i.h.bf16 %v13831_v7 }
0x21f1   :  { %10082 = vmatprep.subr.bf16.mxu0 %v10081_v17  ;;  %v15169_v17 = vunpack.i.l.bf16 %v13837_v58  ;;  %v3651_v56 = vsel %vm1076_vm8, %v13489_v49, %v15166_v51  ;;  %v15178_v52 = vunpack.i.l.bf16 %v13831_v7  ;;  %v7059_v5 = vrot.slane %v2808_v43, 6 }
0x21f3   :  { %10084 = vmatpush3.bf16.msra.mxu0 %v10083_v39  ;;  %v13833_v13 = vpop.permute.xlu0 %10428  ;;  %v15163_v39 = vunpack.i.l.bf16 %v13826_v62 }
0x21f4   :  { %10523 = vrot.lane.b32.xlu0 %v10522_v55, %s10590_s19  ;;  %10488 = vrot.lane.b32.xlu1 %v10487_v50, %s10588_s8  ;;  %v1958_v55 = vrot.slane %v13451_v38, 5  ;;  %v1113_v50 = vrot.slane %v13479_v63, 5 }
0x21f5   :  { %10117 = vmatprep.subr.bf16.mxu0 %v15164_v23 }
0x21f7   :  { %v13835_v37 = vpop.permute.xlu0 %10438 }
0x21f8   :  { %10533 = vrot.lane.b32.xlu0 %v10532_v54, %s10590_s19  ;;  %10503 = vrot.lane.b32.xlu1 %v10502_v11, %s10588_s8  ;;  %s10591_s8 = smov 11   ;;  %v13841_v54 = vpop.permute.xlu1 %10423  ;;  %v15179_v11 = vunpack.i.l.bf16 %v13822_v26  ;;  %v10441_v57 = vunpack.i.h.bf16 %v13835_v37  ;;  %v15168_v45 = vunpack.i.l.bf16 %v13835_v37 }
0x21f9   :  { %v15159_v4 = vunpack.i.h.bf16 %v13841_v54 }
0x21fa   :  { %v1965_v29 = vsel %vm1076_vm8, %v13451_v38, %v15179_v11  ;;  %v1122_v38 = vsel %vm1076_vm8, %v13479_v63, %v15169_v17  ;;  %v4494_v63 = vsel %vm1076_vm8, %v13505_v22, %v15163_v39  ;;  %v15171_v22 = vunpack.i.l.bf16 %v13833_v13  ;;  %v14072_v17 = vld [vmem:[%s14943_s9 + $0x1c0] sm:$0xff] }
0x21fb   :  { %v13839_v30 = vpop.permute.xlu0 %10448 }
0x21fc   :  { %10543 = vrot.lane.b32.xlu0 %v10542_v9, %s10590_s19  ;;  %10508 = vrot.lane.b32.xlu1 %v10507_v19, %s10587_s7  ;;  %v13846_v24 = vpop.permute.xlu1 %10433  ;;  %v7034_v19 = vrot.slane %v1965_v29, 7 }
0x21fd   :  { %v15684_v0 = vunpack.i.h.bf16 %v13846_v24 }
0x21ff   :  { %v13843_v20 = vpop.permute.xlu0 %10458 }
0x2200   :  { %1959 = vrot.lane.b32.xlu0 %v1957_v61, %s10591_s8  ;;  %10518 = vrot.lane.b32.xlu1 %v10517_v25, %s10587_s7  ;;  %v13861_v9 = vpop.permute.xlu1 %10443  ;;  %v10425_v61 = vunpack.i.l.bf16 %v13841_v54  ;;  %v7083_v25 = vrot.slane %v3651_v56, 5  ;;  %v15167_v56 = vunpack.i.l.bf16 %v13839_v30 }
0x2201   :  { %v15157_v48 = vunpack.i.h.bf16 %v13861_v9  ;;  %v10445_v60 = vunpack.i.l.bf16 %v13861_v9 }
0x2203   :  { %v13855_v14 = vpop.permute.xlu0 %10473 }
0x2204   :  { %10553 = vrot.lane.b32.xlu0 %v10552_v59, %s10590_s19  ;;  %10528 = vrot.lane.b32.xlu1 %v10527_v12, %s10590_s19  ;;  %v1945_v59 = vsel %vm1096_vm9, %v10425_v61, %v15159_v4  ;;  %v1936_v12 = vsel %vm389_vm7, %v15178_v52, %v10421_v32 }
0x2207   :  { %v13882_v42 = vpop.permute.xlu0 %10483 }
0x2208   :  { %2804 = vrot.lane.b32.xlu0 %v2801_v2, %s10591_s8  ;;  %10538 = vrot.lane.b32.xlu1 %v10537_v27, %s10590_s19  ;;  %v13892_v2 = vpop.permute.xlu1 %10453  ;;  %v10431_v27 = vunpack.i.h.bf16 %v13833_v13 }
0x220c   :  { %1114 = vrot.lane.b32.xlu0 %v1112_v15, %s10591_s8  ;;  %10548 = vrot.lane.b32.xlu1 %v10547_v34, %s10590_s19  ;;  %v15158_v34 = vunpack.i.h.bf16 %v13846_v24 }
0x2210   :  { %3645 = vrot.lane.b32.xlu0 %v3643_v8, %s10591_s8  ;;  %1961 = vrot.lane.b32.xlu1 %v1958_v55, %s10591_s8  ;;  %v3644_v8 = vrot.slane %v13489_v49, 5  ;;  %v7199_v49 = vsel %vm15650_vm10, %v1122_v38, %v7034_v19  ;;  %v10435_v55 = vunpack.i.l.bf16 %v13846_v24  ;;  %v10451_v19 = vunpack.i.h.bf16 %v13839_v30 }
0x2211   :  { %v7210_v15 = vsel %vm7208_vm2, %v7199_v49, %v7059_v5 }
0x2212   :  { %v7221_v33 = vsel %vm7219_vm3, %v7210_v15, %v7083_v25  ;;  %v2788_v41 = vsel %vm1096_vm9, %v10435_v55, %v15158_v34  ;;  %v13964_v15 = vld [vmem:[%s14943_s9 + $0x110] sm:$0xff]  ;;  %v10461_v34 = vunpack.i.h.bf16 %v13843_v20 }
0x2214   :  { %4488 = vrot.lane.b32.xlu0 %v4486_v44, %s10591_s8  ;;  %2802 = vrot.lane.b32.xlu1 %v2800_v47, %s10591_s8  ;;  %v5337_v44 = vsel %vm1076_vm8, %v13511_v16, %v15162_v18  ;;  %v1097_v16 = vsel %vm1096_vm9, %v10445_v60, %v15157_v48 }
0x2215   :  { %v7131_v29 = vrot.slane %v5337_v44, 3 }
0x2218   :  { %5331 = vrot.lane.b32.xlu0 %v5329_v21, %s10591_s8  ;;  %1116 = vrot.lane.b32.xlu1 %v1113_v50, %s10591_s8  ;;  %v7107_v21 = vrot.slane %v4494_v63, 4  ;;  %v7038_v50 = vrot.slane %v1945_v59, 7  ;;  %v13940_v63 = vld [vmem:[%s14943_s9 + $0x100] sm:$0xff]  ;;  %v13945_v59 = vld [vmem:[%s14943_s9 + $0x108] sm:$0xff] }
0x221a   :  { %v7203_v5 = vsel %vm15651_vm11, %v1097_v16, %v7038_v50  ;;  %v7232_v49 = vsel %vm7230_vm6, %v7221_v33, %v7107_v21  ;;  %v13982_v50 = vld [vmem:[%s14943_s9 + $0x1a0] sm:$0xff]  ;;  %v3622_v16 = vsel %vm389_vm7, %v15167_v56, %v10451_v19  ;;  %v10023_v19 = vpack.c.bf16 %v13945_v59, %v13940_v63  ;;  %v14055_v56 = vld [vmem:[%s14943_s9 + $0x130] sm:$0xff] }
0x221b   :  { %v15170_v63 = vunpack.i.l.bf16 %v13843_v20 }
0x221c   :  { %6174 = vrot.lane.b32.xlu0 %v6172_v10, %s10591_s8  ;;  %3647 = vrot.lane.b32.xlu1 %v3644_v8, %s10591_s8  ;;  %v1967_v10 = vsel %vm1096_vm9, %v1936_v12, %v10425_v61  ;;  %v1087_v8 = vsel %vm389_vm7, %v15168_v45, %v10441_v57  ;;  %v13950_v12 = vld [vmem:[%s14943_s9 + $0x190] sm:$0xff]  ;;  %v7063_v57 = vrot.slane %v2788_v41, 6  ;;  %v13999_v41 = vld [vmem:[%s14943_s9 + $0x120] sm:$0xff] }
0x221d   :  { %v1124_v43 = vsel %vm1096_vm9, %v1087_v8, %v10445_v60  ;;  %v7037_v61 = vrot.slane %v1967_v10, 7  ;;  %v13959_v60 = vld [vmem:[%s14943_s9 + $0x198] sm:$0xff]  ;;  %v13987_v10 = vld [vmem:[%s14943_s9 + $0x1a8] sm:$0xff] }
0x221e   :  { %v14060_v45 = vld [vmem:[%s14943_s9 + $0x138] sm:$0xff] }
0x221f   :  { %v7202_v44 = vsel %vm15652_vm12, %v1124_v43, %v7037_v61  ;;  %v14004_v43 = vld [vmem:[%s14943_s9 + $0x128] sm:$0xff]  ;;  %vm7434_vm12 = vcmask 736256  }
0x2220   :  { %7017 = vrot.lane.b32.xlu0 %v7015_v35, %s10591_s8  ;;  %4490 = vrot.lane.b32.xlu1 %v4487_v28, %s10591_s8  ;;  %v2779_v28 = vsel %vm389_vm7, %v15171_v22, %v10431_v27 }
0x2221   :  { %v2810_v32 = vsel %vm1096_vm9, %v2779_v28, %v10435_v55  ;;  %v13969_v55 = vld [vmem:[%s14943_s9 + $0x118] sm:$0xff]  ;;  %v7214_v28 = vsel %vm7208_vm2, %v7203_v5, %v7063_v57  ;;  %v10025_v5 = vpack.c.bf16 %v13959_v60, %v13950_v12  ;;  %v14029_v12 = vld [vmem:[%s14943_s9 + $0x1b0] sm:$0xff] }
0x2222   :  { %v7062_v8 = vrot.slane %v2810_v32, 6  ;;  %v14034_v60 = vld [vmem:[%s14943_s9 + $0x1b8] sm:$0xff] }
0x2224   :  { %5333 = vrot.lane.b32.xlu1 %v5330_v1, %s10591_s8 }
0x2228   :  { %10558 = vrot.lane.b32.xlu1 %v10557_v3, %s10590_s19  ;;  %v15156_v3 = vunpack.i.h.bf16 %v13892_v2 }
0x222c   :  { %6176 = vrot.lane.b32.xlu1 %v6173_v46, %s10591_s8  ;;  %v10455_v46 = vunpack.i.l.bf16 %v13892_v2 }
0x2230   :  { %7019 = vrot.lane.b32.xlu1 %v7016_v31, %s10591_s8 }
0x225a   :  { %v13905_v47 = vpop.permute.xlu0 %10493  ;;  %v13911_v35 = vpop.permute.xlu1 %10463 }
0x225b   :  { %v15161_v1 = vunpack.i.l.bf16 %v13911_v35  ;;  %v15160_v31 = vunpack.i.h.bf16 %v13911_v35 }
0x225d   :  { %v6180_v27 = vsel %vm1076_vm8, %v13518_v6, %v15161_v1  ;;  %v3631_v6 = vsel %vm1096_vm9, %v10455_v46, %v15156_v3  ;;  %v7023_v21 = vsel %vm1076_vm8, %v13663_v53, %v15160_v31  ;;  %v7242_v53 = vsel %vm901_vm14, %v7232_v49, %v7131_v29 }
0x225e   :  { %v13930_v38 = vpop.permute.xlu0 %10498  ;;  %v13934_v25 = vpop.permute.xlu1 %10468  ;;  %v7155_v61 = vrot.slane %v6180_v27, 2  ;;  %v10027_v29 = vpack.c.bf16 %v13969_v55, %v13964_v15  ;;  %v14015_v49 = vsel %vm7208_vm2, %v7202_v44, %v7062_v8  ;;  %v7087_v57 = vrot.slane %v3631_v6, 5 }
0x225f   :  { %v7179_v3 = vrot.slane %v7023_v21, 1  ;;  %v14020_v27 = vsel %vm1096_vm9, %v3622_v16, %v10455_v46  ;;  %v10476_v46 = vunpack.i.h.bf16 %v13855_v14  ;;  %v15172_v44 = vunpack.i.l.bf16 %v13855_v14 }
0x2260   :  { %v10486_v6 = vunpack.i.h.bf16 %v13882_v42  ;;  %v10470_v21 = vunpack.i.l.bf16 %v13934_v25  ;;  %v15175_v16 = vunpack.i.l.bf16 %v13882_v42  ;;  %v15174_v4 = vunpack.i.h.bf16 %v13934_v25 }
0x2261   :  { %v7252_v1 = vsel %vm246_vm1, %v7242_v53, %v7155_v61  ;;  %v7225_v53 = vsel %vm7219_vm3, %v7214_v28, %v7087_v57  ;;  %v7086_v61 = vrot.slane %v14020_v27, 5  ;;  %v14077_v28 = vld [vmem:[%s14943_s9 + $0x1c8] sm:$0xff]  ;;  %v5308_v57 = vsel %vm389_vm7, %v15172_v44, %v10476_v46 }
0x2262   :  { %v13993_v33 = vpop.permute.xlu0 %10513  ;;  %v14006_v32 = vpop.permute.xlu1 %10478  ;;  %v7262_v23 = vsel %vm226_vm0, %v7252_v1, %v7179_v3  ;;  %v4465_v1 = vsel %vm389_vm7, %v15170_v63, %v10461_v34  ;;  %v10495_v34 = vunpack.i.l.bf16 %v13905_v47  ;;  %v6151_v59 = vsel %vm389_vm7, %v15175_v16, %v10486_v6 }
0x2263   :  { %v10480_v31 = vunpack.i.l.bf16 %v14006_v32  ;;  %v15176_v39 = vunpack.i.h.bf16 %v14006_v32  ;;  %7505 = vmatprep.mubr.f32.mxu1 %v7262_v23  ;;  %v10496_v23 = vunpack.i.h.bf16 %v13905_v47  ;;  %v4496_v27 = vsel %vm1096_vm9, %v4465_v1, %v10470_v21  ;;  %v14114_v1 = vld [vmem:[%s14943_s9 + $0x400] sm:$0xff] }
0x2264   :  { %7506 = vmatmul.mubr.f32.vlgmr.msra.gmra.mrb[88].mxu1 %v13721_v36  ;;  %v4474_v22 = vsel %vm1096_vm9, %v10470_v21, %v15174_v4  ;;  %v10500_v36 = vunpack.i.l.bf16 %v13930_v38  ;;  %v7110_v4 = vrot.slane %v4496_v27, 4  ;;  %v15656_v15 = vunpack.i.l.bf16 %v13822_v26 }
0x2265   :  { %v5339_v46 = vsel %vm1096_vm9, %v5308_v57, %v10480_v31  ;;  %10024 = vmatpush3.bf16.msra.mxu1 %v10023_v19  ;;  %v5317_v40 = vsel %vm1096_vm9, %v10480_v31, %v15176_v39  ;;  %v7400_v31 = vld [vmem:[%s14943_s9 + $0x408] sm:$0xff] }
0x2266   :  { %v14040_v8 = vpop.permute.xlu0 %10523  ;;  %v14046_v18 = vpop.permute.xlu1 %10488  ;;  %10026 = vmatprep.subr.bf16.mxu1 %v10025_v5  ;;  %v6994_v5 = vsel %vm389_vm7, %v10495_v34, %v10496_v23  ;;  %v7134_v27 = vrot.slane %v5339_v46, 3  ;;  %v10118_v46 = vpack.c.bf16 %v7400_v31, %v14114_v1  ;;  %v1927_v55 = vsel %vm1076_vm8, %v15656_v15, %v10500_v36 }
0x2267   :  { %v15177_v3 = vunpack.i.h.bf16 %v14046_v18  ;;  %v10490_v51 = vunpack.i.l.bf16 %v14046_v18  ;;  %v10515_v15 = vunpack.i.l.bf16 %v13993_v33 }
0x2269   :  { %v6182_v6 = vsel %vm1096_vm9, %v6151_v59, %v10490_v51  ;;  %v6160_v19 = vsel %vm1096_vm9, %v10490_v51, %v15177_v3  ;;  %v10501_v59 = vunpack.i.h.bf16 %v13930_v38  ;;  %v7111_v51 = vrot.slane %v4474_v22, 4  ;;  %10028 = vmatpush3.bf16.msra.mxu1 %v10027_v29 }
0x226a   :  { %v14086_v63 = vpop.permute.xlu0 %10533  ;;  %v14095_v44 = vpop.permute.xlu1 %10503  ;;  %v7135_v3 = vrot.slane %v5317_v40, 3  ;;  %v7158_v21 = vrot.slane %v6182_v6, 2  ;;  %v7224_v38 = vsel %vm7219_vm3, %v14015_v49, %v7086_v61  ;;  %v7159_v22 = vrot.slane %v6160_v19, 2 }
0x226b   :  { %15653 = vst [vmem:[#allocation65_spill] sm:$0xff] %v14095_v44  ;;  %v15180_v57 = vunpack.i.h.bf16 %v14095_v44  ;;  %v10505_v16 = vunpack.i.l.bf16 %v14095_v44  ;;  %v15655_v40 = vpack.c.bf16 %v13987_v10, %v13982_v50  ;;  %v7235_v29 = vsel %vm7230_vm6, %v7224_v38, %v7110_v4 }
0x226c   :  { %v7245_v50 = vsel %vm901_vm14, %v7235_v29, %v7134_v27  ;;  %v15658_v10 = vunpack.i.h.bf16 %v13822_v26  ;;  %v15659_v19 = vunpack.i.l.bf16 %v13833_v13  ;;  %v15660_v4 = vpack.c.bf16 %v14004_v43, %v13999_v41  ;;  %v7311_v26 = vld [vmem:[%s14943_s9 + $0x140] sm:$0xff]  ;;  %v7312_v13 = vld [vmem:[%s14943_s9 + $0x148] sm:$0xff]  ;;  %v7329_v27 = vld [vmem:[%s14943_s9 + $0x1d0] sm:$0xff] }
0x226d   :  { %v7003_v52 = vsel %vm1096_vm9, %v10505_v16, %v15180_v57  ;;  %v7025_v11 = vsel %vm1096_vm9, %v6994_v5, %v10505_v16  ;;  %10030 = vmatprep.subr.bf16.mxu1 %v15655_v40  ;;  %v15657_v5 = vunpack.i.l.bf16 %v13831_v7  ;;  %v15662_v43 = vunpack.i.l.bf16 %v13835_v37  ;;  %v7330_v29 = vld [vmem:[%s14943_s9 + $0x1d8] sm:$0xff]  ;;  %v14531_v57 = vld [vmem:[%s14943_s9 + $0x4a0] sm:$0xff] }
0x226e   :  { %v14123_v39 = vpop.permute.xlu0 %10543  ;;  %v10509_v48 = vpop.permute.xlu1 %10508  ;;  %v7182_v23 = vrot.slane %v7025_v11, 1  ;;  %v7183_v16 = vrot.slane %v7003_v52, 1  ;;  %v7236_v11 = vsel %vm7230_vm6, %v7225_v53, %v7111_v51  ;;  %v2770_v1 = vsel %vm1076_vm8, %v15658_v10, %v10501_v59  ;;  %10032 = vmatpush3.bf16.msra.mxu1 %v15660_v4 }
0x226f   :  { %15654 = vst [vmem:[#allocation68_spill] sm:$0xff] %v14123_v39  ;;  %v10510_v6 = vunpack.i.l.bf16 %v10509_v48  ;;  %v1966_v49 = vsel %vm389_vm7, %v10500_v36, %v15657_v5  ;;  %v10511_v61 = vunpack.i.h.bf16 %v10509_v48  ;;  %v2809_v31 = vsel %vm389_vm7, %v10501_v59, %v15659_v19 }
0x2270   :  { %v7246_v7 = vsel %vm901_vm14, %v7236_v11, %v7135_v3  ;;  %v7255_v53 = vsel %vm246_vm1, %v7245_v50, %v7158_v21  ;;  %v15661_v36 = vunpack.i.l.bf16 %v13837_v58  ;;  %v15663_v59 = vpack.c.bf16 %v14034_v60, %v14029_v12  ;;  %v7401_v12 = vld [vmem:[%s14943_s9 + $0x410] sm:$0xff]  ;;  %v7402_v60 = vld [vmem:[%s14943_s9 + $0x418] sm:$0xff] }
0x2271   :  { %v1123_v3 = vsel %vm389_vm7, %v10510_v6, %v15662_v43  ;;  %v7256_v21 = vsel %vm246_vm1, %v7246_v7, %v7159_v22  ;;  %v7265_v51 = vsel %vm226_vm0, %v7255_v53, %v7182_v23  ;;  %v7035_v38 = vrot.slane %v1927_v55, 7  ;;  %v7404_v43 = vld [vmem:[%s14943_s9 + $0x428] sm:$0xff] }
0x2272   :  { %v14157_v52 = vpop.permute.xlu0 %1959  ;;  %v14159_v48 = vpop.permute.xlu1 %10518  ;;  %v1077_v41 = vsel %vm1076_vm8, %v15661_v36, %v10510_v6  ;;  %10034 = vmatprep.subr.bf16.mxu1 %v15663_v59  ;;  %v7036_v40 = vrot.slane %v1966_v49, 7  ;;  %v7266_v37 = vsel %vm226_vm0, %v7256_v21, %v7183_v16  ;;  %v10516_v22 = vunpack.i.h.bf16 %v13993_v33 }
0x2273   :  { %v15664_v23 = vunpack.i.l.bf16 %v13839_v30  ;;  %v15665_v6 = vunpack.i.h.bf16 %v13837_v58  ;;  %7645 = vmatprep.mubr.f32.mxu0 %v7266_v37  ;;  %v10039_v5 = vpack.c.bf16 %v7312_v13, %v7311_v26  ;;  %v7200_v49 = vsel %vm15666_vm13, %v1077_v41, %v7035_v38  ;;  %v7332_v41 = vld [vmem:[%s14943_s9 + $0x1e8] sm:$0xff] }
0x2274   :  { %v7201_v11 = vsel %vm15667_vm15, %v1123_v3, %v7036_v40  ;;  %v15668_v50 = vpack.c.bf16 %v14060_v45, %v14055_v56  ;;  %v10521_v33 = vunpack.i.h.bf16 %v14159_v48  ;;  %v10520_v30 = vunpack.i.l.bf16 %v14159_v48  ;;  %7646 = vmatmul.mubr.f32.vlgmr.msra.gmra.mrb[106].mxu0 %v7265_v51  ;;  %v7313_v45 = vld [vmem:[%s14943_s9 + $0x150] sm:$0xff]  ;;  %v7314_v56 = vld [vmem:[%s14943_s9 + $0x158] sm:$0xff] }
0x2275   :  { %v3652_v55 = vsel %vm389_vm7, %v10511_v61, %v15664_v23  ;;  %v3613_v16 = vsel %vm1076_vm8, %v15665_v6, %v10511_v61  ;;  %v7060_v58 = vrot.slane %v2770_v1, 6  ;;  %v7061_v19 = vrot.slane %v2809_v31, 6  ;;  %10119 = vmatpush1.bf16.msra.mxu0 %v10118_v46  ;;  %v7331_v1 = vld [vmem:[%s14943_s9 + $0x1e0] sm:$0xff]  ;;  %v7334_v23 = vld [vmem:[%s14943_s9 + $0x1f8] sm:$0xff] }
0x2276   :  { %10036 = vmatpush3.bf16.msra.mxu1 %v15668_v50  ;;  %v14207_v10 = vpop.permute.xlu1 %10528  ;;  %v15669_v61 = vpack.c.bf16 %v14077_v28, %v14072_v17  ;;  %v10041_v4 = vpack.c.bf16 %v7330_v29, %v7329_v27  ;;  %v10121_v7 = vpack.c.bf16 %v7402_v60, %v7401_v12  ;;  %v15670_v31 = vunpack.i.l.bf16 %v13843_v20  ;;  %v14228_v36 = vpop.permute.xlu0 %10553  ;;  %v7403_v20 = vld [vmem:[%s14943_s9 + $0x420] sm:$0xff] }
0x2277   :  { %v7085_v28 = vrot.slane %v3652_v55, 5  ;;  %v7084_v46 = vrot.slane %v3613_v16, 5  ;;  %v15671_v53 = vunpack.i.l.bf16 %v13882_v42  ;;  %v15672_v13 = vmov 0.0|0.0  }
0x2278   :  { %10038 = vmatprep.subr.bf16.mxu1 %v15669_v61  ;;  %v4495_v17 = vsel %vm389_vm7, %v10515_v15, %v15670_v31  ;;  %10120 = vmatprep.subr.bf16.mxu0 %v15672_v13  ;;  %v15673_v42 = vunpack.i.l.bf16 %v13855_v14  ;;  %v7211_v59 = vsel %vm7208_vm2, %v7200_v49, %v7060_v58  ;;  %v7212_v21 = vsel %vm7208_vm2, %v7201_v11, %v7061_v19  ;;  %v7315_v14 = vld [vmem:[%s14943_s9 + $0x160] sm:$0xff]  ;;  %v7405_v49 = vld [vmem:[%s14943_s9 + $0x430] sm:$0xff]  ;;  %v7406_v11 = vld [vmem:[%s14943_s9 + $0x438] sm:$0xff] }
0x2279   :  { %v6181_v26 = vsel %vm389_vm7, %v10520_v30, %v15671_v53  ;;  %v7024_v51 = vsel %vm389_vm7, %v10521_v33, %v10495_v34  ;;  %v15674_v27 = vunpack.i.l.bf16 %v13826_v62  ;;  %v10043_v40 = vpack.c.bf16 %v7314_v56, %v7313_v45  ;;  %10122 = vmatpush1.bf16.msra.mxu0 %v10121_v7  ;;  %v7316_v34 = vld [vmem:[%s14943_s9 + $0x168] sm:$0xff]  ;;  %v7383_v53 = vld [vmem:[%s14943_s9 + $0x380] sm:$0xff] }
0x227a   :  { %v5338_v3 = vsel %vm389_vm7, %v10516_v22, %v15673_v42  ;;  %10040 = vmatpush3.bf16.msra.mxu1 %v10039_v5  ;;  %v14252_v37 = vpop.permute.xlu1 %10538  ;;  %v7109_v29 = vrot.slane %v4495_v17, 4  ;;  %v7157_v12 = vrot.slane %v6181_v26, 2  ;;  %v10045_v47 = vpack.c.bf16 %v7332_v41, %v7331_v1  ;;  %10123 = vmatprep.subr.bf16.mxu0 %v15672_v13  ;;  %v14282_v45 = vpop.permute.xlu0 %2804  ;;  %v7408_v42 = vld [vmem:[%s14943_s9 + $0x448] sm:$0xff] }
0x227b   :  { %v4456_v38 = vsel %vm1076_vm8, %v15674_v27, %v10515_v15  ;;  %10042 = vmatprep.subr.bf16.mxu1 %v10041_v4  ;;  %v10124_v60 = vpack.c.bf16 %v7404_v43, %v7403_v20  ;;  %v7333_v15 = vld [vmem:[%s14943_s9 + $0x1f0] sm:$0xff]  ;;  %v7133_v55 = vrot.slane %v5338_v3, 3  ;;  %v7222_v6 = vsel %vm7219_vm3, %v7211_v59, %v7084_v46  ;;  %v7384_v20 = vld [vmem:[%s14943_s9 + $0x388] sm:$0xff]  ;;  %v7407_v43 = vld [vmem:[%s14943_s9 + $0x440] sm:$0xff] }
0x227c   :  { %v7181_v16 = vrot.slane %v7024_v51, 1  ;;  %v7223_v5 = vsel %vm7219_vm3, %v7212_v21, %v7085_v28  ;;  %v15675_v50 = vunpack.i.h.bf16 %v13826_v62  ;;  %v7108_v19 = vrot.slane %v4456_v38, 4  ;;  %v7317_v28 = vld [vmem:[%s14943_s9 + $0x170] sm:$0xff] }
0x227d   :  { %v7234_v61 = vsel %vm7230_vm6, %v7223_v5, %v7109_v29  ;;  %v15676_v4 = vunpack.i.l.bf16 %v13911_v35  ;;  %v10047_v1 = vpack.c.bf16 %v7316_v34, %v7315_v14  ;;  %v10049_v17 = vpack.c.bf16 %v7334_v23, %v7333_v15  ;;  %10125 = vmatpush1.bf16.msra.mxu0 %v10124_v60  ;;  %v7386_v29 = vld [vmem:[%s14943_s9 + $0x398] sm:$0xff]  ;;  %v7409_v60 = vld [vmem:[%s14943_s9 + $0x450] sm:$0xff] }
0x227e   :  { %v5299_v58 = vsel %vm1076_vm8, %v15675_v50, %v10516_v22  ;;  %10044 = vmatpush3.bf16.msra.mxu1 %v10043_v40  ;;  %v7244_v56 = vsel %vm901_vm14, %v7234_v61, %v7133_v55  ;;  %v14285_v31 = vpop.permute.xlu1 %10548  ;;  %v10127_v22 = vpack.c.bf16 %v7406_v11, %v7405_v49  ;;  %v7233_v46 = vsel %vm7230_vm6, %v7222_v6, %v7108_v19  ;;  %v7367_v40 = vld [vmem:[%s14943_s9 + $0x300] sm:$0xff]  ;;  %v7410_v34 = vld [vmem:[%s14943_s9 + $0x458] sm:$0xff]  ;;  %v14341_v15 = vld [vmem:[%s14943_s9 + $0x310] sm:$0xff] }
0x227f   :  { %v6142_v7 = vsel %vm1076_vm8, %v15676_v4, %v10520_v30  ;;  %10046 = vmatprep.subr.bf16.mxu1 %v10045_v47  ;;  %v7254_v62 = vsel %vm246_vm1, %v7244_v56, %v7157_v12  ;;  %v7318_v30 = vld [vmem:[%s14943_s9 + $0x178] sm:$0xff]  ;;  %v7132_v26 = vrot.slane %v5299_v58, 3  ;;  %10126 = vmatprep.subr.bf16.mxu0 %v15672_v13  ;;  %v15677_v3 = vunpack.i.h.bf16 %v13911_v35  ;;  %v7368_v35 = vld [vmem:[%s14943_s9 + $0x308] sm:$0xff]  ;;  %v14329_v47 = vpop.permute.xlu0 %1114  ;;  %v14352_v6 = vld [vmem:[%s14943_s9 + $0x3a0] sm:$0xff] }
0x2280   :  { %v7264_v41 = vsel %vm226_vm0, %v7254_v62, %v7181_v16  ;;  %v7156_v21 = vrot.slane %v6142_v7, 2  ;;  %v10051_v51 = vpack.c.bf16 %v7318_v30, %v7317_v28  ;;  %v10085_v14 = vpack.c.bf16 %v7384_v20, %v7383_v53  ;;  %v14347_v55 = vld [vmem:[%s14943_s9 + $0x318] sm:$0xff]  ;;  %v14357_v16 = vld [vmem:[%s14943_s9 + $0x3a8] sm:$0xff]  ;;  %v14364_v11 = vld [vmem:[%s14943_s9 + $0x460] sm:$0xff] }
0x2281   :  { %v6985_v59 = vsel %vm1076_vm8, %v15677_v3, %v10521_v33  ;;  %7575 = vmatprep.mubr.f32.mxu1 %v7264_v41  ;;  %v7243_v38 = vsel %vm901_vm14, %v7233_v46, %v7132_v26  ;;  %10128 = vmatpush1.bf16.msra.mxu0 %v10127_v22  ;;  %v10130_v48 = vpack.c.bf16 %v7408_v42, %v7407_v43  ;;  %v7385_v33 = vld [vmem:[%s14943_s9 + $0x390] sm:$0xff]  ;;  %v14369_v50 = vld [vmem:[%s14943_s9 + $0x468] sm:$0xff]  ;;  %v14374_v58 = vld [vmem:[%s14943_s9 + $0x320] sm:$0xff]  ;;  %vm1107_vm7 = vcmask 490496  }
0x2282   :  { %10048 = vmatpush3.bf16.msra.mxu1 %v10047_v1  ;;  %v14314_v27 = vpop.permute.xlu1 %1961  ;;  %v7180_v12 = vrot.slane %v6985_v59, 1  ;;  %10129 = vmatprep.subr.bf16.mxu0 %v15672_v13  ;;  %v7253_v23 = vsel %vm246_vm1, %v7243_v38, %v7156_v21  ;;  %v10087_v5 = vpack.c.bf16 %v7368_v35, %v7367_v40  ;;  %v14379_v19 = vld [vmem:[%s14943_s9 + $0x328] sm:$0xff]  ;;  %v10089_v61 = vpack.c.bf16 %v7386_v29, %v7385_v33  ;;  %v14384_v7 = vld [vmem:[%s14943_s9 + $0x3b0] sm:$0xff]  ;;  %v14389_v56 = vld [vmem:[%s14943_s9 + $0x3b8] sm:$0xff] }
0x2283   :  { %10050 = vmatprep.subr.bf16.mxu1 %v10049_v17  ;;  %v10133_v4 = vpack.c.bf16 %v7410_v34, %v7409_v60  ;;  %v14394_v1 = vld [vmem:[%s14943_s9 + $0x470] sm:$0xff]  ;;  %v14399_v17 = vld [vmem:[%s14943_s9 + $0x478] sm:$0xff]  ;;  %v14416_v30 = vld [vmem:[%s14943_s9 + $0x3c0] sm:$0xff]  ;;  %v10091_v46 = vpack.c.bf16 %v14347_v55, %v14341_v15  ;;  %v10093_v53 = vpack.c.bf16 %v14357_v16, %v14352_v6  ;;  %v15184_v43 = vunpack.i.h.bf16 %v14040_v8  ;;  %v14441_v21 = vpop.permute.xlu0 %3645 }
0x2284   :  { %v7263_v62 = vsel %vm226_vm0, %v7253_v23, %v7180_v12  ;;  %v14406_v22 = vld [vmem:[%s14943_s9 + $0x330] sm:$0xff]  ;;  %v14411_v28 = vld [vmem:[%s14943_s9 + $0x338] sm:$0xff]  ;;  %v14425_v26 = vld [vmem:[%s14943_s9 + $0x3c8] sm:$0xff]  ;;  %v10525_v42 = vunpack.i.l.bf16 %v14040_v8  ;;  %v15181_v3 = vunpack.i.h.bf16 %v14207_v10  ;;  %v10530_v59 = vunpack.i.l.bf16 %v14207_v10 }
0x2285   :  { %10131 = vmatpush1.bf16.msra.mxu0 %v10130_v48  ;;  %v14430_v41 = vld [vmem:[%s14943_s9 + $0x480] sm:$0xff]  ;;  %v14435_v20 = vld [vmem:[%s14943_s9 + $0x488] sm:$0xff]  ;;  %v15182_v48 = vunpack.i.h.bf16 %v14252_v37  ;;  %v15183_v35 = vunpack.i.l.bf16 %v14252_v37  ;;  %v10136_v33 = vpack.c.bf16 %v14369_v50, %v14364_v11  ;;  %v10095_v29 = vpack.c.bf16 %v14379_v19, %v14374_v58  ;;  %v14469_v12 = vld [vmem:[%s14943_s9 + $0x3d8] sm:$0xff] }
0x2286   :  { %10052 = vmatpush3.bf16.msra.mxu1 %v10051_v51  ;;  %v14359_v49 = vpop.permute.xlu1 %2802  ;;  %10132 = vmatprep.subr.bf16.mxu0 %v15672_v13  ;;  %v14448_v38 = vld [vmem:[%s14943_s9 + $0x340] sm:$0xff]  ;;  %v14453_v40 = vld [vmem:[%s14943_s9 + $0x348] sm:$0xff]  ;;  %v14474_v60 = vld [vmem:[%s14943_s9 + $0x490] sm:$0xff]  ;;  %v10097_v15 = vpack.c.bf16 %v14389_v56, %v14384_v7  ;;  %v10139_v23 = vpack.c.bf16 %v14399_v17, %v14394_v1  ;;  %v15190_v11 = vunpack.i.h.bf16 %v14086_v63  ;;  %v10535_v50 = vunpack.i.l.bf16 %v14086_v63 }
0x2287   :  { %10086 = vmatprep.subr.bf16.mxu1 %v10085_v14  ;;  %v14458_v14 = vld [vmem:[%s14943_s9 + $0x3d0] sm:$0xff]  ;;  %v14479_v34 = vld [vmem:[%s14943_s9 + $0x498] sm:$0xff]  ;;  %v1954_v7 = vsel %vm1107_vm7, %v10525_v42, %v15184_v43  ;;  %v2797_v56 = vsel %vm1107_vm7, %v10530_v59, %v15181_v3  ;;  %v14536_v19 = vld [vmem:[%s14943_s9 + $0x4a8] sm:$0xff]  ;;  %v15681_v6 = vunpack.i.h.bf16 %v13841_v54  ;;  %v14557_v43 = vpop.permute.xlu0 %4488  ;;  %v10555_v17 = vunpack.i.l.bf16 %v14228_v36 }
0x2288   :  { %v14493_v16 = vld [vmem:[%s14943_s9 + $0x350] sm:$0xff]  ;;  %v14550_v58 = vld [vmem:[%s14943_s9 + $0x360] sm:$0xff]  ;;  %v7065_v3 = vrot.slane %v2797_v56, 6  ;;  %vm15688_vm8 = vmmov %vm15650_vm10 }
0x2289   :  { %7576 = vmatmul.mubr.f32.vlgmr.msra.gmra.mrb[90].mxu1 %v7263_v62  ;;  %10134 = vmatpush1.bf16.msra.mxu0 %v10133_v4  ;;  %15678 = vst [vmem:[#allocation70_spill] sm:$0xff] %v14493_v16  ;;  %v14514_v4 = vld [vmem:[%s14943_s9 + $0x3e8] sm:$0xff]  ;;  %v1968_v55 = vsel %vm1107_vm7, %v15681_v6, %v10525_v42  ;;  %v14570_v54 = vld [vmem:[%s14943_s9 + $0x3f0] sm:$0xff]  ;;  %v14575_v42 = vld [vmem:[%s14943_s9 + $0x3f8] sm:$0xff]  ;;  %v7040_v6 = vrot.slane %v1954_v7, 7  ;;  %v10556_v62 = vunpack.i.h.bf16 %v14228_v36  ;;  %v15685_v16 = vunpack.i.h.bf16 %v14285_v31 }
0x228a   :  { %10088 = vmatpush3.bf16.msra.mxu1 %v10087_v5  ;;  %v14443_v51 = vpop.permute.xlu1 %1116  ;;  %10135 = vmatprep.subr.bf16.mxu0 %v15672_v13  ;;  %v14498_v5 = vld [vmem:[%s14943_s9 + $0x358] sm:$0xff]  ;;  %15680 = vst [vmem:[#allocation66_spill] sm:$0xff] %v14514_v4  ;;  %15682 = vst [vmem:[#allocation67_spill] sm:$0xff] %v14570_v54  ;;  %v7039_v7 = vrot.slane %v1968_v55, 7 }
0x228b   :  { %10090 = vmatprep.subr.bf16.mxu1 %v10089_v61  ;;  %v14509_v61 = vld [vmem:[%s14943_s9 + $0x3e0] sm:$0xff]  ;;  %15683 = vst [vmem:[#allocation69_spill] sm:$0xff] %v14575_v42  ;;  %v6169_v54 = vsel %vm1107_vm7, %v10555_v17, %v10556_v62  ;;  %vm15695_vm9 = vmmov %vm15688_vm8 }
0x228c   :  { %15679 = vst [vmem:[#allocation71_spill] sm:$0xff] %v14509_v61  ;;  %v2811_v61 = vsel %vm1107_vm7, %v15684_v0, %v10530_v59  ;;  %v14599_v0 = vld [vmem:[%s14943_s9 + $0x4b0] sm:$0xff]  ;;  %v14604_v59 = vld [vmem:[%s14943_s9 + $0x4b8] sm:$0xff]  ;;  %vm15706_vm10 = vmmov %vm15688_vm8 }
0x228d   :  { %10137 = vmatpush1.bf16.msra.mxu0 %v10136_v33  ;;  %v14565_v33 = vld [vmem:[%s14943_s9 + $0x368] sm:$0xff]  ;;  %vm15716_vm11 = vmmov %vm15688_vm8 }
0x228e   :  { %10092 = vmatpush3.bf16.msra.mxu1 %v10091_v46  ;;  %v14522_v1 = vpop.permute.xlu1 %3647  ;;  %v3640_v46 = vsel %vm1107_vm7, %v15183_v35, %v15182_v48  ;;  %v10545_v35 = vunpack.i.l.bf16 %v14123_v39  ;;  %10138 = vmatprep.subr.bf16.mxu0 %v15672_v13  ;;  %v14627_v48 = vld [vmem:[%s14943_s9 + $0x378] sm:$0xff] }
0x228f   :  { %10094 = vmatprep.subr.bf16.mxu1 %v10093_v53  ;;  %v1108_v53 = vsel %vm1107_vm7, %v10535_v50, %v15190_v11  ;;  %v7089_v4 = vrot.slane %v3640_v46, 5  ;;  %v15686_v11 = vunpack.i.l.bf16 %v14285_v31  ;;  %v15690_v46 = vunpack.i.h.bf16 %v13934_v25 }
0x2290   :  { %v7205_v55 = vsel %vm15688_vm8, %v1108_v53, %v7040_v6  ;;  %v15691_v25 = vunpack.i.h.bf16 %v14040_v8  ;;  %v7064_v53 = vrot.slane %v2811_v61, 6  ;;  %v15694_v8 = vpack.c.bf16 %v14411_v28, %v14406_v22 }
0x2291   :  { %v5326_v56 = vsel %vm1107_vm7, %v15686_v11, %v15685_v16  ;;  %10140 = vmatpush1.bf16.msra.mxu0 %v10139_v23  ;;  %v15689_v16 = vunpack.i.h.bf16 %v14123_v39  ;;  %v14621_v24 = vsel %vm1107_vm7, %v15690_v46, %v10545_v35  ;;  %v7216_v6 = vsel %vm7208_vm2, %v7205_v55, %v7065_v3  ;;  %v14654_v39 = vpop.permute.xlu0 %5331 }
0x2292   :  { %10096 = vmatpush3.bf16.msra.mxu1 %v10095_v29  ;;  %v4491_v44 = vpop.permute.xlu1 %4490  ;;  %v14609_v29 = vld [vmem:[%s14943_s9 + $0x370] sm:$0xff]  ;;  %10141 = vmatprep.subr.bf16.mxu0 %v15672_v13  ;;  %v7137_v42 = vrot.slane %v5326_v56, 3  ;;  %v10151_v3 = vpack.c.bf16 %v14604_v59, %v14599_v0  ;;  %v7227_v55 = vsel %vm7219_vm3, %v7216_v6, %v7089_v4  ;;  %v15697_v56 = vpack.c.bf16 %v14435_v20, %v14430_v41  ;;  %v7426_v0 = vld [vmem:[%s14943_s9 + $0x4d8] sm:$0x3] }
0x2293   :  { %10098 = vmatprep.subr.bf16.mxu1 %v10097_v15  ;;  %v15687_v15 = vunpack.i.h.bf16 %v13861_v9  ;;  %v4483_v11 = vsel %vm1107_vm7, %v10545_v35, %v15689_v16  ;;  %v14632_v9 = vld [vmem:[%s14943_s9 + $0x4c0] sm:$0xff]  ;;  %v14643_v35 = vsel %vm1118_vm4, %v15691_v25, %v14157_v52  ;;  %v15693_v16 = vunpack.i.h.bf16 %v13892_v2 }
0x2294   :  { %v7113_v25 = vrot.slane %v4483_v11, 4  ;;  %v10115_v22 = vpack.c.bf16 %v14627_v48, %v14609_v29  ;;  %v7041_v4 = vrot.slane %v14643_v35, 7  ;;  %v1963_v20 = vsel %vm1118_vm4, %v14157_v52, %v14314_v27 }
0x2295   :  { %v1125_v23 = vsel %vm1107_vm7, %v15687_v15, %v10535_v50  ;;  %v14637_v50 = vld [vmem:[%s14943_s9 + $0x4c8] sm:$0xff]  ;;  %v15692_v15 = vunpack.i.l.bf16 %v14252_v37  ;;  %10143 = vmatpush1.bf16.msra.mxu0 %v15697_v56  ;;  %v15701_v35 = vunpack.i.h.bf16 %v14006_v32  ;;  %v15703_v52 = vpack.c.bf16 %v14453_v40, %v14448_v38 }
0x2296   :  { %10100 = vmatpush3.bf16.msra.mxu1 %v15694_v8  ;;  %v5334_v61 = vpop.permute.xlu1 %5333  ;;  %v7204_v2 = vsel %vm15695_vm9, %v1125_v23, %v7039_v7  ;;  %v10154_v28 = vpack.c.bf16 %v14637_v50, %v14632_v9  ;;  %v15698_v7 = vunpack.i.h.bf16 %v14046_v18  ;;  %10144 = vmatprep.subr.bf16.mxu0 %v15672_v13  ;;  %v7238_v11 = vsel %vm7230_vm6, %v7227_v55, %v7113_v25 }
0x2297   :  { %v3654_v46 = vsel %vm1107_vm7, %v15693_v16, %v15692_v15  ;;  %v15696_v15 = vpack.c.bf16 %v14425_v26, %v14416_v30  ;;  %v7112_v16 = vrot.slane %v14621_v24, 4  ;;  %v7161_v26 = vrot.slane %v6169_v54, 2 }
0x2298   :  { %v14678_v23 = vsel %vm1107_vm7, %v15698_v7, %v10555_v17  ;;  %v7088_v30 = vrot.slane %v3654_v46, 5  ;;  %v7215_v41 = vsel %vm7208_vm2, %v7204_v2, %v7064_v53  ;;  %v15699_v24 = vunpack.i.h.bf16 %v14086_v63 }
0x2299   :  { %10102 = vmatprep.subr.bf16.mxu1 %v15696_v15  ;;  %v15700_v17 = vunpack.i.l.bf16 %v14285_v31  ;;  %v15702_v54 = vunpack.i.h.bf16 %v14207_v10  ;;  %v7248_v63 = vsel %vm901_vm14, %v7238_v11, %v7137_v42  ;;  %v1119_v46 = vsel %vm1118_vm4, %v14329_v47, %v14443_v51  ;;  %v6175_v51 = vpop.permute.xlu0 %6174  ;;  %v15711_v11 = vld [vmem:[#allocation66_spill] sm:$0xff] }
0x229a   :  { %v1126_v18 = vsel %vm1118_vm4, %v15699_v24, %v14329_v47  ;;  %10104 = vmatpush3.bf16.msra.mxu1 %v15703_v52  ;;  %v14702_v27 = vpop.permute.xlu1 %10558  ;;  %v3649_v32 = vsel %vm1118_vm4, %v14441_v21, %v14522_v1  ;;  %v15704_v10 = vpack.c.bf16 %v14469_v12, %v14458_v14  ;;  %v15705_v38 = vpack.c.bf16 %v14479_v34, %v14474_v60  ;;  %v15712_v24 = vld [vmem:[#allocation71_spill] sm:$0xff] }
0x229b   :  { %v5340_v6 = vsel %vm1107_vm7, %v15701_v35, %v15700_v17  ;;  %v2812_v53 = vsel %vm1118_vm4, %v15702_v54, %v14359_v49  ;;  %v10561_v40 = vunpack.i.h.bf16 %v14702_v27  ;;  %v10560_v42 = vunpack.i.l.bf16 %v14702_v27 }
0x229c   :  { %10106 = vmatprep.subr.bf16.mxu1 %v15704_v10  ;;  %10146 = vmatpush1.bf16.msra.mxu0 %v15705_v38  ;;  %v7226_v8 = vsel %vm7219_vm3, %v7215_v41, %v7088_v30  ;;  %v7042_v55 = vrot.slane %v1963_v20, 7  ;;  %v2806_v47 = vsel %vm1118_vm4, %v14359_v49, %v14282_v45  ;;  %v4492_v14 = vsel %vm1118_vm4, %v14557_v43, %v4491_v44  ;;  %v15707_v45 = vld [vmem:[#allocation70_spill] sm:$0xff]  ;;  %v15709_v41 = vld [vmem:[#allocation65_spill] sm:$0xff] }
0x229d   :  { %10147 = vmatprep.subr.bf16.mxu0 %v15672_v13  ;;  %v7136_v12 = vrot.slane %v5340_v6, 3  ;;  %v5335_v60 = vsel %vm1118_vm4, %v14654_v39, %v5334_v61  ;;  %v7012_v34 = vsel %vm1107_vm7, %v10560_v42, %v10561_v40  ;;  %v7258_v1 = vsel %vm246_vm1, %v7248_v63, %v7161_v26 }
0x229e   :  { %v7066_v2 = vrot.slane %v2812_v53, 6  ;;  %v7207_v25 = vsel %vm15706_vm10, %v1119_v46, %v7042_v55  ;;  %v7091_v15 = vrot.slane %v3649_v32, 5  ;;  %v15708_v49 = vpack.c.bf16 %v14498_v5, %v15707_v45  ;;  %v6177_v56 = vpop.permute.xlu1 %6176 }
0x229f   :  { %v7185_v44 = vrot.slane %v7012_v34, 1  ;;  %v7067_v7 = vrot.slane %v2806_v47, 6  ;;  %v7115_v30 = vrot.slane %v4492_v14, 4  ;;  %v15710_v20 = vunpack.i.h.bf16 %v15709_v41  ;;  %v15721_v47 = vld [vmem:[#allocation67_spill] sm:$0xff]  ;;  %v7425_v34 = vld [vmem:[%s14943_s9 + $0x4d0] sm:$0xff] }
0x22a0   :  { %10108 = vmatpush3.bf16.msra.mxu1 %v15708_v49  ;;  %v15713_v17 = vpack.c.bf16 %v15711_v11, %v15712_v24  ;;  %v15714_v26 = vpack.c.bf16 %v14536_v19, %v14531_v57  ;;  %v6178_v35 = vsel %vm1118_vm4, %v6175_v51, %v6177_v56  ;;  %v7160_v5 = vrot.slane %v14678_v23, 2  ;;  %v7795_v56 = vld [vmem:[%s14944_s11 + $0x18] sm:$0xff]  ;;  %v7800_v24 = vld [vmem:[%s14944_s11 + $0x40] sm:$0xff] }
0x22a1   :  { %v7026_v61 = vsel %vm1107_vm7, %v15710_v20, %v10560_v42  ;;  %v15715_v6 = vunpack.i.h.bf16 %v14252_v37  ;;  %v7139_v53 = vrot.slane %v5335_v60, 3  ;;  %v7268_v52 = vsel %vm226_vm0, %v7258_v1, %v7185_v44  ;;  %v7018_v37 = vpop.permute.xlu0 %7017  ;;  %v7798_v20 = vld [vmem:[%s14944_s11 + $0x30] sm:$0xff] }
0x22a2   :  { %10110 = vmatprep.subr.bf16.mxu1 %v15713_v17  ;;  %10149 = vmatpush1.bf16.msra.mxu0 %v15714_v26  ;;  %v7206_v27 = vsel %vm15716_vm11, %v1126_v18, %v7041_v4  ;;  %v7218_v63 = vsel %vm7208_vm2, %v7207_v25, %v7067_v7  ;;  %v7163_v57 = vrot.slane %v6178_v35, 2  ;;  %v7237_v19 = vsel %vm7230_vm6, %v7226_v8, %v7112_v16  ;;  %v7020_v10 = vpop.permute.xlu1 %7019  ;;  %v15718_v18 = vld [vmem:[#allocation68_spill] sm:$0xff]  ;;  %v15720_v8 = vld [vmem:[#allocation69_spill] sm:$0xff]  ;;  %v7796_v7 = vld [vmem:[%s14944_s11 + $0x20] sm:$0xff] }
0x22a3   :  { %v3655_v54 = vsel %vm1118_vm4, %v15715_v6, %v14441_v21  ;;  %10150 = vmatprep.subr.bf16.mxu0 %v15672_v13  ;;  %7715 = vmatprep.mubr.f32.mxu1 %v7268_v52  ;;  %v7217_v23 = vsel %vm7208_vm2, %v7206_v27, %v7066_v2  ;;  %v7229_v46 = vsel %vm7219_vm3, %v7218_v63, %v7091_v15  ;;  %v7184_v32 = vrot.slane %v7026_v61, 1  ;;  %v7799_v61 = vld [vmem:[%s14944_s11 + $0x38] sm:$0xff]  ;;  %v7801_v17 = vld [vmem:[%s14944_s11 + $0x48] sm:$0xff]  ;;  %v7802_v35 = vld [vmem:[%s14944_s11 + $0x50] sm:$0xff] }
0x22a4   :  { %v15717_v21 = vpack.c.bf16 %v14565_v33, %v14550_v58  ;;  %v7247_v38 = vsel %vm901_vm14, %v7237_v19, %v7136_v12  ;;  %v7090_v4 = vrot.slane %v3655_v54, 5  ;;  %v15719_v42 = vunpack.i.h.bf16 %v15718_v18  ;;  %v7804_v6 = vld [vmem:[%s14944_s11 + $0x60] sm:$0xff]  ;;  %v7806_v27 = vld [vmem:[%s14944_s11 + $0x70] sm:$0xff]  ;;  %v7807_v63 = vld [vmem:[%s14944_s11 + $0x78] sm:$0xff] }
0x22a5   :  { %v7240_v16 = vsel %vm7230_vm6, %v7229_v46, %v7115_v30  ;;  %v15722_v14 = vpack.c.bf16 %v15720_v8, %v15721_v47  ;;  %v7021_v58 = vsel %vm1118_vm4, %v7018_v37, %v7020_v10  ;;  %v15723_v33 = vunpack.i.h.bf16 %v14285_v31  ;;  %v7797_v30 = vld [vmem:[%s14944_s11 + $0x28] sm:$0xff] }
0x22a6   :  { %10112 = vmatpush3.bf16.msra.mxu1 %v15717_v21  ;;  %v4498_v55 = vsel %vm1118_vm4, %v15719_v42, %v14557_v43  ;;  %10152 = vmatpush1.bf16.msra.mxu0 %v10151_v3  ;;  %v7250_v60 = vsel %vm901_vm14, %v7240_v16, %v7139_v53  ;;  %v7187_v43 = vrot.slane %v7021_v58, 1  ;;  %v7228_v59 = vsel %vm7219_vm3, %v7217_v23, %v7090_v4  ;;  %vm10158_vm3 = vmpackc.low %vm7208_vm2, %vm10583_vm5  ;;  %v7805_v53 = vld [vmem:[%s14944_s11 + $0x68] sm:$0xff] }
0x22a7   :  { %10114 = vmatprep.subr.bf16.mxu1 %v15722_v14  ;;  %v5341_v12 = vsel %vm1118_vm4, %v15723_v33, %v14654_v39  ;;  %10153 = vmatprep.subr.bf16.mxu0 %v15672_v13  ;;  %v6184_v39 = vsel %vm1118_vm4, %v10556_v62, %v6175_v51  ;;  %v7257_v31 = vsel %vm246_vm1, %v7247_v38, %v7160_v5  ;;  %v7114_v1 = vrot.slane %v4498_v55, 4  ;;  %v7803_v5 = vld [vmem:[%s14944_s11 + $0x58] sm:$0xff]  ;;  %v8188_v38 = vld [vmem:[%s14945_s10] ss:$0 sm:$0xff] }
0x22a8   :  { %v7260_v3 = vsel %vm246_vm1, %v7250_v60, %v7163_v57  ;;  %v7027_v2 = vsel %vm1118_vm4, %v10561_v40, %v7018_v37  ;;  %v7267_v25 = vsel %vm226_vm0, %v7257_v31, %v7184_v32  ;;  %v7138_v45 = vrot.slane %v5341_v12, 3  ;;  %v7794_v40 = vld [vmem:[%s14944_s11 + $0x10] sm:$0xff]  ;;  %v7886_v12 = vld [vmem:[%s14946_s13] sm:$0xff]  ;;  %v7887_v60 = vld [vmem:[%s14946_s13 + $0x8] sm:$0xff] }
0x22a9   :  { %v7270_v15 = vsel %vm226_vm0, %v7260_v3, %v7187_v43  ;;  %v10157_v36 = vpack.c.bf16 %v7426_v0, %v7425_v34  ;;  %v7239_v62 = vsel %vm7230_vm6, %v7228_v59, %v7114_v1  ;;  %v7162_v51 = vrot.slane %v6184_v39, 2  ;;  %v7888_v31 = vld [vmem:[%s14946_s13 + $0x10] sm:$0xff]  ;;  %v7889_v3 = vld [vmem:[%s14946_s13 + $0x18] sm:$0xff] }
0x22aa   :  { %10116 = vmatpush3.bf16.msra.mxu1 %v10115_v22  ;;  %10155 = vmatpush1.bf16.msra.mxu0 %v10154_v28  ;;  %v7186_v48 = vrot.slane %v7027_v2, 1  ;;  %v7249_v29 = vsel %vm901_vm14, %v7239_v62, %v7138_v45  ;;  %v7792_v22 = vld [vmem:[%s14944_s11] sm:$0xff]  ;;  %v7793_v28 = vld [vmem:[%s14944_s11 + $0x8] sm:$0xff]  ;;  %v10164_v44 = vpack.c.bf16 %v7795_v56, %v7794_v40  ;;  %v10167_v41 = vpack.c.bf16 %v7797_v30, %v7796_v7  ;;  %v7892_v45 = vld [vmem:[%s14946_s13 + $0x30] sm:$0xff] }
0x22ab   :  { %8190 = vmatprep.mubr.msk.f32.mxu0 %vm7434_vm12, %v7270_v15  ;;  %10156 = vmatprep.subr.bf16.mxu0 %v15672_v13  ;;  %v7259_v9 = vsel %vm246_vm1, %v7249_v29, %v7162_v51  ;;  %v10161_v49 = vpack.c.bf16 %v7793_v28, %v7792_v22  ;;  %v10170_v11 = vpack.c.bf16 %v7799_v61, %v7798_v20  ;;  %v15724_v19 = vmov 0.0   ;;  %v7890_v2 = vld [vmem:[%s14946_s13 + $0x20] sm:$0xff]  ;;  %v7899_v40 = vld [vmem:[%s14946_s13 + $0x68] sm:$0xff]  ;;  %v7900_v56 = vld [vmem:[%s14946_s13 + $0x70] sm:$0xff] }
0x22ac   :  { %10160 = vmatprep.subr.bf16.mxu1 %v15672_v13  ;;  %v7269_v50 = vsel %vm226_vm0, %v7259_v9, %v7186_v48  ;;  %v10173_v26 = vpack.c.bf16 %v7801_v17, %v7800_v24  ;;  %v10176_v54 = vpack.c.bf16 %v7803_v5, %v7802_v35  ;;  %v10179_v52 = vpack.c.bf16 %v7805_v53, %v7804_v6  ;;  %v7894_v51 = vld [vmem:[%s14946_s13 + $0x40] sm:$0xff]  ;;  %v7895_v48 = vld [vmem:[%s14946_s13 + $0x48] sm:$0xff]  ;;  %v7896_v9 = vld [vmem:[%s14946_s13 + $0x50] sm:$0xff] }
0x22ad   :  { %7716 = vmatmul.mubr.f32.vlgmr.msra.gmra.mrb[92].mxu1 %v7267_v25  ;;  %v10182_v57 = vpack.c.bf16 %v7807_v63, %v7806_v27  ;;  %vm10593_vm0 = vmmov 0   ;;  %v10185_v59 = vpack.c.bf16 %v7887_v60, %v7886_v12  ;;  %v10188_v1 = vpack.c.bf16 %v7889_v3, %v7888_v31  ;;  %v7891_v25 = vld [vmem:[%s14946_s13 + $0x28] sm:$0xff]  ;;  %v7898_v28 = vld [vmem:[%s14946_s13 + $0x60] sm:$0xff] }
0x22ae   :  { %10159 = vmatpush1.bf16.msk.msra.mxu0 %vm10158_vm3, %v10157_v36  ;;  %10162 = vmatpush3.bf16.msra.mxu1 %v10161_v49  ;;  %v10191_v15 = vpack.c.bf16 %v7891_v25, %v7890_v2  ;;  %v7893_v36 = vld [vmem:[%s14946_s13 + $0x38] sm:$0xff]  ;;  %v10197_v29 = vpack.c.bf16 %v7895_v48, %v7894_v51  ;;  %v10203_v49 = vpack.c.bf16 %v7899_v40, %v7898_v28  ;;  %v8191_v30 = vld [vmem:[%s14947_s12] ss:$0 sm:$0xff] }
0x22af   :  { %10163 = vmatprep.subr.bf16.mxu1 %v15672_v13  ;;  %8399 = vmatprep.mubr.msk.f32.mxu1 %vm10593_vm0, %v15724_v19  ;;  %v10194_v62 = vpack.c.bf16 %v7893_v36, %v7892_v45 }
0x22b1   :  { %7786 = vmatmul.mubr.f32.vlgmr.msra.gmra.mrb[108].mxu0 %v7269_v50  ;;  %v7897_v50 = vld [vmem:[%s14946_s13 + $0x58] sm:$0xff] }
0x22b2   :  { %10165 = vmatpush3.bf16.msra.mxu1 %v10164_v44  ;;  %v10200_v22 = vpack.c.bf16 %v7897_v50, %v7896_v9  ;;  %v7901_v44 = vld [vmem:[%s14946_s13 + $0x78] sm:$0xff] }
0x22b3   :  { %10166 = vmatprep.subr.bf16.mxu1 %v15672_v13  ;;  %v10206_v7 = vpack.c.bf16 %v7901_v44, %v7900_v56 }
0x22b6   :  { %10168 = vmatpush3.bf16.msra.mxu1 %v10167_v41 }
0x22b7   :  { %10169 = vmatprep.subr.bf16.mxu1 %v15672_v13 }
0x22ba   :  { %10171 = vmatpush3.bf16.msra.mxu1 %v10170_v11 }
0x22bb   :  { %10172 = vmatprep.subr.bf16.mxu1 %v15672_v13 }
0x22be   :  { %10174 = vmatpush3.bf16.msra.mxu1 %v10173_v26 }
0x22bf   :  { %10175 = vmatprep.subr.bf16.mxu1 %v15672_v13 }
0x22c2   :  { %10177 = vmatpush3.bf16.msra.mxu1 %v10176_v54 }
0x22c3   :  { %10178 = vmatprep.subr.bf16.mxu1 %v15672_v13 }
0x22c6   :  { %10180 = vmatpush3.bf16.msra.mxu1 %v10179_v52 }
0x22c7   :  { %10181 = vmatprep.subr.bf16.mxu1 %v15672_v13 }
0x22ca   :  { %10183 = vmatpush3.bf16.msra.mxu1 %v10182_v57 }
0x22cb   :  { %10184 = vmatprep.subr.bf16.mxu1 %v15672_v13 }
0x2337   :  { %v8225_v23 = vpop.f32.mrb[88].mxu1 }
0x2338   :  { %v8226_v46 = vpop.f32.mrb[89].mxu1 }
0x2339   :  { %v8227_v37 = vadd.f32 %v8226_v46, %v8225_v23 }
0x233b   :  { %v7508_v42 = vadd.f32 %v8227_v37, %v8188_v38 }
0x2347   :  { %v8295_v32 = vpop.f32.mrb[106].mxu0 }
0x2348   :  { %v8296_v21 = vpop.f32.mrb[107].mxu0 }
0x2349   :  { %v8297_v10 = vadd.f32 %v8296_v21, %v8295_v32 }
0x235c   :  { %v8260_v4 = vpop.f32.mrb[90].mxu1 }
0x235d   :  { %v8261_v18 = vpop.f32.mrb[91].mxu1 }
0x235e   :  { %v8262_v55 = vadd.f32 %v8261_v18, %v8260_v4 }
0x2360   :  { %v7578_v16 = vadd.f32 %v8262_v55, %v7508_v42 }
0x2362   :  { %v7648_v8 = vadd.f32 %v8297_v10, %v7578_v16 }
0x2380   :  { %v8330_v47 = vpop.f32.mrb[92].mxu1 }
0x2381   :  { %v8331_v14 = vpop.f32.mrb[93].mxu1 }
0x2382   :  { %v8332_v58 = vadd.f32 %v8331_v14, %v8330_v47 }
0x2384   :  { %v7718_v33 = vadd.f32 %v8332_v58, %v7648_v8  ;;  %v7787_v43 = vpop.f32.mrb[108].mxu0 }
0x2385   :  { %v7789_v0 = vpop.f32.mrb[109].mxu0 }
0x2386   :  { %v7788_v34 = vadd.f32 %v7787_v43, %v7718_v33 }
0x2388   :  { %v7791_v39 = vmax.f32 %v7788_v34, 0.0 }
0x238a   :  { %8400 = vmatmul.mubr.f32.vlgmr.msra.gmra.mrb[94].mxu1 %v7791_v39 }
0x238b   :  { %10186 = vmatpush3.bf16.msra.mxu1 %v10185_v59  ;;  %8434 = vmatprep.mubr.msk.f32.mxu1 %vm10593_vm0, %v15724_v19 }
0x238c   :  { %10187 = vmatprep.subr.bf16.mxu1 %v15672_v13 }
0x238f   :  { %10189 = vmatpush3.bf16.msra.mxu1 %v10188_v1 }
0x2390   :  { %10190 = vmatprep.subr.bf16.mxu1 %v15672_v13 }
0x2393   :  { %10192 = vmatpush3.bf16.msra.mxu1 %v10191_v15 }
0x2394   :  { %10193 = vmatprep.subr.bf16.mxu1 %v15672_v13 }
0x2397   :  { %10195 = vmatpush3.bf16.msra.mxu1 %v10194_v62 }
0x2398   :  { %10196 = vmatprep.subr.bf16.mxu1 %v15672_v13 }
0x239b   :  { %10198 = vmatpush3.bf16.msra.mxu1 %v10197_v29 }
0x239c   :  { %10199 = vmatprep.subr.bf16.mxu1 %v15672_v13 }
0x239f   :  { %10201 = vmatpush3.bf16.msra.mxu1 %v10200_v22 }
0x23a0   :  { %10202 = vmatprep.subr.bf16.mxu1 %v15672_v13 }
0x23a3   :  { %10204 = vmatpush3.bf16.msra.mxu1 %v10203_v49 }
0x23a4   :  { %10205 = vmatprep.subr.bf16.mxu1 %v15672_v13  ;;  %v8192_v13 = vld [vmem:[%s14948_s14] ss:$0 sm:$0xff] }
0x23a7   :  { %10207 = vmatpush3.bf16.msra.mxu1 %v10206_v7 }
0x245d   :  { %v7881_v41 = vpop.f32.mrb[94].mxu1 }
0x245e   :  { %v7882_v20 = vadd.f32 %v8191_v30, %v7881_v41  ;;  %v8401_v61 = vpop.f32.mrb[95].mxu1 }
0x2460   :  { %v7885_v11 = vmax.f32 %v7882_v20, 0.0 }
0x2462   :  { %8435 = vmatmul.mubr.f32.vlgmr.msra.gmra.mrb[96].mxu1 %v7885_v11 }
0x2535   :  { %v7975_v24 = vpop.f32.mrb[96].mxu1 }
0x2536   :  { %v7976_v17 = vadd.f32 %v8192_v13, %v7975_v24  ;;  %v8436_v26 = vpop.f32.mrb[97].mxu1 }
0x2538   :  { %7979 = vst [vmem:[%s14949_s15] sm:$0xff] %v7976_v17 }

</bundles_post_ra>
